<compile_context>
chip_gen: v7x
topology: tpu7x:2x2x1
jax: 0.10.0
libtpu: 0.0.40
codegen_flags: <defaults>
</compile_context>

<pallas_src>
from functools import partial

import jax
import jax.numpy as jnp
from jax.experimental import pallas as pl
from jax.experimental.pallas import tpu as pltpu

KMAX = 8  # largest conv window (7) + 1 pad shift


def mimick_cnn3_kernel(x_ref, wconv_ref, wfp_ref, wmlp_ref, b_ref, out_ref):
    """Fused convs (shifted-matmul im2col) + sigmoid + featloc + highway MLP."""
    xp = x_ref[...]                           # (TB, L+7, D) f32, zero padded
    TB, Lp, D = xp.shape
    L = Lp - (KMAX - 1)
    E = out_ref.shape[1]
    CIN = wconv_ref.shape[1]                  # 6*F padded to a multiple of 128

    wconv = wconv_ref[...]                    # (KMAX*D, CIN)

    # ---- im2col as KMAX shifted matmuls accumulated in f32 (no lane concat) ----
    conv = jnp.zeros((TB * L, CIN), jnp.float32)
    for i in range(KMAX):
        xi = xp[:, i:i + L, :].reshape(TB * L, D)
        conv = conv + jnp.dot(xi, wconv[i * D:(i + 1) * D, :],
                              preferred_element_type=jnp.float32)

    # Padded channels / invalid positions give finite sigmoids, masked by the
    # corresponding zero rows of wfp below.
    sig = jax.nn.sigmoid(conv)                # (TB*L, CIN) -- full vreg rows

    # ---- featloc: Linear + Sigmoid (wfp rows pre-permuted / zero-masked) ----
    b_all = b_ref[...]                        # (1, 4E) = [bf | b1 | bt | b2]
    flat = sig.reshape(TB, L * CIN)           # whole-vreg repack (CIN = 128k)
    feat = jax.nn.sigmoid(
        jnp.dot(flat, wfp_ref[...], preferred_element_type=jnp.float32)
        + b_all[:, :E])

    # ---- mlp1: Linear + Hardtanh(-3, 3)  (mtp = 1) ----
    wmlp = wmlp_ref[...]                      # (E, 3E) = [w1 | wt | w2]
    out_cnn = jnp.clip(
        jnp.dot(feat, wmlp[:, :E], preferred_element_type=jnp.float32)
        + b_all[:, E:2 * E], -3.0, 3.0)

    # ---- t (Linear+ReLU) and mlp2 (Linear+Hardtanh) fused in one matmul ----
    tm = (jnp.dot(out_cnn, wmlp[:, E:], preferred_element_type=jnp.float32)
          + b_all[:, 2 * E:4 * E])            # (TB, 2E)
    t = jax.nn.relu(tm[:, :E])
    m2 = jnp.clip(tm[:, E:], -3.0, 3.0)

    # out = t * mlp2(out_cnn) + (1 - t) * out_cnn
    out_ref[...] = t * m2 + (1.0 - t) * out_cnn


def pack_mimick_cnn3_params(conv_ws_torch, wf, bf, w1, b1, w2, b2, wt, bt,
                            char_max_len):
    """Pack torch-layout weights into 4 lane-dense slabs.  Call ONCE at load time.

    conv_ws_torch: six arrays, torch Conv2d shape (F, 1, k, D), k = 2..7.
    wf: (F*99, E) featloc weight (already (in, out)); bf/b1/b2/bt: (E,);
    w1/w2/wt: (E, E) weights ((in, out)).
    """
    F = conv_ws_torch[0].shape[0]
    D = conv_ws_torch[0].shape[-1]
    E = wf.shape[1]
    L = char_max_len
    CIN = 6 * F
    CIN_PAD = -(-CIN // 128) * 128            # pad conv channels to full vregs

    # Conv weight slab (KMAX*D, CIN_PAD): rows >= k*D and cols >= 6F are zero.
    wconv = jnp.zeros((KMAX * D, CIN_PAD), jnp.float32)
    for idx, k in enumerate(range(2, 8)):
        wk = conv_ws_torch[idx].reshape(F, k * D).T              # (k*D, F)
        wconv = wconv.at[:k * D, idx * F:(idx + 1) * F].set(wk)

    # featloc weight, rows permuted to the kernel's (t, channel) layout; rows
    # for invalid positions (t >= L-k+1) and padded channels stay zero (mask).
    wfp = jnp.zeros((L, CIN_PAD, E), jnp.float32)
    off = 0
    for idx, k in enumerate(range(2, 8)):
        T = L - k + 1
        blk = wf[off:off + F * T].reshape(F, T, E).transpose(1, 0, 2)  # (T,F,E)
        wfp = wfp.at[:T, idx * F:(idx + 1) * F, :].set(blk)
        off += F * T
    wfp = wfp.reshape(L * CIN_PAD, E)

    wmlp = jnp.concatenate([w1, wt, w2], axis=1)                 # (E, 3E)
    ball = jnp.concatenate([bf, b1, bt, b2]).reshape(1, 4 * E)   # (1, 4E)
    return wconv, wfp, wmlp, ball


@partial(jax.jit, static_argnames=("tb",))
def mimick_cnn3_forward(x, wconv, wfp, wmlp, ball, *, tb=16):
    """x: (B, L, D) embedded chars; w*: preformed slabs from pack_...()."""
    B, L, D = x.shape
    E = wmlp.shape[0]
    Lp = L + KMAX - 1
    CIN_PAD = wconv.shape[1]

    TB = min(tb, max(8, B))                   # batch tile (multiple of 8)
    TB = -(-TB // 8) * 8
    nsteps = pl.cdiv(B, TB)
    Bp = nsteps * TB

    # Zero-pad batch to the tile and the char axis so every shift 0..7 is a
    # valid L-long window.
    x_pad = jnp.pad(x, ((0, Bp - B), (0, KMAX - 1), (0, 0)))     # (Bp, L+7, D)

    flops = (2 * Bp * L * (KMAX * D) * CIN_PAD       # fused conv matmuls
             + 2 * Bp * (L * CIN_PAD) * E            # featloc
             + 2 * Bp * E * E                        # mlp1
             + 2 * Bp * E * (2 * E))                 # fused t | mlp2
    transcendentals = Bp * L * CIN_PAD + Bp * E      # sigmoids
    bytes_accessed = 4 * (x_pad.size + wconv.size + wfp.size
                          + wmlp.size + ball.size + Bp * E)

    out = pl.pallas_call(
        mimick_cnn3_kernel,
        out_shape=jax.ShapeDtypeStruct((Bp, E), jnp.float32),
        grid=(nsteps,),
        in_specs=[
            pl.BlockSpec((TB, Lp, D), lambda i: (i, 0, 0)),      # x: batch-tiled
            pl.BlockSpec(wconv.shape, lambda i: (0, 0)),         # weights stay
            pl.BlockSpec(wfp.shape, lambda i: (0, 0)),           # resident across
            pl.BlockSpec(wmlp.shape, lambda i: (0, 0)),          # grid steps
            pl.BlockSpec(ball.shape, lambda i: (0, 0)),
        ],
        out_specs=pl.BlockSpec((TB, E), lambda i: (i, 0)),
        compiler_params=pltpu.CompilerParams(
            dimension_semantics=("parallel",)),                  # v7x: both TCs
        cost_estimate=pl.CostEstimate(flops=int(flops),
                                      transcendentals=int(transcendentals),
                                      bytes_accessed=int(bytes_accessed)),
    )(x_pad, wconv, wfp, wmlp, ball)
    return out[:B]


def _reference(x, conv_ws_flat, wf, bf, w1, b1, w2, b2, wt, bt):
    """Pure-JAX reference mirroring the PyTorch forward (sanity check)."""
    B, L, D = x.shape
    pieces = []
    for kk, w in zip(range(2, 8), conv_ws_flat):
        T = L - kk + 1
        patches = jnp.concatenate([x[:, i:i + T, :] for i in range(kk)], axis=-1)
        sig = jax.nn.sigmoid(jnp.einsum('btc,cf->btf', patches, w))   # (B, T, F)
        pieces.append(sig.transpose(0, 2, 1).reshape(B, -1))          # F-major flatten
    concat = jnp.concatenate(pieces, axis=1)
    feat = jax.nn.sigmoid(concat @ wf + bf)
    out_cnn = jnp.clip(feat @ w1 + b1, -3.0, 3.0)
    t = jax.nn.relu(out_cnn @ wt + bt)
    m2 = jnp.clip(out_cnn @ w2 + b2, -3.0, 3.0)
    return t * m2 + (1.0 - t) * out_cnn


if __name__ == "__main__":
    # Small, forward-consistent sizes (L must be 20 so that 6L - 21 == 99).
    B = 32                # batch (>= 2 grid steps at TB=16: exercises pipelining)
    VOCAB = 50            # num_embeddings
    D = 16                # char_emb_dim
    L = 20                # char_max_len
    F = 8                 # num_feature
    E = 32                # emb_dim

    key = jax.random.PRNGKey(0)
    keys = jax.random.split(key, 16)

    # Embedding table + integer char ids (torch input shape (B, 1, L)).
    emb_table = jax.random.normal(keys[0], (VOCAB, D), jnp.float32) * 0.5
    inputs = jax.random.randint(keys[1], (B, 1, L), 0, VOCAB, dtype=jnp.int32)

    # Conv2d weights: torch shape (F, 1, k, D), no bias.
    conv_ws_torch, conv_ws_flat = [], []
    for i, kk in enumerate(range(2, 8)):
        w = jax.random.normal(keys[2 + i], (F, 1, kk, D), jnp.float32) * 0.1
        conv_ws_torch.append(w)
        conv_ws_flat.append(w.reshape(F, kk * D).T)              # (k*D, F)
    conv_ws_torch = tuple(conv_ws_torch)
    conv_ws_flat = tuple(conv_ws_flat)

    # Linear layers: torch Linear weight is (out, in); pass transposed + 1D bias.
    def linear(kw, kb, din, dout):
        W = jax.random.normal(kw, (dout, din), jnp.float32) * 0.05
        b = jax.random.normal(kb, (dout,), jnp.float32) * 0.05
        return W.T, b

    wf, bf = linear(keys[8], keys[9], F * 99, E)      # featloc
    w1, b1 = linear(keys[10], keys[11], E, E)         # mlp1
    w2, b2 = linear(keys[12], keys[13], E, E)         # mlp2
    wt, bt = linear(keys[14], keys[15], E, E)         # t

    # Pack weights ONCE (hoisted out of the per-call path).
    packed = pack_mimick_cnn3_params(conv_ws_torch, wf, bf, w1, b1, w2, b2,
                                     wt, bt, char_max_len=L)
    packed = jax.tree_util.tree_map(jax.block_until_ready, packed)

    # TODO(synk): embedding gather is data-dependent; kept in plain JAX as glue
    # (could be fused via PrefetchScalarGridSpec + manual row DMA if B*L grows).
    x = emb_table[inputs].astype(jnp.float32)         # (B, 1, L, D)
    x = jnp.squeeze(x, axis=1)                        # (B, L, D)

    out = mimick_cnn3_forward(x, *packed, tb=16)
    out = jax.block_until_ready(out)

    ref = _reference(x, conv_ws_flat, wf, bf, w1, b1, w2, b2, wt, bt)
    assert out.shape == (B, E)
    assert jnp.all(jnp.isfinite(out))
    assert jnp.max(jnp.abs(out - ref)) < 1e-3, "mismatch vs JAX reference"

    print("KERNEL_OK")
</pallas_src>

<mosaic_0001>
module attributes {stable_mosaic.version = 11 : i64} {
  func.func @mimick_cnn3_kernel(%arg0: i32, %arg1: memref<16x27x16xf32, #tpu.memory_space<vmem>>, %arg2: memref<128x128xf32, #tpu.memory_space<vmem>>, %arg3: memref<2560x32xf32, #tpu.memory_space<vmem>>, %arg4: memref<32x96xf32, #tpu.memory_space<vmem>>, %arg5: memref<1x128xf32, #tpu.memory_space<vmem>>, %arg6: memref<16x32xf32, #tpu.memory_space<vmem>>) attributes {dimension_semantics = [#tpu.dimension_semantics<parallel>], iteration_bounds = array<i64: 2>, scalar_prefetch = 0 : i64, scratch_operands = 0 : i64, tpu.core_type = #tpu.core_type<tc>, window_params = [{transform_indices = @transform_0, window_bounds = array<i64: 16, 27, 16>}, {pipeline_mode = #tpu.pipeline_mode<synchronous>, transform_indices = @transform_1, window_bounds = array<i64: 128, 128>}, {pipeline_mode = #tpu.pipeline_mode<synchronous>, transform_indices = @transform_2, window_bounds = array<i64: 2560, 32>}, {pipeline_mode = #tpu.pipeline_mode<synchronous>, transform_indices = @transform_3, window_bounds = array<i64: 32, 96>}, {pipeline_mode = #tpu.pipeline_mode<synchronous>, transform_indices = @transform_4, window_bounds = array<i64: 1, 128>}, {transform_indices = @transform_5, window_bounds = array<i64: 16, 32>}]} {
    %c0 = arith.constant 0 : index
    %c0_0 = arith.constant 0 : index
    %c0_1 = arith.constant 0 : index
    %0 = vector.load %arg1[%c0, %c0_0, %c0_1] : memref<16x27x16xf32, #tpu.memory_space<vmem>>, vector<16x27x16xf32>
    %c0_2 = arith.constant 0 : index
    %c0_3 = arith.constant 0 : index
    %1 = vector.load %arg2[%c0_2, %c0_3] : memref<128x128xf32, #tpu.memory_space<vmem>>, vector<128x128xf32>
    %cst = arith.constant 0.000000e+00 : f32
    %2 = vector.broadcast %cst : f32 to vector<320x128xf32>
    %3 = vector.extract_strided_slice %0 {offsets = [0, 0, 0], sizes = [16, 20, 16], strides = [1, 1, 1]} : vector<16x27x16xf32> to vector<16x20x16xf32>
    %4 = vector.shape_cast %3 : vector<16x20x16xf32> to vector<320x16xf32>
    %5 = vector.extract_strided_slice %1 {offsets = [0, 0], sizes = [16, 128], strides = [1, 1]} : vector<128x128xf32> to vector<16x128xf32>
    %cst_4 = arith.constant dense<0.000000e+00> : vector<320x128xf32>
    %6 = tpu.matmul %4, %5, %cst_4 {dimension_numbers = #tpu.dot_dimension_numbers<[1], [0], [0], [1], [0, 0, 1, 1], [], []>} : vector<320x16xf32>, vector<16x128xf32>, vector<320x128xf32> -> vector<320x128xf32>
    %7 = arith.addf %2, %6 : vector<320x128xf32>
    %8 = vector.extract_strided_slice %0 {offsets = [0, 1, 0], sizes = [16, 20, 16], strides = [1, 1, 1]} : vector<16x27x16xf32> to vector<16x20x16xf32>
    %9 = vector.shape_cast %8 : vector<16x20x16xf32> to vector<320x16xf32>
    %10 = vector.extract_strided_slice %1 {offsets = [16, 0], sizes = [16, 128], strides = [1, 1]} : vector<128x128xf32> to vector<16x128xf32>
    %cst_5 = arith.constant dense<0.000000e+00> : vector<320x128xf32>
    %11 = tpu.matmul %9, %10, %cst_5 {dimension_numbers = #tpu.dot_dimension_numbers<[1], [0], [0], [1], [0, 0, 1, 1], [], []>} : vector<320x16xf32>, vector<16x128xf32>, vector<320x128xf32> -> vector<320x128xf32>
    %12 = arith.addf %7, %11 : vector<320x128xf32>
    %13 = vector.extract_strided_slice %0 {offsets = [0, 2, 0], sizes = [16, 20, 16], strides = [1, 1, 1]} : vector<16x27x16xf32> to vector<16x20x16xf32>
    %14 = vector.shape_cast %13 : vector<16x20x16xf32> to vector<320x16xf32>
    %15 = vector.extract_strided_slice %1 {offsets = [32, 0], sizes = [16, 128], strides = [1, 1]} : vector<128x128xf32> to vector<16x128xf32>
    %cst_6 = arith.constant dense<0.000000e+00> : vector<320x128xf32>
    %16 = tpu.matmul %14, %15, %cst_6 {dimension_numbers = #tpu.dot_dimension_numbers<[1], [0], [0], [1], [0, 0, 1, 1], [], []>} : vector<320x16xf32>, vector<16x128xf32>, vector<320x128xf32> -> vector<320x128xf32>
    %17 = arith.addf %12, %16 : vector<320x128xf32>
    %18 = vector.extract_strided_slice %0 {offsets = [0, 3, 0], sizes = [16, 20, 16], strides = [1, 1, 1]} : vector<16x27x16xf32> to vector<16x20x16xf32>
    %19 = vector.shape_cast %18 : vector<16x20x16xf32> to vector<320x16xf32>
    %20 = vector.extract_strided_slice %1 {offsets = [48, 0], sizes = [16, 128], strides = [1, 1]} : vector<128x128xf32> to vector<16x128xf32>
    %cst_7 = arith.constant dense<0.000000e+00> : vector<320x128xf32>
    %21 = tpu.matmul %19, %20, %cst_7 {dimension_numbers = #tpu.dot_dimension_numbers<[1], [0], [0], [1], [0, 0, 1, 1], [], []>} : vector<320x16xf32>, vector<16x128xf32>, vector<320x128xf32> -> vector<320x128xf32>
    %22 = arith.addf %17, %21 : vector<320x128xf32>
    %23 = vector.extract_strided_slice %0 {offsets = [0, 4, 0], sizes = [16, 20, 16], strides = [1, 1, 1]} : vector<16x27x16xf32> to vector<16x20x16xf32>
    %24 = vector.shape_cast %23 : vector<16x20x16xf32> to vector<320x16xf32>
    %25 = vector.extract_strided_slice %1 {offsets = [64, 0], sizes = [16, 128], strides = [1, 1]} : vector<128x128xf32> to vector<16x128xf32>
    %cst_8 = arith.constant dense<0.000000e+00> : vector<320x128xf32>
    %26 = tpu.matmul %24, %25, %cst_8 {dimension_numbers = #tpu.dot_dimension_numbers<[1], [0], [0], [1], [0, 0, 1, 1], [], []>} : vector<320x16xf32>, vector<16x128xf32>, vector<320x128xf32> -> vector<320x128xf32>
    %27 = arith.addf %22, %26 : vector<320x128xf32>
    %28 = vector.extract_strided_slice %0 {offsets = [0, 5, 0], sizes = [16, 20, 16], strides = [1, 1, 1]} : vector<16x27x16xf32> to vector<16x20x16xf32>
    %29 = vector.shape_cast %28 : vector<16x20x16xf32> to vector<320x16xf32>
    %30 = vector.extract_strided_slice %1 {offsets = [80, 0], sizes = [16, 128], strides = [1, 1]} : vector<128x128xf32> to vector<16x128xf32>
    %cst_9 = arith.constant dense<0.000000e+00> : vector<320x128xf32>
    %31 = tpu.matmul %29, %30, %cst_9 {dimension_numbers = #tpu.dot_dimension_numbers<[1], [0], [0], [1], [0, 0, 1, 1], [], []>} : vector<320x16xf32>, vector<16x128xf32>, vector<320x128xf32> -> vector<320x128xf32>
    %32 = arith.addf %27, %31 : vector<320x128xf32>
    %33 = vector.extract_strided_slice %0 {offsets = [0, 6, 0], sizes = [16, 20, 16], strides = [1, 1, 1]} : vector<16x27x16xf32> to vector<16x20x16xf32>
    %34 = vector.shape_cast %33 : vector<16x20x16xf32> to vector<320x16xf32>
    %35 = vector.extract_strided_slice %1 {offsets = [96, 0], sizes = [16, 128], strides = [1, 1]} : vector<128x128xf32> to vector<16x128xf32>
    %cst_10 = arith.constant dense<0.000000e+00> : vector<320x128xf32>
    %36 = tpu.matmul %34, %35, %cst_10 {dimension_numbers = #tpu.dot_dimension_numbers<[1], [0], [0], [1], [0, 0, 1, 1], [], []>} : vector<320x16xf32>, vector<16x128xf32>, vector<320x128xf32> -> vector<320x128xf32>
    %37 = arith.addf %32, %36 : vector<320x128xf32>
    %38 = vector.extract_strided_slice %0 {offsets = [0, 7, 0], sizes = [16, 20, 16], strides = [1, 1, 1]} : vector<16x27x16xf32> to vector<16x20x16xf32>
    %39 = vector.shape_cast %38 : vector<16x20x16xf32> to vector<320x16xf32>
    %40 = vector.extract_strided_slice %1 {offsets = [112, 0], sizes = [16, 128], strides = [1, 1]} : vector<128x128xf32> to vector<16x128xf32>
    %cst_11 = arith.constant dense<0.000000e+00> : vector<320x128xf32>
    %41 = tpu.matmul %39, %40, %cst_11 {dimension_numbers = #tpu.dot_dimension_numbers<[1], [0], [0], [1], [0, 0, 1, 1], [], []>} : vector<320x16xf32>, vector<16x128xf32>, vector<320x128xf32> -> vector<320x128xf32>
    %42 = arith.addf %37, %41 : vector<320x128xf32>
    %43 = arith.negf %42 : vector<320x128xf32>
    %44 = math.exp %43 : vector<320x128xf32>
    %cst_12 = arith.constant 1.000000e+00 : f32
    %45 = vector.broadcast %cst_12 : f32 to vector<320x128xf32>
    %46 = arith.addf %45, %44 : vector<320x128xf32>
    %47 = arith.divf %45, %46 : vector<320x128xf32>
    %c0_13 = arith.constant 0 : index
    %c0_14 = arith.constant 0 : index
    %48 = vector.load %arg5[%c0_13, %c0_14] : memref<1x128xf32, #tpu.memory_space<vmem>>, vector<1x128xf32>
    %49 = vector.shape_cast %47 : vector<320x128xf32> to vector<16x2560xf32>
    %c0_15 = arith.constant 0 : index
    %c0_16 = arith.constant 0 : index
    %50 = vector.load %arg3[%c0_15, %c0_16] : memref<2560x32xf32, #tpu.memory_space<vmem>>, vector<2560x32xf32>
    %cst_17 = arith.constant dense<0.000000e+00> : vector<16x32xf32>
    %51 = tpu.matmul %49, %50, %cst_17 {dimension_numbers = #tpu.dot_dimension_numbers<[1], [0], [0], [1], [0, 0, 1, 1], [], []>} : vector<16x2560xf32>, vector<2560x32xf32>, vector<16x32xf32> -> vector<16x32xf32>
    %52 = vector.extract_strided_slice %48 {offsets = [0, 0], sizes = [1, 32], strides = [1, 1]} : vector<1x128xf32> to vector<1x32xf32>
    %53 = vector.broadcast %52 : vector<1x32xf32> to vector<16x32xf32>
    %54 = arith.addf %51, %53 : vector<16x32xf32>
    %55 = arith.negf %54 : vector<16x32xf32>
    %56 = math.exp %55 : vector<16x32xf32>
    %cst_18 = arith.constant 1.000000e+00 : f32
    %57 = vector.broadcast %cst_18 : f32 to vector<16x32xf32>
    %58 = arith.addf %57, %56 : vector<16x32xf32>
    %59 = arith.divf %57, %58 : vector<16x32xf32>
    %c0_19 = arith.constant 0 : index
    %c0_20 = arith.constant 0 : index
    %60 = vector.load %arg4[%c0_19, %c0_20] : memref<32x96xf32, #tpu.memory_space<vmem>>, vector<32x96xf32>
    %61 = vector.extract_strided_slice %60 {offsets = [0, 0], sizes = [32, 32], strides = [1, 1]} : vector<32x96xf32> to vector<32x32xf32>
    %cst_21 = arith.constant dense<0.000000e+00> : vector<16x32xf32>
    %62 = tpu.matmul %59, %61, %cst_21 {dimension_numbers = #tpu.dot_dimension_numbers<[1], [0], [0], [1], [0, 0, 1, 1], [], []>} : vector<16x32xf32>, vector<32x32xf32>, vector<16x32xf32> -> vector<16x32xf32>
    %63 = vector.extract_strided_slice %48 {offsets = [0, 32], sizes = [1, 32], strides = [1, 1]} : vector<1x128xf32> to vector<1x32xf32>
    %64 = vector.broadcast %63 : vector<1x32xf32> to vector<16x32xf32>
    %65 = arith.addf %62, %64 : vector<16x32xf32>
    %cst_22 = arith.constant -3.000000e+00 : f32
    %cst_23 = arith.constant 3.000000e+00 : f32
    %66 = vector.broadcast %cst_22 : f32 to vector<16x32xf32>
    %67 = arith.maximumf %66, %65 : vector<16x32xf32>
    %68 = vector.broadcast %cst_23 : f32 to vector<16x32xf32>
    %69 = arith.minimumf %68, %67 : vector<16x32xf32>
    %70 = vector.extract_strided_slice %60 {offsets = [0, 32], sizes = [32, 64], strides = [1, 1]} : vector<32x96xf32> to vector<32x64xf32>
    %cst_24 = arith.constant dense<0.000000e+00> : vector<16x64xf32>
    %71 = tpu.matmul %69, %70, %cst_24 {dimension_numbers = #tpu.dot_dimension_numbers<[1], [0], [0], [1], [0, 0, 1, 1], [], []>} : vector<16x32xf32>, vector<32x64xf32>, vector<16x64xf32> -> vector<16x64xf32>
    %72 = vector.extract_strided_slice %48 {offsets = [0, 64], sizes = [1, 64], strides = [1, 1]} : vector<1x128xf32> to vector<1x64xf32>
    %73 = vector.broadcast %72 : vector<1x64xf32> to vector<16x64xf32>
    %74 = arith.addf %71, %73 : vector<16x64xf32>
    %75 = vector.extract_strided_slice %74 {offsets = [0, 0], sizes = [16, 32], strides = [1, 1]} : vector<16x64xf32> to vector<16x32xf32>
    %cst_25 = arith.constant 0.000000e+00 : f32
    %76 = vector.broadcast %cst_25 : f32 to vector<16x32xf32>
    %77 = arith.maximumf %75, %76 : vector<16x32xf32>
    %78 = vector.extract_strided_slice %74 {offsets = [0, 32], sizes = [16, 32], strides = [1, 1]} : vector<16x64xf32> to vector<16x32xf32>
    %cst_26 = arith.constant -3.000000e+00 : f32
    %cst_27 = arith.constant 3.000000e+00 : f32
    %79 = vector.broadcast %cst_26 : f32 to vector<16x32xf32>
    %80 = arith.maximumf %79, %78 : vector<16x32xf32>
    %81 = vector.broadcast %cst_27 : f32 to vector<16x32xf32>
    %82 = arith.minimumf %81, %80 : vector<16x32xf32>
    %83 = arith.mulf %77, %82 : vector<16x32xf32>
    %cst_28 = arith.constant 1.000000e+00 : f32
    %84 = vector.broadcast %cst_28 : f32 to vector<16x32xf32>
    %85 = arith.subf %84, %77 : vector<16x32xf32>
    %86 = arith.mulf %85, %69 : vector<16x32xf32>
    %87 = arith.addf %83, %86 : vector<16x32xf32>
    %c0_29 = arith.constant 0 : index
    %c0_30 = arith.constant 0 : index
    %88 = vector.load %arg6[%c0_29, %c0_30] : memref<16x32xf32, #tpu.memory_space<vmem>>, vector<16x32xf32>
    tpu.vector_store %arg6[%c0_29, %c0_30], %87 {strides = array<i32>} : memref<16x32xf32, #tpu.memory_space<vmem>>, vector<16x32xf32>,
    return
  }
  func.func @transform_0(%arg0: i32) -> (i32, i32, i32) {
    %c0_i32 = arith.constant 0 : i32
    %c0_i32_0 = arith.constant 0 : i32
    %c0_i32_1 = arith.constant 0 : i32
    return %arg0, %c0_i32, %c0_i32_0 : i32, i32, i32
  }
  func.func @transform_1(%arg0: i32) -> (i32, i32) {
    %c0_i32 = arith.constant 0 : i32
    %c0_i32_0 = arith.constant 0 : i32
    %c0_i32_1 = arith.constant 0 : i32
    return %c0_i32, %c0_i32_0 : i32, i32
  }
  func.func @transform_2(%arg0: i32) -> (i32, i32) {
    %c0_i32 = arith.constant 0 : i32
    %c0_i32_0 = arith.constant 0 : i32
    %c0_i32_1 = arith.constant 0 : i32
    return %c0_i32, %c0_i32_0 : i32, i32
  }
  func.func @transform_3(%arg0: i32) -> (i32, i32) {
    %c0_i32 = arith.constant 0 : i32
    %c0_i32_0 = arith.constant 0 : i32
    %c0_i32_1 = arith.constant 0 : i32
    return %c0_i32, %c0_i32_0 : i32, i32
  }
  func.func @transform_4(%arg0: i32) -> (i32, i32) {
    %c0_i32 = arith.constant 0 : i32
    %c0_i32_0 = arith.constant 0 : i32
    %c0_i32_1 = arith.constant 0 : i32
    return %c0_i32, %c0_i32_0 : i32, i32
  }
  func.func @transform_5(%arg0: i32) -> (i32, i32) {
    %c0_i32 = arith.constant 0 : i32
    %c0_i32_0 = arith.constant 0 : i32
    return %arg0, %c0_i32 : i32, i32
  }
}

</mosaic_0001>

<bundles_post_ra>
// kernel: mimick_cnn3_forward.1
= control target key start
LH: loop header
LB: loop body
LE: loop exit
PB: predicated region body
PF: predicated region fallthrough
CT: control target
= control target key end

     0   :  { %10 = vsyncpa [#allocation3], 0  ;;  %s15623_s0 = inlined_call_operand.vmem [shape: f32[32,27,16], index: 0, kind: input, shape index: {}]   ;;  %s15624_s1 = inlined_call_operand.vmem [shape: f32[128,128], index: 1, kind: input, shape index: {}]   ;;  %s15625_s2 = inlined_call_operand.vmem [shape: f32[2560,32], index: 2, kind: input, shape index: {}]   ;;  %s15626_s3 = inlined_call_operand.vmem [shape: f32[32,96], index: 3, kind: input, shape index: {}]   ;;  %s15627_s4 = inlined_call_operand.vmem [shape: f32[1,128], index: 4, kind: input, shape index: {}]   ;;  %s15628_s5 = inlined_call_operand.hbm [shape: f32[32,32], index: 5, kind: output, shape index: {}]  }
   0x1   :  { %12 = vsyncpa [#allocation3 + $0x1], 0  ;;  %s9704_s18 = smov 0   ;;  %s9706_s19 = smov 0  }
   0x2   :  { %s9708_s20 = smov 0   ;;  %s9710_s21 = smov 0  }
   0x3 LB: > { %s9725_s22 = sadd.s32 4294967295, %s9667_s21   ;;  %s6883_s23 = sadd.s32 4294967294, %s9667_s21   ;;  %s9667_s21 = sphi %s9710_s21, %s17042_s21   ;;  %s9663_s20 = sphi %s9708_s20, %s17041_s20   ;;  %s9659_s19 = sphi %s9706_s19, %s17040_s19   ;;  %s9655_s18 = sphi %s9704_s18, %s17039_s18  }
   0x4   : > { %s9729_s24 = sadd.s32 1, %s9667_s21   ;;  %s135_s25 = sadd.s32 1, %s9663_s20 }
   0x5   : > { %s132_s26 = ssub.s32 %s9667_s21, %s9729_s24  ;;  %p145_p0 = scmp.ne.s32.totalorder %s9663_s20, %s9659_s19 }
   0x6   : > { %p133_p1 = scmp.eq.s32.totalorder %s132_s26, 0  ;;  %p146_p2 = scmp.eq.s32.totalorder %s9725_s22, 1 }
   0x7   : > { %p151_p3 = scmp.ne.s32.totalorder %s9659_s19, %s9655_s18  ;;  %p152_p4 = scmp.eq.s32.totalorder %s6883_s23, 1 }
   0x8   : > { %s9740_s27 = scalar_select %p133_p1, %s9663_s20, %s135_s25  }
   0x9   : > { %p9742_p5 = por %p146_p2, %p145_p0  ;;  %p9746_p6 = por %p152_p4, %p151_p3 }
   0xa   : > { %p6886_p7 = scmp.ge.s32.totalorder %s9667_s21, 1  ;;  %p192_p8 = scmp.lt.s32.totalorder %s9667_s21, 3 }
   0xc   : > { %p193_p9 = pnand %p6886_p7, %p192_p8 }
   0xe   : > { %196 = sbr.rel (%p193_p9) target bundleno = 1844 (0x734), region = 40 }
  0x15   : > { %v297_v0 = vld [vmem:[%s15624_s1 + $0x20] sm:$0xff]  ;;  %v298_v1 = vld [vmem:[%s15624_s1 + $0x28] sm:$0xff]  ;;  %s6888_s9 = sshll.u32 %s9725_s22, 4  ;;  %v299_v3 = vld [vmem:[%s15624_s1 + $0x30] sm:$0xff]  ;;  %vm1435_vm0 = vcmask 1041408   ;;  %vm1436_vm1 = vcmask 1045508  }
  0x16   : > { %v8595_v2 = vpack.c.bf16 %v298_v1, %v297_v0  ;;  %p222_p10 = scmp.lt.s32.totalorder %s6888_s9, 31  ;;  %v300_v4 = vld [vmem:[%s15624_s1 + $0x38] sm:$0xff]  ;;  %v301_v6 = vld [vmem:[%s15624_s1 + $0x40] sm:$0xff]  ;;  %v302_v7 = vld [vmem:[%s15624_s1 + $0x48] sm:$0xff]  ;;  %vm704_vm2 = vcmask 130048   ;;  %v16110_v18 = vmov 0 }
  0x17   : > { %v9765_v5 = vpack.c.bf16 %v300_v4, %v299_v3  ;;  %v9788_v11 = vpack.c.bf16 %v302_v7, %v301_v6  ;;  %vm9809_vm3 = vmor %vm1435_vm0, %vm1436_vm1  ;;  %vm2119_vm4 = vcmask 1040384   ;;  %vm2120_vm5 = vcmask 1044484   ;;  %s9669_s26 = smov 96   ;;  %s9670_s6 = smov 64  }
  0x18   : > { %8596 = vmatprep.subr.bf16.mxu0 %v8595_v2  ;;  %s17044_s9 = smov (!%p222_p10, %s6888_s9), 31  ;;  %v16111_v18 = vsel %vm9809_vm3, 4294967295, %v16110_v18  ;;  %vm10627_vm6 = vmor %vm2119_vm4, %vm2120_vm5  ;;  %vm405_vm7 = vcmask 1042432   ;;  %vm406_vm8 = vcmask 1046532   ;;  %vm4906_vm10 = vcmask 1041409   ;;  %s218_s7 = sand.u32 1, %s9659_s19  }
  0x19   : > { %8598 = vmatpush3.bf16.msra.mxu0 %v8595_v2  ;;  %s7323_s23 = sshll.u32 %s17044_s9, 5  ;;  %16112 = vst [vmem:[#allocation8_spill] sm:$0xff] %v16111_v18  ;;  %vm11379_vm9 = vmor %vm405_vm7, %vm406_vm8  ;;  %vm4909_vm11 = vcmask 1042434   ;;  %vm4912_vm12 = vcmask 1043459   ;;  %vm4917_vm13 = vcmask 1045509   ;;  %vm4920_vm14 = vcmask 1046534  }
  0x1a   : > { %8600 = vmatprep.subr.bf16.mxu0 %v9765_v5  ;;  %s9777_s30 = scalar_lea.vmem %s15623_s0, %s7323_s23  ;;  %vm4923_vm15 = vcmask 1047559   ;;  %vm6597_vm0 = vcmask 261120   ;;  %s6887_s8 = sshll.u32 %s218_s7, 4 }
  0x1b   : > { %v9780_v8 = vld [vmem:[%s9777_s30] sm:$0xff]  ;;  %v9783_v9 = vld [vmem:[%s9777_s30 + $0x8] sm:$0xff]  ;;  %v9786_v10 = vld [vmem:[%s9777_s30 + $0x10] sm:$0xff]  ;;  %s220_s9 = scalar_lea.vmem [#allocation2], %s6887_s8  ;;  %s7324_s11 = sshll.u32 %s9725_s22, 8 }
  0x1c   : > { %v9792_v12 = vcombine.high %v9780_v8, %v9780_v8  ;;  %v9796_v13 = vcombine.high %v9783_v9, %v9783_v9  ;;  %v9800_v14 = vcombine.high %v9786_v10, %v9786_v10  ;;  %v6987_v15 = vrot.slane %v9780_v8, 10  ;;  %v9804_v16 = vld [vmem:[%s9777_s30 + $0x20] sm:$0xff]  ;;  %v9807_v17 = vld [vmem:[%s9777_s30 + $0x28] sm:$0xff]  ;;  %v9845_v39 = vld [vmem:[%s9777_s30 + $0x30] sm:$0xff]  ;;  %s6821_s10 = sshll.u32 %s220_s9, 4  ;;  %s15576_s14 = scalar_lea.hbm %s15628_s5, %s7324_s11  ;;  %s15578_s10 = int_to_ptr.vmem [resolvable:$true] %s6821_s10 }
  0x1d   : > { %v1443_v19 = vrot.slane %v9783_v9, 6  ;;  %v1449_v20 = vrot.slane %v9786_v10, 6  ;;  %v9817_v21 = vcombine.high %v9804_v16, %v9804_v16  ;;  %v6988_v22 = vrot.slane %v9804_v16, 10  ;;  %v9857_v44 = vld [vmem:[%s9777_s30 + $0x40] sm:$0xff]  ;;  %v9867_v49 = vld [vmem:[%s9777_s30 + $0x48] sm:$0xff]  ;;  %v9870_v50 = vld [vmem:[%s9777_s30 + $0x50] sm:$0xff] }
  0x1e   : > { %16107 = vst [vmem:[#allocation5_spill] sm:$0xff] %v9792_v12  ;;  %16108 = vst [vmem:[#allocation6_spill] sm:$0xff] %v9796_v13  ;;  %v1440_v23 = vrot.slane %v9792_v12, 6  ;;  %v1446_v24 = vrot.slane %v9796_v13, 6  ;;  %v15632_v25 = vrot.slane %v9800_v14, 6  ;;  %v9825_v26 = vcombine.high %v9807_v17, %v9807_v17  ;;  %v9885_v55 = vld [vmem:[%s9777_s30 + $0x60] sm:$0xff] }
  0x1f   : > { %16109 = vst [vmem:[#allocation7_spill] sm:$0xff] %v9800_v14  ;;  %16113 = vst [vmem:[#allocation9_spill] sm:$0xff] %v9817_v21  ;;  %v1445_v27 = vrot.slane %v1443_v19, 4  ;;  %v1451_v28 = vrot.slane %v1449_v20, 4  ;;  %v1456_v29 = vrot.slane %v9817_v21, 6  ;;  %v1459_v30 = vrot.slane %v9807_v17, 6 }
  0x20   : > { %16114 = vst [vmem:[#allocation10_spill] sm:$0xff] %v9825_v26  ;;  %v1441_v31 = vsel %vm9809_vm3, %v6987_v15, %v1440_v23  ;;  %v1442_v32 = vrot.slane %v1440_v23, 4  ;;  %v1448_v33 = vrot.slane %v1446_v24, 4  ;;  %v1462_v34 = vrot.slane %v9825_v26, 6  ;;  %v9921_v15 = vld [vmem:[%s9777_s30 + $0x68] sm:$0xff]  ;;  %s15582_s22 = scalar_lea.sflag [#allocation3], %s218_s7 }
  0x21   : > { %v9834_v35 = vsel %vm9809_vm3, %v1445_v27, %v1446_v24  ;;  %v9840_v36 = vsel %vm9809_vm3, %v1451_v28, %v15632_v25  ;;  %v1457_v37 = vsel %vm9809_vm3, %v6988_v22, %v1456_v29  ;;  %v1458_v38 = vrot.slane %v1456_v29, 4  ;;  %v9934_v24 = vld [vmem:[%s9777_s30 + $0x70] sm:$0xff]  ;;  %v10031_v47 = vld [vmem:[%s9777_s30 + $0xa8] sm:$0xff]  ;;  %s9605_s15 = scalar_lea.vmem %s15578_s10, 256  ;;  %s9671_s16 = smov [#allocation2]  }
  0x22   : > { %16115 = vst [vmem:[#allocation11_spill] sm:$0xff] %v9834_v35  ;;  %16116 = vst [vmem:[#allocation12_spill] sm:$0xff] %v9840_v36  ;;  %v9849_v40 = vsel %vm9809_vm3, %v1442_v32, %v1443_v19  ;;  %v9853_v41 = vsel %vm9809_vm3, %v1448_v33, %v1449_v20  ;;  %v1696_v42 = vcombine.low %v9840_v36, %v1457_v37  ;;  %v1461_v43 = vrot.slane %v1459_v30, 4  ;;  %p9606_p11 = scmp.ne.s32.totalorder %s15578_s10, %s9605_s15  ;;  %s9609_s17 = sshll.u32 %s9671_s16, 4  ;;  %s9610_s17 = int_to_ptr.vmem [resolvable:$false] %s9609_s17 }
  0x23   : > { %16117 = vst [vmem:[#allocation13_spill] sm:$0xff] %v9849_v40  ;;  %16118 = vst [vmem:[#allocation14_spill] sm:$0xff] %v9853_v41  ;;  %v1694_v45 = vcombine.low %v1441_v31, %v9849_v40  ;;  %v1695_v46 = vcombine.low %v9834_v35, %v9853_v41  ;;  %v9874_v51 = vsel %vm9809_vm3, %v1458_v38, %v1459_v30  ;;  %v1464_v54 = vrot.slane %v1462_v34, 4  ;;  %v10152_v35 = vld [vmem:[%s9777_s30 + $0xf0] sm:$0xff]  ;;  %s9611_s23 = scalar_lea.vmem %s9610_s17, 512  ;;  %p9612_p0 = scmp.lt.s32.totalorder %s15578_s10, %s9610_s17 }
  0x24   : > { %16119 = vst [vmem:[#allocation15_spill] sm:$0xff] %v9874_v51  ;;  %v9878_v52 = vsel %vm9809_vm3, %v1461_v43, %v1462_v34  ;;  %v9882_v53 = vcombine.high %v9845_v39, %v9845_v39  ;;  %v1465_v57 = vrot.slane %v9845_v39, 6  ;;  %v9893_v58 = vcombine.high %v9857_v44, %v9857_v44  ;;  %16161 = vst [vmem:[#allocation55_spill] sm:$0xff] %v10152_v35  ;;  %p9607_p12 = pnand %p9606_p11, %p9742_p5  ;;  %p9613_p1 = scmp.lt.s32.totalorder %s9611_s23, %s9605_s15 }
  0x25   : > { %16120 = vst [vmem:[#allocation16_spill] sm:$0xff] %v9878_v52  ;;  %8185 = vmatprep.mubr.msk.f32.mxu0 %vm704_vm2, %v1694_v45  ;;  %v1697_v56 = vcombine.low %v9874_v51, %v9878_v52  ;;  %v6989_v59 = vrot.slane %v9857_v44, 10  ;;  %v1475_v61 = vrot.slane %v9867_v49, 6  ;;  %v9901_v62 = vcombine.high %v9867_v49, %v9867_v49  ;;  %v9971_v45 = vld [vmem:[%s9777_s30 + $0x80] sm:$0xff]  ;;  %v10137_v52 = vld [vmem:[%s9777_s30 + $0xe8] sm:$0xff] }
  0x26   : > { %16121 = vst [vmem:[#allocation17_spill] sm:$0xff] %v9882_v53  ;;  %16122 = vst [vmem:[#allocation18_spill] sm:$0xff] %v9893_v58  ;;  %8186 = vmatmul.mubr.msk.f32.vlgmr.msra.gmra.mrb[0].mxu0 %vm704_vm2, %v1695_v46  ;;  %v15631_v60 = vrot.slane %v9882_v53, 6  ;;  %v1481_v63 = vrot.slane %v9870_v50, 6  ;;  %v9908_v0 = vsel %vm9809_vm3, %v1464_v54, %v1465_v57  ;;  %v1467_v1 = vrot.slane %v1465_v57, 4  ;;  %p9608_p13 = pneg %p9607_p12  ;;  %p9614_p2 = por %p9613_p1, %p9612_p0 }
  0x27   : > { %16123 = vst [vmem:[#allocation19_spill] sm:$0xff] %v9901_v62  ;;  %8602 = vmatpush3.bf16.msra.mxu0 %v9765_v5  ;;  %8188 = vmatprep.mubr.msk.f32.mxu0 %vm704_vm2, %v1696_v42  ;;  %16124 = vst [vmem:[#allocation20_spill] sm:$0xff] %v9908_v0  ;;  %v1472_v2 = vrot.slane %v9893_v58, 6  ;;  %v9913_v3 = vcombine.high %v9885_v55, %v9885_v55  ;;  %v1477_v4 = vrot.slane %v1475_v61, 4  ;;  %v1478_v6 = vrot.slane %v9901_v62, 6 }
  0x28   : > { %v9918_v5 = vcombine.high %v9870_v50, %v9870_v50  ;;  %v1483_v7 = vrot.slane %v1481_v63, 4  ;;  %8604 = vmatprep.subr.bf16.mxu0 %v9788_v11  ;;  %v9928_v19 = vsel %vm9809_vm3, %v1467_v1, %v15631_v60  ;;  %v6990_v23 = vrot.slane %v9885_v55, 10  ;;  %16159 = vst [vmem:[#allocation53_spill] sm:$0xff] %v10137_v52  ;;  %p9615_p3 = pnand %p9614_p2, %p9608_p13 }
  0x29   : > { %16125 = vst [vmem:[#allocation21_spill] sm:$0xff] %v9913_v3  ;;  %16127 = vst [vmem:[#allocation23_spill] sm:$0xff] %v9928_v19  ;;  %v1473_v20 = vsel %vm9809_vm3, %v6989_v59, %v1472_v2  ;;  %v1474_v22 = vrot.slane %v1472_v2, 4  ;;  %v1698_v27 = vcombine.low %v9908_v0, %v9928_v19  ;;  %v9941_v28 = vsel %vm9809_vm3, %v1477_v4, %v1478_v6  ;;  %v9978_v59 = vld [vmem:[%s9777_s30 + $0x88] sm:$0xff]  ;;  %v9986_v4 = vld [vmem:[%s9777_s30 + $0x90] sm:$0xff] }
  0x2a   : > { %16126 = vst [vmem:[#allocation22_spill] sm:$0xff] %v9918_v5  ;;  %8189 = vmatmul.mubr.msk.f32.gmra.mrb[2].mxu0 %vm704_vm2, %v1697_v56  ;;  %16128 = vst [vmem:[#allocation24_spill] sm:$0xff] %v9941_v28  ;;  %v1480_v29 = vrot.slane %v1478_v6, 4  ;;  %v15629_v30 = vrot.slane %v9918_v5, 6  ;;  %v1488_v32 = vrot.slane %v9913_v3, 6  ;;  %v9951_v33 = vcombine.high %v9921_v15, %v9921_v15 }
  0x2b   : > { %v9946_v31 = vsel %vm9809_vm3, %v1474_v22, %v1475_v61  ;;  %v1491_v34 = vrot.slane %v9921_v15, 6  ;;  %8191 = vmatprep.mubr.msk.f32.mxu0 %vm704_vm2, %v1698_v27  ;;  %v9968_v43 = vcombine.high %v9934_v24, %v9934_v24  ;;  %v1497_v1 = vrot.slane %v9934_v24, 6 }
  0x2c   : > { %16129 = vst [vmem:[#allocation25_spill] sm:$0xff] %v9946_v31  ;;  %16130 = vst [vmem:[#allocation26_spill] sm:$0xff] %v9951_v33  ;;  %v1699_v37 = vcombine.low %v1473_v20, %v9946_v31  ;;  %v9958_v38 = vsel %vm9809_vm3, %v1480_v29, %v1481_v63  ;;  %v9964_v42 = vsel %vm9809_vm3, %v1483_v7, %v15629_v30  ;;  %v1490_v56 = vrot.slane %v1488_v32, 4 }
  0x2d   : > { %16131 = vst [vmem:[#allocation27_spill] sm:$0xff] %v9958_v38  ;;  %16132 = vst [vmem:[#allocation28_spill] sm:$0xff] %v9964_v42  ;;  %v1700_v46 = vcombine.low %v9941_v28, %v9958_v38  ;;  %v1489_v54 = vsel %vm9809_vm3, %v6990_v23, %v1488_v32  ;;  %v1493_v57 = vrot.slane %v1491_v34, 4  ;;  %v1494_v63 = vrot.slane %v9951_v33, 6  ;;  %v10000_v23 = vld [vmem:[%s9777_s30 + $0xa0] sm:$0xff] }
  0x2e   : > { %16133 = vst [vmem:[#allocation29_spill] sm:$0xff] %v9968_v43  ;;  %8192 = vmatmul.mubr.msk.f32.gmra.mrb[4].mxu0 %vm704_vm2, %v1699_v37  ;;  %v1701_v61 = vcombine.low %v9964_v42, %v1489_v54  ;;  %v15630_v2 = vrot.slane %v9968_v43, 6  ;;  %v9991_v6 = vsel %vm9809_vm3, %v1490_v56, %v1491_v34  ;;  %v9995_v7 = vcombine.high %v9971_v45, %v9971_v45 }
  0x2f   : > { %8194 = vmatprep.mubr.msk.f32.mxu0 %vm704_vm2, %v1700_v46  ;;  %16134 = vst [vmem:[#allocation30_spill] sm:$0xff] %v9991_v6  ;;  %v6991_v20 = vrot.slane %v9971_v45, 10  ;;  %v1507_v22 = vrot.slane %v9978_v59, 6  ;;  %v10004_v27 = vsel %vm9809_vm3, %v1493_v57, %v1494_v63  ;;  %v1496_v29 = vrot.slane %v1494_v63, 4 }
  0x30   : > { %16135 = vst [vmem:[#allocation31_spill] sm:$0xff] %v9995_v7  ;;  %16136 = vst [vmem:[#allocation32_spill] sm:$0xff] %v10004_v27  ;;  %v1499_v32 = vrot.slane %v1497_v1, 4  ;;  %v10008_v34 = vcombine.high %v9978_v59, %v9978_v59  ;;  %v1702_v37 = vcombine.low %v9991_v6, %v10004_v27  ;;  %v1504_v46 = vrot.slane %v9995_v7, 6 }
  0x31   : > { %v1509_v54 = vrot.slane %v1507_v22, 4  ;;  %v1513_v56 = vrot.slane %v9986_v4, 6  ;;  %v10017_v57 = vsel %vm9809_vm3, %v1496_v29, %v1497_v1  ;;  %v10028_v48 = vcombine.high %v10000_v23, %v10000_v23 }
  0x32   : > { %16137 = vst [vmem:[#allocation33_spill] sm:$0xff] %v10008_v34  ;;  %8195 = vmatmul.mubr.msk.f32.gmra.mrb[6].mxu0 %vm704_vm2, %v1701_v61  ;;  %16138 = vst [vmem:[#allocation34_spill] sm:$0xff] %v10017_v57  ;;  %v10023_v63 = vsel %vm9809_vm3, %v1499_v32, %v15630_v2  ;;  %v1510_v30 = vrot.slane %v10008_v34, 6  ;;  %v1505_v1 = vsel %vm9809_vm3, %v6991_v20, %v1504_v46  ;;  %v1506_v29 = vrot.slane %v1504_v46, 4  ;;  %v10043_v2 = vld [vmem:[%s9777_s30 + $0xb0] sm:$0xff]  ;;  %v10072_v46 = vld [vmem:[%s9777_s30 + $0xc0] sm:$0xff] }
  0x33   : > { %16139 = vst [vmem:[#allocation35_spill] sm:$0xff] %v10023_v63  ;;  %16140 = vst [vmem:[#allocation36_spill] sm:$0xff] %v10028_v48  ;;  %8197 = vmatprep.mubr.msk.f32.mxu0 %vm704_vm2, %v1702_v37  ;;  %v1703_v61 = vcombine.low %v10017_v57, %v10023_v63  ;;  %v10040_v32 = vcombine.high %v9986_v4, %v9986_v4  ;;  %v1515_v37 = vrot.slane %v1513_v56, 4  ;;  %v6992_v63 = vrot.slane %v10000_v23, 10 }
  0x34   : > { %v10047_v60 = vsel %vm9809_vm3, %v1509_v54, %v1510_v30  ;;  %v1512_v25 = vrot.slane %v1510_v30, 4  ;;  %v10052_v20 = vsel %vm9809_vm3, %v1506_v29, %v1507_v22  ;;  %v1520_v27 = vrot.slane %v10028_v48, 6 }
  0x35   : > { %16141 = vst [vmem:[#allocation37_spill] sm:$0xff] %v10040_v32  ;;  %16142 = vst [vmem:[#allocation38_spill] sm:$0xff] %v10047_v60  ;;  %v10058_v57 = vcombine.high %v10031_v47, %v10031_v47  ;;  %v1704_v30 = vcombine.low %v1505_v1, %v10052_v20  ;;  %v1523_v22 = vrot.slane %v10031_v47, 6  ;;  %v10069_v29 = vcombine.high %v10043_v2, %v10043_v2 }
  0x36   : > { %16143 = vst [vmem:[#allocation39_spill] sm:$0xff] %v10052_v20  ;;  %8198 = vmatmul.mubr.msk.f32.gmra.mrb[8].mxu0 %vm704_vm2, %v1703_v61  ;;  %v10064_v54 = vsel %vm9809_vm3, %v1512_v25, %v1513_v56  ;;  %v16147_v61 = vrot.slane %v10040_v32, 6  ;;  %v1521_v25 = vsel %vm9809_vm3, %v6992_v63, %v1520_v27  ;;  %v1522_v56 = vrot.slane %v1520_v27, 4  ;;  %v10085_v20 = vld [vmem:[%s9777_s30 + $0xc8] sm:$0xff] }
  0x37   : > { %16144 = vst [vmem:[#allocation40_spill] sm:$0xff] %v10058_v57  ;;  %16145 = vst [vmem:[#allocation41_spill] sm:$0xff] %v10064_v54  ;;  %v1705_v6 = vcombine.low %v10047_v60, %v10064_v54  ;;  %8200 = vmatprep.mubr.msk.f32.mxu0 %vm704_vm2, %v1704_v30  ;;  %v1525_v42 = vrot.slane %v1523_v22, 4  ;;  %v1526_v31 = vrot.slane %v10058_v57, 6  ;;  %v1529_v54 = vrot.slane %v10043_v2, 6  ;;  %v10092_v60 = vld [vmem:[%s9777_s30 + $0xd0] sm:$0xff] }
  0x38   : > { %16146 = vst [vmem:[#allocation42_spill] sm:$0xff] %v10069_v29  ;;  %v10080_v1 = vsel %vm9809_vm3, %v1515_v37, %v16147_v61  ;;  %16149 = vst [vmem:[#allocation44_spill] sm:$0xff] %v10092_v60  ;;  %v10096_v37 = vsel %vm9809_vm3, %v1522_v56, %v1523_v22  ;;  %v10101_v27 = vcombine.high %v10072_v46, %v10072_v46  ;;  %v6993_v30 = vrot.slane %v10072_v46, 10  ;;  %v10105_v61 = vld [vmem:[%s9777_s30 + $0xe0] sm:$0xff] }
  0x39   : > { %16148 = vst [vmem:[#allocation43_spill] sm:$0xff] %v10080_v1  ;;  %v1706_v38 = vcombine.low %v10080_v1, %v1521_v25  ;;  %16150 = vst [vmem:[#allocation45_spill] sm:$0xff] %v10096_v37  ;;  %v10110_v25 = vsel %vm9809_vm3, %v1525_v42, %v1526_v31  ;;  %v1528_v1 = vrot.slane %v1526_v31, 4  ;;  %v1531_v22 = vrot.slane %v1529_v54, 4 }
  0x3a   : > { %16151 = vst [vmem:[#allocation46_spill] sm:$0xff] %v10101_v27  ;;  %16152 = vst [vmem:[#allocation47_spill] sm:$0xff] %v10105_v61  ;;  %8201 = vmatmul.mubr.msk.f32.gmra.mrb[10].mxu0 %vm704_vm2, %v1705_v6  ;;  %v1539_v56 = vrot.slane %v10085_v20, 6  ;;  %v1707_v63 = vcombine.low %v10096_v37, %v10110_v25  ;;  %v1536_v28 = vrot.slane %v10101_v27, 6  ;;  %v10119_v19 = vcombine.high %v10085_v20, %v10085_v20 }
  0x3b   : > { %16153 = vst [vmem:[#allocation48_spill] sm:$0xff] %v10110_v25  ;;  %8203 = vmatprep.mubr.msk.f32.mxu0 %vm704_vm2, %v1706_v38  ;;  %v1545_v6 = vrot.slane %v10092_v60, 6  ;;  %v10124_v31 = vsel %vm9809_vm3, %v1528_v1, %v1529_v54  ;;  %v16156_v42 = vrot.slane %v10069_v29, 6  ;;  %v10134_v37 = vcombine.high %v10105_v61, %v10105_v61 }
  0x3c   : > { %16154 = vst [vmem:[#allocation49_spill] sm:$0xff] %v10119_v19  ;;  %16155 = vst [vmem:[#allocation50_spill] sm:$0xff] %v10124_v31  ;;  %v1541_v25 = vrot.slane %v1539_v56, 4  ;;  %v1537_v54 = vsel %vm9809_vm3, %v6993_v30, %v1536_v28  ;;  %v1538_v1 = vrot.slane %v1536_v28, 4  ;;  %v1542_v36 = vrot.slane %v10119_v19, 6 }
  0x3d   : > { %v10130_v38 = vsel %vm9809_vm3, %v1531_v22, %v16156_v42  ;;  %16158 = vst [vmem:[#allocation52_spill] sm:$0xff] %v10134_v37  ;;  %v10147_v22 = vcombine.high %v10092_v60, %v10092_v60  ;;  %v1547_v42 = vrot.slane %v1545_v6, 4  ;;  %v6994_v41 = vrot.slane %v10105_v61, 10 }
  0x3e   : > { %16157 = vst [vmem:[#allocation51_spill] sm:$0xff] %v10130_v38  ;;  %v1708_v0 = vcombine.low %v10124_v31, %v10130_v38  ;;  %8204 = vmatmul.mubr.msk.f32.gmra.mrb[12].mxu0 %vm704_vm2, %v1707_v63  ;;  %v1552_v51 = vrot.slane %v10134_v37, 6  ;;  %v10157_v28 = vsel %vm9809_vm3, %v1538_v1, %v1539_v56  ;;  %v10161_v63 = vsel %vm9809_vm3, %v1541_v25, %v1542_v36  ;;  %v10168_v31 = vld [vmem:[%s9777_s30 + $0x100] sm:$0xff] }
  0x3f   : > { %16160 = vst [vmem:[#allocation54_spill] sm:$0xff] %v10147_v22  ;;  %16162 = vst [vmem:[#allocation56_spill] sm:$0xff] %v10157_v28  ;;  %v1544_v30 = vrot.slane %v1542_v36, 4  ;;  %v10165_v38 = vcombine.high %v10137_v52, %v10137_v52  ;;  %v1709_v40 = vcombine.low %v1537_v54, %v10157_v28  ;;  %v1555_v36 = vrot.slane %v10137_v52, 6  ;;  %v10211_v52 = vld [vmem:[%s9777_s30 + $0x110] sm:$0xff] }
  0x40   : > { %8206 = vmatprep.mubr.msk.f32.mxu0 %vm704_vm2, %v1708_v0  ;;  %16163 = vst [vmem:[#allocation57_spill] sm:$0xff] %v10161_v63  ;;  %16165 = vst [vmem:[#allocation59_spill] sm:$0xff] %v10168_v31  ;;  %v15663_v0 = vrot.slane %v10147_v22, 6  ;;  %v1553_v56 = vsel %vm9809_vm3, %v6994_v41, %v1552_v51  ;;  %v1554_v1 = vrot.slane %v1552_v51, 4  ;;  %v10182_v61 = vcombine.high %v10152_v35, %v10152_v35  ;;  %v10245_v22 = vld [vmem:[%s9777_s30 + $0x128] sm:$0xff] }
  0x41   : > { %16164 = vst [vmem:[#allocation58_spill] sm:$0xff] %v10165_v38  ;;  %v10176_v25 = vsel %vm9809_vm3, %v1544_v30, %v1545_v6  ;;  %v1558_v37 = vrot.slane %v10165_v38, 6  ;;  %v1561_v51 = vrot.slane %v10152_v35, 6  ;;  %v10195_v6 = vld [vmem:[%s9777_s30 + $0x108] sm:$0xff]  ;;  %v10199_v30 = vcombine.high %v10168_v31, %v10168_v31  ;;  %16172 = vst [vmem:[#allocation66_spill] sm:$0xff] %v10211_v52 }
  0x42   : > { %16166 = vst [vmem:[#allocation60_spill] sm:$0xff] %v10176_v25  ;;  %16167 = vst [vmem:[#allocation61_spill] sm:$0xff] %v10182_v61  ;;  %8207 = vmatmul.mubr.msk.f32.gmra.mrb[14].mxu0 %vm704_vm2, %v1709_v40  ;;  %v1710_v54 = vcombine.low %v10161_v63, %v10176_v25  ;;  %v10191_v41 = vsel %vm9809_vm3, %v1547_v42, %v15663_v0  ;;  %v10204_v25 = vsel %vm9809_vm3, %v1554_v1, %v1555_v36  ;;  %v10227_v0 = vld [vmem:[%s9777_s30 + $0x120] sm:$0xff] }
  0x43   : > { %16168 = vst [vmem:[#allocation62_spill] sm:$0xff] %v10191_v41  ;;  %16169 = vst [vmem:[#allocation63_spill] sm:$0xff] %v10195_v6  ;;  %v1711_v40 = vcombine.low %v10191_v41, %v1553_v56  ;;  %v1557_v28 = vrot.slane %v1555_v36, 4  ;;  %v1560_v63 = vrot.slane %v1558_v37, 4  ;;  %v1563_v42 = vrot.slane %v1561_v51, 4 }
  0x44   : > { %16170 = vst [vmem:[#allocation64_spill] sm:$0xff] %v10199_v30  ;;  %16171 = vst [vmem:[#allocation65_spill] sm:$0xff] %v10204_v25  ;;  %8209 = vmatprep.mubr.msk.f32.mxu0 %vm704_vm2, %v1710_v54  ;;  %v6995_v35 = vrot.slane %v10168_v31, 10  ;;  %v1568_v38 = vrot.slane %v10199_v30, 6  ;;  %v1571_v36 = vrot.slane %v10195_v6, 6  ;;  %v10224_v54 = vcombine.high %v10195_v6, %v10195_v6 }
  0x45   : > { %v10215_v56 = vsel %vm9809_vm3, %v1557_v28, %v1558_v37  ;;  %v10219_v1 = vsel %vm9809_vm3, %v1560_v63, %v1561_v51  ;;  %16176 = vst [vmem:[#allocation70_spill] sm:$0xff] %v10227_v0  ;;  %v16177_v28 = vrot.slane %v10182_v61, 6  ;;  %v1577_v31 = vrot.slane %v10211_v52, 6  ;;  %16179 = vst [vmem:[#allocation72_spill] sm:$0xff] %v10245_v22 }
  0x46   : > { %16173 = vst [vmem:[#allocation67_spill] sm:$0xff] %v10215_v56  ;;  %16174 = vst [vmem:[#allocation68_spill] sm:$0xff] %v10219_v1  ;;  %8210 = vmatmul.mubr.msk.f32.gmra.mrb[16].mxu0 %vm704_vm2, %v1711_v40  ;;  %v1712_v37 = vcombine.low %v10204_v25, %v10215_v56  ;;  %v1569_v51 = vsel %vm9809_vm3, %v6995_v35, %v1568_v38  ;;  %v1570_v41 = vrot.slane %v1568_v38, 4  ;;  %v1573_v30 = vrot.slane %v1571_v36, 4  ;;  %v10265_v56 = vld [vmem:[%s9777_s30 + $0x140] sm:$0xff] }
  0x47   : > { %16175 = vst [vmem:[#allocation69_spill] sm:$0xff] %v10224_v54  ;;  %v10236_v63 = vsel %vm9809_vm3, %v1563_v42, %v16177_v28  ;;  %v1574_v40 = vrot.slane %v10224_v54, 6  ;;  %v10254_v35 = vcombine.high %v10227_v0, %v10227_v0  ;;  %v10258_v38 = vcombine.high %v10211_v52, %v10211_v52  ;;  %16184 = vst [vmem:[#allocation77_spill] sm:$0xff] %v10265_v56 }
  0x48   : > { %16178 = vst [vmem:[#allocation71_spill] sm:$0xff] %v10236_v63  ;;  %v1713_v6 = vcombine.low %v10219_v1, %v10236_v63  ;;  %8212 = vmatprep.mubr.msk.f32.mxu0 %vm704_vm2, %v1712_v37  ;;  %v10250_v42 = vsel %vm9809_vm3, %v1570_v41, %v1571_v36  ;;  %v6996_v28 = vrot.slane %v10227_v0, 10  ;;  %v10262_v63 = vld [vmem:[%s9777_s30 + $0x130] sm:$0xff]  ;;  %v1579_v1 = vrot.slane %v1577_v31, 4 }
  0x49   : > { %16180 = vst [vmem:[#allocation73_spill] sm:$0xff] %v10250_v42  ;;  %16181 = vst [vmem:[#allocation74_spill] sm:$0xff] %v10254_v35  ;;  %v1714_v37 = vcombine.low %v1569_v51, %v10250_v42  ;;  %v10270_v41 = vsel %vm9809_vm3, %v1573_v30, %v1574_v40  ;;  %v1576_v36 = vrot.slane %v1574_v40, 4  ;;  %v1584_v52 = vrot.slane %v10254_v35, 6 }
  0x4a   : > { %16182 = vst [vmem:[#allocation75_spill] sm:$0xff] %v10258_v38  ;;  %16183 = vst [vmem:[#allocation76_spill] sm:$0xff] %v10262_v63  ;;  %8213 = vmatmul.mubr.msk.f32.gmra.mrb[18].mxu0 %vm704_vm2, %v1713_v6  ;;  %v10277_v0 = vcombine.high %v10245_v22, %v10245_v22  ;;  %v1587_v54 = vrot.slane %v10245_v22, 6  ;;  %v10287_v51 = vcombine.high %v10262_v63, %v10262_v63  ;;  %v1593_v6 = vrot.slane %v10262_v63, 6  ;;  %v10305_v22 = vld [vmem:[%s9777_s30 + $0x148] sm:$0xff] }
  0x4b   : > { %16185 = vst [vmem:[#allocation78_spill] sm:$0xff] %v10270_v41  ;;  %8215 = vmatprep.mubr.msk.f32.mxu0 %vm704_vm2, %v1714_v37  ;;  %v10283_v30 = vsel %vm9809_vm3, %v1576_v36, %v1577_v31  ;;  %v10292_v40 = vcombine.high %v10265_v56, %v10265_v56  ;;  %v16190_v37 = vrot.slane %v10258_v38, 6  ;;  %v1585_v36 = vsel %vm9809_vm3, %v6996_v28, %v1584_v52  ;;  %v10413_v38 = vld [vmem:[%s9777_s30 + $0x190] sm:$0xff] }
  0x4c   : > { %16186 = vst [vmem:[#allocation79_spill] sm:$0xff] %v10277_v0  ;;  %16187 = vst [vmem:[#allocation80_spill] sm:$0xff] %v10283_v30  ;;  %v1715_v25 = vcombine.low %v10270_v41, %v10283_v30  ;;  %v1586_v42 = vrot.slane %v1584_v52, 4  ;;  %v1589_v35 = vrot.slane %v1587_v54, 4  ;;  %v1590_v61 = vrot.slane %v10277_v0, 6 }
  0x4d   : > { %16188 = vst [vmem:[#allocation81_spill] sm:$0xff] %v10287_v51  ;;  %16189 = vst [vmem:[#allocation82_spill] sm:$0xff] %v10292_v40  ;;  %v10300_v31 = vsel %vm9809_vm3, %v1579_v1, %v16190_v37  ;;  %v1595_v60 = vrot.slane %v1593_v6, 4  ;;  %v6997_v28 = vrot.slane %v10265_v56, 10  ;;  %v1600_v52 = vrot.slane %v10292_v40, 6  ;;  %v10318_v37 = vld [vmem:[%s9777_s30 + $0x150] sm:$0xff] }
  0x4e   : > { %16191 = vst [vmem:[#allocation83_spill] sm:$0xff] %v10300_v31  ;;  %16192 = vst [vmem:[#allocation84_spill] sm:$0xff] %v10305_v22  ;;  %v1716_v63 = vcombine.low %v10300_v31, %v1585_v36  ;;  %8216 = vmatmul.mubr.msk.f32.gmra.mrb[20].mxu0 %vm704_vm2, %v1715_v25  ;;  %v10312_v30 = vsel %vm9809_vm3, %v1586_v42, %v1587_v54  ;;  %v10323_v36 = vsel %vm9809_vm3, %v1589_v35, %v1590_v61  ;;  %v10331_v42 = vld [vmem:[%s9777_s30 + $0x160] sm:$0xff] }
  0x4f   : > { %16193 = vst [vmem:[#allocation85_spill] sm:$0xff] %v10312_v30  ;;  %16194 = vst [vmem:[#allocation86_spill] sm:$0xff] %v10318_v37  ;;  %v1592_v25 = vrot.slane %v1590_v61, 4  ;;  %v1603_v31 = vrot.slane %v10305_v22, 6  ;;  %v10328_v54 = vcombine.high %v10305_v22, %v10305_v22  ;;  %v1717_v1 = vcombine.low %v10312_v30, %v10323_v36 }
  0x50   : > { %8218 = vmatprep.mubr.msk.f32.mxu0 %vm704_vm2, %v1716_v63  ;;  %16195 = vst [vmem:[#allocation87_spill] sm:$0xff] %v10323_v36  ;;  %16197 = vst [vmem:[#allocation89_spill] sm:$0xff] %v10331_v42  ;;  %v16198_v41 = vrot.slane %v10287_v51, 6  ;;  %v1601_v61 = vsel %vm9809_vm3, %v6997_v28, %v1600_v52  ;;  %v1602_v35 = vrot.slane %v1600_v52, 4  ;;  %v1609_v0 = vrot.slane %v10318_v37, 6  ;;  %v10350_v36 = vld [vmem:[%s9777_s30 + $0x168] sm:$0xff] }
  0x51   : > { %16196 = vst [vmem:[#allocation88_spill] sm:$0xff] %v10328_v54  ;;  %v10345_v22 = vsel %vm9809_vm3, %v1592_v25, %v1593_v6  ;;  %v1605_v40 = vrot.slane %v1603_v31, 4  ;;  %v1606_v56 = vrot.slane %v10328_v54, 6  ;;  %16201 = vst [vmem:[#allocation92_spill] sm:$0xff] %v10350_v36  ;;  %v10361_v6 = vcombine.high %v10331_v42, %v10331_v42  ;;  %v10368_v52 = vld [vmem:[%s9777_s30 + $0x170] sm:$0xff] }
  0x52   : > { %v10339_v63 = vsel %vm9809_vm3, %v1595_v60, %v16198_v41  ;;  %16200 = vst [vmem:[#allocation91_spill] sm:$0xff] %v10345_v22  ;;  %8219 = vmatmul.mubr.msk.f32.gmra.mrb[22].mxu0 %vm704_vm2, %v1717_v1  ;;  %v10357_v41 = vsel %vm9809_vm3, %v1602_v35, %v1603_v31  ;;  %v10365_v28 = vcombine.high %v10318_v37, %v10318_v37  ;;  %16205 = vst [vmem:[#allocation96_spill] sm:$0xff] %v10368_v52  ;;  %v10394_v35 = vld [vmem:[%s9777_s30 + $0x180] sm:$0xff] }
  0x53   : > { %16199 = vst [vmem:[#allocation90_spill] sm:$0xff] %v10339_v63  ;;  %v1718_v60 = vcombine.low %v10345_v22, %v10339_v63  ;;  %16202 = vst [vmem:[#allocation93_spill] sm:$0xff] %v10357_v41  ;;  %v1719_v1 = vcombine.low %v1601_v61, %v10357_v41  ;;  %v10373_v25 = vsel %vm9809_vm3, %v1605_v40, %v1606_v56  ;;  %v1608_v63 = vrot.slane %v1606_v56, 4 }
  0x54   : > { %16203 = vst [vmem:[#allocation94_spill] sm:$0xff] %v10361_v6  ;;  %16204 = vst [vmem:[#allocation95_spill] sm:$0xff] %v10365_v28  ;;  %v1611_v31 = vrot.slane %v1609_v0, 4  ;;  %v6998_v22 = vrot.slane %v10331_v42, 10  ;;  %v1616_v30 = vrot.slane %v10361_v6, 6  ;;  %v10381_v37 = vcombine.high %v10350_v36, %v10350_v36  ;;  %v10408_v42 = vld [vmem:[%s9777_s30 + $0x188] sm:$0xff] }
  0x55   : > { %16206 = vst [vmem:[#allocation97_spill] sm:$0xff] %v10373_v25  ;;  %8221 = vmatprep.mubr.msk.f32.mxu0 %vm704_vm2, %v1718_v60  ;;  %v10385_v40 = vsel %vm9809_vm3, %v1608_v63, %v1609_v0  ;;  %v1619_v56 = vrot.slane %v10350_v36, 6  ;;  %v10390_v61 = vcombine.high %v10368_v52, %v10368_v52  ;;  %v1625_v60 = vrot.slane %v10368_v52, 6  ;;  %16210 = vst [vmem:[#allocation101_spill] sm:$0xff] %v10394_v35 }
  0x56   : > { %16207 = vst [vmem:[#allocation98_spill] sm:$0xff] %v10381_v37  ;;  %16208 = vst [vmem:[#allocation99_spill] sm:$0xff] %v10385_v40  ;;  %8222 = vmatmul.mubr.msk.f32.gmra.mrb[24].mxu0 %vm704_vm2, %v1719_v1  ;;  %v1720_v41 = vcombine.low %v10373_v25, %v10385_v40  ;;  %v16211_v6 = vrot.slane %v10365_v28, 6  ;;  %v1617_v63 = vsel %vm9809_vm3, %v6998_v22, %v1616_v30  ;;  %v1618_v36 = vrot.slane %v1616_v30, 4  ;;  %v10580_v28 = vld [vmem:[%s9777_s30 + $0x1f0] sm:$0xff] }
  0x57   : > { %16209 = vst [vmem:[#allocation100_spill] sm:$0xff] %v10390_v61  ;;  %16213 = vst [vmem:[#allocation103_spill] sm:$0xff] %v10408_v42  ;;  %v1621_v54 = vrot.slane %v1619_v56, 4  ;;  %v1622_v1 = vrot.slane %v10381_v37, 6  ;;  %v1627_v51 = vrot.slane %v1625_v60, 4  ;;  %v10423_v22 = vcombine.high %v10394_v35, %v10394_v35 }
  0x58   : > { %v10403_v0 = vsel %vm9809_vm3, %v1611_v31, %v16211_v6  ;;  %16214 = vst [vmem:[#allocation104_spill] sm:$0xff] %v10413_v38  ;;  %8224 = vmatprep.mubr.msk.f32.mxu0 %vm704_vm2, %v1720_v41  ;;  %v10418_v6 = vsel %vm9809_vm3, %v1618_v36, %v1619_v56  ;;  %v15729_v31 = vrot.slane %v10390_v61, 6  ;;  %v6999_v30 = vrot.slane %v10394_v35, 10  ;;  %16247 = vst [vmem:[#allocation135_spill] sm:$0xff] %v10580_v28  ;;  %v16333_v18 = vld [vmem:[#allocation92_spill] sm:$0xff] }
  0x59   : > { %16212 = vst [vmem:[#allocation102_spill] sm:$0xff] %v10403_v0  ;;  %v1721_v52 = vcombine.low %v10403_v0, %v1617_v63  ;;  %16215 = vst [vmem:[#allocation105_spill] sm:$0xff] %v10418_v6  ;;  %v10427_v63 = vld [vmem:[%s9777_s30 + $0x1a0] sm:$0xff]  ;;  %v10431_v40 = vsel %vm9809_vm3, %v1621_v54, %v1622_v1  ;;  %v1624_v41 = vrot.slane %v1622_v1, 4  ;;  %v1635_v0 = vrot.slane %v10408_v42, 6 }
  0x5a   : > { %16216 = vst [vmem:[#allocation106_spill] sm:$0xff] %v10423_v22  ;;  %16217 = vst [vmem:[#allocation107_spill] sm:$0xff] %v10427_v63  ;;  %v10436_v36 = vcombine.high %v10408_v42, %v10408_v42  ;;  %v1722_v56 = vcombine.low %v10418_v6, %v10431_v40  ;;  %v10445_v25 = vsel %vm9809_vm3, %v1627_v51, %v15729_v31  ;;  %v1632_v54 = vrot.slane %v10423_v22, 6  ;;  %v10459_v6 = vld [vmem:[%s9777_s30 + $0x1a8] sm:$0xff] }
  0x5b   : > { %16218 = vst [vmem:[#allocation108_spill] sm:$0xff] %v10431_v40  ;;  %8225 = vmatmul.mubr.msk.f32.gmra.mrb[26].mxu0 %vm704_vm2, %v1721_v52  ;;  %16220 = vst [vmem:[#allocation110_spill] sm:$0xff] %v10445_v25  ;;  %v1641_v1 = vrot.slane %v10413_v38, 6  ;;  %v10451_v42 = vsel %vm9809_vm3, %v1624_v41, %v1625_v60  ;;  %v1637_v35 = vrot.slane %v1635_v0, 4  ;;  %v10456_v40 = vcombine.high %v10427_v63, %v10427_v63  ;;  %v10471_v41 = vld [vmem:[%s9777_s30 + $0x1b0] sm:$0xff] }
  0x5c   : > { %16219 = vst [vmem:[#allocation109_spill] sm:$0xff] %v10436_v36  ;;  %16221 = vst [vmem:[#allocation111_spill] sm:$0xff] %v10451_v42  ;;  %v1638_v52 = vrot.slane %v10436_v36, 6  ;;  %8227 = vmatprep.mubr.msk.f32.mxu0 %vm704_vm2, %v1722_v56  ;;  %v1723_v51 = vcombine.low %v10451_v42, %v10445_v25  ;;  %v1633_v31 = vsel %vm9809_vm3, %v6999_v30, %v1632_v54  ;;  %v1634_v22 = vrot.slane %v1632_v54, 4 }
  0x5d   : > { %16222 = vst [vmem:[#allocation112_spill] sm:$0xff] %v10456_v40  ;;  %16223 = vst [vmem:[#allocation113_spill] sm:$0xff] %v10459_v6  ;;  %v10468_v60 = vcombine.high %v10413_v38, %v10413_v38  ;;  %v1643_v56 = vrot.slane %v1641_v1, 4  ;;  %v7000_v25 = vrot.slane %v10427_v63, 10  ;;  %v1648_v42 = vrot.slane %v10456_v40, 6 }
  0x5e   : > { %16225 = vst [vmem:[#allocation115_spill] sm:$0xff] %v10471_v41  ;;  %v10475_v36 = vsel %vm9809_vm3, %v1637_v35, %v1638_v52  ;;  %v1640_v61 = vrot.slane %v1638_v52, 4  ;;  %v10481_v30 = vsel %vm9809_vm3, %v1634_v22, %v1635_v0  ;;  %v10487_v38 = vcombine.high %v10459_v6, %v10459_v6  ;;  %v10500_v22 = vld [vmem:[%s9777_s30 + $0x1c0] sm:$0xff] }
  0x5f   : > { %16224 = vst [vmem:[#allocation114_spill] sm:$0xff] %v10468_v60  ;;  %16226 = vst [vmem:[#allocation116_spill] sm:$0xff] %v10475_v36  ;;  %8228 = vmatmul.mubr.msk.f32.gmra.mrb[28].mxu0 %vm704_vm2, %v1723_v51  ;;  %v1724_v35 = vcombine.low %v1633_v31, %v10481_v30  ;;  %v1651_v51 = vrot.slane %v10459_v6, 6  ;;  %v10497_v0 = vcombine.high %v10471_v41, %v10471_v41  ;;  %v16232_v40 = vrot.slane %v10468_v60, 6  ;;  %v10520_v60 = vld [vmem:[%s9777_s30 + $0x1d0] sm:$0xff] }
  0x60   : > { %16227 = vst [vmem:[#allocation117_spill] sm:$0xff] %v10481_v30  ;;  %16228 = vst [vmem:[#allocation118_spill] sm:$0xff] %v10487_v38  ;;  %v10492_v52 = vsel %vm9809_vm3, %v1640_v61, %v1641_v1  ;;  %v1649_v61 = vsel %vm9809_vm3, %v7000_v25, %v1648_v42  ;;  %v1650_v1 = vrot.slane %v1648_v42, 4  ;;  %v10513_v30 = vld [vmem:[%s9777_s30 + $0x1c8] sm:$0xff] }
  0x61   : > { %16229 = vst [vmem:[#allocation119_spill] sm:$0xff] %v10492_v52  ;;  %16230 = vst [vmem:[#allocation120_spill] sm:$0xff] %v10497_v0  ;;  %v1725_v54 = vcombine.low %v10475_v36, %v10492_v52  ;;  %v10508_v31 = vsel %vm9809_vm3, %v1643_v56, %v16232_v40  ;;  %8230 = vmatprep.mubr.msk.f32.mxu0 %vm704_vm2, %v1724_v35  ;;  %v1653_v63 = vrot.slane %v1651_v51, 4  ;;  %v1654_v52 = vrot.slane %v10487_v38, 6  ;;  %v10534_v35 = vld [vmem:[%s9777_s30 + $0x1e0] sm:$0xff] }
  0x62   : > { %16231 = vst [vmem:[#allocation121_spill] sm:$0xff] %v10500_v22  ;;  %16233 = vst [vmem:[#allocation122_spill] sm:$0xff] %v10508_v31  ;;  %v1726_v6 = vcombine.low %v10508_v31, %v1649_v61  ;;  %v1657_v36 = vrot.slane %v10471_v41, 6  ;;  %v10525_v42 = vsel %vm9809_vm3, %v1650_v1, %v1651_v51  ;;  %v10530_v40 = vcombine.high %v10500_v22, %v10500_v22 }
  0x63   : > { %16234 = vst [vmem:[#allocation123_spill] sm:$0xff] %v10513_v30  ;;  %16235 = vst [vmem:[#allocation124_spill] sm:$0xff] %v10520_v60  ;;  %8231 = vmatmul.mubr.msk.f32.gmra.mrb[30].mxu0 %vm704_vm2, %v1725_v54  ;;  %v7001_v56 = vrot.slane %v10500_v22, 10  ;;  %v10539_v54 = vsel %vm9809_vm3, %v1653_v63, %v1654_v52  ;;  %v1656_v61 = vrot.slane %v1654_v52, 4  ;;  %v1667_v1 = vrot.slane %v10513_v30, 6 }
  0x64   : > { %16236 = vst [vmem:[#allocation125_spill] sm:$0xff] %v10525_v42  ;;  %16237 = vst [vmem:[#allocation126_spill] sm:$0xff] %v10530_v40  ;;  %8233 = vmatprep.mubr.msk.f32.mxu0 %vm704_vm2, %v1726_v6  ;;  %v1659_v51 = vrot.slane %v1657_v36, 4  ;;  %v1727_v25 = vcombine.low %v10525_v42, %v10539_v54  ;;  %v1664_v31 = vrot.slane %v10530_v40, 6  ;;  %v10547_v22 = vcombine.high %v10513_v30, %v10513_v30  ;;  %v10565_v30 = vld [vmem:[%s9777_s30 + $0x1e8] sm:$0xff] }
  0x65   : > { %16238 = vst [vmem:[#allocation127_spill] sm:$0xff] %v10534_v35  ;;  %16239 = vst [vmem:[#allocation128_spill] sm:$0xff] %v10539_v54  ;;  %v1673_v6 = vrot.slane %v10520_v60, 6  ;;  %v10552_v63 = vsel %vm9809_vm3, %v1656_v61, %v1657_v36  ;;  %v16242_v52 = vrot.slane %v10497_v0, 6  ;;  %v1669_v54 = vrot.slane %v1667_v1, 4 }
  0x66   : > { %16240 = vst [vmem:[#allocation129_spill] sm:$0xff] %v10547_v22  ;;  %16241 = vst [vmem:[#allocation130_spill] sm:$0xff] %v10552_v63  ;;  %v10562_v42 = vcombine.high %v10534_v35, %v10534_v35  ;;  %v1665_v36 = vsel %vm9809_vm3, %v7001_v56, %v1664_v31  ;;  %v1666_v61 = vrot.slane %v1664_v31, 4  ;;  %v1670_v0 = vrot.slane %v10547_v22, 6 }
  0x67   : > { %v10558_v41 = vsel %vm9809_vm3, %v1659_v51, %v16242_v52  ;;  %16245 = vst [vmem:[#allocation133_spill] sm:$0xff] %v10565_v30  ;;  %8234 = vmatmul.mubr.msk.f32.gmra.mrb[32].mxu0 %vm704_vm2, %v1727_v25  ;;  %v10575_v51 = vcombine.high %v10520_v60, %v10520_v60  ;;  %v1675_v52 = vrot.slane %v1673_v6, 4  ;;  %v7002_v38 = vrot.slane %v10534_v35, 10 }
  0x68   : > { %16243 = vst [vmem:[#allocation131_spill] sm:$0xff] %v10558_v41  ;;  %16244 = vst [vmem:[#allocation132_spill] sm:$0xff] %v10562_v42  ;;  %v1728_v40 = vcombine.low %v10552_v63, %v10558_v41  ;;  %v1680_v37 = vrot.slane %v10562_v42, 6  ;;  %v10585_v25 = vsel %vm9809_vm3, %v1666_v61, %v1667_v1  ;;  %v10589_v31 = vsel %vm9809_vm3, %v1669_v54, %v1670_v0 }
  0x69   : > { %16246 = vst [vmem:[#allocation134_spill] sm:$0xff] %v10575_v51  ;;  %16248 = vst [vmem:[#allocation136_spill] sm:$0xff] %v10585_v25  ;;  %v1672_v56 = vrot.slane %v1670_v0, 4  ;;  %v10593_v41 = vcombine.high %v10565_v30, %v10565_v30  ;;  %v1729_v63 = vcombine.low %v1665_v36, %v10585_v25  ;;  %v15779_v42 = vrot.slane %v10575_v51, 6 }
  0x6a   : > { %8236 = vmatprep.mubr.msk.f32.mxu0 %vm704_vm2, %v1728_v40  ;;  %16249 = vst [vmem:[#allocation137_spill] sm:$0xff] %v10589_v31  ;;  %v1681_v40 = vsel %vm9809_vm3, %v7002_v38, %v1680_v37  ;;  %v1682_v35 = vrot.slane %v1680_v37, 4  ;;  %v1683_v54 = vrot.slane %v10565_v30, 6  ;;  %v10607_v61 = vcombine.high %v10580_v28, %v10580_v28 }
  0x6b   : > { %16250 = vst [vmem:[#allocation138_spill] sm:$0xff] %v10593_v41  ;;  %v10601_v1 = vsel %vm9809_vm3, %v1672_v56, %v1673_v6  ;;  %v1686_v0 = vrot.slane %v10593_v41, 6  ;;  %8237 = vmatmul.mubr.msk.f32.gmra.mrb[34].mxu0 %vm704_vm2, %v1729_v63  ;;  %v10616_v38 = vsel %vm9809_vm3, %v1675_v52, %v15779_v42  ;;  %v1689_v37 = vrot.slane %v10580_v28, 6 }
  0x6c   : > { %16251 = vst [vmem:[#allocation139_spill] sm:$0xff] %v10601_v1  ;;  %16252 = vst [vmem:[#allocation140_spill] sm:$0xff] %v10607_v61  ;;  %v1730_v36 = vcombine.low %v10589_v31, %v10601_v1  ;;  %v7043_v6 = vrot.slane %v9780_v8, 11  ;;  %v1731_v56 = vcombine.low %v10616_v38, %v1681_v40  ;;  %v10623_v25 = vsel %vm9809_vm3, %v1682_v35, %v1683_v54 }
  0x6d   : > { %16253 = vst [vmem:[#allocation141_spill] sm:$0xff] %v10616_v38  ;;  %16254 = vst [vmem:[#allocation142_spill] sm:$0xff] %v10623_v25  ;;  %v1685_v63 = vrot.slane %v1683_v54, 4  ;;  %v1688_v41 = vrot.slane %v1686_v0, 4  ;;  %v16255_v1 = vmov 0  ;;  %v1691_v52 = vrot.slane %v1689_v37, 4 }
  0x6e   : > { %v16256_v1 = vsel %vm10627_vm6, 4294967295, %v16255_v1  ;;  %8239 = vmatprep.mubr.msk.f32.mxu0 %vm704_vm2, %v1730_v36  ;;  %v15785_v42 = vrot.slane %v10607_v61, 6  ;;  %v2124_v8 = vrot.slane %v9792_v12, 7  ;;  %v2127_v40 = vrot.slane %v9783_v9, 7 }
  0x6f   : > { %16257 = vst [vmem:[#allocation143_spill] sm:$0xff] %v16256_v1  ;;  %v10637_v35 = vsel %vm9809_vm3, %v1685_v63, %v1686_v0  ;;  %v10641_v54 = vsel %vm9809_vm3, %v1688_v41, %v1689_v37  ;;  %v2130_v38 = vrot.slane %v9796_v13, 7  ;;  %v2133_v31 = vrot.slane %v9786_v10, 7  ;;  %8240 = vmatmul.mubr.msk.f32.gmra.mrb[36].mxu0 %vm704_vm2, %v1731_v56  ;;  %v11220_v1 = vld [vmem:[%s9777_s30 + $0x60] sm:$0xff] }
  0x70   : > { %16258 = vst [vmem:[#allocation144_spill] sm:$0xff] %v10637_v35  ;;  %16259 = vst [vmem:[#allocation145_spill] sm:$0xff] %v10641_v54  ;;  %v1732_v36 = vcombine.low %v10623_v25, %v10637_v35  ;;  %v10652_v9 = vsel %vm9809_vm3, %v1691_v52, %v15785_v42  ;;  %v2125_v0 = vsel %vm10627_vm6, %v7043_v6, %v2124_v8  ;;  %v2126_v41 = vrot.slane %v2124_v8, 4 }
  0x71   : > { %16260 = vst [vmem:[#allocation146_spill] sm:$0xff] %v10652_v9  ;;  %v1733_v37 = vcombine.low %v10641_v54, %v10652_v9  ;;  %v2129_v63 = vrot.slane %v2127_v40, 4  ;;  %v2132_v10 = vrot.slane %v2130_v38, 4  ;;  %v2135_v13 = vrot.slane %v2133_v31, 4  ;;  %v16332_v54 = vld [vmem:[#allocation94_spill] sm:$0xff]  ;;  %16385 = vst [vmem:[#allocation192_spill] sm:$0xff] %v11220_v1 }
  0x72   : > { %8242 = vmatprep.mubr.msk.f32.mxu0 %vm704_vm2, %v1732_v36  ;;  %v10661_v56 = vsel %vm10627_vm6, %v2126_v41, %v2127_v40  ;;  %v15787_v35 = vrot.slane %v9800_v14, 7  ;;  %v7044_v52 = vrot.slane %v9804_v16, 11  ;;  %v2140_v42 = vrot.slane %v9817_v21, 7 }
  0x73   : > { %16261 = vst [vmem:[#allocation147_spill] sm:$0xff] %v10661_v56  ;;  %v2378_v6 = vcombine.low %v2125_v0, %v10661_v56  ;;  %v10669_v8 = vsel %vm10627_vm6, %v2129_v63, %v2130_v38  ;;  %v10673_v9 = vsel %vm10627_vm6, %v2132_v10, %v2133_v31  ;;  %v2143_v36 = vrot.slane %v9807_v17, 7  ;;  %8243 = vmatmul.mubr.msk.f32.gmra.mrb[38].mxu0 %vm704_vm2, %v1733_v37  ;;  %v16327_v56 = vld [vmem:[#allocation95_spill] sm:$0xff] }
  0x74   : > { %16262 = vst [vmem:[#allocation148_spill] sm:$0xff] %v10669_v8  ;;  %16263 = vst [vmem:[#allocation149_spill] sm:$0xff] %v10673_v9  ;;  %v2379_v40 = vcombine.low %v10669_v8, %v10673_v9  ;;  %v10683_v16 = vsel %vm10627_vm6, %v2135_v13, %v15787_v35  ;;  %v2141_v38 = vsel %vm10627_vm6, %v7044_v52, %v2140_v42  ;;  %v2142_v0 = vrot.slane %v2140_v42, 4  ;;  %v16323_v9 = vld [vmem:[#allocation84_spill] sm:$0xff] }
  0x75   : > { %16264 = vst [vmem:[#allocation150_spill] sm:$0xff] %v10683_v16  ;;  %8249 = vmatprep.mubr.msk.f32.mxu0 %vm704_vm2, %v2378_v6  ;;  %v2380_v31 = vcombine.low %v10683_v16, %v2141_v38  ;;  %v2145_v41 = vrot.slane %v2143_v36, 4  ;;  %v2146_v37 = vrot.slane %v9825_v26, 7  ;;  %v2149_v13 = vrot.slane %v9845_v39, 7 }
  0x76   : > { %v10694_v63 = vsel %vm10627_vm6, %v2142_v0, %v2143_v36  ;;  %v15790_v10 = vrot.slane %v9882_v53, 7  ;;  %v7045_v42 = vrot.slane %v9857_v44, 11  ;;  %v2156_v38 = vrot.slane %v9893_v58, 7 }
  0x77   : > { %16265 = vst [vmem:[#allocation151_spill] sm:$0xff] %v10694_v63  ;;  %v10701_v52 = vsel %vm10627_vm6, %v2145_v41, %v2146_v37  ;;  %v2148_v6 = vrot.slane %v2146_v37, 4  ;;  %v2159_v17 = vrot.slane %v9867_v49, 7  ;;  %8250 = vmatmul.mubr.msk.f32.vlgmr.msra.gmra.mrb[0].mxu0 %vm704_vm2, %v2379_v40  ;;  %v2151_v0 = vrot.slane %v2149_v13, 4 }
  0x78   : > { %16266 = vst [vmem:[#allocation152_spill] sm:$0xff] %v10701_v52  ;;  %v2381_v36 = vcombine.low %v10694_v63, %v10701_v52  ;;  %v2162_v39 = vrot.slane %v9901_v62, 7  ;;  %v2165_v35 = vrot.slane %v9870_v50, 7  ;;  %8606 = vmatpush3.bf16.msra.mxu0 %v9788_v11  ;;  %8252 = vmatprep.mubr.msk.f32.mxu0 %vm704_vm2, %v2380_v31  ;;  %v2157_v49 = vsel %vm10627_vm6, %v7045_v42, %v2156_v38  ;;  %v11236_v62 = vld [vmem:[%s9777_s30 + $0x88] sm:$0xff] }
  0x79   : > { %v10714_v44 = vsel %vm10627_vm6, %v2148_v6, %v2149_v13  ;;  %v2158_v40 = vrot.slane %v2156_v38, 4  ;;  %v2161_v41 = vrot.slane %v2159_v17, 4  ;;  %v10722_v37 = vsel %vm10627_vm6, %v2151_v0, %v15790_v10  ;;  %16386 = vst [vmem:[#allocation193_spill] sm:$0xff] %v11236_v62  ;;  %v11257_v62 = vld [vmem:[%s9777_s30 + $0xb0] sm:$0xff] }
  0x7a   : > { %16267 = vst [vmem:[#allocation153_spill] sm:$0xff] %v10714_v44  ;;  %16268 = vst [vmem:[#allocation154_spill] sm:$0xff] %v10722_v37  ;;  %v2164_v50 = vrot.slane %v2162_v39, 4  ;;  %v2167_v52 = vrot.slane %v2165_v35, 4  ;;  %v15789_v11 = vrot.slane %v9918_v5, 7  ;;  %v2382_v31 = vcombine.low %v10714_v44, %v10722_v37  ;;  %v16319_v37 = vld [vmem:[#allocation81_spill] sm:$0xff] }
  0x7b   : > { %v10729_v13 = vsel %vm10627_vm6, %v2158_v40, %v2159_v17  ;;  %v10733_v42 = vsel %vm10627_vm6, %v2161_v41, %v2162_v39  ;;  %v7046_v6 = vrot.slane %v9885_v55, 11  ;;  %8253 = vmatmul.mubr.msk.f32.gmra.mrb[2].mxu0 %vm704_vm2, %v2381_v36  ;;  %v2172_v40 = vrot.slane %v9913_v3, 7  ;;  %v16354_v3 = vld [vmem:[#allocation112_spill] sm:$0xff] }
  0x7c   : > { %16269 = vst [vmem:[#allocation155_spill] sm:$0xff] %v10729_v13  ;;  %16270 = vst [vmem:[#allocation156_spill] sm:$0xff] %v10733_v42  ;;  %v2383_v38 = vcombine.low %v2157_v49, %v10729_v13  ;;  %v10740_v0 = vsel %vm10627_vm6, %v2164_v50, %v2165_v35  ;;  %v10746_v17 = vsel %vm10627_vm6, %v2167_v52, %v15789_v11  ;;  %8255 = vmatprep.mubr.msk.f32.mxu0 %vm704_vm2, %v2382_v31 }
  0x7d   : > { %16271 = vst [vmem:[#allocation157_spill] sm:$0xff] %v10740_v0  ;;  %16272 = vst [vmem:[#allocation158_spill] sm:$0xff] %v10746_v17  ;;  %v2384_v55 = vcombine.low %v10733_v42, %v10740_v0  ;;  %v2175_v36 = vrot.slane %v9921_v15, 7  ;;  %v2178_v39 = vrot.slane %v9951_v33, 7  ;;  %v2181_v35 = vrot.slane %v9934_v24, 7 }
  0x7e   : > { %v2173_v49 = vsel %vm10627_vm6, %v7046_v6, %v2172_v40  ;;  %v2174_v41 = vrot.slane %v2172_v40, 4  ;;  %v15793_v52 = vrot.slane %v9968_v43, 7  ;;  %v7047_v50 = vrot.slane %v9971_v45, 11  ;;  %v11252_v43 = vld [vmem:[%s9777_s30 + $0xa8] sm:$0xff] }
  0x7f   : > { %v2385_v11 = vcombine.low %v10746_v17, %v2173_v49  ;;  %v2177_v31 = vrot.slane %v2175_v36, 4  ;;  %v2180_v10 = vrot.slane %v2178_v39, 4  ;;  %v2183_v13 = vrot.slane %v2181_v35, 4  ;;  %8256 = vmatmul.mubr.msk.f32.gmra.mrb[4].mxu0 %vm704_vm2, %v2383_v38 }
  0x80   : > { %v10763_v15 = vsel %vm10627_vm6, %v2174_v41, %v2175_v36  ;;  %v2188_v24 = vrot.slane %v9995_v7, 7  ;;  %v2191_v6 = vrot.slane %v9978_v59, 7  ;;  %v2194_v40 = vrot.slane %v10008_v34, 7  ;;  %8258 = vmatprep.mubr.msk.f32.mxu0 %vm704_vm2, %v2384_v55  ;;  %v11262_v34 = vld [vmem:[%s9777_s30 + $0xc8] sm:$0xff]  ;;  %v11267_v7 = vld [vmem:[%s9777_s30 + $0xd0] sm:$0xff] }
  0x81   : > { %16273 = vst [vmem:[#allocation159_spill] sm:$0xff] %v10763_v15  ;;  %v10771_v45 = vsel %vm10627_vm6, %v2177_v31, %v2178_v39  ;;  %v10775_v49 = vsel %vm10627_vm6, %v2180_v10, %v2181_v35  ;;  %v10781_v38 = vsel %vm10627_vm6, %v2183_v13, %v15793_v52  ;;  %v2197_v59 = vrot.slane %v9986_v4, 7  ;;  %16388 = vst [vmem:[#allocation195_spill] sm:$0xff] %v11262_v34  ;;  %v11287_v34 = vld [vmem:[%s9777_s30 + $0x108] sm:$0xff] }
  0x82   : > { %16274 = vst [vmem:[#allocation160_spill] sm:$0xff] %v10771_v45  ;;  %16275 = vst [vmem:[#allocation161_spill] sm:$0xff] %v10775_v49  ;;  %v2386_v36 = vcombine.low %v10763_v15, %v10771_v45  ;;  %v2387_v55 = vcombine.low %v10775_v49, %v10781_v38  ;;  %v2189_v39 = vsel %vm10627_vm6, %v7047_v50, %v2188_v24  ;;  %v2190_v41 = vrot.slane %v2188_v24, 4 }
  0x83   : > { %16276 = vst [vmem:[#allocation162_spill] sm:$0xff] %v10781_v38  ;;  %v2193_v10 = vrot.slane %v2191_v6, 4  ;;  %v2196_v35 = vrot.slane %v2194_v40, 4  ;;  %v2199_v31 = vrot.slane %v2197_v59, 4  ;;  %v15795_v0 = vrot.slane %v10040_v32, 7  ;;  %8259 = vmatmul.mubr.msk.f32.gmra.mrb[6].mxu0 %vm704_vm2, %v2385_v11  ;;  %v16353_v32 = vld [vmem:[#allocation107_spill] sm:$0xff] }
  0x84   : > { %v10794_v4 = vsel %vm10627_vm6, %v2190_v41, %v2191_v6  ;;  %v7048_v13 = vrot.slane %v10000_v23, 11  ;;  %v2204_v52 = vrot.slane %v10028_v48, 7  ;;  %v2207_v38 = vrot.slane %v10031_v47, 7  ;;  %8261 = vmatprep.mubr.msk.f32.mxu0 %vm704_vm2, %v2386_v36 }
  0x85   : > { %16277 = vst [vmem:[#allocation163_spill] sm:$0xff] %v10794_v4  ;;  %v2388_v50 = vcombine.low %v2189_v39, %v10794_v4  ;;  %v10803_v24 = vsel %vm10627_vm6, %v2193_v10, %v2194_v40  ;;  %v10807_v11 = vsel %vm10627_vm6, %v2196_v35, %v2197_v59  ;;  %v10813_v23 = vsel %vm10627_vm6, %v2199_v31, %v15795_v0 }
  0x86   : > { %16278 = vst [vmem:[#allocation164_spill] sm:$0xff] %v10803_v24  ;;  %16279 = vst [vmem:[#allocation165_spill] sm:$0xff] %v10807_v11  ;;  %v2389_v47 = vcombine.low %v10803_v24, %v10807_v11  ;;  %v2205_v6 = vsel %vm10627_vm6, %v7048_v13, %v2204_v52  ;;  %v2206_v36 = vrot.slane %v2204_v52, 4  ;;  %v2209_v39 = vrot.slane %v2207_v38, 4  ;;  %v16286_v11 = vld [vmem:[#allocation44_spill] sm:$0xff] }
  0x87   : > { %16280 = vst [vmem:[#allocation166_spill] sm:$0xff] %v10813_v23  ;;  %v2390_v40 = vcombine.low %v10813_v23, %v2205_v6  ;;  %v2210_v41 = vrot.slane %v10058_v57, 7  ;;  %v2213_v59 = vrot.slane %v10043_v2, 7  ;;  %8262 = vmatmul.mubr.msk.f32.gmra.mrb[8].mxu0 %vm704_vm2, %v2387_v55  ;;  %v7049_v31 = vrot.slane %v10072_v46, 11  ;;  %v11277_v57 = vld [vmem:[%s9777_s30 + $0xe8] sm:$0xff] }
  0x88   : > { %v10826_v35 = vsel %vm10627_vm6, %v2206_v36, %v2207_v38  ;;  %v2220_v13 = vrot.slane %v10101_v27, 7  ;;  %v2223_v52 = vrot.slane %v10085_v20, 7  ;;  %8264 = vmatprep.mubr.msk.f32.mxu0 %vm704_vm2, %v2388_v50  ;;  %v2226_v55 = vrot.slane %v10119_v19, 7  ;;  %v11292_v19 = vld [vmem:[%s9777_s30 + $0x110] sm:$0xff] }
  0x89   : > { %16281 = vst [vmem:[#allocation167_spill] sm:$0xff] %v10826_v35  ;;  %v10834_v6 = vsel %vm10627_vm6, %v2209_v39, %v2210_v41  ;;  %v2212_v2 = vrot.slane %v2210_v41, 4  ;;  %v2215_v0 = vrot.slane %v2213_v59, 4  ;;  %v16284_v50 = vrot.slane %v10069_v29, 7  ;;  %v11282_v29 = vld [vmem:[%s9777_s30 + $0xf0] sm:$0xff]  ;;  %16390 = vst [vmem:[#allocation197_spill] sm:$0xff] %v11292_v19 }
  0x8a   : > { %16282 = vst [vmem:[#allocation168_spill] sm:$0xff] %v10834_v6  ;;  %v2391_v38 = vcombine.low %v10826_v35, %v10834_v6  ;;  %v2221_v46 = vsel %vm10627_vm6, %v7049_v31, %v2220_v13  ;;  %v2222_v36 = vrot.slane %v2220_v13, 4  ;;  %v2225_v10 = vrot.slane %v2223_v52, 4  ;;  %v16294_v35 = vld [vmem:[#allocation58_spill] sm:$0xff]  ;;  %v11323_v19 = vld [vmem:[%s9777_s30 + $0x150] sm:$0xff] }
  0x8b   : > { %v10843_v20 = vsel %vm10627_vm6, %v2212_v2, %v2213_v59  ;;  %v10849_v39 = vsel %vm10627_vm6, %v2215_v0, %v16284_v50  ;;  %v2228_v41 = vrot.slane %v2226_v55, 4  ;;  %v2229_v23 = vrot.slane %v16286_v11, 7  ;;  %8265 = vmatmul.mubr.msk.f32.gmra.mrb[10].mxu0 %vm704_vm2, %v2389_v47  ;;  %v16289_v2 = vld [vmem:[#allocation54_spill] sm:$0xff]  ;;  %v16291_v50 = vld [vmem:[#allocation47_spill] sm:$0xff]  ;;  %16393 = vst [vmem:[#allocation199_spill] sm:$0xff] %v11323_v19 }
  0x8c   : > { %16283 = vst [vmem:[#allocation169_spill] sm:$0xff] %v10843_v20  ;;  %16285 = vst [vmem:[#allocation170_spill] sm:$0xff] %v10849_v39  ;;  %v2392_v31 = vcombine.low %v10843_v20, %v10849_v39  ;;  %v10857_v13 = vsel %vm10627_vm6, %v2222_v36, %v2223_v52  ;;  %v10861_v59 = vsel %vm10627_vm6, %v2225_v10, %v2226_v55  ;;  %8267 = vmatprep.mubr.msk.f32.mxu0 %vm704_vm2, %v2390_v40  ;;  %v16292_v36 = vld [vmem:[#allocation52_spill] sm:$0xff]  ;;  %v16293_v10 = vld [vmem:[#allocation53_spill] sm:$0xff] }
  0x8d   : > { %16287 = vst [vmem:[#allocation44_spill] sm:$0xff] %v10857_v13  ;;  %16288 = vst [vmem:[#allocation171_spill] sm:$0xff] %v10861_v59  ;;  %v2393_v0 = vcombine.low %v2221_v46, %v10857_v13  ;;  %v10868_v11 = vsel %vm10627_vm6, %v2228_v41, %v2229_v23  ;;  %v2231_v47 = vrot.slane %v2229_v23, 4  ;;  %v7050_v39 = vrot.slane %v16291_v50, 11  ;;  %v16297_v41 = vld [vmem:[#allocation55_spill] sm:$0xff]  ;;  %v16298_v23 = vld [vmem:[#allocation61_spill] sm:$0xff] }
  0x8e   : > { %16290 = vst [vmem:[#allocation172_spill] sm:$0xff] %v10868_v11  ;;  %v2394_v52 = vcombine.low %v10861_v59, %v10868_v11  ;;  %v2236_v20 = vrot.slane %v16292_v36, 7  ;;  %v2239_v55 = vrot.slane %v16293_v10, 7  ;;  %v2242_v6 = vrot.slane %v16294_v35, 7  ;;  %v16299_v50 = vld [vmem:[#allocation59_spill] sm:$0xff]  ;;  %v11302_v35 = vld [vmem:[%s9777_s30 + $0x128] sm:$0xff] }
  0x8f   : > { %v16295_v40 = vrot.slane %v16289_v2, 7  ;;  %v2245_v13 = vrot.slane %v16297_v41, 7  ;;  %v15813_v4 = vrot.slane %v16298_v23, 7  ;;  %v7051_v24 = vrot.slane %v16299_v50, 11  ;;  %8268 = vmatmul.mubr.msk.f32.gmra.mrb[12].mxu0 %vm704_vm2, %v2391_v38  ;;  %v16301_v41 = vld [vmem:[#allocation63_spill] sm:$0xff]  ;;  %v16349_v2 = vld [vmem:[#allocation104_spill] sm:$0xff] }
  0x90   : > { %v2237_v11 = vsel %vm10627_vm6, %v7050_v39, %v2236_v20  ;;  %v2238_v10 = vrot.slane %v2236_v20, 4  ;;  %v2241_v59 = vrot.slane %v2239_v55, 4  ;;  %v2244_v45 = vrot.slane %v2242_v6, 4  ;;  %8270 = vmatprep.mubr.msk.f32.mxu0 %vm704_vm2, %v2392_v31  ;;  %v16305_v39 = vld [vmem:[#allocation69_spill] sm:$0xff]  ;;  %v306_v19 = vld [vmem:[%s15624_s1 + $0x68] sm:$0xff] }
  0x91   : > { %v10880_v46 = vsel %vm10627_vm6, %v2231_v47, %v16295_v40  ;;  %v2247_v47 = vrot.slane %v2245_v13, 4  ;;  %v16300_v40 = vld [vmem:[#allocation64_spill] sm:$0xff]  ;;  %v2255_v17 = vrot.slane %v16301_v41, 7  ;;  %v2258_v31 = vrot.slane %v16305_v39, 7  ;;  %v11316_v39 = vld [vmem:[%s9777_s30 + $0x148] sm:$0xff] }
  0x92   : > { %16296 = vst [vmem:[#allocation47_spill] sm:$0xff] %v10880_v46  ;;  %v2395_v49 = vcombine.low %v10880_v46, %v2237_v11  ;;  %v2252_v15 = vrot.slane %v16300_v40, 7  ;;  %v10894_v50 = vsel %vm10627_vm6, %v2238_v10, %v2239_v55  ;;  %v10898_v38 = vsel %vm10627_vm6, %v2241_v59, %v2242_v6  ;;  %v16307_v10 = vld [vmem:[#allocation66_spill] sm:$0xff] }
  0x93   : > { %16302 = vst [vmem:[#allocation53_spill] sm:$0xff] %v10894_v50  ;;  %16303 = vst [vmem:[#allocation55_spill] sm:$0xff] %v10898_v38  ;;  %v10902_v20 = vsel %vm10627_vm6, %v2244_v45, %v2245_v13  ;;  %v2396_v11 = vcombine.low %v10894_v50, %v10898_v38  ;;  %v10911_v41 = vsel %vm10627_vm6, %v2247_v47, %v15813_v4  ;;  %8271 = vmatmul.mubr.msk.f32.gmra.mrb[14].mxu0 %vm704_vm2, %v2393_v0  ;;  %v16309_v47 = vld [vmem:[#allocation75_spill] sm:$0xff]  ;;  %v16310_v50 = vld [vmem:[#allocation70_spill] sm:$0xff] }
  0x94   : > { %16304 = vst [vmem:[#allocation59_spill] sm:$0xff] %v10902_v20  ;;  %16306 = vst [vmem:[#allocation63_spill] sm:$0xff] %v10911_v41  ;;  %v2253_v55 = vsel %vm10627_vm6, %v7051_v24, %v2252_v15  ;;  %v2254_v6 = vrot.slane %v2252_v15, 4  ;;  %v2397_v45 = vcombine.low %v10902_v20, %v10911_v41  ;;  %v2257_v13 = vrot.slane %v2255_v17, 4  ;;  %8273 = vmatprep.mubr.msk.f32.mxu0 %vm704_vm2, %v2394_v52  ;;  %v16311_v15 = vld [vmem:[#allocation74_spill] sm:$0xff]  ;;  %v16314_v4 = vld [vmem:[#allocation72_spill] sm:$0xff] }
  0x95   : > { %v2260_v59 = vrot.slane %v2258_v31, 4  ;;  %v2261_v46 = vrot.slane %v16307_v10, 7  ;;  %v7052_v24 = vrot.slane %v16310_v50, 11  ;;  %v2268_v42 = vrot.slane %v16311_v15, 7 }
  0x96   : > { %v10922_v38 = vsel %vm10627_vm6, %v2254_v6, %v2255_v17  ;;  %v10930_v41 = vsel %vm10627_vm6, %v2257_v13, %v2258_v31  ;;  %v2271_v20 = vrot.slane %v16314_v4, 7  ;;  %v16317_v13 = vld [vmem:[#allocation79_spill] sm:$0xff]  ;;  %v2287_v63 = vrot.slane %v16323_v9, 7 }
  0x97   : > { %16308 = vst [vmem:[#allocation66_spill] sm:$0xff] %v10922_v38  ;;  %v2398_v0 = vcombine.low %v2253_v55, %v10922_v38  ;;  %16312 = vst [vmem:[#allocation70_spill] sm:$0xff] %v10930_v41  ;;  %v10934_v10 = vsel %vm10627_vm6, %v2260_v59, %v2261_v46  ;;  %v2263_v52 = vrot.slane %v2261_v46, 4  ;;  %v2269_v6 = vsel %vm10627_vm6, %v7052_v24, %v2268_v42  ;;  %v16318_v46 = vld [vmem:[#allocation76_spill] sm:$0xff]  ;;  %v16321_v24 = vld [vmem:[#allocation77_spill] sm:$0xff] }
  0x98   : > { %16313 = vst [vmem:[#allocation173_spill] sm:$0xff] %v10934_v10  ;;  %v2399_v17 = vcombine.low %v10930_v41, %v10934_v10  ;;  %v2270_v50 = vrot.slane %v2268_v42, 4  ;;  %8274 = vmatmul.mubr.msk.f32.gmra.mrb[16].mxu0 %vm704_vm2, %v2395_v49  ;;  %v16315_v55 = vrot.slane %v16309_v47, 7  ;;  %v2274_v59 = vrot.slane %v16317_v13, 7  ;;  %v16343_v47 = vld [vmem:[#allocation106_spill] sm:$0xff] }
  0x99   : > { %v2277_v38 = vrot.slane %v16318_v46, 7  ;;  %8276 = vmatprep.mubr.msk.f32.mxu0 %vm704_vm2, %v2396_v11  ;;  %v2273_v49 = vrot.slane %v2271_v20, 4  ;;  %v7053_v41 = vrot.slane %v16321_v24, 11  ;;  %v16325_v11 = vld [vmem:[#allocation88_spill] sm:$0xff]  ;;  %v16329_v9 = vrot.slane %v16319_v37, 7 }
  0x9a   : > { %v10946_v31 = vsel %vm10627_vm6, %v2263_v52, %v16315_v55  ;;  %v10955_v4 = vsel %vm10627_vm6, %v2270_v50, %v2271_v20  ;;  %v2276_v44 = vrot.slane %v2274_v59, 4  ;;  %v16322_v55 = vld [vmem:[#allocation82_spill] sm:$0xff]  ;;  %v2290_v10 = vrot.slane %v16325_v11, 7 }
  0x9b   : > { %16316 = vst [vmem:[#allocation72_spill] sm:$0xff] %v10946_v31  ;;  %v2400_v42 = vcombine.low %v10946_v31, %v2269_v6  ;;  %16320 = vst [vmem:[#allocation76_spill] sm:$0xff] %v10955_v4  ;;  %v2279_v52 = vrot.slane %v2277_v38, 4  ;;  %v2284_v16 = vrot.slane %v16322_v55, 7  ;;  %v10962_v46 = vsel %vm10627_vm6, %v2273_v49, %v2274_v59  ;;  %v16326_v6 = vld [vmem:[#allocation86_spill] sm:$0xff] }
  0x9c   : > { %16324 = vst [vmem:[#allocation77_spill] sm:$0xff] %v10962_v46  ;;  %v2293_v31 = vrot.slane %v16326_v6, 7  ;;  %8277 = vmatmul.mubr.msk.f32.gmra.mrb[18].mxu0 %vm704_vm2, %v2397_v45  ;;  %v2401_v20 = vcombine.low %v10955_v4, %v10962_v46  ;;  %v10972_v24 = vsel %vm10627_vm6, %v2276_v44, %v2277_v38  ;;  %v2289_v46 = vrot.slane %v2287_v63, 4  ;;  %v16331_v44 = vld [vmem:[#allocation89_spill] sm:$0xff] }
  0x9d   : > { %16328 = vst [vmem:[#allocation84_spill] sm:$0xff] %v10972_v24  ;;  %v10978_v59 = vsel %vm10627_vm6, %v2279_v52, %v16329_v9  ;;  %v2285_v49 = vsel %vm10627_vm6, %v7053_v41, %v2284_v16  ;;  %8279 = vmatprep.mubr.msk.f32.mxu0 %vm704_vm2, %v2398_v0  ;;  %v2286_v50 = vrot.slane %v2284_v16, 4  ;;  %v2292_v4 = vrot.slane %v2290_v10, 4  ;;  %v16337_v0 = vld [vmem:[#allocation98_spill] sm:$0xff] }
  0x9e   : > { %16330 = vst [vmem:[#allocation86_spill] sm:$0xff] %v10978_v59  ;;  %v2402_v45 = vcombine.low %v10972_v24, %v10978_v59  ;;  %v2295_v8 = vrot.slane %v2293_v31, 4  ;;  %v7054_v38 = vrot.slane %v16331_v44, 11  ;;  %v2300_v25 = vrot.slane %v16332_v54, 7  ;;  %v16341_v54 = vld [vmem:[#allocation100_spill] sm:$0xff]  ;;  %v9568_v44 = vld [vmem:[%s9777_s30 + $0x8] sm:$0xff] }
  0x9f   : > { %v2303_v15 = vrot.slane %v16333_v18, 7  ;;  %v10990_v52 = vsel %vm10627_vm6, %v2286_v50, %v2287_v63  ;;  %v10994_v41 = vsel %vm10627_vm6, %v2289_v46, %v2290_v10  ;;  %v10998_v16 = vsel %vm10627_vm6, %v2292_v4, %v2293_v31 }
  0xa0   : > { %16334 = vst [vmem:[#allocation92_spill] sm:$0xff] %v10990_v52  ;;  %16335 = vst [vmem:[#allocation174_spill] sm:$0xff] %v10994_v41  ;;  %v2306_v9 = vrot.slane %v16337_v0, 7  ;;  %8280 = vmatmul.mubr.msk.f32.gmra.mrb[20].mxu0 %vm704_vm2, %v2399_v17  ;;  %v2403_v59 = vcombine.low %v2285_v49, %v10990_v52  ;;  %v2404_v24 = vcombine.low %v10994_v41, %v10998_v16  ;;  %v16338_v63 = vrot.slane %v16327_v56, 7  ;;  %v16340_v49 = vld [vmem:[#allocation96_spill] sm:$0xff]  ;;  %v16342_v41 = vld [vmem:[#allocation101_spill] sm:$0xff] }
  0xa1   : > { %16336 = vst [vmem:[#allocation175_spill] sm:$0xff] %v10998_v16  ;;  %v2301_v10 = vsel %vm10627_vm6, %v7054_v38, %v2300_v25  ;;  %8282 = vmatprep.mubr.msk.f32.mxu0 %vm704_vm2, %v2400_v42  ;;  %v2302_v4 = vrot.slane %v2300_v25, 4  ;;  %v2305_v17 = vrot.slane %v2303_v15, 4  ;;  %v2309_v52 = vrot.slane %v16340_v49, 7  ;;  %v16346_v38 = vld [vmem:[#allocation103_spill] sm:$0xff] }
  0xa2   : > { %v11009_v50 = vsel %vm10627_vm6, %v2295_v8, %v16338_v63  ;;  %v2308_v46 = vrot.slane %v2306_v9, 4  ;;  %v7055_v56 = vrot.slane %v16342_v41, 11  ;;  %v2316_v36 = vrot.slane %v16343_v47, 7  ;;  %v16347_v63 = vld [vmem:[#allocation109_spill] sm:$0xff] }
  0xa3   : > { %16339 = vst [vmem:[#allocation176_spill] sm:$0xff] %v11009_v50  ;;  %v2405_v31 = vcombine.low %v11009_v50, %v2301_v10  ;;  %v11021_v8 = vsel %vm10627_vm6, %v2302_v4, %v2303_v15  ;;  %v11025_v42 = vsel %vm10627_vm6, %v2305_v17, %v2306_v9  ;;  %v2319_v25 = vrot.slane %v16346_v38, 7 }
  0xa4   : > { %16344 = vst [vmem:[#allocation101_spill] sm:$0xff] %v11021_v8  ;;  %16345 = vst [vmem:[#allocation177_spill] sm:$0xff] %v11025_v42  ;;  %v2322_v10 = vrot.slane %v16347_v63, 7  ;;  %8283 = vmatmul.mubr.msk.f32.gmra.mrb[22].mxu0 %vm704_vm2, %v2401_v20  ;;  %v2406_v16 = vcombine.low %v11021_v8, %v11025_v42  ;;  %v11034_v41 = vsel %vm10627_vm6, %v2308_v46, %v2309_v52  ;;  %v2311_v50 = vrot.slane %v2309_v52, 4  ;;  %v16352_v8 = vld [vmem:[#allocation114_spill] sm:$0xff] }
  0xa5   : > { %16348 = vst [vmem:[#allocation178_spill] sm:$0xff] %v11034_v41  ;;  %v2317_v15 = vsel %vm10627_vm6, %v7055_v56, %v2316_v36  ;;  %8285 = vmatprep.mubr.msk.f32.mxu0 %vm704_vm2, %v2402_v45  ;;  %v2318_v9 = vrot.slane %v2316_v36, 4  ;;  %v2321_v4 = vrot.slane %v2319_v25, 4  ;;  %v2325_v48 = vrot.slane %v16349_v2, 7 }
  0xa6   : > { %v2324_v17 = vrot.slane %v2322_v10, 4  ;;  %v16350_v20 = vrot.slane %v16341_v54, 7  ;;  %v7056_v52 = vrot.slane %v16353_v32, 11  ;;  %v2332_v5 = vrot.slane %v16354_v3, 7 }
  0xa7   : > { %v11053_v36 = vsel %vm10627_vm6, %v2318_v9, %v2319_v25  ;;  %v11057_v45 = vsel %vm10627_vm6, %v2321_v4, %v2322_v10  ;;  %v16358_v10 = vld [vmem:[#allocation113_spill] sm:$0xff] }
  0xa8   : > { %v11044_v42 = vsel %vm10627_vm6, %v2311_v50, %v16350_v20  ;;  %16355 = vst [vmem:[#allocation107_spill] sm:$0xff] %v11053_v36  ;;  %16356 = vst [vmem:[#allocation179_spill] sm:$0xff] %v11057_v45  ;;  %v11061_v50 = vsel %vm10627_vm6, %v2324_v17, %v2325_v48  ;;  %8286 = vmatmul.mubr.msk.f32.gmra.mrb[24].mxu0 %vm704_vm2, %v2403_v59  ;;  %v2408_v20 = vcombine.low %v2317_v15, %v11053_v36  ;;  %v16360_v17 = vld [vmem:[#allocation115_spill] sm:$0xff]  ;;  %v16364_v36 = vld [vmem:[#allocation121_spill] sm:$0xff] }
  0xa9   : > { %16351 = vst [vmem:[#allocation104_spill] sm:$0xff] %v11044_v42  ;;  %v2407_v56 = vcombine.low %v11034_v41, %v11044_v42  ;;  %16357 = vst [vmem:[#allocation180_spill] sm:$0xff] %v11061_v50  ;;  %v2409_v46 = vcombine.low %v11057_v45, %v11061_v50  ;;  %v2327_v42 = vrot.slane %v2325_v48, 4  ;;  %v2333_v25 = vsel %vm10627_vm6, %v7056_v52, %v2332_v5  ;;  %v16359_v41 = vld [vmem:[#allocation118_spill] sm:$0xff]  ;;  %v16363_v50 = vld [vmem:[#allocation120_spill] sm:$0xff] }
  0xaa   : > { %8288 = vmatprep.mubr.msk.f32.mxu0 %vm704_vm2, %v2404_v24  ;;  %v2334_v9 = vrot.slane %v2332_v5, 4  ;;  %v2335_v4 = vrot.slane %v16358_v10, 7  ;;  %v2338_v3 = vrot.slane %v16359_v41, 7  ;;  %v2341_v21 = vrot.slane %v16360_v17, 7  ;;  %v16365_v52 = vld [vmem:[#allocation126_spill] sm:$0xff]  ;;  %v16367_v48 = vld [vmem:[#allocation123_spill] sm:$0xff] }
  0xab   : > { %v16361_v59 = vrot.slane %v16352_v8, 7  ;;  %v7057_v45 = vrot.slane %v16364_v36, 11  ;;  %v2348_v14 = vrot.slane %v16365_v52, 7  ;;  %v2351_v36 = vrot.slane %v16367_v48, 7 }
  0xac   : > { %v11085_v24 = vsel %vm10627_vm6, %v2334_v9, %v2335_v4  ;;  %v2337_v10 = vrot.slane %v2335_v4, 4  ;;  %v2340_v17 = vrot.slane %v2338_v3, 4  ;;  %8289 = vmatmul.mubr.msk.f32.gmra.mrb[26].mxu0 %vm704_vm2, %v2405_v31  ;;  %v2343_v8 = vrot.slane %v2341_v21, 4 }
  0xad   : > { %v11077_v15 = vsel %vm10627_vm6, %v2327_v42, %v16361_v59  ;;  %16366 = vst [vmem:[#allocation121_spill] sm:$0xff] %v11085_v24  ;;  %v11090_v42 = vsel %vm10627_vm6, %v7057_v45, %v2348_v14  ;;  %v2350_v59 = vrot.slane %v2348_v14, 4  ;;  %8291 = vmatprep.mubr.msk.f32.mxu0 %vm704_vm2, %v2406_v16  ;;  %v2354_v31 = vrot.slane %v10547_v22, 7 }
  0xae   : > { %16362 = vst [vmem:[#allocation181_spill] sm:$0xff] %v11077_v15  ;;  %v2410_v5 = vcombine.low %v11077_v15, %v2333_v25  ;;  %v11096_v25 = vsel %vm10627_vm6, %v2337_v10, %v2338_v3  ;;  %v11100_v9 = vsel %vm10627_vm6, %v2340_v17, %v2341_v21  ;;  %v2357_v4 = vrot.slane %v10520_v60, 7 }
  0xaf   : > { %16368 = vst [vmem:[#allocation123_spill] sm:$0xff] %v11096_v25  ;;  %16369 = vst [vmem:[#allocation182_spill] sm:$0xff] %v11100_v9  ;;  %v2411_v45 = vcombine.low %v11085_v24, %v11096_v25  ;;  %v16370_v14 = vrot.slane %v16363_v50, 7  ;;  %v11114_v3 = vsel %vm10627_vm6, %v2350_v59, %v2351_v36  ;;  %v2353_v10 = vrot.slane %v2351_v36, 4  ;;  %v16375_v24 = vld [vmem:[#allocation132_spill] sm:$0xff] }
  0xb0   : > { %16372 = vst [vmem:[#allocation184_spill] sm:$0xff] %v11114_v3  ;;  %v2356_v15 = vrot.slane %v2354_v31, 4  ;;  %v2359_v22 = vrot.slane %v2357_v4, 4  ;;  %8292 = vmatmul.mubr.msk.f32.gmra.mrb[28].mxu0 %vm704_vm2, %v2407_v56  ;;  %v2364_v36 = vrot.slane %v16375_v24, 7  ;;  %v2367_v17 = vrot.slane %v10565_v30, 7  ;;  %v16383_v30 = vld [vmem:[#allocation6_spill] sm:$0xff] }
  0xb1   : > { %v11110_v16 = vsel %vm10627_vm6, %v2343_v8, %v16370_v14  ;;  %v11123_v25 = vsel %vm10627_vm6, %v2353_v10, %v2354_v31  ;;  %v16374_v14 = vld [vmem:[#allocation127_spill] sm:$0xff]  ;;  %8294 = vmatprep.mubr.msk.f32.mxu0 %vm704_vm2, %v2408_v20  ;;  %v2373_v31 = vrot.slane %v10580_v28, 7  ;;  %v304_v8 = vld [vmem:[%s15624_s1 + $0x58] sm:$0xff]  ;;  %v16392_v23 = vcombine.low %v11090_v42, %v11114_v3 }
  0xb2   : > { %16371 = vst [vmem:[#allocation183_spill] sm:$0xff] %v11110_v16  ;;  %v2412_v21 = vcombine.low %v11100_v9, %v11110_v16  ;;  %16373 = vst [vmem:[#allocation185_spill] sm:$0xff] %v11123_v25  ;;  %v7058_v59 = vrot.slane %v16374_v14, 11  ;;  %v11131_v16 = vsel %vm10627_vm6, %v2356_v15, %v2357_v4  ;;  %v16377_v9 = vld [vmem:[#allocation138_spill] sm:$0xff]  ;;  %v303_v10 = vld [vmem:[%s15624_s1 + $0x50] sm:$0xff]  ;;  %v16378_v15 = vrot.slane %v10575_v51, 7 }
  0xb3   : > { %16376 = vst [vmem:[#allocation186_spill] sm:$0xff] %v11131_v16  ;;  %v2370_v56 = vrot.slane %v16377_v9, 7  ;;  %v2366_v28 = vrot.slane %v2364_v36, 4  ;;  %v2369_v9 = vrot.slane %v2367_v17, 4  ;;  %v2375_v60 = vrot.slane %v2373_v31, 4  ;;  %v11231_v51 = vld [vmem:[%s9777_s30 + $0x70] sm:$0xff] }
  0xb4   : > { %v11148_v4 = vsel %vm10627_vm6, %v2359_v22, %v16378_v15  ;;  %v11152_v24 = vsel %vm10627_vm6, %v7058_v59, %v2364_v36  ;;  %8295 = vmatmul.mubr.msk.f32.gmra.mrb[30].mxu0 %vm704_vm2, %v2409_v46  ;;  %v15877_v15 = vrot.slane %v10607_v61, 7  ;;  %v11163_v59 = vld [vmem:[%s9777_s30 + $0x8] sm:$0xff]  ;;  %v11167_v20 = vpack.c.bf16 %v304_v8, %v303_v10  ;;  %v11184_v8 = vld [vmem:[%s9777_s30 + $0x20] sm:$0xff]  ;;  %v11203_v10 = vld [vmem:[%s9777_s30 + $0x30] sm:$0xff] }
  0xb5   : > { %16379 = vst [vmem:[#allocation187_spill] sm:$0xff] %v11148_v4  ;;  %v2372_v14 = vrot.slane %v2370_v56, 4  ;;  %v11159_v22 = vsel %vm10627_vm6, %v2366_v28, %v2367_v17  ;;  %8297 = vmatprep.mubr.msk.f32.mxu0 %vm704_vm2, %v2410_v5  ;;  %v11172_v46 = vsel %vm10627_vm6, %v2369_v9, %v2370_v56  ;;  %v11179_v17 = vld [vmem:[%s9777_s30 + $0x10] sm:$0xff]  ;;  %v11198_v56 = vld [vmem:[%s9777_s30 + $0x28] sm:$0xff]  ;;  %v296_v5 = vld [vmem:[%s15624_s1 + $0x18] sm:$0xff]  ;;  %v416_v38 = vrot.slane %v16383_v30, 5 }
  0xb6   : > { %16380 = vst [vmem:[#allocation188_spill] sm:$0xff] %v11159_v22  ;;  %16381 = vst [vmem:[#allocation189_spill] sm:$0xff] %v11172_v46  ;;  %8608 = vmatprep.subr.bf16.mxu0 %v11167_v20  ;;  %v11215_v9 = vld [vmem:[%s9777_s30 + $0x50] sm:$0xff]  ;;  %v11226_v36 = vld [vmem:[%s9777_s30 + $0x68] sm:$0xff]  ;;  %v16405_v0 = vcombine.low %v11159_v22, %v11172_v46 }
  0xb7   : > { %v11176_v28 = vsel %vm10627_vm6, %v2372_v14, %v2373_v31  ;;  %v11194_v14 = vsel %vm10627_vm6, %v2375_v60, %v15877_v15  ;;  %v11210_v60 = vld [vmem:[%s9777_s30 + $0x48] sm:$0xff]  ;;  %v11247_v15 = vld [vmem:[%s9777_s30 + $0xa0] sm:$0xff]  ;;  %v11311_v31 = vld [vmem:[%s9777_s30 + $0x130] sm:$0xff]  ;;  %v418_v1 = vrot.slane %v416_v38, 4 }
  0xb8   : > { %16382 = vst [vmem:[#allocation190_spill] sm:$0xff] %v11176_v28  ;;  %16384 = vst [vmem:[#allocation191_spill] sm:$0xff] %v11194_v14  ;;  %8298 = vmatmul.mubr.msk.f32.gmra.mrb[32].mxu0 %vm704_vm2, %v2411_v45  ;;  %v11241_v45 = vld [vmem:[%s9777_s30 + $0x90] sm:$0xff]  ;;  %v16409_v46 = vld [vmem:[#allocation9_spill] sm:$0xff]  ;;  %v16410_v54 = vcombine.low %v11176_v28, %v11194_v14 }
  0xb9   : > { %8300 = vmatprep.mubr.msk.f32.mxu0 %vm704_vm2, %v2412_v21  ;;  %16387 = vst [vmem:[#allocation194_spill] sm:$0xff] %v11247_v15  ;;  %v11272_v15 = vld [vmem:[%s9777_s30 + $0xe0] sm:$0xff]  ;;  %v16394_v21 = vcombine.low %v11123_v25, %v11131_v16  ;;  %v426_v22 = vrot.slane %v16409_v46, 5  ;;  %v16411_v46 = vcombine.low %v9792_v12, %v11163_v59 }
  0xba   : > { %16389 = vst [vmem:[#allocation196_spill] sm:$0xff] %v11272_v15  ;;  %v11297_v15 = vld [vmem:[%s9777_s30 + $0x120] sm:$0xff] }
  0xbb   : > { %16391 = vst [vmem:[#allocation198_spill] sm:$0xff] %v11297_v15  ;;  %v16395_v16 = vld [vmem:[#allocation113_spill] sm:$0xff]  ;;  %v16402_v15 = vcombine.low %v11148_v4, %v11152_v24  ;;  %v410_v24 = vrot.slane %v9792_v12, 5  ;;  %v419_v4 = vrot.slane %v11179_v17, 5 }
  0xbc   : > { %8301 = vmatmul.mubr.msk.f32.gmra.mrb[34].mxu0 %vm704_vm2, %v16392_v23  ;;  %v295_v23 = vld [vmem:[%s15624_s1 + $0x10] sm:$0xff]  ;;  %v305_v25 = vld [vmem:[%s15624_s1 + $0x60] sm:$0xff] }
  0xbd   : > { %8303 = vmatprep.mubr.msk.f32.mxu0 %vm704_vm2, %v16394_v21  ;;  %v16396_v21 = vld [vmem:[#allocation115_spill] sm:$0xff]  ;;  %v8587_v47 = vpack.c.bf16 %v296_v5, %v295_v23  ;;  %v11372_v5 = vld [vmem:[%s9777_s30] sm:$0xff]  ;;  %v11388_v49 = vpack.c.bf16 %v306_v19, %v305_v25  ;;  %v412_v63 = vrot.slane %v410_v24, 4  ;;  %v428_v25 = vrot.slane %v426_v22, 4 }
  0xbe   : > { %16404 = vst [vmem:[#allocation113_spill] sm:$0xff] %v11372_v5  ;;  %v6891_v23 = vrot.slane %v11372_v5, 9  ;;  %v16408_v5 = vld [vmem:[#allocation7_spill] sm:$0xff] }
  0xbf   : > { %8588 = vmatprep.subr.bf16.mxu1 %v8587_v47  ;;  %v422_v61 = vrot.slane %v16408_v5, 5  ;;  %v429_v5 = vrot.slane %v11198_v56, 5 }
  0xc0   : > { %8304 = vmatmul.mubr.msk.f32.gmra.mrb[36].mxu0 %vm704_vm2, %v16402_v15  ;;  %v413_v15 = vrot.slane %v11163_v59, 5  ;;  %8590 = vmatpush3.bf16.msra.mxu1 %v8587_v47  ;;  %v411_v3 = vsel %vm11379_vm9, %v6891_v23, %v410_v24  ;;  %v421_v47 = vrot.slane %v419_v4, 4 }
  0xc1   : > { %8306 = vmatprep.mubr.msk.f32.mxu0 %vm704_vm2, %v16405_v0  ;;  %v6892_v0 = vrot.slane %v11184_v8, 9 }
  0xc2   : > { %v415_v42 = vrot.slane %v413_v15, 4  ;;  %v11407_v23 = vsel %vm11379_vm9, %v412_v63, %v413_v15  ;;  %v11421_v59 = vsel %vm11379_vm9, %v421_v47, %v422_v61  ;;  %v431_v15 = vrot.slane %v429_v5, 4 }
  0xc3   : > { %v427_v19 = vsel %vm11379_vm9, %v6892_v0, %v426_v22  ;;  %v432_v22 = vrot.slane %v9825_v26, 5  ;;  %v232_v0 = vld [vmem:[%s9777_s30 + $0x18] sm:$0x7]  ;;  %v3244_v47 = vrot.slane %v422_v61, 4 }
  0xc4   : > { %8307 = vmatmul.mubr.msk.f32.gmra.mrb[38].mxu0 %vm704_vm2, %v16410_v54  ;;  %v11411_v24 = vsel %vm11379_vm9, %v415_v42, %v416_v38  ;;  %v11415_v54 = vsel %vm11379_vm9, %v418_v1, %v419_v4  ;;  %v666_v4 = vcombine.low %v11421_v59, %v427_v19  ;;  %v11433_v42 = vsel %vm11379_vm9, %v428_v25, %v429_v5 }
  0xc5   : > { %8313 = vmatprep.mubr.msk.f32.mxu0 %vm704_vm2, %v16411_v46  ;;  %v664_v46 = vcombine.low %v411_v3, %v11407_v23  ;;  %v665_v63 = vcombine.low %v11411_v24, %v11415_v54  ;;  %v16412_v3 = vcombine.low %v16383_v30, %v11179_v17  ;;  %v3245_v38 = vrot.slane %v232_v0, 5 }
  0xc6   : > { %v434_v14 = vrot.slane %v432_v22, 4  ;;  %v435_v1 = vrot.slane %v11203_v10, 5  ;;  %v16413_v19 = vcombine.high %v11179_v17, %v11184_v8  ;;  %v11448_v5 = vsel %vm11379_vm9, %v431_v15, %v432_v22  ;;  %v16418_v15 = vld [vmem:[#allocation22_spill] sm:$0xff] }
  0xc7   : > { %8057 = vmatprep.mubr.msk.f32.mxu1 %vm704_vm2, %v664_v46  ;;  %v438_v25 = vrot.slane %v9882_v53, 5  ;;  %v442_v0 = vrot.slane %v9893_v58, 5  ;;  %v236_v46 = vld [vmem:[%s9777_s30 + $0x38] sm:$0x7]  ;;  %v11463_v17 = vsel %vm11379_vm9, %v3244_v47, %v3245_v38  ;;  %v16415_v38 = vcombine.low %v11198_v56, %v9825_v26  ;;  %v16417_v56 = vld [vmem:[#allocation19_spill] sm:$0xff] }
  0xc8   : > { %8314 = vmatmul.mubr.msk.f32.vlgmr.msra.gmra.mrb[0].mxu0 %vm704_vm2, %v16412_v3  ;;  %v11452_v3 = vld [vmem:[%s9777_s30 + $0x40] sm:$0xff]  ;;  %8058 = vmatmul.mubr.msk.f32.vlgmr.msra.gmra.mrb[0].mxu1 %vm704_vm2, %v665_v63  ;;  %v11467_v8 = vsel %vm11379_vm9, %v434_v14, %v435_v1  ;;  %v437_v22 = vrot.slane %v435_v1, 4  ;;  %v445_v1 = vrot.slane %v11210_v60, 5  ;;  %v3248_v47 = vrot.slane %v236_v46, 5 }
  0xc9   : > { %8610 = vmatpush3.bf16.msra.mxu0 %v11167_v20  ;;  %8316 = vmatprep.mubr.msk.f32.mxu0 %vm704_vm2, %v16413_v19  ;;  %16414 = vst [vmem:[#allocation115_spill] sm:$0xff] %v11452_v3  ;;  %v6893_v61 = vrot.slane %v11452_v3, 9  ;;  %v667_v20 = vcombine.low %v11433_v42, %v11448_v5  ;;  %v444_v28 = vrot.slane %v442_v0, 4  ;;  %v16416_v63 = vcombine.low %v11203_v10, %v9882_v53  ;;  %v240_v53 = vld [vmem:[%s9777_s30 + $0x58] sm:$0x7] }
  0xca   : > { %8612 = vmatprep.subr.bf16.mxu0 %v11388_v49  ;;  %8060 = vmatprep.mubr.msk.f32.mxu1 %vm704_vm2, %v666_v4  ;;  %v11482_v14 = vsel %vm11379_vm9, %v437_v22, %v438_v25  ;;  %v3247_v4 = vrot.slane %v438_v25, 4  ;;  %v454_v3 = vrot.slane %v16418_v15, 5  ;;  %v447_v46 = vrot.slane %v445_v1, 4  ;;  %v16419_v22 = vld [vmem:[#allocation192_spill] sm:$0xff] }
  0xcb   : > { %v443_v19 = vsel %vm11379_vm9, %v6893_v61, %v442_v0  ;;  %v668_v61 = vcombine.low %v11467_v8, %v11482_v14  ;;  %v448_v0 = vrot.slane %v16417_v56, 5  ;;  %v11497_v25 = vsel %vm11379_vm9, %v444_v28, %v445_v1 }
  0xcc   : > { %8317 = vmatmul.mubr.msk.f32.gmra.mrb[2].mxu0 %vm704_vm2, %v16415_v38  ;;  %v451_v38 = vrot.slane %v11215_v9, 5  ;;  %8061 = vmatmul.mubr.msk.f32.gmra.mrb[2].mxu1 %vm704_vm2, %v667_v20  ;;  %v11501_v10 = vsel %vm11379_vm9, %v3247_v4, %v3248_v47  ;;  %v669_v26 = vcombine.low %v443_v19, %v11497_v25  ;;  %v16420_v28 = vcombine.low %v9893_v58, %v11210_v60  ;;  %v16421_v4 = vld [vmem:[#allocation21_spill] sm:$0xff] }
  0xcd   : > { %8319 = vmatprep.mubr.msk.f32.mxu0 %vm704_vm2, %v16416_v63  ;;  %v6894_v63 = vrot.slane %v16419_v22, 9  ;;  %8063 = vmatprep.mubr.msk.f32.mxu1 %vm704_vm2, %v668_v61  ;;  %v450_v15 = vrot.slane %v448_v0, 4  ;;  %v11515_v1 = vsel %vm11379_vm9, %v447_v46, %v448_v0  ;;  %v458_v47 = vrot.slane %v16421_v4, 5 }
  0xce   : > { %v453_v30 = vrot.slane %v451_v38, 4  ;;  %v461_v61 = vrot.slane %v11226_v36, 5  ;;  %v3250_v12 = vrot.slane %v454_v3, 4  ;;  %v16422_v19 = vcombine.low %v16417_v56, %v11215_v9 }
  0xcf   : > { %v11527_v60 = vsel %vm11379_vm9, %v450_v15, %v451_v38  ;;  %v3251_v46 = vrot.slane %v240_v53, 5  ;;  %v460_v15 = vrot.slane %v458_v47, 4 }
  0xd0   : > { %8320 = vmatmul.mubr.msk.f32.gmra.mrb[4].mxu0 %vm704_vm2, %v16420_v28  ;;  %v11531_v0 = vsel %vm11379_vm9, %v453_v30, %v454_v3  ;;  %v244_v28 = vld [vmem:[%s9777_s30 + $0x78] sm:$0x7]  ;;  %8064 = vmatmul.mubr.msk.f32.gmra.mrb[4].mxu1 %vm704_vm2, %v669_v26  ;;  %v670_v4 = vcombine.low %v11515_v1, %v11527_v60  ;;  %v463_v53 = vrot.slane %v461_v61, 4  ;;  %v464_v26 = vrot.slane %v9951_v33, 5 }
  0xd1   : > { %8322 = vmatprep.mubr.msk.f32.mxu0 %vm704_vm2, %v16422_v19  ;;  %16423 = vst [vmem:[#allocation192_spill] sm:$0xff] %v11531_v0  ;;  %v459_v19 = vsel %vm11379_vm9, %v6894_v63, %v458_v47  ;;  %v11544_v30 = vsel %vm11379_vm9, %v3250_v12, %v3251_v46  ;;  %v16425_v3 = vcombine.high %v11215_v9, %v16419_v22  ;;  %v467_v47 = vrot.slane %v11231_v51, 5 }
  0xd2   : > { %v671_v38 = vcombine.low %v11531_v0, %v459_v19  ;;  %16424 = vst [vmem:[#allocation200_spill] sm:$0xff] %v11544_v30  ;;  %8066 = vmatprep.mubr.msk.f32.mxu1 %vm704_vm2, %v670_v4  ;;  %v11554_v63 = vsel %vm11379_vm9, %v460_v15, %v461_v61  ;;  %v16427_v19 = vld [vmem:[#allocation29_spill] sm:$0xff]  ;;  %v3254_v12 = vrot.slane %v244_v28, 5  ;;  %v16428_v46 = vcombine.low %v11226_v36, %v9951_v33 }
  0xd3   : > { %16426 = vst [vmem:[#allocation201_spill] sm:$0xff] %v11554_v63  ;;  %v470_v20 = vrot.slane %v16427_v19, 5  ;;  %v11566_v22 = vsel %vm11379_vm9, %v463_v53, %v464_v26  ;;  %v466_v4 = vrot.slane %v464_v26, 4  ;;  %v11569_v61 = vld [vmem:[%s9777_s30 + $0x80] sm:$0xff]  ;;  %v469_v36 = vrot.slane %v467_v47, 4 }
  0xd4   : > { %8323 = vmatmul.mubr.msk.f32.gmra.mrb[6].mxu0 %vm704_vm2, %v16425_v3  ;;  %16429 = vst [vmem:[#allocation202_spill] sm:$0xff] %v11569_v61  ;;  %v6895_v15 = vrot.slane %v11569_v61, 9  ;;  %8067 = vmatmul.mubr.msk.f32.gmra.mrb[6].mxu1 %vm704_vm2, %v671_v38  ;;  %v672_v28 = vcombine.low %v11554_v63, %v11566_v22  ;;  %v16431_v53 = vld [vmem:[#allocation193_spill] sm:$0xff]  ;;  %v483_v30 = vrot.slane %v11241_v45, 5  ;;  %v16433_v38 = vcombine.low %v11231_v51, %v16427_v19  ;;  %v16436_v19 = vld [vmem:[#allocation194_spill] sm:$0xff] }
  0xd5   : > { %8325 = vmatprep.mubr.msk.f32.mxu0 %vm704_vm2, %v16428_v46  ;;  %v3253_v3 = vrot.slane %v470_v20, 4  ;;  %v16430_v46 = vld [vmem:[#allocation31_spill] sm:$0xff]  ;;  %v11578_v9 = vsel %vm11379_vm9, %v466_v4, %v467_v47  ;;  %v477_v56 = vrot.slane %v16431_v53, 5  ;;  %v16432_v26 = vld [vmem:[#allocation33_spill] sm:$0xff]  ;;  %v11590_v61 = vsel %vm11379_vm9, %v469_v36, %v470_v20 }
  0xd6   : > { %v474_v33 = vrot.slane %v16430_v46, 5  ;;  %v480_v58 = vrot.slane %v16432_v26, 5  ;;  %8069 = vmatprep.mubr.msk.f32.mxu1 %vm704_vm2, %v672_v28  ;;  %v16434_v0 = vcombine.low %v16430_v46, %v16431_v53  ;;  %v673_v51 = vcombine.low %v11578_v9, %v11590_v61  ;;  %v16435_v53 = vld [vmem:[#allocation37_spill] sm:$0xff] }
  0xd7   : > { %v11596_v4 = vsel %vm11379_vm9, %v3253_v3, %v3254_v12  ;;  %v479_v36 = vrot.slane %v477_v56, 4  ;;  %v486_v47 = vrot.slane %v16435_v53, 5  ;;  %v16442_v53 = vcombine.high %v11241_v45, %v16436_v19 }
  0xd8   : > { %8326 = vmatmul.mubr.msk.f32.gmra.mrb[8].mxu0 %vm704_vm2, %v16433_v38  ;;  %v476_v63 = vrot.slane %v474_v33, 4  ;;  %v475_v28 = vsel %vm11379_vm9, %v6895_v15, %v474_v33  ;;  %v482_v3 = vrot.slane %v480_v58, 4  ;;  %v485_v38 = vrot.slane %v483_v30, 4  ;;  %8070 = vmatmul.mubr.msk.f32.gmra.mrb[8].mxu1 %vm704_vm2, %v673_v51  ;;  %v16437_v15 = vld [vmem:[#allocation36_spill] sm:$0xff] }
  0xd9   : > { %8328 = vmatprep.mubr.msk.f32.mxu0 %vm704_vm2, %v16434_v0  ;;  %v11617_v20 = vsel %vm11379_vm9, %v479_v36, %v480_v58  ;;  %v6896_v33 = vrot.slane %v16436_v19, 9  ;;  %v490_v46 = vrot.slane %v16437_v15, 5  ;;  %v11637_v36 = vld [vmem:[%s9777_s30 + $0x98] sm:$0x7] }
  0xda   : > { %v11610_v12 = vsel %vm11379_vm9, %v476_v63, %v477_v56  ;;  %v16438_v56 = vcombine.low %v16432_v26, %v11241_v45  ;;  %v11627_v63 = vsel %vm11379_vm9, %v482_v3, %v483_v30  ;;  %v11633_v58 = vsel %vm11379_vm9, %v485_v38, %v486_v47  ;;  %16441 = vst [vmem:[#allocation203_spill] sm:$0xff] %v11637_v36  ;;  %v16443_v45 = vld [vmem:[#allocation40_spill] sm:$0xff] }
  0xdb   : > { %v674_v0 = vcombine.low %v475_v28, %v11610_v12  ;;  %16439 = vst [vmem:[#allocation193_spill] sm:$0xff] %v11627_v63  ;;  %16440 = vst [vmem:[#allocation194_spill] sm:$0xff] %v11633_v58  ;;  %v493_v28 = vrot.slane %v11252_v43, 5  ;;  %v675_v30 = vcombine.low %v11617_v20, %v11627_v63  ;;  %v491_v38 = vsel %vm11379_vm9, %v6896_v33, %v490_v46  ;;  %v16444_v63 = vld [vmem:[#allocation42_spill] sm:$0xff] }
  0xdc   : > { %8329 = vmatmul.mubr.msk.f32.gmra.mrb[10].mxu0 %vm704_vm2, %v16438_v56  ;;  %v492_v56 = vrot.slane %v490_v46, 4  ;;  %v676_v51 = vcombine.low %v11633_v58, %v491_v38  ;;  %v496_v19 = vrot.slane %v16443_v45, 5  ;;  %v3257_v3 = vrot.slane %v11637_v36, 5  ;;  %v11675_v36 = vld [vmem:[%s9777_s30 + $0xb8] sm:$0x7] }
  0xdd   : > { %8331 = vmatprep.mubr.msk.f32.mxu0 %vm704_vm2, %v16442_v53  ;;  %8072 = vmatprep.mubr.msk.f32.mxu1 %vm704_vm2, %v674_v0  ;;  %v495_v15 = vrot.slane %v493_v28, 4  ;;  %v3256_v53 = vrot.slane %v486_v47, 4  ;;  %v499_v26 = vrot.slane %v11257_v62, 5  ;;  %v502_v33 = vrot.slane %v16444_v63, 5  ;;  %16448 = vst [vmem:[#allocation206_spill] sm:$0xff] %v11675_v36 }
  0xde   : > { %8073 = vmatmul.mubr.msk.f32.gmra.mrb[10].mxu1 %vm704_vm2, %v675_v30  ;;  %v11655_v0 = vsel %vm11379_vm9, %v492_v56, %v493_v28  ;;  %v16445_v46 = vcombine.low %v11252_v43, %v16443_v45  ;;  %v498_v30 = vrot.slane %v496_v19, 4  ;;  %v11670_v28 = vld [vmem:[%s9777_s30 + $0xc0] sm:$0xff]  ;;  %v506_v56 = vrot.slane %v10101_v27, 5 }
  0xdf   : > { %8075 = vmatprep.mubr.msk.f32.mxu1 %vm704_vm2, %v676_v51  ;;  %v11667_v47 = vsel %vm11379_vm9, %v495_v15, %v496_v19  ;;  %16447 = vst [vmem:[#allocation205_spill] sm:$0xff] %v11670_v28  ;;  %v6897_v38 = vrot.slane %v11670_v28, 9  ;;  %v16449_v43 = vcombine.low %v11257_v62, %v16444_v63  ;;  %v11685_v15 = vsel %vm11379_vm9, %v3256_v53, %v3257_v3 }
  0xe0   : > { %8332 = vmatmul.mubr.msk.f32.gmra.mrb[12].mxu0 %vm704_vm2, %v16445_v46  ;;  %16446 = vst [vmem:[#allocation204_spill] sm:$0xff] %v11667_v47  ;;  %v677_v51 = vcombine.low %v11655_v0, %v11667_v47  ;;  %v501_v19 = vrot.slane %v499_v26, 4  ;;  %v16450_v46 = vld [vmem:[#allocation195_spill] sm:$0xff]  ;;  %v11692_v58 = vsel %vm11379_vm9, %v498_v30, %v499_v26  ;;  %v3259_v63 = vrot.slane %v502_v33, 4 }
  0xe1   : > { %8334 = vmatprep.mubr.msk.f32.mxu0 %vm704_vm2, %v16449_v43  ;;  %v509_v45 = vrot.slane %v16450_v46, 5  ;;  %16451 = vst [vmem:[#allocation195_spill] sm:$0xff] %v11692_v58  ;;  %v507_v62 = vsel %vm11379_vm9, %v6897_v38, %v506_v56  ;;  %v508_v43 = vrot.slane %v506_v56, 4  ;;  %v3260_v28 = vrot.slane %v11675_v36, 5  ;;  %v16457_v36 = vld [vmem:[#allocation54_spill] sm:$0xff] }
  0xe2   : > { %8076 = vmatmul.mubr.msk.f32.gmra.mrb[12].mxu1 %vm704_vm2, %v677_v51  ;;  %v11701_v53 = vsel %vm11379_vm9, %v501_v19, %v502_v33  ;;  %v16453_v26 = vcombine.low %v10101_v27, %v16450_v46  ;;  %v16454_v51 = vld [vmem:[#allocation49_spill] sm:$0xff]  ;;  %v518_v27 = vrot.slane %v16457_v36, 5  ;;  %v16460_v36 = vld [vmem:[#allocation52_spill] sm:$0xff] }
  0xe3   : > { %16452 = vst [vmem:[#allocation207_spill] sm:$0xff] %v11701_v53  ;;  %v678_v30 = vcombine.low %v11692_v58, %v11701_v53  ;;  %v11712_v38 = vsel %vm11379_vm9, %v508_v43, %v509_v45  ;;  %v511_v56 = vrot.slane %v509_v45, 4  ;;  %v512_v3 = vrot.slane %v16454_v51, 5  ;;  %v11727_v43 = vld [vmem:[%s9777_s30 + $0xd8] sm:$0x7] }
  0xe4   : > { %8335 = vmatmul.mubr.msk.f32.gmra.mrb[14].mxu0 %vm704_vm2, %v16453_v26  ;;  %v16455_v33 = vcombine.low %v16454_v51, %v11267_v7  ;;  %v679_v19 = vcombine.low %v507_v62, %v11712_v38  ;;  %v11722_v46 = vsel %vm11379_vm9, %v3259_v63, %v3260_v28  ;;  %v515_v26 = vrot.slane %v11267_v7, 5  ;;  %16458 = vst [vmem:[#allocation209_spill] sm:$0xff] %v11727_v43  ;;  %v16459_v51 = vld [vmem:[#allocation196_spill] sm:$0xff] }
  0xe5   : > { %16456 = vst [vmem:[#allocation208_spill] sm:$0xff] %v11722_v46  ;;  %8078 = vmatprep.mubr.msk.f32.mxu1 %vm704_vm2, %v678_v30  ;;  %v514_v62 = vrot.slane %v512_v3, 4  ;;  %v6898_v58 = vrot.slane %v16459_v51, 9  ;;  %v522_v47 = vrot.slane %v16460_v36, 5  ;;  %v525_v30 = vrot.slane %v11277_v57, 5  ;;  %v16462_v46 = vld [vmem:[#allocation58_spill] sm:$0xff] }
  0xe6   : > { %8337 = vmatprep.mubr.msk.f32.mxu0 %vm704_vm2, %v16455_v33  ;;  %v11734_v33 = vsel %vm11379_vm9, %v511_v56, %v512_v3  ;;  %8079 = vmatmul.mubr.msk.f32.gmra.mrb[14].mxu1 %vm704_vm2, %v679_v19  ;;  %v517_v28 = vrot.slane %v515_v26, 4  ;;  %v16461_v45 = vcombine.high %v11267_v7, %v16459_v51  ;;  %v3262_v56 = vrot.slane %v518_v27, 4 }
  0xe7   : > { %v11748_v3 = vsel %vm11379_vm9, %v514_v62, %v515_v26  ;;  %v3263_v19 = vrot.slane %v11727_v43, 5  ;;  %v528_v53 = vrot.slane %v16462_v46, 5  ;;  %v16463_v63 = vcombine.low %v11277_v57, %v16462_v46 }
  0xe8   : > { %8338 = vmatmul.mubr.msk.f32.gmra.mrb[16].mxu0 %vm704_vm2, %v16461_v45  ;;  %v680_v36 = vcombine.low %v11734_v33, %v11748_v3  ;;  %v11760_v7 = vsel %vm11379_vm9, %v517_v28, %v518_v27  ;;  %v523_v51 = vsel %vm11379_vm9, %v6898_v58, %v522_v47  ;;  %v524_v26 = vrot.slane %v522_v47, 4  ;;  %v11765_v45 = vld [vmem:[%s9777_s30 + $0xf8] sm:$0x7]  ;;  %v16467_v28 = vld [vmem:[#allocation61_spill] sm:$0xff] }
  0xe9   : > { %8340 = vmatprep.mubr.msk.f32.mxu0 %vm704_vm2, %v16463_v63  ;;  %16464 = vst [vmem:[#allocation196_spill] sm:$0xff] %v11765_v45  ;;  %v681_v62 = vcombine.low %v11760_v7, %v523_v51  ;;  %v11772_v63 = vsel %vm11379_vm9, %v3262_v56, %v3263_v19  ;;  %v527_v43 = vrot.slane %v525_v30, 4  ;;  %v530_v58 = vrot.slane %v528_v53, 4  ;;  %v11794_v19 = vld [vmem:[%s9777_s30 + $0x100] sm:$0xff] }
  0xea   : > { %16465 = vst [vmem:[#allocation210_spill] sm:$0xff] %v11772_v63  ;;  %8081 = vmatprep.mubr.msk.f32.mxu1 %vm704_vm2, %v680_v36  ;;  %v11777_v27 = vsel %vm11379_vm9, %v524_v26, %v525_v30  ;;  %v531_v47 = vrot.slane %v11282_v29, 5  ;;  %v534_v46 = vrot.slane %v16467_v28, 5  ;;  %v16468_v51 = vcombine.low %v11282_v29, %v16467_v28  ;;  %16470 = vst [vmem:[#allocation213_spill] sm:$0xff] %v11794_v19  ;;  %v16472_v28 = vld [vmem:[#allocation69_spill] sm:$0xff]  ;;  %v16476_v63 = vld [vmem:[#allocation75_spill] sm:$0xff] }
  0xeb   : > { %16466 = vst [vmem:[#allocation211_spill] sm:$0xff] %v11777_v27  ;;  %8082 = vmatmul.mubr.msk.f32.gmra.mrb[16].mxu1 %vm704_vm2, %v681_v62  ;;  %v11790_v36 = vsel %vm11379_vm9, %v527_v43, %v528_v53  ;;  %v3266_v30 = vrot.slane %v11765_v45, 5  ;;  %v6899_v26 = vrot.slane %v11794_v19, 9  ;;  %v16471_v29 = vcombine.low %v16300_v40, %v11287_v34 }
  0xec   : > { %8341 = vmatmul.mubr.msk.f32.gmra.mrb[18].mxu0 %vm704_vm2, %v16468_v51  ;;  %16469 = vst [vmem:[#allocation212_spill] sm:$0xff] %v11790_v36  ;;  %v682_v62 = vcombine.low %v11777_v27, %v11790_v36  ;;  %v11805_v51 = vsel %vm11379_vm9, %v530_v58, %v531_v47  ;;  %v533_v53 = vrot.slane %v531_v47, 4  ;;  %v3265_v43 = vrot.slane %v534_v46, 4  ;;  %v16475_v47 = vld [vmem:[#allocation197_spill] sm:$0xff] }
  0xed   : > { %8343 = vmatprep.mubr.msk.f32.mxu0 %vm704_vm2, %v16471_v29  ;;  %v538_v57 = vrot.slane %v16300_v40, 5  ;;  %v541_v45 = vrot.slane %v11287_v34, 5  ;;  %v544_v19 = vrot.slane %v16472_v28, 5  ;;  %v547_v27 = vrot.slane %v16475_v47, 5 }
  0xee   : > { %8084 = vmatprep.mubr.msk.f32.mxu1 %vm704_vm2, %v682_v62  ;;  %v11815_v29 = vsel %vm11379_vm9, %v533_v53, %v534_v46  ;;  %v11819_v58 = vsel %vm11379_vm9, %v3265_v43, %v3266_v30  ;;  %v550_v56 = vrot.slane %v16476_v63, 5  ;;  %v16477_v40 = vcombine.low %v16472_v28, %v16475_v47  ;;  %v16478_v53 = vld [vmem:[#allocation198_spill] sm:$0xff] }
  0xef   : > { %16473 = vst [vmem:[#allocation214_spill] sm:$0xff] %v11815_v29  ;;  %16474 = vst [vmem:[#allocation215_spill] sm:$0xff] %v11819_v58  ;;  %v683_v34 = vcombine.low %v11805_v51, %v11815_v29  ;;  %v539_v62 = vsel %vm11379_vm9, %v6899_v26, %v538_v57  ;;  %v540_v30 = vrot.slane %v538_v57, 4  ;;  %v16479_v43 = vcombine.high %v16475_v47, %v16478_v53  ;;  %v16480_v58 = vld [vmem:[#allocation74_spill] sm:$0xff] }
  0xf0   : > { %8344 = vmatmul.mubr.msk.f32.gmra.mrb[20].mxu0 %vm704_vm2, %v16477_v40  ;;  %v543_v63 = vrot.slane %v541_v45, 4  ;;  %v546_v28 = vrot.slane %v544_v19, 4  ;;  %v549_v36 = vrot.slane %v547_v27, 4  ;;  %v6900_v40 = vrot.slane %v16478_v53, 9 }
  0xf1   : > { %8346 = vmatprep.mubr.msk.f32.mxu0 %vm704_vm2, %v16479_v43  ;;  %8085 = vmatmul.mubr.msk.f32.gmra.mrb[18].mxu1 %vm704_vm2, %v683_v34  ;;  %v11841_v46 = vsel %vm11379_vm9, %v540_v30, %v541_v45  ;;  %v554_v26 = vrot.slane %v16480_v58, 5  ;;  %v557_v57 = vrot.slane %v11302_v35, 5  ;;  %v560_v29 = vrot.slane %v16317_v13, 5  ;;  %v11860_v34 = vld [vmem:[%s9777_s30 + $0x118] sm:$0x7] }
  0xf2   : > { %v684_v47 = vcombine.low %v539_v62, %v11841_v46  ;;  %v11849_v43 = vsel %vm11379_vm9, %v543_v63, %v544_v19  ;;  %v11853_v53 = vsel %vm11379_vm9, %v546_v28, %v547_v27  ;;  %v11857_v45 = vsel %vm11379_vm9, %v549_v36, %v550_v56  ;;  %16481 = vst [vmem:[#allocation197_spill] sm:$0xff] %v11860_v34 }
  0xf3   : > { %v16482_v30 = vcombine.low %v11302_v35, %v16317_v13  ;;  %v685_v62 = vcombine.low %v11849_v43, %v11853_v53  ;;  %v555_v28 = vsel %vm11379_vm9, %v6900_v40, %v554_v26  ;;  %v16483_v36 = vcombine.low %v11311_v31, %v16319_v37 }
  0xf4   : > { %8087 = vmatprep.mubr.msk.f32.mxu1 %vm704_vm2, %v684_v47  ;;  %v686_v35 = vcombine.low %v11857_v45, %v555_v28  ;;  %v556_v19 = vrot.slane %v554_v26, 4  ;;  %v3268_v63 = vrot.slane %v550_v56, 4  ;;  %v3269_v27 = vrot.slane %v11860_v34, 5  ;;  %v11894_v56 = vld [vmem:[%s9777_s30 + $0x140] sm:$0xff]  ;;  %v16490_v34 = vld [vmem:[#allocation199_spill] sm:$0xff] }
  0xf5   : > { %8347 = vmatmul.mubr.msk.f32.gmra.mrb[22].mxu0 %vm704_vm2, %v16482_v30  ;;  %v559_v30 = vrot.slane %v557_v57, 4  ;;  %8088 = vmatmul.mubr.msk.f32.gmra.mrb[20].mxu1 %vm704_vm2, %v685_v62  ;;  %v562_v13 = vrot.slane %v560_v29, 4  ;;  %v563_v40 = vrot.slane %v11311_v31, 5  ;;  %v566_v58 = vrot.slane %v16319_v37, 5  ;;  %16485 = vst [vmem:[#allocation216_spill] sm:$0xff] %v11894_v56 }
  0xf6   : > { %8349 = vmatprep.mubr.msk.f32.mxu0 %vm704_vm2, %v16483_v36  ;;  %8090 = vmatprep.mubr.msk.f32.mxu1 %vm704_vm2, %v686_v35  ;;  %v11887_v47 = vsel %vm11379_vm9, %v556_v19, %v557_v57  ;;  %v6901_v62 = vrot.slane %v11894_v56, 9  ;;  %v570_v28 = vrot.slane %v16322_v55, 5  ;;  %v11899_v36 = vld [vmem:[%s9777_s30 + $0x138] sm:$0x7]  ;;  %v16487_v31 = vcombine.low %v16322_v55, %v11316_v39 }
  0xf7   : > { %v11891_v26 = vsel %vm11379_vm9, %v559_v30, %v560_v29  ;;  %16486 = vst [vmem:[#allocation217_spill] sm:$0xff] %v11899_v36  ;;  %v11909_v29 = vsel %vm11379_vm9, %v3268_v63, %v3269_v27  ;;  %v11913_v35 = vsel %vm11379_vm9, %v562_v13, %v563_v40  ;;  %v565_v19 = vrot.slane %v563_v40, 4 }
  0xf8   : > { %16484 = vst [vmem:[#allocation198_spill] sm:$0xff] %v11891_v26  ;;  %v687_v57 = vcombine.low %v11887_v47, %v11891_v26  ;;  %16488 = vst [vmem:[#allocation218_spill] sm:$0xff] %v11913_v35  ;;  %v16489_v30 = vcombine.low %v16325_v11, %v16326_v6  ;;  %v571_v63 = vsel %vm11379_vm9, %v6901_v62, %v570_v28  ;;  %v572_v27 = vrot.slane %v570_v28, 4  ;;  %v16491_v28 = vld [vmem:[#allocation95_spill] sm:$0xff]  ;;  %v11970_v26 = vld [vmem:[%s9777_s30 + $0x168] sm:$0xff] }
  0xf9   : > { %8350 = vmatmul.mubr.msk.f32.gmra.mrb[24].mxu0 %vm704_vm2, %v16487_v31  ;;  %v11928_v13 = vsel %vm11379_vm9, %v565_v19, %v566_v58  ;;  %v573_v6 = vrot.slane %v11316_v39, 5  ;;  %v3271_v40 = vrot.slane %v566_v58, 4  ;;  %v576_v31 = vrot.slane %v16325_v11, 5  ;;  %16502 = vst [vmem:[#allocation222_spill] sm:$0xff] %v11970_v26 }
  0xfa   : > { %8352 = vmatprep.mubr.msk.f32.mxu0 %vm704_vm2, %v16489_v30  ;;  %8091 = vmatmul.mubr.msk.f32.gmra.mrb[22].mxu1 %vm704_vm2, %v687_v57  ;;  %v3272_v30 = vrot.slane %v11899_v36, 5  ;;  %v688_v37 = vcombine.low %v11913_v35, %v11928_v13  ;;  %v579_v62 = vrot.slane %v16490_v34, 5  ;;  %v582_v56 = vrot.slane %v16491_v28, 5  ;;  %v16492_v57 = vld [vmem:[#allocation89_spill] sm:$0xff]  ;;  %v11954_v28 = vld [vmem:[%s9777_s30 + $0x158] sm:$0x7] }
  0xfb   : > { %v16493_v55 = vcombine.high %v16490_v34, %v16492_v57  ;;  %v11943_v39 = vsel %vm11379_vm9, %v572_v27, %v573_v6  ;;  %v575_v19 = vrot.slane %v573_v6, 4  ;;  %v11950_v36 = vld [vmem:[%s9777_s30 + $0x160] sm:$0xff]  ;;  %16497 = vst [vmem:[#allocation220_spill] sm:$0xff] %v11954_v28  ;;  %v16498_v34 = vld [vmem:[#allocation98_spill] sm:$0xff]  ;;  %v578_v6 = vrot.slane %v576_v31, 4 }
  0xfc   : > { %16494 = vst [vmem:[#allocation199_spill] sm:$0xff] %v11943_v39  ;;  %v11947_v58 = vsel %vm11379_vm9, %v3271_v40, %v3272_v30  ;;  %16496 = vst [vmem:[#allocation219_spill] sm:$0xff] %v11950_v36  ;;  %v6902_v11 = vrot.slane %v11950_v36, 9  ;;  %v16499_v57 = vcombine.low %v16333_v18, %v16498_v34  ;;  %8093 = vmatprep.mubr.msk.f32.mxu1 %vm704_vm2, %v688_v37  ;;  %v581_v40 = vrot.slane %v579_v62, 4  ;;  %v16501_v36 = vld [vmem:[#allocation94_spill] sm:$0xff]  ;;  %v16508_v37 = vld [vmem:[#allocation103_spill] sm:$0xff] }
  0xfd   : > { %8353 = vmatmul.mubr.msk.f32.gmra.mrb[26].mxu0 %vm704_vm2, %v16493_v55  ;;  %16495 = vst [vmem:[#allocation89_spill] sm:$0xff] %v11947_v58  ;;  %v689_v55 = vcombine.low %v571_v63, %v11943_v39  ;;  %v11966_v30 = vsel %vm11379_vm9, %v575_v19, %v576_v31  ;;  %v586_v35 = vrot.slane %v16501_v36, 5  ;;  %v589_v18 = vrot.slane %v11970_v26, 5  ;;  %v11986_v27 = vld [vmem:[%s9777_s30 + $0x178] sm:$0x7] }
  0xfe   : > { %8355 = vmatprep.mubr.msk.f32.mxu0 %vm704_vm2, %v16499_v57  ;;  %16500 = vst [vmem:[#allocation221_spill] sm:$0xff] %v11966_v30  ;;  %v3274_v57 = vrot.slane %v582_v56, 4  ;;  %v11978_v63 = vsel %vm11379_vm9, %v578_v6, %v579_v62  ;;  %v11982_v31 = vsel %vm11379_vm9, %v581_v40, %v582_v56  ;;  %v3275_v19 = vrot.slane %v11954_v28, 5  ;;  %16503 = vst [vmem:[#allocation223_spill] sm:$0xff] %v11986_v27  ;;  %v16504_v36 = vld [vmem:[#allocation96_spill] sm:$0xff]  ;;  %v16507_v40 = vld [vmem:[#allocation106_spill] sm:$0xff] }
  0xff   : > { %8094 = vmatmul.mubr.msk.f32.gmra.mrb[24].mxu1 %vm704_vm2, %v689_v55  ;;  %v16505_v26 = vld [vmem:[#allocation100_spill] sm:$0xff]  ;;  %v690_v55 = vcombine.low %v11966_v30, %v11978_v63  ;;  %v587_v62 = vsel %vm11379_vm9, %v6902_v11, %v586_v35  ;;  %v588_v56 = vrot.slane %v586_v35, 4  ;;  %v16509_v28 = vcombine.low %v16507_v40, %v16508_v37  ;;  %v12014_v35 = vld [vmem:[%s9777_s30 + $0x170] sm:$0xff]  ;;  %v16513_v6 = vld [vmem:[#allocation109_spill] sm:$0xff] }
 0x100   : > { %v16506_v58 = vcombine.low %v16504_v36, %v16505_v26  ;;  %v691_v36 = vcombine.low %v11982_v31, %v587_v62  ;;  %v591_v30 = vrot.slane %v589_v18, 4  ;;  %v592_v39 = vrot.slane %v16498_v34, 5  ;;  %16511 = vst [vmem:[#allocation103_spill] sm:$0xff] %v12014_v35 }
 0x101   : > { %8096 = vmatprep.mubr.msk.f32.mxu1 %vm704_vm2, %v690_v55  ;;  %v12011_v11 = vsel %vm11379_vm9, %v588_v56, %v589_v18  ;;  %v595_v37 = vrot.slane %v12014_v35, 5  ;;  %v3278_v62 = vrot.slane %v11986_v27, 5  ;;  %v12027_v55 = vld [vmem:[%s9777_s30 + $0x180] sm:$0xff]  ;;  %v608_v35 = vrot.slane %v16513_v6, 5 }
 0x102   : > { %8356 = vmatmul.mubr.msk.f32.gmra.mrb[28].mxu0 %vm704_vm2, %v16506_v58  ;;  %v12005_v58 = vsel %vm11379_vm9, %v3274_v57, %v3275_v19  ;;  %16510 = vst [vmem:[#allocation96_spill] sm:$0xff] %v12011_v11  ;;  %v12024_v19 = vsel %vm11379_vm9, %v591_v30, %v592_v39  ;;  %v594_v18 = vrot.slane %v592_v39, 4  ;;  %16512 = vst [vmem:[#allocation224_spill] sm:$0xff] %v12027_v55  ;;  %v6903_v56 = vrot.slane %v12027_v55, 9  ;;  %v12046_v55 = vld [vmem:[%s9777_s30 + $0x188] sm:$0xff] }
 0x103   : > { %8358 = vmatprep.mubr.msk.f32.mxu0 %vm704_vm2, %v16509_v28  ;;  %v598_v28 = vrot.slane %v16505_v26, 5  ;;  %8097 = vmatmul.mubr.msk.f32.gmra.mrb[26].mxu1 %vm704_vm2, %v691_v36  ;;  %v16514_v26 = vcombine.low %v16513_v6, %v16349_v2  ;;  %v692_v36 = vcombine.low %v12011_v11, %v12024_v19  ;;  %v597_v27 = vrot.slane %v595_v37, 4  ;;  %16517 = vst [vmem:[#allocation226_spill] sm:$0xff] %v12046_v55  ;;  %v12051_v11 = vld [vmem:[%s9777_s30 + $0x190] sm:$0xff] }
 0x104   : > { %v602_v57 = vrot.slane %v16507_v40, 5  ;;  %v16515_v30 = vcombine.high %v16349_v2, %v16353_v32  ;;  %v12043_v39 = vsel %vm11379_vm9, %v594_v18, %v595_v37  ;;  %16518 = vst [vmem:[#allocation227_spill] sm:$0xff] %v12051_v11  ;;  %v611_v40 = vrot.slane %v12051_v11, 5 }
 0x105   : > { %v3277_v34 = vrot.slane %v598_v28, 4  ;;  %16516 = vst [vmem:[#allocation225_spill] sm:$0xff] %v12043_v39  ;;  %8099 = vmatprep.mubr.msk.f32.mxu1 %vm704_vm2, %v692_v36  ;;  %v12057_v32 = vsel %vm11379_vm9, %v597_v27, %v598_v28  ;;  %v16519_v28 = vcombine.low %v16395_v16, %v16359_v41  ;;  %v610_v2 = vrot.slane %v608_v35, 4 }
 0x106   : > { %8359 = vmatmul.mubr.msk.f32.gmra.mrb[30].mxu0 %vm704_vm2, %v16514_v26  ;;  %v605_v26 = vrot.slane %v12046_v55, 5  ;;  %v603_v18 = vsel %vm11379_vm9, %v6903_v56, %v602_v57  ;;  %v604_v11 = vrot.slane %v602_v57, 4  ;;  %v12077_v56 = vld [vmem:[%s9777_s30 + $0x1a0] sm:$0xff] }
 0x107   : > { %8361 = vmatprep.mubr.msk.f32.mxu0 %vm704_vm2, %v16515_v30  ;;  %v12063_v37 = vsel %vm11379_vm9, %v3277_v34, %v3278_v62  ;;  %v693_v30 = vcombine.low %v12043_v39, %v12057_v32  ;;  %v613_v34 = vrot.slane %v611_v40, 4  ;;  %v16520_v62 = vld [vmem:[#allocation114_spill] sm:$0xff]  ;;  %16521 = vst [vmem:[#allocation228_spill] sm:$0xff] %v12077_v56  ;;  %v6904_v6 = vrot.slane %v12077_v56, 9 }
 0x108   : > { %v607_v27 = vrot.slane %v605_v26, 4  ;;  %v614_v55 = vrot.slane %v16520_v62, 5  ;;  %v16522_v39 = vcombine.low %v16396_v21, %v16363_v50  ;;  %v12087_v16 = vsel %vm11379_vm9, %v604_v11, %v605_v26  ;;  %v12095_v62 = vld [vmem:[%s9777_s30 + $0x1a8] sm:$0xff] }
 0x109   : > { %8100 = vmatmul.mubr.msk.f32.gmra.mrb[28].mxu1 %vm704_vm2, %v693_v30  ;;  %16523 = vst [vmem:[#allocation229_spill] sm:$0xff] %v12087_v16  ;;  %16526 = vst [vmem:[#allocation231_spill] sm:$0xff] %v12095_v62  ;;  %v621_v56 = vrot.slane %v12095_v62, 5  ;;  %v694_v21 = vcombine.low %v603_v18, %v12087_v16  ;;  %v16531_v18 = vld [vmem:[#allocation129_spill] sm:$0xff]  ;;  %v16542_v16 = vld [vmem:[#allocation138_spill] sm:$0xff] }
 0x10a   : > { %8362 = vmatmul.mubr.msk.f32.gmra.mrb[32].mxu0 %vm704_vm2, %v16519_v28  ;;  %v12091_v57 = vsel %vm11379_vm9, %v607_v27, %v608_v35  ;;  %v16525_v28 = vld [vmem:[#allocation112_spill] sm:$0xff]  ;;  %v12107_v26 = vsel %vm11379_vm9, %v613_v34, %v614_v55  ;;  %v16530_v27 = vcombine.low %v16365_v52, %v16367_v48  ;;  %v3280_v62 = vrot.slane %v614_v55, 4 }
 0x10b   : > { %8364 = vmatprep.mubr.msk.f32.mxu0 %vm704_vm2, %v16522_v39  ;;  %16524 = vst [vmem:[#allocation230_spill] sm:$0xff] %v12091_v57  ;;  %v618_v36 = vrot.slane %v16525_v28, 5  ;;  %v12101_v39 = vsel %vm11379_vm9, %v610_v2, %v611_v40  ;;  %16528 = vst [vmem:[#allocation233_spill] sm:$0xff] %v12107_v26  ;;  %v12110_v35 = vld [vmem:[%s9777_s30 + $0x198] sm:$0x7]  ;;  %8102 = vmatprep.mubr.msk.f32.mxu1 %vm704_vm2, %v694_v21  ;;  %v623_v11 = vrot.slane %v621_v56, 4 }
 0x10c   : > { %16527 = vst [vmem:[#allocation232_spill] sm:$0xff] %v12101_v39  ;;  %16529 = vst [vmem:[#allocation234_spill] sm:$0xff] %v12110_v35  ;;  %v695_v30 = vcombine.low %v12091_v57, %v12101_v39  ;;  %v624_v28 = vrot.slane %v16359_v41, 5  ;;  %v16532_v39 = vld [vmem:[#allocation124_spill] sm:$0xff]  ;;  %v630_v55 = vrot.slane %v16363_v50, 5  ;;  %v12160_v41 = vld [vmem:[%s9777_s30 + $0x1c8] sm:$0xff] }
 0x10d   : > { %v619_v40 = vsel %vm11379_vm9, %v6904_v6, %v618_v36  ;;  %v620_v2 = vrot.slane %v618_v36, 4  ;;  %v16533_v57 = vcombine.low %v16531_v18, %v16532_v39  ;;  %v3281_v6 = vrot.slane %v12110_v35, 5  ;;  %v12136_v36 = vld [vmem:[%s9777_s30 + $0x1b0] sm:$0xff]  ;;  %16537 = vst [vmem:[#allocation237_spill] sm:$0xff] %v12160_v41 }
 0x10e   : > { %8365 = vmatmul.mubr.msk.f32.gmra.mrb[34].mxu0 %vm704_vm2, %v16530_v27  ;;  %v696_v34 = vcombine.low %v12107_v26, %v619_v40  ;;  %8103 = vmatmul.mubr.msk.f32.gmra.mrb[30].mxu1 %vm704_vm2, %v695_v30  ;;  %16534 = vst [vmem:[#allocation124_spill] sm:$0xff] %v12136_v36  ;;  %v627_v21 = vrot.slane %v12136_v36, 5  ;;  %v626_v30 = vrot.slane %v624_v28, 4  ;;  %v12146_v40 = vld [vmem:[%s9777_s30 + $0x1c0] sm:$0xff]  ;;  %v12151_v27 = vld [vmem:[%s9777_s30 + $0x1b8] sm:$0x7] }
 0x10f   : > { %8367 = vmatprep.mubr.msk.f32.mxu0 %vm704_vm2, %v16533_v57  ;;  %v12132_v48 = vsel %vm11379_vm9, %v620_v2, %v621_v56  ;;  %v12143_v57 = vsel %vm11379_vm9, %v623_v11, %v624_v28  ;;  %16535 = vst [vmem:[#allocation235_spill] sm:$0xff] %v12146_v40  ;;  %v6905_v56 = vrot.slane %v12146_v40, 9  ;;  %v634_v2 = vrot.slane %v16365_v52, 5  ;;  %16536 = vst [vmem:[#allocation236_spill] sm:$0xff] %v12151_v27  ;;  %v16538_v11 = vld [vmem:[#allocation127_spill] sm:$0xff]  ;;  %v16541_v26 = vld [vmem:[#allocation133_spill] sm:$0xff] }
 0x110   : > { %8105 = vmatprep.mubr.msk.f32.mxu1 %vm704_vm2, %v696_v34  ;;  %v697_v35 = vcombine.low %v12132_v48, %v12143_v57  ;;  %v12157_v50 = vsel %vm11379_vm9, %v3280_v62, %v3281_v6  ;;  %v629_v34 = vrot.slane %v627_v21, 4  ;;  %v637_v28 = vrot.slane %v12160_v41, 5 }
 0x111   : > { %v16539_v36 = vcombine.high %v16532_v39, %v16538_v11  ;;  %v12171_v52 = vsel %vm11379_vm9, %v626_v30, %v627_v21  ;;  %v635_v62 = vsel %vm11379_vm9, %v6905_v56, %v634_v2  ;;  %v636_v6 = vrot.slane %v634_v2, 4  ;;  %v16545_v39 = vld [vmem:[#allocation134_spill] sm:$0xff] }
 0x112   : > { %16540 = vst [vmem:[#allocation127_spill] sm:$0xff] %v12171_v52  ;;  %v16543_v41 = vcombine.low %v16541_v26, %v16542_v16  ;;  %8106 = vmatmul.mubr.msk.f32.gmra.mrb[32].mxu1 %vm704_vm2, %v697_v35  ;;  %v3283_v21 = vrot.slane %v630_v55, 4  ;;  %v3284_v30 = vrot.slane %v12151_v27, 5  ;;  %v640_v35 = vrot.slane %v16531_v18, 5  ;;  %v12205_v27 = vld [vmem:[%s9777_s30 + $0x1d8] sm:$0x7] }
 0x113   : > { %8368 = vmatmul.mubr.msk.f32.gmra.mrb[36].mxu0 %vm704_vm2, %v16539_v36  ;;  %v12184_v36 = vsel %vm11379_vm9, %v629_v34, %v630_v55  ;;  %v12191_v26 = vsel %vm11379_vm9, %v636_v6, %v637_v28  ;;  %v12200_v55 = vld [vmem:[%s9777_s30 + $0x1d0] sm:$0xff]  ;;  %v646_v40 = vrot.slane %v16545_v39, 5  ;;  %16546 = vst [vmem:[#allocation238_spill] sm:$0xff] %v12205_v27  ;;  %v16552_v18 = vcombine.low %v11407_v23, %v11411_v24 }
 0x114   : > { %8370 = vmatprep.mubr.msk.f32.mxu0 %vm704_vm2, %v16543_v41  ;;  %v698_v56 = vcombine.low %v12171_v52, %v12184_v36  ;;  %v639_v41 = vrot.slane %v637_v28, 4  ;;  %v699_v2 = vcombine.low %v635_v62, %v12191_v26  ;;  %v12197_v34 = vsel %vm11379_vm9, %v3283_v21, %v3284_v30  ;;  %16544 = vst [vmem:[#allocation133_spill] sm:$0xff] %v12200_v55  ;;  %v16547_v6 = vld [vmem:[#allocation135_spill] sm:$0xff]  ;;  %v16548_v52 = vld [vmem:[#allocation140_spill] sm:$0xff]  ;;  %v12231_v62 = vld [vmem:[%s9777_s30 + $0x1e8] sm:$0xff] }
 0x115   : > { %v643_v11 = vrot.slane %v12200_v55, 5  ;;  %v16549_v28 = vcombine.low %v16547_v6, %v16548_v52  ;;  %v642_v30 = vrot.slane %v640_v35, 4  ;;  %v12219_v55 = vld [vmem:[%s9777_s30 + $0x1e0] sm:$0xff]  ;;  %16554 = vst [vmem:[#allocation239_spill] sm:$0xff] %v12231_v62  ;;  %v3286_v23 = vrot.slane %v646_v40, 4 }
 0x116   : > { %8108 = vmatprep.mubr.msk.f32.mxu1 %vm704_vm2, %v698_v56  ;;  %v12216_v21 = vsel %vm11379_vm9, %v639_v41, %v640_v35  ;;  %16551 = vst [vmem:[#allocation140_spill] sm:$0xff] %v12219_v55  ;;  %v6906_v39 = vrot.slane %v12219_v55, 9  ;;  %v653_v35 = vrot.slane %v12231_v62, 5  ;;  %v3287_v24 = vrot.slane %v12205_v27, 5  ;;  %v12255_v27 = vld [vmem:[%s9777_s30 + $0x1f8] sm:$0x7] }
 0x117   : > { %8371 = vmatmul.mubr.msk.f32.gmra.mrb[38].mxu0 %vm704_vm2, %v16549_v28  ;;  %16550 = vst [vmem:[#allocation135_spill] sm:$0xff] %v12216_v21  ;;  %8109 = vmatmul.mubr.msk.f32.gmra.mrb[34].mxu1 %vm704_vm2, %v699_v2  ;;  %v645_v6 = vrot.slane %v643_v11, 4  ;;  %v16553_v28 = vld [vmem:[#allocation132_spill] sm:$0xff]  ;;  %v12236_v55 = vsel %vm11379_vm9, %v642_v30, %v643_v11  ;;  %v293_v11 = vld [vmem:[%s15624_s1] sm:$0xff]  ;;  %v294_v30 = vld [vmem:[%s15624_s1 + $0x8] sm:$0xff] }
 0x118   : > { %8377 = vmatprep.mubr.msk.f32.mxu0 %vm704_vm2, %v16552_v18  ;;  %v650_v41 = vrot.slane %v16553_v28, 5  ;;  %v656_v18 = vrot.slane %v16542_v16, 5  ;;  %v700_v2 = vcombine.low %v12216_v21, %v12236_v55  ;;  %16555 = vst [vmem:[#allocation240_spill] sm:$0xff] %v12255_v27  ;;  %v16556_v16 = vcombine.low %v11415_v54, %v11421_v59 }
 0x119   : > { %v12244_v56 = vsel %vm11379_vm9, %v645_v6, %v646_v40  ;;  %v12266_v6 = vsel %vm11379_vm9, %v3286_v23, %v3287_v24  ;;  %v16557_v21 = vcombine.low %v11463_v17, %v11433_v42  ;;  %v662_v23 = vrot.slane %v16548_v52, 5 }
 0x11a   : > { %v651_v28 = vsel %vm11379_vm9, %v6906_v39, %v650_v41  ;;  %v652_v62 = vrot.slane %v650_v41, 4  ;;  %v655_v41 = vrot.slane %v653_v35, 4  ;;  %v658_v59 = vrot.slane %v656_v18, 4  ;;  %8111 = vmatprep.mubr.msk.f32.mxu1 %vm704_vm2, %v700_v2 }
 0x11b   : > { %8378 = vmatmul.mubr.msk.f32.vlgmr.msra.gmra.mrb[0].mxu0 %vm704_vm2, %v16556_v16  ;;  %v701_v40 = vcombine.low %v12244_v56, %v651_v28  ;;  %v12278_v16 = vld [vmem:[%s9777_s30 + $0x1f0] sm:$0xff]  ;;  %v8591_v17 = vpack.c.bf16 %v294_v30, %v293_v11  ;;  %v3289_v11 = vrot.slane %v662_v23, 4  ;;  %v16558_v30 = vcombine.low %v11448_v5, %v11467_v8 }
 0x11c   : > { %8614 = vmatpush3.bf16.msra.mxu0 %v11388_v49  ;;  %8380 = vmatprep.mubr.msk.f32.mxu0 %vm704_vm2, %v16557_v21  ;;  %v12275_v54 = vsel %vm11379_vm9, %v652_v62, %v653_v35  ;;  %v659_v28 = vrot.slane %v12278_v16, 5  ;;  %v12287_v42 = vsel %vm11379_vm9, %v655_v41, %v656_v18  ;;  %v3290_v62 = vrot.slane %v12255_v27, 5  ;;  %v307_v21 = vld [vmem:[%s15624_s1 + $0x70] sm:$0xff]  ;;  %v308_v35 = vld [vmem:[%s15624_s1 + $0x78] sm:$0xff]  ;;  %v16560_v49 = vld [vmem:[#allocation113_spill] sm:$0xff] }
 0x11d   : > { %8112 = vmatmul.mubr.msk.f32.gmra.mrb[36].mxu1 %vm704_vm2, %v701_v40  ;;  %v702_v24 = vcombine.low %v12275_v54, %v12287_v42  ;;  %8592 = vmatprep.subr.bf16.mxu1 %v8591_v17  ;;  %v16559_v40 = vld [vmem:[#allocation5_spill] sm:$0xff]  ;;  %v16561_v27 = vcombine.low %v11482_v14, %v11501_v10 }
 0x11e   : > { %v12301_v18 = vsel %vm11379_vm9, %v658_v59, %v659_v28  ;;  %v661_v2 = vrot.slane %v659_v28, 4  ;;  %v1050_v39 = vcombine.low %v16560_v49, %v16559_v40  ;;  %v12322_v8 = vsel %vm11379_vm9, %v3289_v11, %v3290_v62  ;;  %8594 = vmatpush3.bf16.msra.mxu1 %v8591_v17  ;;  %v16563_v28 = vld [vmem:[#allocation6_spill] sm:$0xff]  ;;  %v16564_v49 = vld [vmem:[#allocation192_spill] sm:$0xff]  ;;  %v9569_v17 = vld [vmem:[%s9777_s30 + $0x10] sm:$0xff] }
 0x11f   : > { %8381 = vmatmul.mubr.msk.f32.gmra.mrb[2].mxu0 %vm704_vm2, %v16558_v30  ;;  %v3330_v41 = vcombine.low %v12287_v42, %v12301_v18  ;;  %8114 = vmatprep.mubr.msk.f32.mxu1 %vm704_vm2, %v702_v24  ;;  %v12324_v59 = vpack.c.bf16 %v308_v35, %v307_v21  ;;  %v16565_v62 = vcombine.low %v11527_v60, %v16564_v49  ;;  %v9570_v21 = vld [vmem:[%s9777_s30 + $0x20] sm:$0xff]  ;;  %v16571_v40 = vld [vmem:[#allocation10_spill] sm:$0xff]  ;;  %v16576_v49 = vld [vmem:[#allocation19_spill] sm:$0xff] }
 0x120   : > { %8383 = vmatprep.mubr.msk.f32.mxu0 %vm704_vm2, %v16561_v27  ;;  %v12318_v5 = vsel %vm11379_vm9, %v661_v2, %v662_v23  ;;  %v16562_v27 = vcombine.low %v11497_v25, %v11515_v1  ;;  %v1051_v23 = vcombine.low %v9568_v44, %v16563_v28  ;;  %v1052_v35 = vcombine.low %v9569_v17, %v9570_v21  ;;  %v16566_v25 = vld [vmem:[#allocation200_spill] sm:$0xff]  ;;  %v16567_v1 = vld [vmem:[#allocation201_spill] sm:$0xff]  ;;  %v9571_v2 = vld [vmem:[%s9777_s30 + $0x28] sm:$0xff] }
 0x121   : > { %v703_v14 = vcombine.low %v12301_v18, %v12318_v5  ;;  %v3331_v10 = vcombine.low %v12318_v5, %v12322_v8  ;;  %8616 = vmatprep.subr.bf16.mxu0 %v12324_v59  ;;  %v16568_v24 = vcombine.low %v16566_v25, %v16567_v1  ;;  %v16569_v11 = vld [vmem:[#allocation9_spill] sm:$0xff]  ;;  %v16570_v30 = vcombine.low %v11566_v22, %v11578_v9  ;;  %v16573_v44 = vld [vmem:[#allocation18_spill] sm:$0xff]  ;;  %v16574_v28 = vld [vmem:[#allocation115_spill] sm:$0xff] }
 0x122   : > { %v1053_v60 = vcombine.low %v16569_v11, %v9571_v2  ;;  %v16575_v9 = vcombine.low %v11610_v12, %v11617_v20  ;;  %v9573_v22 = vld [vmem:[%s9777_s30 + $0x48] sm:$0xff]  ;;  %v16577_v17 = vld [vmem:[#allocation193_spill] sm:$0xff]  ;;  %v9574_v21 = vld [vmem:[%s9777_s30 + $0x50] sm:$0xff]  ;;  %v16580_v20 = vcombine.low %v11685_v15, %v11655_v0 }
 0x123   : > { %8384 = vmatmul.mubr.msk.f32.gmra.mrb[4].mxu0 %vm704_vm2, %v16562_v27  ;;  %8115 = vmatmul.mubr.msk.f32.gmra.mrb[38].mxu1 %vm704_vm2, %v703_v14  ;;  %v16572_v27 = vcombine.low %v11590_v61, %v11596_v4  ;;  %v16578_v61 = vld [vmem:[#allocation194_spill] sm:$0xff]  ;;  %v16581_v1 = vld [vmem:[#allocation21_spill] sm:$0xff]  ;;  %v16582_v2 = vld [vmem:[#allocation204_spill] sm:$0xff] }
 0x124   : > { %8386 = vmatprep.mubr.msk.f32.mxu0 %vm704_vm2, %v16565_v62  ;;  %8121 = vmatprep.mubr.msk.f32.mxu1 %vm704_vm2, %v1050_v39  ;;  %v9572_v39 = vld [vmem:[%s9777_s30 + $0x30] sm:$0xff]  ;;  %v1056_v62 = vcombine.low %v9573_v22, %v16576_v49  ;;  %v16579_v4 = vcombine.low %v16577_v17, %v16578_v61  ;;  %v9576_v12 = vld [vmem:[%s9777_s30 + $0x68] sm:$0xff]  ;;  %v16592_v22 = vld [vmem:[#allocation33_spill] sm:$0xff] }
 0x125   : > { %v1054_v14 = vcombine.low %v16571_v40, %v9572_v39  ;;  %v16583_v11 = vld [vmem:[#allocation195_spill] sm:$0xff]  ;;  %v16585_v39 = vld [vmem:[#allocation26_spill] sm:$0xff]  ;;  %v16587_v40 = vld [vmem:[#allocation208_spill] sm:$0xff] }
 0x126   : > { %v16586_v15 = vld [vmem:[#allocation207_spill] sm:$0xff]  ;;  %v9580_v61 = vld [vmem:[%s9777_s30 + $0xa0] sm:$0xff]  ;;  %v16668_v42 = vld [vmem:[#allocation126_spill] sm:$0xff] }
 0x127   : > { %8387 = vmatmul.mubr.msk.f32.gmra.mrb[6].mxu0 %vm704_vm2, %v16568_v24  ;;  %8122 = vmatmul.mubr.msk.f32.vlgmr.msra.gmra.mrb[0].mxu1 %vm704_vm2, %v1051_v23  ;;  %v1055_v23 = vcombine.low %v16574_v28, %v16573_v44  ;;  %v1058_v24 = vcombine.low %v16581_v1, %v9576_v12  ;;  %v16590_v44 = vld [vmem:[#allocation202_spill] sm:$0xff]  ;;  %v9579_v17 = vld [vmem:[%s9777_s30 + $0x90] sm:$0xff]  ;;  %v16600_v1 = vld [vmem:[#allocation40_spill] sm:$0xff] }
 0x128   : > { %8389 = vmatprep.mubr.msk.f32.mxu0 %vm704_vm2, %v16570_v30  ;;  %8124 = vmatprep.mubr.msk.f32.mxu1 %vm704_vm2, %v1052_v35  ;;  %v9575_v35 = vld [vmem:[%s9777_s30 + $0x60] sm:$0xff]  ;;  %v9577_v30 = vld [vmem:[%s9777_s30 + $0x70] sm:$0xff] }
 0x129   : > { %v1057_v25 = vcombine.low %v9574_v21, %v9575_v35  ;;  %v1059_v0 = vcombine.low %v16585_v39, %v9577_v30  ;;  %v9581_v35 = vld [vmem:[%s9777_s30 + $0xa8] sm:$0xff]  ;;  %v9582_v12 = vld [vmem:[%s9777_s30 + $0xb0] sm:$0xff]  ;;  %v16605_v39 = vld [vmem:[#allocation205_spill] sm:$0xff] }
 0x12a   : > { %v16604_v30 = vld [vmem:[#allocation46_spill] sm:$0xff]  ;;  %v16669_v18 = vld [vmem:[#allocation235_spill] sm:$0xff]  ;;  %v16674_v8 = vld [vmem:[#allocation129_spill] sm:$0xff] }
 0x12b   : > { %8390 = vmatmul.mubr.msk.f32.gmra.mrb[8].mxu0 %vm704_vm2, %v16572_v27  ;;  %8125 = vmatmul.mubr.msk.f32.gmra.mrb[2].mxu1 %vm704_vm2, %v1053_v60  ;;  %v16584_v60 = vcombine.low %v16582_v2, %v16583_v11  ;;  %v16589_v27 = vld [vmem:[#allocation31_spill] sm:$0xff]  ;;  %v16601_v2 = vld [vmem:[#allocation214_spill] sm:$0xff] }
 0x12c   : > { %8392 = vmatprep.mubr.msk.f32.mxu0 %vm704_vm2, %v16575_v9  ;;  %8127 = vmatprep.mubr.msk.f32.mxu1 %vm704_vm2, %v1054_v14  ;;  %v16588_v14 = vcombine.low %v16586_v15, %v16587_v40  ;;  %v1060_v28 = vcombine.low %v16590_v44, %v16589_v27  ;;  %v9578_v9 = vld [vmem:[%s9777_s30 + $0x88] sm:$0xff]  ;;  %v16602_v11 = vld [vmem:[#allocation215_spill] sm:$0xff]  ;;  %v16607_v40 = vld [vmem:[#allocation49_spill] sm:$0xff]  ;;  %v16608_v27 = vcombine.low %v11853_v53, %v11857_v45 }
 0x12d   : > { %v1061_v49 = vcombine.low %v9578_v9, %v16592_v22  ;;  %v9583_v15 = vld [vmem:[%s9777_s30 + $0xc8] sm:$0xff]  ;;  %v9584_v44 = vld [vmem:[%s9777_s30 + $0xd0] sm:$0xff]  ;;  %v16610_v9 = vld [vmem:[#allocation52_spill] sm:$0xff] }
 0x12e   : > { %v16611_v45 = vld [vmem:[#allocation198_spill] sm:$0xff] }
 0x12f   : > { %8393 = vmatmul.mubr.msk.f32.gmra.mrb[10].mxu0 %vm704_vm2, %v16579_v4  ;;  %8128 = vmatmul.mubr.msk.f32.gmra.mrb[4].mxu1 %vm704_vm2, %v1055_v23  ;;  %v16591_v23 = vcombine.low %v11712_v38, %v11734_v33  ;;  %v1062_v4 = vcombine.low %v9579_v17, %v9580_v61  ;;  %v16594_v38 = vld [vmem:[#allocation210_spill] sm:$0xff]  ;;  %v16595_v33 = vld [vmem:[#allocation211_spill] sm:$0xff] }
 0x130   : > { %8395 = vmatprep.mubr.msk.f32.mxu0 %vm704_vm2, %v16580_v20  ;;  %8130 = vmatprep.mubr.msk.f32.mxu1 %vm704_vm2, %v1056_v62  ;;  %v16593_v62 = vcombine.low %v11748_v3, %v11760_v7  ;;  %v16596_v21 = vcombine.low %v16594_v38, %v16595_v33  ;;  %v16598_v7 = vld [vmem:[#allocation212_spill] sm:$0xff]  ;;  %v16612_v22 = vld [vmem:[#allocation218_spill] sm:$0xff]  ;;  %v16618_v38 = vld [vmem:[#allocation213_spill] sm:$0xff] }
 0x131   : > { %v16599_v20 = vcombine.low %v16598_v7, %v11805_v51  ;;  %v16606_v51 = vcombine.low %v11841_v46, %v11849_v43  ;;  %v16609_v46 = vcombine.low %v11909_v29, %v11887_v47  ;;  %v9586_v43 = vld [vmem:[%s9777_s30 + $0xe8] sm:$0xff]  ;;  %v16615_v29 = vld [vmem:[#allocation89_spill] sm:$0xff] }
 0x132   : > { %v1068_v53 = vcombine.low %v16610_v9, %v9586_v43  ;;  %v16614_v17 = vld [vmem:[#allocation58_spill] sm:$0xff]  ;;  %v16616_v61 = vcombine.low %v11928_v13, %v16615_v29  ;;  %v16622_v7 = vld [vmem:[#allocation69_spill] sm:$0xff]  ;;  %v16623_v13 = vcombine.low %v11978_v63, %v11982_v31  ;;  %v16637_v9 = vld [vmem:[#allocation232_spill] sm:$0xff] }
 0x133   : > { %8396 = vmatmul.mubr.msk.f32.gmra.mrb[12].mxu0 %vm704_vm2, %v16584_v60  ;;  %8131 = vmatmul.mubr.msk.f32.gmra.mrb[6].mxu1 %vm704_vm2, %v1057_v25  ;;  %v16597_v25 = vld [vmem:[#allocation36_spill] sm:$0xff]  ;;  %v16603_v60 = vcombine.low %v16601_v2, %v16602_v11  ;;  %v16627_v63 = vld [vmem:[#allocation225_spill] sm:$0xff]  ;;  %v16644_v29 = vld [vmem:[#allocation127_spill] sm:$0xff] }
 0x134   : > { %8398 = vmatprep.mubr.msk.f32.mxu0 %vm704_vm2, %v16588_v14  ;;  %8133 = vmatprep.mubr.msk.f32.mxu1 %vm704_vm2, %v1058_v24  ;;  %v1063_v3 = vcombine.low %v16597_v25, %v9581_v35  ;;  %v1064_v24 = vcombine.low %v16600_v1, %v9582_v12  ;;  %v1066_v14 = vcombine.low %v9583_v15, %v16607_v40  ;;  %v16620_v35 = vld [vmem:[#allocation221_spill] sm:$0xff]  ;;  %v9589_v12 = vld [vmem:[%s9777_s30 + $0x110] sm:$0xff]  ;;  %v16624_v2 = vld [vmem:[#allocation96_spill] sm:$0xff] }
 0x135   : > { %v9590_v1 = vld [vmem:[%s9777_s30 + $0x120] sm:$0xff]  ;;  %v16625_v11 = vcombine.low %v12005_v58, %v16624_v2  ;;  %v16628_v31 = vcombine.low %v12024_v19, %v16627_v63  ;;  %v16630_v58 = vcombine.low %v12057_v32, %v12063_v37  ;;  %v16631_v40 = vld [vmem:[#allocation82_spill] sm:$0xff]  ;;  %v9594_v37 = vld [vmem:[%s9777_s30 + $0x150] sm:$0xff] }
 0x136   : > { %v12558_v2 = vld [vmem:[%s9777_s30 + $0x18] sm:$0x7]  ;;  %v16664_v63 = vld [vmem:[#allocation118_spill] sm:$0xff] }
 0x137   : > { %8399 = vmatmul.mubr.msk.f32.gmra.mrb[14].mxu0 %vm704_vm2, %v16591_v23  ;;  %8134 = vmatmul.mubr.msk.f32.gmra.mrb[8].mxu1 %vm704_vm2, %v1059_v0  ;;  %v1065_v0 = vcombine.low %v16605_v39, %v16604_v30  ;;  %v16626_v30 = vld [vmem:[#allocation74_spill] sm:$0xff] }
 0x138   : > { %8401 = vmatprep.mubr.msk.f32.mxu0 %vm704_vm2, %v16593_v62  ;;  %8136 = vmatprep.mubr.msk.f32.mxu1 %vm704_vm2, %v1060_v28  ;;  %v9585_v28 = vld [vmem:[%s9777_s30 + $0xe0] sm:$0xff]  ;;  %v9587_v62 = vld [vmem:[%s9777_s30 + $0xf0] sm:$0xff] }
 0x139   : > { %v1067_v23 = vcombine.low %v9584_v44, %v9585_v28  ;;  %v1069_v47 = vcombine.low %v16614_v17, %v9587_v62  ;;  %v16633_v44 = vld [vmem:[#allocation229_spill] sm:$0xff]  ;;  %v16634_v28 = vld [vmem:[#allocation230_spill] sm:$0xff] }
 0x13a   : > { %v16635_v19 = vcombine.low %v16633_v44, %v16634_v28  ;;  %v16642_v62 = vld [vmem:[#allocation222_spill] sm:$0xff]  ;;  %v16673_v28 = vld [vmem:[#allocation15_spill] sm:$0xff] }
 0x13b   : > { %8402 = vmatmul.mubr.msk.f32.gmra.mrb[16].mxu0 %vm704_vm2, %v16596_v21  ;;  %8137 = vmatmul.mubr.msk.f32.gmra.mrb[10].mxu1 %vm704_vm2, %v1061_v49  ;;  %v16613_v49 = vcombine.low %v16611_v45, %v16612_v22  ;;  %v16619_v21 = vld [vmem:[#allocation199_spill] sm:$0xff]  ;;  %v16643_v17 = vld [vmem:[#allocation94_spill] sm:$0xff] }
 0x13c   : > { %8404 = vmatprep.mubr.msk.f32.mxu0 %vm704_vm2, %v16599_v20  ;;  %8139 = vmatprep.mubr.msk.f32.mxu1 %vm704_vm2, %v1062_v4  ;;  %v16617_v4 = vld [vmem:[#allocation64_spill] sm:$0xff]  ;;  %v16621_v25 = vcombine.low %v16619_v21, %v16620_v35  ;;  %v16640_v45 = vld [vmem:[#allocation219_spill] sm:$0xff] }
 0x13d   : > { %v1070_v33 = vcombine.low %v16618_v38, %v16617_v4  ;;  %v1077_v22 = vcombine.low %v9594_v37, %v16640_v45  ;;  %v16646_v4 = vld [vmem:[#allocation103_spill] sm:$0xff]  ;;  %v16647_v38 = vld [vmem:[#allocation98_spill] sm:$0xff]  ;;  %v16650_v21 = vld [vmem:[#allocation224_spill] sm:$0xff] }
 0x13e   : > { %v16681_v45 = vld [vmem:[#allocation140_spill] sm:$0xff] }
 0x13f   : > { %8405 = vmatmul.mubr.msk.f32.gmra.mrb[18].mxu0 %vm704_vm2, %v16603_v60  ;;  %8140 = vmatmul.mubr.msk.f32.gmra.mrb[12].mxu1 %vm704_vm2, %v1063_v3  ;;  %v9588_v3 = vld [vmem:[%s9777_s30 + $0x108] sm:$0xff] }
 0x140   : > { %8407 = vmatprep.mubr.msk.f32.mxu0 %vm704_vm2, %v16606_v51  ;;  %8142 = vmatprep.mubr.msk.f32.mxu1 %vm704_vm2, %v1064_v24  ;;  %v1071_v20 = vcombine.low %v9588_v3, %v16622_v7  ;;  %v1072_v24 = vcombine.low %v9589_v12, %v9590_v1  ;;  %v9591_v60 = vld [vmem:[%s9777_s30 + $0x128] sm:$0xff]  ;;  %v16629_v51 = vld [vmem:[#allocation79_spill] sm:$0xff]  ;;  %v16653_v3 = vld [vmem:[#allocation109_spill] sm:$0xff] }
 0x141   : > { %v1073_v39 = vcombine.low %v16626_v30, %v9591_v60  ;;  %v16654_v7 = vld [vmem:[#allocation226_spill] sm:$0xff]  ;;  %v16658_v1 = vld [vmem:[#allocation7_spill] sm:$0xff]  ;;  %v16660_v60 = vcombine.low %v12266_v6, %v12275_v54  ;;  %v16666_v54 = vld [vmem:[#allocation17_spill] sm:$0xff] }
 0x143   : > { %8408 = vmatmul.mubr.msk.f32.gmra.mrb[20].mxu0 %vm704_vm2, %v16608_v27  ;;  %8143 = vmatmul.mubr.msk.f32.gmra.mrb[14].mxu1 %vm704_vm2, %v1065_v0  ;;  %v9592_v0 = vld [vmem:[%s9777_s30 + $0x130] sm:$0xff] }
 0x144   : > { %8410 = vmatprep.mubr.msk.f32.mxu0 %vm704_vm2, %v16609_v46  ;;  %8145 = vmatprep.mubr.msk.f32.mxu1 %vm704_vm2, %v1066_v14  ;;  %v1074_v15 = vcombine.low %v16629_v51, %v9592_v0  ;;  %v16632_v14 = vld [vmem:[#allocation216_spill] sm:$0xff]  ;;  %v16667_v51 = vrot.slane %v16666_v54, 6  ;;  %v16786_v0 = vrot.slane %v16666_v54, 7 }
 0x145   : > { %v1075_v27 = vcombine.low %v16632_v14, %v16631_v40  ;;  %v16636_v46 = vld [vmem:[#allocation88_spill] sm:$0xff]  ;;  %v16670_v14 = vld [vmem:[#allocation13_spill] sm:$0xff] }
 0x147   : > { %8411 = vmatmul.mubr.msk.f32.gmra.mrb[22].mxu0 %vm704_vm2, %v16613_v49  ;;  %8146 = vmatmul.mubr.msk.f32.gmra.mrb[16].mxu1 %vm704_vm2, %v1067_v23  ;;  %v9593_v23 = vld [vmem:[%s9777_s30 + $0x148] sm:$0xff]  ;;  %v16641_v49 = vcombine.low %v12157_v50, %v12132_v48  ;;  %v16648_v50 = vcombine.low %v12184_v36, %v12197_v34  ;;  %v16655_v36 = vcombine.low %v12236_v55, %v12244_v56  ;;  %v16656_v34 = vld [vmem:[#allocation228_spill] sm:$0xff]  ;;  %v16661_v55 = vld [vmem:[#allocation231_spill] sm:$0xff] }
 0x148   : > { %8413 = vmatprep.mubr.msk.f32.mxu0 %vm704_vm2, %v16616_v61  ;;  %8148 = vmatprep.mubr.msk.f32.mxu1 %vm704_vm2, %v1068_v53  ;;  %v1076_v43 = vcombine.low %v9593_v23, %v16636_v46  ;;  %v16638_v53 = vld [vmem:[#allocation233_spill] sm:$0xff]  ;;  %v16645_v61 = vcombine.low %v12143_v57, %v16644_v29  ;;  %v16649_v48 = vld [vmem:[#allocation106_spill] sm:$0xff]  ;;  %v16662_v56 = vld [vmem:[#allocation112_spill] sm:$0xff] }
 0x149   : > { %v16639_v32 = vcombine.low %v16637_v9, %v16638_v53  ;;  %v1080_v35 = vcombine.low %v16650_v21, %v16649_v48  ;;  %v1083_v30 = vcombine.low %v16662_v56, %v16661_v55  ;;  %v16676_v46 = vld [vmem:[#allocation14_spill] sm:$0xff]  ;;  %v16679_v53 = vld [vmem:[#allocation20_spill] sm:$0xff]  ;;  %v16689_v21 = vld [vmem:[#allocation25_spill] sm:$0xff] }
 0x14a   : > { %v16697_v55 = vld [vmem:[#allocation32_spill] sm:$0xff] }
 0x14b   : > { %8414 = vmatmul.mubr.msk.f32.gmra.mrb[24].mxu0 %vm704_vm2, %v16621_v25  ;;  %8149 = vmatmul.mubr.msk.f32.gmra.mrb[18].mxu1 %vm704_vm2, %v1069_v47  ;;  %v1078_v47 = vcombine.low %v16643_v17, %v16642_v62  ;;  %v16651_v25 = vld [vmem:[#allocation135_spill] sm:$0xff] }
 0x14c   : > { %8416 = vmatprep.mubr.msk.f32.mxu0 %vm704_vm2, %v16623_v13  ;;  %8151 = vmatprep.mubr.msk.f32.mxu1 %vm704_vm2, %v1070_v33  ;;  %v1079_v33 = vcombine.low %v16647_v38, %v16646_v4  ;;  %v16652_v57 = vcombine.low %v12191_v26, %v16651_v25  ;;  %v16657_v13 = vld [vmem:[#allocation227_spill] sm:$0xff]  ;;  %v16659_v26 = vrot.slane %v16658_v1, 6  ;;  %v12615_v4 = vld [vmem:[%s9777_s30 + $0x58] sm:$0x7]  ;;  %v16690_v25 = vld [vmem:[#allocation138_spill] sm:$0xff] }
 0x14d   : > { %v1082_v12 = vcombine.low %v16657_v13, %v16656_v34  ;;  %v16683_v62 = vld [vmem:[#allocation23_spill] sm:$0xff]  ;;  %v3724_v38 = vrot.slane %v12615_v4, 6  ;;  %v16693_v34 = vld [vmem:[#allocation29_spill] sm:$0xff] }
 0x14e   : > { %v16694_v13 = vrot.slane %v16693_v34, 6 }
 0x14f   : > { %8417 = vmatmul.mubr.msk.f32.gmra.mrb[26].mxu0 %vm704_vm2, %v16625_v11  ;;  %8152 = vmatmul.mubr.msk.f32.gmra.mrb[20].mxu1 %vm704_vm2, %v1071_v20  ;;  %v1081_v20 = vcombine.low %v16654_v7, %v16653_v3  ;;  %v3718_v11 = vrot.slane %v12558_v2, 6  ;;  %v16691_v3 = vld [vmem:[#allocation28_spill] sm:$0xff]  ;;  %v16692_v7 = vld [vmem:[#allocation27_spill] sm:$0xff] }
 0x150   : > { %8419 = vmatprep.mubr.msk.f32.mxu0 %vm704_vm2, %v16628_v31  ;;  %8154 = vmatprep.mubr.msk.f32.mxu1 %vm704_vm2, %v1072_v24  ;;  %v3717_v24 = vrot.slane %v16659_v26, 4  ;;  %v12635_v26 = vld [vmem:[%s9777_s30 + $0x78] sm:$0x7] }
 0x152   : > { %v3719_v6 = vsel %vm9809_vm3, %v3717_v24, %v3718_v11  ;;  %v3727_v24 = vrot.slane %v12635_v26, 6 }
 0x153   : > { %8420 = vmatmul.mubr.msk.f32.gmra.mrb[28].mxu0 %vm704_vm2, %v16630_v58  ;;  %8155 = vmatmul.mubr.msk.f32.gmra.mrb[22].mxu1 %vm704_vm2, %v1073_v39  ;;  %v16663_v39 = vld [vmem:[#allocation124_spill] sm:$0xff] }
 0x154   : > { %8422 = vmatprep.mubr.msk.f32.mxu0 %vm704_vm2, %v16635_v19  ;;  %8157 = vmatprep.mubr.msk.f32.mxu1 %vm704_vm2, %v1074_v15  ;;  %v1084_v31 = vcombine.low %v16664_v63, %v16663_v39  ;;  %v3720_v15 = vrot.slane %v16667_v51, 4  ;;  %v12580_v58 = vld [vmem:[%s9777_s30 + $0x38] sm:$0x7]  ;;  %v3767_v19 = vcombine.low %v3719_v6, %v16673_v28  ;;  %v16698_v39 = vld [vmem:[#allocation37_spill] sm:$0xff]  ;;  %v16700_v6 = vld [vmem:[#allocation203_spill] sm:$0xff] }
 0x155   : > { %v3721_v40 = vrot.slane %v12580_v58, 6  ;;  %v16699_v63 = vrot.slane %v16698_v39, 6  ;;  %v3730_v51 = vrot.slane %v16700_v6, 6 }
 0x157   : > { %8423 = vmatmul.mubr.msk.f32.gmra.mrb[30].mxu0 %vm704_vm2, %v16639_v32  ;;  %8158 = vmatmul.mubr.msk.f32.gmra.mrb[24].mxu1 %vm704_vm2, %v1075_v27  ;;  %v16671_v27 = vld [vmem:[#allocation11_spill] sm:$0xff]  ;;  %v3722_v5 = vsel %vm9809_vm3, %v3720_v15, %v3721_v40  ;;  %v16680_v32 = vld [vmem:[#allocation16_spill] sm:$0xff] }
 0x158   : > { %8425 = vmatprep.mubr.msk.f32.mxu0 %vm704_vm2, %v16641_v49  ;;  %8160 = vmatprep.mubr.msk.f32.mxu1 %vm704_vm2, %v1076_v43  ;;  %v16672_v44 = vcombine.low %v16670_v14, %v16671_v27  ;;  %v16677_v43 = vld [vmem:[#allocation12_spill] sm:$0xff]  ;;  %v3768_v37 = vcombine.low %v16680_v32, %v16679_v53  ;;  %v3769_v17 = vcombine.low %v16683_v62, %v3722_v5  ;;  %v16701_v15 = vld [vmem:[#allocation35_spill] sm:$0xff]  ;;  %v16704_v27 = vld [vmem:[#allocation42_spill] sm:$0xff] }
 0x159   : > { %v16678_v9 = vcombine.low %v16676_v46, %v16677_v43  ;;  %v16709_v46 = vld [vmem:[#allocation45_spill] sm:$0xff]  ;;  %v16710_v53 = vld [vmem:[#allocation50_spill] sm:$0xff]  ;;  %v16711_v32 = vld [vmem:[#allocation48_spill] sm:$0xff] }
 0x15b   : > { %8426 = vmatmul.mubr.msk.f32.gmra.mrb[32].mxu0 %vm704_vm2, %v16645_v61  ;;  %8161 = vmatmul.mubr.msk.f32.gmra.mrb[26].mxu1 %vm704_vm2, %v1077_v22  ;;  %v16682_v22 = vld [vmem:[#allocation133_spill] sm:$0xff] }
 0x15c   : > { %8428 = vmatprep.mubr.msk.f32.mxu0 %vm704_vm2, %v16648_v50  ;;  %8163 = vmatprep.mubr.msk.f32.mxu1 %vm704_vm2, %v1078_v47  ;;  %v1087_v49 = vcombine.low %v16682_v22, %v16681_v45  ;;  %v16684_v47 = vld [vmem:[#allocation22_spill] sm:$0xff]  ;;  %v16687_v50 = vld [vmem:[#allocation132_spill] sm:$0xff]  ;;  %v16712_v45 = vld [vmem:[#allocation51_spill] sm:$0xff] }
 0x15d   : > { %v16685_v29 = vrot.slane %v16684_v47, 6 }
 0x15f   : > { %8429 = vmatmul.mubr.msk.f32.gmra.mrb[34].mxu0 %vm704_vm2, %v16652_v57  ;;  %8164 = vmatmul.mubr.msk.f32.gmra.mrb[28].mxu1 %vm704_vm2, %v1079_v33  ;;  %v3723_v61 = vrot.slane %v16685_v29, 4  ;;  %v16686_v33 = vld [vmem:[#allocation239_spill] sm:$0xff]  ;;  %v1089_v57 = vcombine.low %v16690_v25, %v12278_v16  ;;  %v16695_v16 = vld [vmem:[#allocation30_spill] sm:$0xff]  ;;  %v16715_v29 = vld [vmem:[#allocation209_spill] sm:$0xff] }
 0x160   : > { %8431 = vmatprep.mubr.msk.f32.mxu0 %vm704_vm2, %v16655_v36  ;;  %8166 = vmatprep.mubr.msk.f32.mxu1 %vm704_vm2, %v1080_v35  ;;  %v1088_v48 = vcombine.low %v16687_v50, %v16686_v33  ;;  %v16717_v33 = vld [vmem:[#allocation56_spill] sm:$0xff]  ;;  %v16720_v25 = vld [vmem:[#allocation61_spill] sm:$0xff] }
 0x161   : > { %v3725_v36 = vsel %vm9809_vm3, %v3723_v61, %v3724_v38  ;;  %v3736_v61 = vrot.slane %v16715_v29, 6  ;;  %v16716_v38 = vld [vmem:[#allocation57_spill] sm:$0xff] }
 0x162   : > { %v3772_v11 = vcombine.low %v3725_v36, %v16695_v16  ;;  %v3780_v50 = vcombine.low %v16717_v33, %v16716_v38  ;;  %v16723_v36 = vld [vmem:[#allocation65_spill] sm:$0xff] }
 0x163   : > { %8432 = vmatmul.mubr.msk.f32.gmra.mrb[36].mxu0 %vm704_vm2, %v16660_v60  ;;  %8167 = vmatmul.mubr.msk.f32.gmra.mrb[30].mxu1 %vm704_vm2, %v1081_v20  ;;  %v3771_v20 = vcombine.low %v16692_v7, %v16691_v3  ;;  %v16696_v60 = vld [vmem:[#allocation34_spill] sm:$0xff]  ;;  %v16722_v7 = vld [vmem:[#allocation196_spill] sm:$0xff]  ;;  %v16745_v38 = vld [vmem:[#allocation93_spill] sm:$0xff] }
 0x164   : > { %8434 = vmatprep.mubr.msk.f32.mxu0 %vm704_vm2, %v3330_v41  ;;  %8169 = vmatprep.mubr.msk.f32.mxu1 %vm704_vm2, %v1082_v12  ;;  %v1085_v41 = vcombine.low %v16669_v18, %v16668_v42  ;;  %v3726_v12 = vrot.slane %v16694_v13, 4  ;;  %v3773_v56 = vcombine.low %v16697_v55, %v16696_v60  ;;  %v16702_v42 = vld [vmem:[#allocation38_spill] sm:$0xff]  ;;  %v16703_v18 = vld [vmem:[#allocation39_spill] sm:$0xff] }
 0x165   : > { %v16726_v60 = vld [vmem:[#allocation75_spill] sm:$0xff] }
 0x166   : > { %v16727_v55 = vrot.slane %v16726_v60, 6 }
 0x167   : > { %8435 = vmatmul.mubr.msk.f32.gmra.mrb[38].mxu0 %vm704_vm2, %v3331_v10  ;;  %8170 = vmatmul.mubr.msk.f32.gmra.mrb[32].mxu1 %vm704_vm2, %v1083_v30  ;;  %v16675_v10 = vld [vmem:[#allocation237_spill] sm:$0xff]  ;;  %v3728_v30 = vsel %vm9809_vm3, %v3726_v12, %v3727_v24  ;;  %v16724_v12 = vld [vmem:[#allocation68_spill] sm:$0xff]  ;;  %v16725_v24 = vld [vmem:[#allocation67_spill] sm:$0xff] }
 0x168   : > { %8441 = vmatprep.mubr.msk.f32.mxu0 %vm704_vm2, %v16672_v44  ;;  %8172 = vmatprep.mubr.msk.f32.mxu1 %vm704_vm2, %v1084_v31  ;;  %v1086_v23 = vcombine.low %v16675_v10, %v16674_v8  ;;  %v3729_v31 = vrot.slane %v16699_v63, 4  ;;  %v3774_v40 = vcombine.low %v16701_v15, %v3728_v30  ;;  %v16705_v44 = vrot.slane %v16704_v27, 6  ;;  %v16707_v8 = vld [vmem:[#allocation43_spill] sm:$0xff]  ;;  %v16708_v10 = vld [vmem:[#allocation41_spill] sm:$0xff] }
 0x169   : > { %v3783_v16 = vcombine.low %v16725_v24, %v16724_v12  ;;  %v16728_v30 = vld [vmem:[#allocation197_spill] sm:$0xff]  ;;  %v16752_v12 = vld [vmem:[#allocation111_spill] sm:$0xff]  ;;  %v16753_v24 = vld [vmem:[#allocation108_spill] sm:$0xff] }
 0x16a   : > { %v3731_v14 = vsel %vm9809_vm3, %v3729_v31, %v3730_v51  ;;  %v3732_v28 = vrot.slane %v16705_v44, 4  ;;  %v3742_v63 = vrot.slane %v16728_v30, 6  ;;  %v16729_v31 = vld [vmem:[#allocation71_spill] sm:$0xff]  ;;  %v16730_v51 = vld [vmem:[#allocation78_spill] sm:$0xff]  ;;  %v16731_v15 = vld [vmem:[#allocation73_spill] sm:$0xff] }
 0x16b   : > { %8442 = vmatmul.mubr.msk.f32.vlgmr.msra.gmra.mrb[0].mxu0 %vm704_vm2, %v16678_v9  ;;  %8173 = vmatmul.mubr.msk.f32.gmra.mrb[34].mxu1 %vm704_vm2, %v1085_v41  ;;  %v3775_v41 = vcombine.low %v16703_v18, %v16702_v42  ;;  %v3777_v43 = vcombine.low %v3731_v14, %v16709_v46  ;;  %v16732_v18 = vld [vmem:[#allocation81_spill] sm:$0xff] }
 0x16c   : > { %8618 = vmatpush3.bf16.msra.mxu0 %v12324_v59  ;;  %8444 = vmatprep.mubr.msk.f32.mxu0 %vm704_vm2, %v3767_v19  ;;  %v16688_v59 = vld [vmem:[#allocation24_spill] sm:$0xff]  ;;  %v16706_v19 = vld [vmem:[#allocation206_spill] sm:$0xff]  ;;  %v16734_v44 = vld [vmem:[#allocation217_spill] sm:$0xff] }
 0x16d   : > { %8175 = vmatprep.mubr.msk.f32.mxu1 %vm704_vm2, %v1086_v23  ;;  %v3770_v35 = vcombine.low %v16689_v21, %v16688_v59  ;;  %v3733_v5 = vrot.slane %v16706_v19, 6  ;;  %v3776_v23 = vcombine.low %v16708_v10, %v16707_v8  ;;  %v16719_v59 = vld [vmem:[#allocation60_spill] sm:$0xff]  ;;  %v16735_v19 = vld [vmem:[#allocation83_spill] sm:$0xff]  ;;  %v16737_v10 = vld [vmem:[#allocation85_spill] sm:$0xff] }
 0x16f   : > { %8445 = vmatmul.mubr.msk.f32.gmra.mrb[2].mxu0 %vm704_vm2, %v3768_v37  ;;  %8176 = vmatmul.mubr.msk.f32.gmra.mrb[36].mxu1 %vm704_vm2, %v1087_v49  ;;  %v3734_v9 = vsel %vm9809_vm3, %v3732_v28, %v3733_v5  ;;  %v3778_v37 = vcombine.low %v16711_v32, %v16710_v53  ;;  %v16713_v49 = vld [vmem:[#allocation54_spill] sm:$0xff]  ;;  %v3745_v28 = vrot.slane %v16734_v44, 6  ;;  %v16736_v5 = vld [vmem:[#allocation80_spill] sm:$0xff] }
 0x170   : > { %8447 = vmatprep.mubr.msk.f32.mxu0 %vm704_vm2, %v3769_v17  ;;  %8178 = vmatprep.mubr.msk.f32.mxu1 %vm704_vm2, %v1088_v48  ;;  %v3779_v22 = vcombine.low %v16712_v45, %v3734_v9  ;;  %v16714_v62 = vrot.slane %v16713_v49, 6  ;;  %v16718_v48 = vld [vmem:[#allocation62_spill] sm:$0xff]  ;;  %v3786_v8 = vcombine.low %v16736_v5, %v16735_v19  ;;  %v16739_v9 = vld [vmem:[#allocation87_spill] sm:$0xff]  ;;  %v16762_v19 = vld [vmem:[#allocation236_spill] sm:$0xff] }
 0x171   : > { %v3781_v21 = vcombine.low %v16719_v59, %v16718_v48  ;;  %v16740_v32 = vld [vmem:[#allocation90_spill] sm:$0xff]  ;;  %v16741_v45 = vld [vmem:[#allocation95_spill] sm:$0xff]  ;;  %v3757_v5 = vrot.slane %v16762_v19, 6 }
 0x172   : > { %v3735_v17 = vrot.slane %v16714_v62, 4  ;;  %v16747_v48 = vld [vmem:[#allocation99_spill] sm:$0xff] }
 0x173   : > { %8448 = vmatmul.mubr.msk.f32.gmra.mrb[4].mxu0 %vm704_vm2, %v3770_v35  ;;  %8179 = vmatmul.mubr.msk.f32.gmra.mrb[38].mxu1 %vm704_vm2, %v1089_v57  ;;  %v16721_v57 = vrot.slane %v16720_v25, 6 }
 0x174   : > { %8450 = vmatprep.mubr.msk.f32.mxu0 %vm704_vm2, %v3771_v20  ;;  %v3737_v35 = vsel %vm9809_vm3, %v3735_v17, %v3736_v61  ;;  %v3739_v20 = vrot.slane %v16722_v7, 6  ;;  %v16743_v17 = vld [vmem:[#allocation220_spill] sm:$0xff]  ;;  %v16744_v61 = vld [vmem:[#allocation97_spill] sm:$0xff]  ;;  %v16750_v7 = vld [vmem:[#allocation223_spill] sm:$0xff] }
 0x175   : > { %v3738_v3 = vrot.slane %v16721_v57, 4  ;;  %v3782_v13 = vcombine.low %v3737_v35, %v16723_v36  ;;  %v3748_v29 = vrot.slane %v16743_v17, 6  ;;  %v3790_v33 = vcombine.low %v16745_v38, %v16744_v61  ;;  %v16748_v35 = vld [vmem:[#allocation100_spill] sm:$0xff]  ;;  %v16751_v36 = vld [vmem:[#allocation105_spill] sm:$0xff] }
 0x176   : > { %v16749_v57 = vrot.slane %v16748_v35, 6 }
 0x177   : > { %8451 = vmatmul.mubr.msk.f32.gmra.mrb[6].mxu0 %vm704_vm2, %v3772_v11  ;;  %v3740_v11 = vsel %vm9809_vm3, %v3738_v3, %v3739_v20  ;;  %v3751_v20 = vrot.slane %v16750_v7, 6 }
 0x178   : > { %8453 = vmatprep.mubr.msk.f32.mxu0 %vm704_vm2, %v3773_v56  ;;  %v3741_v56 = vrot.slane %v16727_v55, 4  ;;  %v3784_v6 = vcombine.low %v16729_v31, %v3740_v11  ;;  %v3750_v3 = vrot.slane %v16749_v57, 4  ;;  %v16754_v55 = vld [vmem:[#allocation114_spill] sm:$0xff]  ;;  %v16774_v57 = vld [vmem:[#allocation141_spill] sm:$0xff] }
 0x17a   : > { %v3743_v42 = vsel %vm9809_vm3, %v3741_v56, %v3742_v63  ;;  %v3752_v11 = vsel %vm9809_vm3, %v3750_v3, %v3751_v20  ;;  %v16755_v56 = vrot.slane %v16754_v55, 6  ;;  %v16756_v63 = vld [vmem:[#allocation234_spill] sm:$0xff]  ;;  %v16775_v3 = vld [vmem:[#allocation139_spill] sm:$0xff] }
 0x17b   : > { %8454 = vmatmul.mubr.msk.f32.gmra.mrb[8].mxu0 %vm704_vm2, %v3774_v40  ;;  %v3785_v40 = vcombine.low %v16731_v15, %v16730_v51  ;;  %v3754_v31 = vrot.slane %v16756_v63, 6  ;;  %v16758_v15 = vld [vmem:[#allocation116_spill] sm:$0xff]  ;;  %v3801_v20 = vcombine.low %v16775_v3, %v16774_v57  ;;  %v16797_v3 = vld [vmem:[#allocation158_spill] sm:$0xff] }
 0x17c   : > { %8456 = vmatprep.mubr.msk.f32.mxu0 %vm704_vm2, %v3775_v41  ;;  %v16733_v41 = vrot.slane %v16732_v18, 6  ;;  %v3753_v30 = vrot.slane %v16755_v56, 4 }
 0x17e   : > { %v3744_v14 = vrot.slane %v16733_v41, 4  ;;  %v3755_v41 = vsel %vm9809_vm3, %v3753_v30, %v3754_v31  ;;  %v16779_v30 = vld [vmem:[#allocation145_spill] sm:$0xff]  ;;  %v16780_v31 = vld [vmem:[#allocation144_spill] sm:$0xff] }
 0x17f   : > { %8457 = vmatmul.mubr.msk.f32.gmra.mrb[10].mxu0 %vm704_vm2, %v3776_v23  ;;  %v3787_v23 = vcombine.low %v3743_v42, %v16737_v10  ;;  %v16764_v10 = vld [vmem:[#allocation119_spill] sm:$0xff] }
 0x180   : > { %8459 = vmatprep.mubr.msk.f32.mxu0 %vm704_vm2, %v3777_v43  ;;  %v3746_v46 = vsel %vm9809_vm3, %v3744_v14, %v3745_v28  ;;  %v16738_v43 = vld [vmem:[#allocation91_spill] sm:$0xff]  ;;  %v16760_v14 = vld [vmem:[#allocation120_spill] sm:$0xff] }
 0x181   : > { %v3788_v53 = vcombine.low %v16739_v9, %v16738_v43  ;;  %v16761_v44 = vrot.slane %v16760_v14, 6 }
 0x183   : > { %8460 = vmatmul.mubr.msk.f32.gmra.mrb[12].mxu0 %vm704_vm2, %v3778_v37  ;;  %v3789_v37 = vcombine.low %v16740_v32, %v3746_v46  ;;  %v3756_v28 = vrot.slane %v16761_v44, 4  ;;  %v16765_v46 = vld [vmem:[#allocation125_spill] sm:$0xff]  ;;  %v16767_v32 = vld [vmem:[#allocation128_spill] sm:$0xff] }
 0x184   : > { %8462 = vmatprep.mubr.msk.f32.mxu0 %vm704_vm2, %v3779_v22  ;;  %v16742_v22 = vrot.slane %v16741_v45, 6  ;;  %v3797_v43 = vcombine.low %v3755_v41, %v16765_v46  ;;  %v16782_v41 = vld [vmem:[#allocation146_spill] sm:$0xff]  ;;  %v4193_v46 = vrot.slane %v16786_v0, 4 }
 0x185   : > { %v3758_v9 = vsel %vm9809_vm3, %v3756_v28, %v3757_v5  ;;  %v16783_v28 = vld [vmem:[#allocation148_spill] sm:$0xff]  ;;  %v16784_v5 = vld [vmem:[#allocation147_spill] sm:$0xff]  ;;  %v5503_v0 = vld [vmem:[%s15625_s2 + $0x8] sm:$0xff] }
 0x186   : > { %v3747_v62 = vrot.slane %v16742_v22, 4  ;;  %v16768_v22 = vld [vmem:[#allocation131_spill] sm:$0xff] }
 0x187   : > { %8463 = vmatmul.mubr.msk.f32.gmra.mrb[14].mxu0 %vm704_vm2, %v3780_v50  ;;  %v16746_v50 = vld [vmem:[#allocation102_spill] sm:$0xff] }
 0x188   : > { %8465 = vmatprep.mubr.msk.f32.mxu0 %vm704_vm2, %v3781_v21  ;;  %v3791_v59 = vcombine.low %v16747_v48, %v16746_v50  ;;  %v3749_v21 = vsel %vm9809_vm3, %v3747_v62, %v3748_v29  ;;  %v3799_v62 = vcombine.low %v16768_v22, %v3758_v9  ;;  %v16769_v29 = vld [vmem:[#allocation134_spill] sm:$0xff]  ;;  %v16772_v48 = vld [vmem:[#allocation137_spill] sm:$0xff] }
 0x189   : > { %v16770_v61 = vrot.slane %v16769_v29, 6  ;;  %v16791_v22 = vld [vmem:[#allocation153_spill] sm:$0xff] }
 0x18b   : > { %8466 = vmatmul.mubr.msk.f32.gmra.mrb[16].mxu0 %vm704_vm2, %v3782_v13  ;;  %v3792_v13 = vcombine.low %v3749_v21, %v16751_v36  ;;  %v3759_v38 = vrot.slane %v16770_v61, 4 }
 0x18c   : > { %8468 = vmatprep.mubr.msk.f32.mxu0 %vm704_vm2, %v3783_v16  ;;  %v3793_v16 = vcombine.low %v16753_v24, %v16752_v12  ;;  %v16777_v24 = vld [vmem:[#allocation240_spill] sm:$0xff] }
 0x18f   : > { %8469 = vmatmul.mubr.msk.f32.gmra.mrb[18].mxu0 %vm704_vm2, %v3784_v6  ;;  %v16757_v6 = vld [vmem:[#allocation110_spill] sm:$0xff] }
 0x190   : > { %8471 = vmatprep.mubr.msk.f32.mxu0 %vm704_vm2, %v3785_v40  ;;  %v3794_v51 = vcombine.low %v16757_v6, %v3752_v11  ;;  %v16759_v40 = vld [vmem:[#allocation117_spill] sm:$0xff]  ;;  %v16778_v11 = vld [vmem:[#allocation142_spill] sm:$0xff]  ;;  %v3803_v6 = vcombine.low %v16780_v31, %v16779_v30  ;;  %v16802_v30 = vld [vmem:[#allocation160_spill] sm:$0xff] }
 0x191   : > { %v3795_v42 = vcombine.low %v16759_v40, %v16758_v15  ;;  %v16781_v15 = vrot.slane %v16658_v1, 7  ;;  %v4194_v1 = vrot.slane %v12580_v58, 7  ;;  %v16793_v58 = vld [vmem:[#allocation154_spill] sm:$0xff] }
 0x193   : > { %8472 = vmatmul.mubr.msk.f32.gmra.mrb[20].mxu0 %vm704_vm2, %v3786_v8  ;;  %v16763_v8 = vld [vmem:[#allocation122_spill] sm:$0xff]  ;;  %v4190_v40 = vrot.slane %v16781_v15, 4  ;;  %v4195_v9 = vsel %vm10627_vm6, %v4193_v46, %v4194_v1  ;;  %v16807_v1 = vrot.slane %v16704_v27, 7 }
 0x194   : > { %8474 = vmatprep.mubr.msk.f32.mxu0 %vm704_vm2, %v3787_v23  ;;  %v3796_v23 = vcombine.low %v16764_v10, %v16763_v8  ;;  %v4238_v8 = vcombine.low %v16784_v5, %v16783_v28  ;;  %v4242_v61 = vcombine.low %v16793_v58, %v4195_v9  ;;  %v5502_v28 = vld [vmem:[%s15625_s2] sm:$0xff]  ;;  %v16806_v5 = vld [vmem:[#allocation163_spill] sm:$0xff] }
 0x195   : > { %v16811_v58 = vld [vmem:[#allocation169_spill] sm:$0xff] }
 0x197   : > { %8475 = vmatmul.mubr.msk.f32.gmra.mrb[22].mxu0 %vm704_vm2, %v3788_v53  ;;  %v16766_v53 = vld [vmem:[#allocation130_spill] sm:$0xff] }
 0x198   : > { %8477 = vmatprep.mubr.msk.f32.mxu0 %vm704_vm2, %v3789_v37  ;;  %v3798_v37 = vcombine.low %v16767_v32, %v16766_v53  ;;  %v16788_v53 = vld [vmem:[#allocation149_spill] sm:$0xff]  ;;  %v16789_v32 = vld [vmem:[#allocation150_spill] sm:$0xff] }
 0x19b   : > { %8478 = vmatmul.mubr.msk.f32.gmra.mrb[24].mxu0 %vm704_vm2, %v3790_v33  ;;  %v16771_v33 = vld [vmem:[#allocation238_spill] sm:$0xff] }
 0x19c   : > { %8480 = vmatprep.mubr.msk.f32.mxu0 %vm704_vm2, %v3791_v59  ;;  %v3760_v50 = vrot.slane %v16771_v33, 6  ;;  %v16773_v59 = vld [vmem:[#allocation136_spill] sm:$0xff] }
 0x19d   : > { %v3800_v21 = vcombine.low %v16773_v59, %v16772_v48  ;;  %v4197_v48 = vrot.slane %v12615_v4, 7  ;;  %v16795_v59 = vld [vmem:[#allocation156_spill] sm:$0xff]  ;;  %v16800_v4 = vld [vmem:[#allocation159_spill] sm:$0xff] }
 0x19e   : > { %v3761_v36 = vsel %vm9809_vm3, %v3759_v38, %v3760_v50  ;;  %v16794_v38 = vrot.slane %v16684_v47, 7 }
 0x19f   : > { %8481 = vmatmul.mubr.msk.f32.gmra.mrb[26].mxu0 %vm704_vm2, %v3792_v13  ;;  %v16776_v13 = vrot.slane %v16548_v52, 6  ;;  %v3802_v56 = vcombine.low %v3761_v36, %v16778_v11 }
 0x1a0   : > { %8483 = vmatprep.mubr.msk.f32.mxu0 %vm704_vm2, %v3793_v16  ;;  %v3763_v16 = vrot.slane %v16777_v24, 6  ;;  %v4196_v50 = vrot.slane %v16794_v38, 4 }
 0x1a1   : > { %v3762_v12 = vrot.slane %v16776_v13, 4 }
 0x1a2   : > { %v4198_v13 = vsel %vm10627_vm6, %v4196_v50, %v4197_v48  ;;  %v16813_v50 = vld [vmem:[#allocation170_spill] sm:$0xff] }
 0x1a3   : > { %8484 = vmatmul.mubr.msk.f32.gmra.mrb[28].mxu0 %vm704_vm2, %v3794_v51  ;;  %v3764_v51 = vsel %vm9809_vm3, %v3762_v12, %v3763_v16  ;;  %v16799_v12 = vrot.slane %v16693_v34, 7  ;;  %v4200_v16 = vrot.slane %v12635_v26, 7  ;;  %v4245_v11 = vcombine.low %v4198_v13, %v16800_v4  ;;  %v9599_v34 = vld [vmem:[%s9777_s30 + $0x98] sm:$0x7]  ;;  %v16804_v26 = vld [vmem:[#allocation162_spill] sm:$0xff] }
 0x1a4   : > { %8486 = vmatprep.mubr.msk.f32.mxu0 %vm704_vm2, %v3795_v42  ;;  %v4191_v42 = vrot.slane %v12558_v2, 7  ;;  %v3804_v44 = vcombine.low %v16782_v41, %v3764_v51  ;;  %v16787_v2 = vld [vmem:[#allocation151_spill] sm:$0xff]  ;;  %v16803_v51 = vrot.slane %v16698_v39, 7  ;;  %v5518_v41 = vld [vmem:[%s15625_s2 + $0x80] sm:$0xff]  ;;  %v16805_v39 = vld [vmem:[#allocation164_spill] sm:$0xff] }
 0x1a5   : > { %v4199_v47 = vrot.slane %v16799_v12, 4  ;;  %v16817_v12 = vld [vmem:[#allocation47_spill] sm:$0xff] }
 0x1a6   : > { %v4202_v15 = vrot.slane %v16803_v51, 4  ;;  %v16821_v51 = vld [vmem:[#allocation59_spill] sm:$0xff] }
 0x1a7   : > { %8487 = vmatmul.mubr.msk.f32.gmra.mrb[30].mxu0 %vm704_vm2, %v3796_v23  ;;  %v4192_v23 = vsel %vm10627_vm6, %v4190_v40, %v4191_v42  ;;  %v4203_v40 = vrot.slane %v9599_v34, 7 }
 0x1a8   : > { %8489 = vmatprep.mubr.msk.f32.mxu0 %vm704_vm2, %v3797_v43  ;;  %v4240_v43 = vcombine.low %v4192_v23, %v16787_v2  ;;  %v4205_v2 = vrot.slane %v16807_v1, 4  ;;  %v9604_v1 = vld [vmem:[%s9777_s30 + $0x138] sm:$0x7] }
 0x1a9   : > { %v4204_v46 = vsel %vm10627_vm6, %v4202_v15, %v4203_v40  ;;  %v16822_v15 = vld [vmem:[#allocation55_spill] sm:$0xff] }
 0x1aa   : > { %v4256_v34 = vcombine.low %v16822_v15, %v16821_v51 }
 0x1ab   : > { %8490 = vmatmul.mubr.msk.f32.gmra.mrb[32].mxu0 %vm704_vm2, %v3798_v37  ;;  %v16790_v37 = vcombine.low %v16788_v53, %v16789_v32  ;;  %v8621_v53 = vpack.c.bf16 %v5503_v0, %v5502_v28  ;;  %v16808_v32 = vld [vmem:[#allocation166_spill] sm:$0xff]  ;;  %v16827_v0 = vrot.slane %v16732_v18, 7 }
 0x1ac   : > { %8492 = vmatprep.mubr.msk.f32.mxu0 %vm704_vm2, %v3799_v62  ;;  %v16792_v62 = vld [vmem:[#allocation152_spill] sm:$0xff] }
 0x1ad   : > { %v4241_v54 = vcombine.low %v16792_v62, %v16791_v22  ;;  %v16810_v62 = vld [vmem:[#allocation167_spill] sm:$0xff] }
 0x1af   : > { %8493 = vmatmul.mubr.msk.f32.gmra.mrb[34].mxu0 %vm704_vm2, %v3800_v21  ;;  %v16796_v21 = vld [vmem:[#allocation155_spill] sm:$0xff] }
 0x1b0   : > { %8495 = vmatprep.mubr.msk.f32.mxu0 %vm704_vm2, %v3801_v20  ;;  %v4243_v57 = vcombine.low %v16796_v21, %v16795_v59  ;;  %v16798_v20 = vld [vmem:[#allocation157_spill] sm:$0xff]  ;;  %v16814_v59 = vrot.slane %v16713_v49, 7 }
 0x1b1   : > { %v4244_v36 = vcombine.low %v16798_v20, %v16797_v3  ;;  %v16815_v20 = vld [vmem:[#allocation171_spill] sm:$0xff] }
 0x1b2   : > { %v4208_v21 = vrot.slane %v16814_v59, 4 }
 0x1b3   : > { %8496 = vmatmul.mubr.msk.f32.gmra.mrb[36].mxu0 %vm704_vm2, %v3802_v56  ;;  %v16801_v56 = vld [vmem:[#allocation161_spill] sm:$0xff] }
 0x1b4   : > { %8498 = vmatprep.mubr.msk.f32.mxu0 %vm704_vm2, %v3803_v6  ;;  %v4246_v31 = vcombine.low %v16802_v30, %v16801_v56  ;;  %v4201_v6 = vsel %vm10627_vm6, %v4199_v47, %v4200_v16  ;;  %v16818_v47 = vld [vmem:[#allocation172_spill] sm:$0xff] }
 0x1b5   : > { %v4247_v42 = vcombine.low %v16804_v26, %v4201_v6  ;;  %v4254_v16 = vcombine.low %v16818_v47, %v16817_v12  ;;  %v9602_v56 = vld [vmem:[%s9777_s30 + $0xf8] sm:$0x7]  ;;  %v16823_v26 = vrot.slane %v16726_v60, 7  ;;  %v4218_v60 = vrot.slane %v9604_v1, 7  ;;  %v16841_v47 = vld [vmem:[#allocation178_spill] sm:$0xff]  ;;  %v16855_v1 = vld [vmem:[#allocation185_spill] sm:$0xff] }
 0x1b6   : > { %v4212_v30 = vrot.slane %v9602_v56, 7 }
 0x1b7   : > { %8499 = vmatmul.mubr.msk.f32.gmra.mrb[38].mxu0 %vm704_vm2, %v3804_v44  ;;  %v5519_v44 = vld [vmem:[%s15625_s2 + $0x88] sm:$0xff] }
 0x1b8   : > { %8505 = vmatprep.mubr.msk.f32.mxu0 %vm704_vm2, %v4238_v8  ;;  %v4248_v8 = vcombine.low %v16806_v5, %v16805_v39  ;;  %v8619_v23 = vpack.c.bf16 %v5519_v44, %v5518_v41  ;;  %v16824_v44 = vld [vmem:[#allocation63_spill] sm:$0xff]  ;;  %v16825_v39 = vld [vmem:[#allocation70_spill] sm:$0xff] }
 0x1b9   : > { %v16826_v5 = vld [vmem:[#allocation66_spill] sm:$0xff] }
 0x1ba   : > { %8620 = vmatprep.subr.bf16.mxu1 %v8619_v23 }
 0x1bb   : > { %8506 = vmatmul.mubr.msk.f32.vlgmr.msra.gmra.mrb[0].mxu0 %vm704_vm2, %v16790_v37  ;;  %v16809_v37 = vld [vmem:[#allocation165_spill] sm:$0xff]  ;;  %8622 = vmatpush3.bf16.msra.mxu1 %v8621_v53  ;;  %v16830_v53 = vld [vmem:[#allocation76_spill] sm:$0xff] }
 0x1bc   : > { %8508 = vmatprep.mubr.msk.f32.mxu0 %vm704_vm2, %v4240_v43  ;;  %v9600_v43 = vld [vmem:[%s9777_s30 + $0xb8] sm:$0x7]  ;;  %v4249_v22 = vcombine.low %v16809_v37, %v16808_v32 }
 0x1bd   : > { %v4206_v9 = vrot.slane %v9600_v43, 7  ;;  %v16829_v43 = vld [vmem:[#allocation173_spill] sm:$0xff] }
 0x1bf   : > { %8509 = vmatmul.mubr.msk.f32.gmra.mrb[2].mxu0 %vm704_vm2, %v4241_v54  ;;  %v4250_v54 = vcombine.low %v4204_v46, %v16810_v62  ;;  %v4207_v27 = vsel %vm10627_vm6, %v4205_v2, %v4206_v9  ;;  %v4217_v46 = vrot.slane %v16827_v0, 4  ;;  %v16828_v2 = vld [vmem:[#allocation72_spill] sm:$0xff]  ;;  %v16832_v62 = vld [vmem:[#allocation77_spill] sm:$0xff]  ;;  %v4233_v0 = vrot.slane %v16771_v33, 7 }
 0x1c0   : > { %8511 = vmatprep.mubr.msk.f32.mxu0 %vm704_vm2, %v4242_v61  ;;  %v16812_v61 = vld [vmem:[#allocation168_spill] sm:$0xff]  ;;  %v4252_v48 = vcombine.low %v16813_v50, %v4207_v27  ;;  %v4259_v9 = vcombine.low %v16829_v43, %v16828_v2  ;;  %v16835_v50 = vld [vmem:[#allocation174_spill] sm:$0xff] }
 0x1c1   : > { %v4251_v38 = vcombine.low %v16812_v61, %v16811_v58  ;;  %v4219_v37 = vsel %vm10627_vm6, %v4217_v46, %v4218_v60  ;;  %v16834_v58 = vrot.slane %v16741_v45, 7  ;;  %v4224_v45 = vrot.slane %v16750_v7, 7  ;;  %v16844_v7 = vld [vmem:[#allocation104_spill] sm:$0xff] }
 0x1c2   : > { %v16856_v60 = vld [vmem:[#allocation184_spill] sm:$0xff] }
 0x1c3   : > { %8512 = vmatmul.mubr.msk.f32.gmra.mrb[4].mxu0 %vm704_vm2, %v4243_v57  ;;  %v9601_v57 = vld [vmem:[%s9777_s30 + $0xd8] sm:$0x7]  ;;  %v4220_v61 = vrot.slane %v16834_v58, 4  ;;  %v4273_v2 = vcombine.low %v16856_v60, %v16855_v1  ;;  %v16861_v58 = vld [vmem:[#allocation190_spill] sm:$0xff]  ;;  %v5508_v60 = vld [vmem:[%s15625_s2 + $0x30] sm:$0xff] }
 0x1c4   : > { %8514 = vmatprep.mubr.msk.f32.mxu0 %vm704_vm2, %v4244_v36  ;;  %v4209_v3 = vrot.slane %v9601_v57, 7  ;;  %v16816_v36 = vld [vmem:[#allocation44_spill] sm:$0xff]  ;;  %v16838_v57 = vld [vmem:[#allocation175_spill] sm:$0xff] }
 0x1c5   : > { %v4253_v13 = vcombine.low %v16816_v36, %v16815_v20  ;;  %v16839_v36 = vrot.slane %v16748_v35, 7  ;;  %v4227_v35 = vrot.slane %v16756_v63, 7  ;;  %v16848_v63 = vld [vmem:[#allocation181_spill] sm:$0xff]  ;;  %v5525_v1 = vld [vmem:[%s15625_s2 + $0xb8] sm:$0xff] }
 0x1c6   : > { %v4210_v4 = vsel %vm10627_vm6, %v4208_v21, %v4209_v3  ;;  %v16837_v21 = vld [vmem:[#allocation176_spill] sm:$0xff] }
 0x1c7   : > { %8515 = vmatmul.mubr.msk.f32.gmra.mrb[6].mxu0 %vm704_vm2, %v4245_v11  ;;  %v16819_v11 = vrot.slane %v16720_v25, 7  ;;  %v9603_v25 = vld [vmem:[%s9777_s30 + $0x118] sm:$0x7]  ;;  %v4264_v3 = vcombine.low %v16838_v57, %v16837_v21 }
 0x1c8   : > { %8517 = vmatprep.mubr.msk.f32.mxu0 %vm704_vm2, %v4246_v31  ;;  %v16820_v31 = vld [vmem:[#allocation53_spill] sm:$0xff]  ;;  %v4215_v41 = vrot.slane %v9603_v25, 7 }
 0x1c9   : > { %v4211_v49 = vrot.slane %v16819_v11, 4  ;;  %v4255_v6 = vcombine.low %v4210_v4, %v16820_v31  ;;  %v16845_v31 = vld [vmem:[#allocation179_spill] sm:$0xff]  ;;  %v16850_v25 = vld [vmem:[#allocation121_spill] sm:$0xff] }
 0x1cb   : > { %8518 = vmatmul.mubr.msk.f32.gmra.mrb[8].mxu0 %vm704_vm2, %v4247_v42  ;;  %v4213_v40 = vsel %vm10627_vm6, %v4211_v49, %v4212_v30  ;;  %v4214_v42 = vrot.slane %v16823_v26, 4  ;;  %v16843_v49 = vrot.slane %v16754_v55, 7  ;;  %v4230_v55 = vrot.slane %v16762_v19, 7  ;;  %v16849_v26 = vld [vmem:[#allocation180_spill] sm:$0xff]  ;;  %v16853_v19 = vld [vmem:[#allocation183_spill] sm:$0xff] }
 0x1cc   : > { %8520 = vmatprep.mubr.msk.f32.mxu0 %vm704_vm2, %v4248_v8  ;;  %v4257_v28 = vcombine.low %v16824_v44, %v4213_v40  ;;  %v4258_v8 = vcombine.low %v16826_v5, %v16825_v39  ;;  %v16852_v39 = vld [vmem:[#allocation123_spill] sm:$0xff] }
 0x1cd   : > { %v4216_v23 = vsel %vm10627_vm6, %v4214_v42, %v4215_v41  ;;  %v4226_v56 = vrot.slane %v16843_v49, 4  ;;  %v4269_v42 = vcombine.low %v16849_v26, %v16848_v63 }
 0x1ce   : > { %v4260_v32 = vcombine.low %v4216_v23, %v16830_v53  ;;  %v16858_v53 = vld [vmem:[#allocation186_spill] sm:$0xff] }
 0x1cf   : > { %8521 = vmatmul.mubr.msk.f32.gmra.mrb[10].mxu0 %vm704_vm2, %v4249_v22  ;;  %v16831_v22 = vld [vmem:[#allocation84_spill] sm:$0xff]  ;;  %v4228_v15 = vsel %vm10627_vm6, %v4226_v56, %v4227_v35  ;;  %v5520_v35 = vld [vmem:[%s15625_s2 + $0x90] sm:$0xff] }
 0x1d0   : > { %8523 = vmatprep.mubr.msk.f32.mxu0 %vm704_vm2, %v4250_v54  ;;  %v4261_v18 = vcombine.low %v16832_v62, %v16831_v22  ;;  %v16833_v54 = vld [vmem:[#allocation86_spill] sm:$0xff]  ;;  %v4270_v41 = vcombine.low %v4228_v15, %v16850_v25  ;;  %v4236_v22 = vrot.slane %v16777_v24, 7  ;;  %v16863_v24 = vld [vmem:[#allocation191_spill] sm:$0xff] }
 0x1d1   : > { %v4262_v27 = vcombine.low %v16833_v54, %v4219_v37  ;;  %v16859_v37 = vrot.slane %v16548_v52, 7  ;;  %v5523_v25 = vld [vmem:[%s15625_s2 + $0xa8] sm:$0xff] }
 0x1d3   : > { %8524 = vmatmul.mubr.msk.f32.gmra.mrb[12].mxu0 %vm704_vm2, %v4251_v38  ;;  %v4221_v38 = vrot.slane %v16743_v17, 7  ;;  %v16840_v17 = vld [vmem:[#allocation101_spill] sm:$0xff]  ;;  %v4235_v33 = vrot.slane %v16859_v37, 4 }
 0x1d4   : > { %8526 = vmatprep.mubr.msk.f32.mxu0 %vm704_vm2, %v4252_v48  ;;  %v16836_v48 = vld [vmem:[#allocation92_spill] sm:$0xff]  ;;  %v5526_v37 = vld [vmem:[%s15625_s2 + $0xc0] sm:$0xff] }
 0x1d5   : > { %v4263_v59 = vcombine.low %v16836_v48, %v16835_v50  ;;  %v4222_v20 = vsel %vm10627_vm6, %v4220_v61, %v4221_v38  ;;  %v16862_v61 = vld [vmem:[#allocation189_spill] sm:$0xff]  ;;  %v4237_v50 = vsel %vm10627_vm6, %v4235_v33, %v4236_v22  ;;  %v5527_v33 = vld [vmem:[%s15625_s2 + $0xc8] sm:$0xff] }
 0x1d6   : > { %v4265_v12 = vcombine.low %v4222_v20, %v16840_v17  ;;  %v4276_v38 = vcombine.low %v16862_v61, %v16861_v58  ;;  %v4277_v48 = vcombine.low %v16863_v24, %v4237_v50  ;;  %v5511_v58 = vld [vmem:[%s15625_s2 + $0x48] sm:$0xff]  ;;  %v5528_v24 = vld [vmem:[%s15625_s2 + $0xd0] sm:$0xff] }
 0x1d7   : > { %8527 = vmatmul.mubr.msk.f32.gmra.mrb[14].mxu0 %vm704_vm2, %v4253_v13  ;;  %v4223_v13 = vrot.slane %v16839_v36, 4 }
 0x1d8   : > { %8529 = vmatprep.mubr.msk.f32.mxu0 %vm704_vm2, %v4254_v16  ;;  %v16842_v16 = vld [vmem:[#allocation177_spill] sm:$0xff] }
 0x1d9   : > { %v4266_v4 = vcombine.low %v16842_v16, %v16841_v47  ;;  %v4225_v11 = vsel %vm10627_vm6, %v4223_v13, %v4224_v45 }
 0x1da   : > { %v4267_v30 = vcombine.low %v16844_v7, %v4225_v11  ;;  %v5521_v7 = vld [vmem:[%s15625_s2 + $0x98] sm:$0xff] }
 0x1db   : > { %8530 = vmatmul.mubr.msk.f32.gmra.mrb[16].mxu0 %vm704_vm2, %v4255_v6  ;;  %v16846_v6 = vld [vmem:[#allocation107_spill] sm:$0xff] }
 0x1dc   : > { %8532 = vmatprep.mubr.msk.f32.mxu0 %vm704_vm2, %v4256_v34  ;;  %v4268_v51 = vcombine.low %v16846_v6, %v16845_v31  ;;  %v16847_v34 = vrot.slane %v16760_v14, 7  ;;  %v8623_v6 = vpack.c.bf16 %v5521_v7, %v5520_v35  ;;  %v5512_v7 = vld [vmem:[%s15625_s2 + $0x50] sm:$0xff] }
 0x1de   : > { %v4229_v40 = vrot.slane %v16847_v34, 4  ;;  %8624 = vmatprep.subr.bf16.mxu1 %v8623_v6 }
 0x1df   : > { %8533 = vmatmul.mubr.msk.f32.gmra.mrb[18].mxu0 %vm704_vm2, %v4257_v28  ;;  %v16851_v28 = vld [vmem:[#allocation182_spill] sm:$0xff] }
 0x1e0   : > { %8535 = vmatprep.mubr.msk.f32.mxu0 %vm704_vm2, %v4258_v8  ;;  %v4231_v44 = vsel %vm10627_vm6, %v4229_v40, %v4230_v55  ;;  %v4271_v14 = vcombine.low %v16852_v39, %v16851_v28  ;;  %v16854_v8 = vrot.slane %v16769_v29, 7  ;;  %v5506_v39 = vld [vmem:[%s15625_s2 + $0x20] sm:$0xff] }
 0x1e1   : > { %v4272_v5 = vcombine.low %v16853_v19, %v4231_v44 }
 0x1e2   : > { %v4232_v23 = vrot.slane %v16854_v8, 4 }
 0x1e3   : > { %8536 = vmatmul.mubr.msk.f32.gmra.mrb[20].mxu0 %vm704_vm2, %v4259_v9  ;;  %v16857_v9 = vld [vmem:[#allocation187_spill] sm:$0xff] }
 0x1e4   : > { %8538 = vmatprep.mubr.msk.f32.mxu0 %vm704_vm2, %v4260_v32  ;;  %v4274_v32 = vcombine.low %v16858_v53, %v16857_v9  ;;  %v4234_v29 = vsel %vm10627_vm6, %v4232_v23, %v4233_v0  ;;  %v5524_v0 = vld [vmem:[%s15625_s2 + $0xb0] sm:$0xff]  ;;  %v5509_v53 = vld [vmem:[%s15625_s2 + $0x38] sm:$0xff] }
 0x1e5   : > { %v8631_v9 = vpack.c.bf16 %v5525_v1, %v5524_v0  ;;  %v5532_v0 = vld [vmem:[%s15625_s2 + $0xf0] sm:$0xff]  ;;  %v5533_v1 = vld [vmem:[%s15625_s2 + $0xf8] sm:$0xff] }
 0x1e7   : > { %8539 = vmatmul.mubr.msk.f32.gmra.mrb[22].mxu0 %vm704_vm2, %v4261_v18  ;;  %v16860_v18 = vld [vmem:[#allocation188_spill] sm:$0xff] }
 0x1e8   : > { %8541 = vmatprep.mubr.msk.f32.mxu0 %vm704_vm2, %v4262_v27  ;;  %v4275_v54 = vcombine.low %v4234_v29, %v16860_v18  ;;  %v8635_v18 = vpack.c.bf16 %v5527_v33, %v5526_v37  ;;  %v5550_v37 = vld [vmem:[%s15625_s2 + $0x180] sm:$0xff]  ;;  %v5551_v33 = vld [vmem:[%s15625_s2 + $0x188] sm:$0xff] }
 0x1eb   : > { %8542 = vmatmul.mubr.msk.f32.gmra.mrb[24].mxu0 %vm704_vm2, %v4263_v59 }
 0x1ec   : > { %8544 = vmatprep.mubr.msk.f32.mxu0 %vm704_vm2, %v4264_v3 }
 0x1ef   : > { %8545 = vmatmul.mubr.msk.f32.gmra.mrb[26].mxu0 %vm704_vm2, %v4265_v12 }
 0x1f0   : > { %8547 = vmatprep.mubr.msk.f32.mxu0 %vm704_vm2, %v4266_v4 }
 0x1f3   : > { %8548 = vmatmul.mubr.msk.f32.gmra.mrb[28].mxu0 %vm704_vm2, %v4267_v30  ;;  %v5504_v30 = vld [vmem:[%s15625_s2 + $0x10] sm:$0xff] }
 0x1f4   : > { %8550 = vmatprep.mubr.msk.f32.mxu0 %vm704_vm2, %v4268_v51  ;;  %v5505_v51 = vld [vmem:[%s15625_s2 + $0x18] sm:$0xff] }
 0x1f5   : > { %v8625_v34 = vpack.c.bf16 %v5505_v51, %v5504_v30  ;;  %v5513_v30 = vld [vmem:[%s15625_s2 + $0x58] sm:$0xff] }
 0x1f6   : > { %v8641_v6 = vpack.c.bf16 %v5513_v30, %v5512_v7 }
 0x1f7   : > { %8551 = vmatmul.mubr.msk.f32.gmra.mrb[30].mxu0 %vm704_vm2, %v4269_v42  ;;  %8626 = vmatpush3.bf16.msra.mxu1 %v8625_v34  ;;  %v5522_v42 = vld [vmem:[%s15625_s2 + $0xa0] sm:$0xff] }
 0x1f8   : > { %8553 = vmatprep.mubr.msk.f32.mxu0 %vm704_vm2, %v4270_v41  ;;  %v8627_v41 = vpack.c.bf16 %v5523_v25, %v5522_v42  ;;  %v5530_v42 = vld [vmem:[%s15625_s2 + $0xe0] sm:$0xff]  ;;  %v5531_v25 = vld [vmem:[%s15625_s2 + $0xe8] sm:$0xff] }
 0x1fa   : > { %v12964_v46 = vpop.f32.mrb[0].mxu1  ;;  %8628 = vmatprep.subr.bf16.mxu1 %v8627_v41  ;;  %v8643_v41 = vpack.c.bf16 %v5531_v25, %v5530_v42 }
 0x1fb   : > { %8554 = vmatmul.mubr.msk.f32.gmra.mrb[32].mxu0 %vm704_vm2, %v4271_v14  ;;  %v12969_v43 = vpop.f32.mrb[1].mxu1  ;;  %v5507_v14 = vld [vmem:[%s15625_s2 + $0x28] sm:$0xff] }
 0x1fc   : > { %8556 = vmatprep.mubr.msk.f32.mxu0 %vm704_vm2, %v4272_v5  ;;  %v8629_v19 = vpack.c.bf16 %v5507_v14, %v5506_v39  ;;  %v5514_v39 = vld [vmem:[%s15625_s2 + $0x60] sm:$0xff]  ;;  %v5515_v14 = vld [vmem:[%s15625_s2 + $0x68] sm:$0xff] }
 0x1fe   : > { %v12979_v62 = vpop.f32.mrb[2].mxu1  ;;  %8630 = vmatpush3.bf16.msra.mxu1 %v8629_v19  ;;  %v8645_v19 = vpack.c.bf16 %v5515_v14, %v5514_v39 }
 0x1ff   : > { %8557 = vmatmul.mubr.msk.f32.gmra.mrb[34].mxu0 %vm704_vm2, %v4273_v2  ;;  %v12983_v27 = vpop.f32.mrb[3].mxu1  ;;  %8632 = vmatprep.subr.bf16.mxu1 %v8631_v9  ;;  %v5516_v9 = vld [vmem:[%s15625_s2 + $0x70] sm:$0xff] }
 0x200   : > { %8559 = vmatprep.mubr.msk.f32.mxu0 %vm704_vm2, %v4274_v32  ;;  %v8633_v32 = vpack.c.bf16 %v5509_v53, %v5508_v60  ;;  %v8647_v60 = vpack.c.bf16 %v5533_v1, %v5532_v0  ;;  %v5517_v53 = vld [vmem:[%s15625_s2 + $0x78] sm:$0xff] }
 0x202   : > { %v12990_v52 = vpop.f32.mrb[4].mxu1  ;;  %8634 = vmatpush3.bf16.msra.mxu1 %v8633_v32  ;;  %v8649_v32 = vpack.c.bf16 %v5517_v53, %v5516_v9 }
 0x203   : > { %8560 = vmatmul.mubr.msk.f32.gmra.mrb[36].mxu0 %vm704_vm2, %v4275_v54  ;;  %v12994_v59 = vpop.f32.mrb[5].mxu1  ;;  %v5510_v54 = vld [vmem:[%s15625_s2 + $0x40] sm:$0xff]  ;;  %8636 = vmatprep.subr.bf16.mxu1 %v8635_v18  ;;  %v8651_v18 = vpack.c.bf16 %v5551_v33, %v5550_v37 }
 0x204   : > { %8562 = vmatprep.mubr.msk.f32.mxu0 %vm704_vm2, %v4276_v38  ;;  %v8637_v61 = vpack.c.bf16 %v5511_v58, %v5510_v54  ;;  %v13175_v33 = vld [vmem:[%s15625_s2 + $0x100] sm:$0xff] }
 0x206   : > { %v12997_v21 = vpop.f32.mrb[6].mxu1  ;;  %8638 = vmatpush3.bf16.msra.mxu1 %v8637_v61 }
 0x207   : > { %8563 = vmatmul.mubr.msk.f32.gmra.mrb[38].mxu0 %vm704_vm2, %v4277_v48  ;;  %v13000_v57 = vpop.f32.mrb[7].mxu1  ;;  %v5529_v48 = vld [vmem:[%s15625_s2 + $0xd8] sm:$0xff] }
 0x208   : > { %v8639_v35 = vpack.c.bf16 %v5529_v48, %v5528_v24 }
 0x20a   : > { %v13002_v3 = vpop.f32.mrb[8].mxu1  ;;  %8640 = vmatprep.subr.bf16.mxu1 %v8639_v35 }
 0x20b   : > { %v13004_v10 = vpop.f32.mrb[9].mxu1  ;;  %8642 = vmatpush3.bf16.msra.mxu1 %v8641_v6 }
 0x20c   : > { %8644 = vmatprep.subr.bf16.mxu1 %v8643_v41 }
 0x20e   : > { %v13006_v20 = vpop.f32.mrb[10].mxu1 }
 0x20f   : > { %v13008_v36 = vpop.f32.mrb[11].mxu1  ;;  %8646 = vmatpush3.bf16.msra.mxu1 %v8645_v19 }
 0x210   : > { %8648 = vmatprep.subr.bf16.mxu1 %v8647_v60 }
 0x212   : > { %v13010_v13 = vpop.f32.mrb[12].mxu1 }
 0x213   : > { %v13012_v45 = vpop.f32.mrb[13].mxu1  ;;  %8650 = vmatpush3.bf16.msra.mxu1 %v8649_v32 }
 0x214   : > { %8652 = vmatprep.subr.bf16.mxu1 %v8651_v18 }
 0x216   : > { %v13014_v17 = vpop.f32.mrb[14].mxu1 }
 0x217   : > { %v13016_v12 = vpop.f32.mrb[15].mxu1 }
 0x21a   : > { %v13018_v47 = vpop.f32.mrb[16].mxu1 }
 0x21b   : > { %v13020_v16 = vpop.f32.mrb[17].mxu1 }
 0x21e   : > { %v13022_v4 = vpop.f32.mrb[18].mxu1 }
 0x21f   : > { %v13024_v11 = vpop.f32.mrb[19].mxu1 }
 0x222   : > { %v13026_v49 = vpop.f32.mrb[20].mxu1 }
 0x223   : > { %v13028_v56 = vpop.f32.mrb[21].mxu1 }
 0x226   : > { %v13039_v31 = vpop.f32.mrb[22].mxu1 }
 0x227   : > { %v13044_v15 = vpop.f32.mrb[23].mxu1 }
 0x22a   : > { %v13046_v40 = vpop.f32.mrb[24].mxu1 }
 0x22b   : > { %v13048_v55 = vpop.f32.mrb[25].mxu1 }
 0x22e   : > { %v13050_v63 = vpop.f32.mrb[26].mxu1 }
 0x22f   : > { %v13052_v26 = vpop.f32.mrb[27].mxu1 }
 0x232   : > { %v13060_v44 = vpop.f32.mrb[28].mxu1 }
 0x233   : > { %v13062_v28 = vpop.f32.mrb[29].mxu1 }
 0x236   : > { %v13070_v5 = vpop.f32.mrb[30].mxu1 }
 0x237   : > { %v13072_v8 = vpop.f32.mrb[31].mxu1 }
 0x23a   : > { %v13074_v23 = vpop.f32.mrb[32].mxu1 }
 0x23b   : > { %v13085_v2 = vpop.f32.mrb[33].mxu1 }
 0x23e   : > { %v13090_v29 = vpop.f32.mrb[34].mxu1 }
 0x23f   : > { %v13098_v22 = vpop.f32.mrb[35].mxu1 }
 0x242   : > { %v13106_v38 = vpop.f32.mrb[36].mxu1 }
 0x243   : > { %v13108_v50 = vpop.f32.mrb[37].mxu1 }
 0x246   : > { %v13122_v51 = vpop.f32.mrb[38].mxu1 }
 0x247   : > { %v13124_v34 = vpop.f32.mrb[39].mxu1 }
 0x28e   : > { %v8507_v54 = vpop.f32.mrb[0].mxu0 }
 0x28f   : > { %v8955_v58 = vadd.f32 %v8507_v54, %v12964_v46  ;;  %v4424_v61 = vpop.f32.mrb[1].mxu0  ;;  %v13195_v54 = vld [vmem:[%s15625_s2 + $0x110] sm:$0xff] }
 0x290   : > { %v8956_v24 = vadd.f32 %v4424_v61, %v12969_v43 }
 0x291   : > { %v7268_v42 = vmul.f32 -1.442695, %v8955_v58  ;;  %v13200_v58 = vld [vmem:[%s15625_s2 + $0x118] sm:$0xff] }
 0x292   : > { %v8510_v48 = vpop.f32.mrb[2].mxu0  ;;  %v7267_v19 = vmul.f32 -1.442695, %v8956_v24 }
 0x293   : > { %v8957_v35 = vadd.f32 %v8510_v48, %v12979_v62  ;;  %v4434_v7 = vpop.f32.mrb[3].mxu0  ;;  %9352 = vpow2.f32 %v7268_v42  ;;  %v13205_v48 = vld [vmem:[%s15625_s2 + $0x1a0] sm:$0xff]  ;;  %v13223_v42 = vld [vmem:[%s15625_s2 + $0x128] sm:$0xff] }
 0x294   : > { %v8958_v30 = vadd.f32 %v4434_v7, %v12983_v27  ;;  %9354 = vpow2.f32 %v7267_v19  ;;  %v13215_v7 = vld [vmem:[%s15625_s2 + $0x120] sm:$0xff]  ;;  %v13244_v19 = vld [vmem:[%s15625_s2 + $0x138] sm:$0xff] }
 0x295   : > { %v7270_v37 = vmul.f32 -1.442695, %v8957_v35  ;;  %v13210_v35 = vld [vmem:[%s15625_s2 + $0x1a8] sm:$0xff] }
 0x296   : > { %v8513_v6 = vpop.f32.mrb[4].mxu0  ;;  %v7269_v1 = vmul.f32 -1.442695, %v8958_v30 }
 0x297   : > { %v8959_v25 = vadd.f32 %v8513_v6, %v12990_v52  ;;  %v4444_v41 = vpop.f32.mrb[5].mxu0 }
 0x298   : > { %v8960_v39 = vadd.f32 %v4444_v41, %v12994_v59  ;;  %9356 = vpow2.f32 %v7269_v1  ;;  %v13233_v41 = vld [vmem:[%s15625_s2 + $0x1b8] sm:$0xff]  ;;  %v13305_v1 = vld [vmem:[%s15625_s2 + $0x1e0] sm:$0xff] }
 0x299   : > { %v7272_v52 = vmul.f32 -1.442695, %v8959_v25  ;;  %v13228_v25 = vld [vmem:[%s15625_s2 + $0x1b0] sm:$0xff]  ;;  %16872 = vst [vmem:[#allocation18_spill] sm:$0xff] %v13305_v1  ;;  %v13402_v1 = vld [vmem:[%s15625_s2 + $0x218] sm:$0xff] }
 0x29a   : > { %v8516_v14 = vpop.f32.mrb[6].mxu0  ;;  %v7271_v18 = vmul.f32 -1.442695, %v8960_v39  ;;  %16886 = vst [vmem:[#allocation210_spill] sm:$0xff] %v13402_v1  ;;  %v13507_v1 = vld [vmem:[%s15625_s2 + $0x258] sm:$0xff] }
 0x29b   : > { %v8961_v46 = vadd.f32 %v8516_v14, %v12997_v21  ;;  %v4454_v0 = vpop.f32.mrb[7].mxu0  ;;  %9358 = vpow2.f32 %v7272_v52  ;;  %v13239_v14 = vld [vmem:[%s15625_s2 + $0x130] sm:$0xff]  ;;  %v13268_v52 = vld [vmem:[%s15625_s2 + $0x148] sm:$0xff]  ;;  %16901 = vst [vmem:[#allocation64_spill] sm:$0xff] %v13507_v1 }
 0x29c   : > { %v8962_v43 = vadd.f32 %v4454_v0, %v13000_v57  ;;  %16864 = vst [vmem:[#allocation5_spill] sm:$0xff] %v13239_v14  ;;  %16868 = vst [vmem:[#allocation200_spill] sm:$0xff] %v13268_v52  ;;  %v13348_v14 = vld [vmem:[%s15625_s2 + $0x178] sm:$0xff]  ;;  %v13367_v52 = vld [vmem:[%s15625_s2 + $0x200] sm:$0xff] }
 0x29d   : > { %v7274_v53 = vmul.f32 -1.442695, %v8961_v46  ;;  %v13249_v46 = vld [vmem:[%s15625_s2 + $0x1c0] sm:$0xff]  ;;  %16879 = vst [vmem:[#allocation195_spill] sm:$0xff] %v13348_v14  ;;  %16882 = vst [vmem:[#allocation208_spill] sm:$0xff] %v13367_v52  ;;  %v13447_v14 = vld [vmem:[%s15625_s2 + $0x230] sm:$0xff] }
 0x29e   : > { %v8519_v62 = vpop.f32.mrb[8].mxu0  ;;  %16865 = vst [vmem:[#allocation113_spill] sm:$0xff] %v13249_v46  ;;  %16893 = vst [vmem:[#allocation46_spill] sm:$0xff] %v13447_v14  ;;  %v13462_v52 = vld [vmem:[%s15625_s2 + $0x2c0] sm:$0xff]  ;;  %v13540_v14 = vld [vmem:[%s15625_s2 + $0x2f0] sm:$0xff] }
 0x29f   : > { %v8963_v27 = vadd.f32 %v8519_v62, %v13002_v3  ;;  %v4464_v60 = vpop.f32.mrb[9].mxu0  ;;  %v13180_v3 = vld [vmem:[%s15625_s2 + $0x108] sm:$0xff]  ;;  %9360 = vpow2.f32 %v7274_v53  ;;  %16895 = vst [vmem:[#allocation49_spill] sm:$0xff] %v13462_v52  ;;  %16906 = vst [vmem:[#allocation96_spill] sm:$0xff] %v13540_v14 }
 0x2a0   : > { %v13166_v9 = vadd.f32 %v4464_v60, %v13004_v10  ;;  %v13185_v10 = vld [vmem:[%s15625_s2 + $0x190] sm:$0xff]  ;;  %9362 = vpow2.f32 %v7270_v37  ;;  %v13258_v62 = vld [vmem:[%s15625_s2 + $0x1c8] sm:$0xff]  ;;  %v13263_v60 = vld [vmem:[%s15625_s2 + $0x140] sm:$0xff] }
 0x2a1   : > { %9364 = vpow2.f32 %v7271_v18  ;;  %16866 = vst [vmem:[#allocation6_spill] sm:$0xff] %v13258_v62  ;;  %16867 = vst [vmem:[#allocation192_spill] sm:$0xff] %v13263_v60  ;;  %v7276_v18 = vmul.f32 -1.442695, %v8963_v27  ;;  %v13310_v37 = vld [vmem:[%s15625_s2 + $0x1e8] sm:$0xff]  ;;  %v13343_v62 = vld [vmem:[%s15625_s2 + $0x170] sm:$0xff] }
 0x2a2   : > { %v8522_v59 = vpop.f32.mrb[10].mxu0  ;;  %16873 = vst [vmem:[#allocation115_spill] sm:$0xff] %v13310_v37  ;;  %16878 = vst [vmem:[#allocation204_spill] sm:$0xff] %v13343_v62  ;;  %v13362_v60 = vld [vmem:[%s15625_s2 + $0x288] sm:$0xff]  ;;  %v13407_v37 = vld [vmem:[%s15625_s2 + $0x2a0] sm:$0xff] }
 0x2a3   : > { %v13169_v32 = vadd.f32 %v8522_v59, %v13006_v20  ;;  %v4474_v21 = vpop.f32.mrb[11].mxu0  ;;  %v9353_v20 = vpop.eup %9352  ;;  %v7273_v59 = vmul.f32 -1.442695, %v8962_v43  ;;  %v13324_v43 = vld [vmem:[%s15625_s2 + $0x168] sm:$0xff]  ;;  %16881 = vst [vmem:[#allocation207_spill] sm:$0xff] %v13362_v60  ;;  %16887 = vst [vmem:[#allocation211_spill] sm:$0xff] %v13407_v37 }
 0x2a4   : > { %v8966_v57 = vadd.f32 %v4474_v21, %v13008_v36  ;;  %v13190_v36 = vld [vmem:[%s15625_s2 + $0x198] sm:$0xff]  ;;  %v4784_v39 = vadd.f32 1.0, %v9353_v20  ;;  %v9355_v0 = vpop.eup %9354  ;;  %16875 = vst [vmem:[#allocation193_spill] sm:$0xff] %v13324_v43  ;;  %v13426_v43 = vld [vmem:[%s15625_s2 + $0x228] sm:$0xff] }
 0x2a5   : > { %v9357_v20 = vpop.eup %9356  ;;  %v4783_v27 = vadd.f32 1.0, %v9355_v0  ;;  %16890 = vst [vmem:[#allocation40_spill] sm:$0xff] %v13426_v43  ;;  %v13442_v62 = vld [vmem:[%s15625_s2 + $0x2b8] sm:$0xff]  ;;  %v13481_v60 = vld [vmem:[%s15625_s2 + $0x248] sm:$0xff] }
 0x2a6   : > { %v7277_v61 = vmul.f32 -1.442695, %v8966_v57  ;;  %v8525_v24 = vpop.f32.mrb[12].mxu0  ;;  %v13275_v57 = vld [vmem:[%s15625_s2 + $0x1d0] sm:$0xff]  ;;  %16892 = vst [vmem:[#allocation215_spill] sm:$0xff] %v13442_v62 }
 0x2a7   : > { %v13218_v30 = vadd.f32 %v8525_v24, %v13010_v13  ;;  %v4484_v6 = vpop.f32.mrb[13].mxu0  ;;  %16869 = vst [vmem:[#allocation201_spill] sm:$0xff] %v13275_v57 }
 0x2a8   : > { %v8968_v13 = vadd.f32 %v4484_v6, %v13012_v45  ;;  %9366 = vpow2.f32 %v7277_v61  ;;  %v13285_v61 = vld [vmem:[%s15625_s2 + $0x1d8] sm:$0xff]  ;;  %v13329_v45 = vld [vmem:[%s15625_s2 + $0x1f0] sm:$0xff] }
 0x2a9   : > { %16870 = vst [vmem:[#allocation9_spill] sm:$0xff] %v13285_v61  ;;  %9368 = vrcp.f32 %v4784_v39  ;;  %v13315_v39 = vld [vmem:[%s15625_s2 + $0x160] sm:$0xff]  ;;  %16876 = vst [vmem:[#allocation194_spill] sm:$0xff] %v13329_v45  ;;  %v13383_v61 = vld [vmem:[%s15625_s2 + $0x290] sm:$0xff] }
 0x2aa   : > { %v7279_v53 = vmul.f32 -1.442695, %v8968_v13  ;;  %v8528_v21 = vpop.f32.mrb[14].mxu0  ;;  %v13290_v13 = vld [vmem:[%s15625_s2 + $0x150] sm:$0xff]  ;;  %16874 = vst [vmem:[#allocation19_spill] sm:$0xff] %v13315_v39  ;;  %16884 = vst [vmem:[#allocation202_spill] sm:$0xff] %v13383_v61 }
 0x2ab   : > { %v8969_v24 = vadd.f32 %v8528_v21, %v13014_v17  ;;  %v4494_v6 = vpop.f32.mrb[15].mxu0  ;;  %16871 = vst [vmem:[#allocation10_spill] sm:$0xff] %v13290_v13  ;;  %v13295_v17 = vld [vmem:[%s15625_s2 + $0x158] sm:$0xff]  ;;  %v13486_v61 = vld [vmem:[%s15625_s2 + $0x2d0] sm:$0xff] }
 0x2ac   : > { %v13298_v21 = vadd.f32 %v4494_v6, %v13016_v12  ;;  %9370 = vpow2.f32 %v7279_v53  ;;  %v13334_v53 = vld [vmem:[%s15625_s2 + $0x1f8] sm:$0xff]  ;;  %v7275_v6 = vmul.f32 -1.442695, %v13166_v9  ;;  %v13372_v9 = vld [vmem:[%s15625_s2 + $0x208] sm:$0xff]  ;;  %16897 = vst [vmem:[#allocation198_spill] sm:$0xff] %v13486_v61 }
 0x2ad   : > { %v7282_v12 = vmul.f32 -1.442695, %v8969_v24  ;;  %16877 = vst [vmem:[#allocation21_spill] sm:$0xff] %v13334_v53  ;;  %v4785_v24 = vadd.f32 1.0, %v9357_v20  ;;  %9372 = vpow2.f32 %v7273_v59  ;;  %v13353_v59 = vld [vmem:[%s15625_s2 + $0x280] sm:$0xff]  ;;  %v9359_v20 = vpop.eup %9358  ;;  %16883 = vst [vmem:[#allocation31_spill] sm:$0xff] %v13372_v9 }
 0x2ae   : > { %v8531_v0 = vpop.f32.mrb[16].mxu0  ;;  %16880 = vst [vmem:[#allocation26_spill] sm:$0xff] %v13353_v59  ;;  %9374 = vpow2.f32 %v7276_v18  ;;  %v13388_v13 = vld [vmem:[%s15625_s2 + $0x298] sm:$0xff]  ;;  %v13421_v53 = vld [vmem:[%s15625_s2 + $0x220] sm:$0xff]  ;;  %v13467_v9 = vld [vmem:[%s15625_s2 + $0x2c8] sm:$0xff] }
 0x2af   : > { %v8971_v46 = vadd.f32 %v8531_v0, %v13018_v47  ;;  %v4504_v57 = vpop.f32.mrb[17].mxu0  ;;  %9376 = vrcp.f32 %v4783_v27  ;;  %v7278_v47 = vmul.f32 -1.442695, %v13169_v32  ;;  %v13393_v32 = vld [vmem:[%s15625_s2 + $0x210] sm:$0xff]  ;;  %v4788_v27 = vadd.f32 1.0, %v9359_v20  ;;  %16889 = vst [vmem:[#allocation212_spill] sm:$0xff] %v13421_v53 }
 0x2b0   : > { %v13376_v18 = vadd.f32 %v4504_v57, %v13020_v16  ;;  %16885 = vst [vmem:[#allocation33_spill] sm:$0xff] %v13393_v32  ;;  %v9361_v16 = vpop.eup %9360  ;;  %9378 = vpow2.f32 %v7282_v12  ;;  %v7280_v0 = vmul.f32 -1.442695, %v13218_v30  ;;  %v13452_v30 = vld [vmem:[%s15625_s2 + $0x238] sm:$0xff]  ;;  %16896 = vst [vmem:[#allocation52_spill] sm:$0xff] %v13467_v9  ;;  %v13502_v32 = vld [vmem:[%s15625_s2 + $0x250] sm:$0xff] }
 0x2b1   : > { %v7284_v57 = vmul.f32 -1.442695, %v8971_v46  ;;  %v13412_v46 = vld [vmem:[%s15625_s2 + $0x2a8] sm:$0xff]  ;;  %v9363_v12 = vpop.eup %9362  ;;  %9380 = vrcp.f32 %v4785_v24  ;;  %v13431_v24 = vld [vmem:[%s15625_s2 + $0x2b0] sm:$0xff]  ;;  %16894 = vst [vmem:[#allocation205_spill] sm:$0xff] %v13452_v30  ;;  %16900 = vst [vmem:[#allocation89_spill] sm:$0xff] %v13502_v32 }
 0x2b2   : > { %16888 = vst [vmem:[#allocation36_spill] sm:$0xff] %v13412_v46  ;;  %v8534_v39 = vpop.f32.mrb[18].mxu0  ;;  %16891 = vst [vmem:[#allocation214_spill] sm:$0xff] %v13431_v24  ;;  %v9365_v20 = vpop.eup %9364  ;;  %9382 = vpow2.f32 %v7275_v6  ;;  %v13527_v53 = vld [vmem:[%s15625_s2 + $0x260] sm:$0xff]  ;;  %v13545_v30 = vld [vmem:[%s15625_s2 + $0x2f8] sm:$0xff] }
 0x2b3   : > { %v13435_v45 = vadd.f32 %v8534_v39, %v13022_v4  ;;  %v4514_v59 = vpop.f32.mrb[19].mxu0  ;;  %v9367_v4 = vpop.eup %9366  ;;  %v4790_v39 = vadd.f32 1.0, %v9361_v16  ;;  %9384 = vpow2.f32 %v7278_v47  ;;  %v13472_v47 = vld [vmem:[%s15625_s2 + $0x240] sm:$0xff]  ;;  %v4787_v37 = vadd.f32 1.0, %v9365_v20  ;;  %16904 = vst [vmem:[#allocation221_spill] sm:$0xff] %v13527_v53  ;;  %16907 = vst [vmem:[#allocation74_spill] sm:$0xff] %v13545_v30 }
 0x2b4   : > { %v13455_v6 = vadd.f32 %v4514_v59, %v13024_v11  ;;  %v4793_v11 = vadd.f32 1.0, %v9367_v4  ;;  %9386 = vpow2.f32 %v7284_v57  ;;  %v13491_v57 = vld [vmem:[%s15625_s2 + $0x2d8] sm:$0xff]  ;;  %v13493_v4 = vpop.eup %9368  ;;  %v4786_v59 = vadd.f32 1.0, %v9363_v12 }
 0x2b5   : > { %16898 = vst [vmem:[#allocation218_spill] sm:$0xff] %v13491_v57  ;;  %16899 = vst [vmem:[#allocation58_spill] sm:$0xff] %v13493_v4  ;;  %9388 = vrcp.f32 %v4788_v27  ;;  %v13512_v27 = vld [vmem:[%s15625_s2 + $0x2e0] sm:$0xff]  ;;  %v13522_v4 = vld [vmem:[%s15625_s2 + $0x2e8] sm:$0xff] }
 0x2b6   : > { %v8537_v16 = vpop.f32.mrb[20].mxu0  ;;  %16902 = vst [vmem:[#allocation213_spill] sm:$0xff] %v13512_v27  ;;  %v9371_v12 = vpop.eup %9370  ;;  %9390 = vpow2.f32 %v7280_v0  ;;  %16903 = vst [vmem:[#allocation199_spill] sm:$0xff] %v13522_v4  ;;  %v13532_v0 = vld [vmem:[%s15625_s2 + $0x268] sm:$0xff]  ;;  %v13587_v27 = vld [vmem:[%s15625_s2 + $0x300] sm:$0xff] }
 0x2b7   : > { %v13515_v46 = vadd.f32 %v8537_v16, %v13026_v49  ;;  %v4524_v24 = vpop.f32.mrb[21].mxu0  ;;  %16905 = vst [vmem:[#allocation69_spill] sm:$0xff] %v13532_v0  ;;  %v9373_v49 = vpop.eup %9372  ;;  %9392 = vrcp.f32 %v4790_v39  ;;  %v4795_v20 = vadd.f32 1.0, %v9371_v12  ;;  %v13556_v12 = vld [vmem:[%s15625_s2 + $0x270] sm:$0xff]  ;;  %16912 = vst [vmem:[#allocation229_spill] sm:$0xff] %v13587_v27  ;;  %v13592_v4 = vld [vmem:[%s15625_s2 + $0x308] sm:$0xff] }
 0x2b8   : > { %v8976_v16 = vadd.f32 %v4524_v24, %v13028_v56  ;;  %v9375_v43 = vpop.eup %9374  ;;  %9394 = vrcp.f32 %v4793_v11  ;;  %16908 = vst [vmem:[#allocation225_spill] sm:$0xff] %v13556_v12  ;;  %v13567_v24 = vld [vmem:[%s15625_s2 + $0x278] sm:$0xff]  ;;  %v13572_v56 = vld [vmem:[%s15625_s2 + $0x380] sm:$0xff]  ;;  %v4789_v11 = vadd.f32 1.0, %v9373_v49  ;;  %16913 = vst [vmem:[#allocation230_spill] sm:$0xff] %v13592_v4 }
 0x2b9   : > { %v13558_v62 = vpop.eup %9376  ;;  %9396 = vrcp.f32 %v4786_v59  ;;  %16909 = vst [vmem:[#allocation79_spill] sm:$0xff] %v13567_v24  ;;  %16910 = vst [vmem:[#allocation82_spill] sm:$0xff] %v13572_v56  ;;  %v13577_v59 = vld [vmem:[%s15625_s2 + $0x388] sm:$0xff]  ;;  %v4792_v49 = vadd.f32 1.0, %v9375_v43 }
 0x2ba   : > { %v7287_v52 = vmul.f32 -1.442695, %v8976_v16  ;;  %v8540_v9 = vpop.f32.mrb[22].mxu0  ;;  %16911 = vst [vmem:[#allocation216_spill] sm:$0xff] %v13577_v59  ;;  %v9379_v16 = vpop.eup %9378  ;;  %9398 = vrcp.f32 %v4787_v37  ;;  %v4925_v0 = vrot.slane %v13558_v62, 1  ;;  %v4904_v43 = vsel %vm2119_vm4, %v13558_v62, 0.0 }
 0x2bb   : > { %v13580_v39 = vadd.f32 %v8540_v9, %v13039_v31  ;;  %v4534_v53 = vpop.f32.mrb[23].mxu0  ;;  %v13594_v37 = vpop.eup %9380  ;;  %9400 = vrcp.f32 %v4795_v20  ;;  %v4798_v31 = vadd.f32 1.0, %v9379_v16 }
 0x2bc   : > { %16914 = vst [vmem:[#allocation88_spill] sm:$0xff] %v13594_v37  ;;  %v8978_v9 = vadd.f32 %v4534_v53, %v13044_v15  ;;  %v9383_v32 = vpop.eup %9382  ;;  %9402 = vpow2.f32 %v7287_v52  ;;  %v7281_v53 = vmul.f32 -1.442695, %v13298_v21  ;;  %v4927_v56 = vrot.slane %v13594_v37, 4 }
 0x2bd   : > { %v9385_v1 = vpop.eup %9384  ;;  %9404 = vrcp.f32 %v4798_v31  ;;  %v4791_v15 = vadd.f32 1.0, %v9383_v32  ;;  %v4926_v21 = vsel %vm2119_vm4, %v4925_v0, 0.0 }
 0x2be   : > { %v7289_v61 = vmul.f32 -1.442695, %v8978_v9  ;;  %v8543_v57 = vpop.f32.mrb[24].mxu0  ;;  %v9387_v52 = vpop.eup %9386  ;;  %9406 = vrcp.f32 %v4789_v11 }
 0x2bf   : > { %v8979_v20 = vadd.f32 %v8543_v57, %v13046_v40  ;;  %v4544_v16 = vpop.f32.mrb[25].mxu0  ;;  %v13609_v31 = vpop.eup %9388  ;;  %9408 = vrcp.f32 %v4792_v49  ;;  %v4800_v9 = vadd.f32 1.0, %v9387_v52  ;;  %v4794_v40 = vadd.f32 1.0, %v9385_v1 }
 0x2c0   : > { %v13612_v14 = vadd.f32 %v4544_v16, %v13048_v55  ;;  %v9391_v59 = vpop.eup %9390  ;;  %9410 = vpow2.f32 %v7289_v61  ;;  %v7283_v16 = vmul.f32 -1.442695, %v13376_v18  ;;  %v4929_v0 = vrot.slane %v13609_v31, 7 }
 0x2c1   : > { %v7292_v11 = vmul.f32 -1.442695, %v8979_v20  ;;  %v13616_v27 = vpop.eup %9392  ;;  %9412 = vrcp.f32 %v4800_v9  ;;  %v4928_v9 = vsel %vm4906_vm10, %v4927_v56, %v4926_v21  ;;  %v4908_v18 = vrot.slane %v13609_v31, 6 }
 0x2c2   : > { %16915 = vst [vmem:[#allocation232_spill] sm:$0xff] %v13616_v27  ;;  %v8546_v57 = vpop.f32.mrb[26].mxu0  ;;  %v13620_v55 = vpop.eup %9394  ;;  %9414 = vpow2.f32 %v7281_v53  ;;  %v16918_v56 = vrot.slane %v13594_v37, 3  ;;  %v4930_v52 = vsel %vm4909_vm11, %v4929_v0, %v4928_v9 }
 0x2c3   : > { %v8981_v61 = vadd.f32 %v8546_v57, %v13050_v63  ;;  %v4554_v32 = vpop.f32.mrb[27].mxu0  ;;  %v13625_v20 = vpop.eup %9396  ;;  %9416 = vpow2.f32 %v7292_v11  ;;  %v4931_v63 = vrot.slane %v13616_v27, 2  ;;  %v4796_v11 = vadd.f32 1.0, %v9391_v59 }
 0x2c4   : > { %v13628_v1 = vadd.f32 %v4554_v32, %v13052_v26  ;;  %v13632_v30 = vpop.eup %9398  ;;  %9418 = vrcp.f32 %v4791_v15  ;;  %v4933_v26 = vrot.slane %v13620_v55, 5  ;;  %v4907_v21 = vsel %vm4906_vm10, %v16918_v56, %v4904_v43 }
 0x2c5   : > { %16916 = vst [vmem:[#allocation233_spill] sm:$0xff] %v13632_v30  ;;  %v7294_v53 = vmul.f32 -1.442695, %v8981_v61  ;;  %v13636_v57 = vpop.eup %9400  ;;  %9420 = vrcp.f32 %v4794_v40  ;;  %v16081_v30 = vrot.slane %v13616_v27, 1  ;;  %v7285_v59 = vmul.f32 -1.442695, %v13455_v6 }
 0x2c6   : > { %16917 = vst [vmem:[#allocation219_spill] sm:$0xff] %v13636_v57  ;;  %v8549_v49 = vpop.f32.mrb[28].mxu0  ;;  %v9403_v32 = vpop.eup %9402  ;;  %9422 = vpow2.f32 %v7283_v16  ;;  %v4914_v24 = vrot.slane %v13620_v55, 4  ;;  %v16083_v16 = vrot.slane %v13636_v57, 7 }
 0x2c7   : > { %v13643_v15 = vadd.f32 %v8549_v49, %v13060_v44  ;;  %v4564_v61 = vpop.f32.mrb[29].mxu0  ;;  %v13647_v40 = vpop.eup %9404  ;;  %v4803_v4 = vadd.f32 1.0, %v9403_v32  ;;  %9424 = vpow2.f32 %v7294_v53  ;;  %v4932_v44 = vsel %vm4912_vm12, %v4931_v63, %v4930_v52 }
 0x2c8   : > { %v8984_v12 = vadd.f32 %v4564_v61, %v13062_v28  ;;  %v13652_v43 = vpop.eup %9406  ;;  %v4910_v49 = vsel %vm4909_vm11, %v4908_v18, %v4907_v21  ;;  %9426 = vrcp.f32 %v4796_v11  ;;  %v4934_v6 = vsel %vm2120_vm5, %v4933_v26, %v4932_v44 }
 0x2c9   : > { %v13657_v0 = vpop.eup %9408  ;;  %v4936_v56 = vrot.slane %v13647_v40, 3  ;;  %v4919_v28 = vrot.slane %v13647_v40, 2  ;;  %v7286_v61 = vmul.f32 -1.442695, %v13435_v45  ;;  %9428 = vrcp.f32 %v4803_v4 }
 0x2ca   : > { %16919 = vst [vmem:[#allocation222_spill] sm:$0xff] %v13657_v0  ;;  %v8552_v9 = vpop.f32.mrb[30].mxu0  ;;  %v9411_v32 = vpop.eup %9410  ;;  %v4913_v63 = vsel %vm4912_vm12, %v16081_v30, %v4910_v49  ;;  %9430 = vpow2.f32 %v7285_v59  ;;  %v4935_v45 = vsel %vm4917_vm13, %v13636_v57, %v4934_v6  ;;  %v7288_v59 = vmul.f32 -1.442695, %v13515_v46 }
 0x2cb   : > { %v13664_v52 = vadd.f32 %v8552_v9, %v13070_v5  ;;  %v4574_v53 = vpop.f32.mrb[31].mxu0  ;;  %v13669_v18 = vpop.eup %9412  ;;  %v4805_v11 = vadd.f32 1.0, %v9411_v32  ;;  %v4915_v21 = vsel %vm2120_vm5, %v4914_v24, %v4913_v63  ;;  %v7290_v46 = vmul.f32 -1.442695, %v13580_v39 }
 0x2cc   : > { %16920 = vst [vmem:[#allocation94_spill] sm:$0xff] %v13669_v18  ;;  %v8986_v26 = vadd.f32 %v4574_v53, %v13072_v8  ;;  %v9415_v44 = vpop.eup %9414  ;;  %v4938_v5 = vrot.slane %v13669_v18, 6  ;;  %v4918_v4 = vsel %vm4917_vm13, %v16083_v16, %v4915_v21  ;;  %v16086_v49 = vrot.slane %v13669_v18, 5 }
 0x2cd   : > { %v9417_v9 = vpop.eup %9416  ;;  %9432 = vrcp.f32 %v4805_v11  ;;  %v4937_v8 = vsel %vm4920_vm14, %v4936_v56, %v4935_v45  ;;  %v4921_v24 = vsel %vm4920_vm14, %v4919_v28, %v4918_v4  ;;  %v4985_v4 = vrot.slane %v13558_v62, 5 }
 0x2ce   : > { %v8555_v32 = vpop.f32.mrb[32].mxu0  ;;  %v13683_v53 = vpop.eup %9418  ;;  %v4808_v6 = vadd.f32 1.0, %v9417_v9  ;;  %v7297_v63 = vmul.f32 -1.442695, %v8986_v26  ;;  %v4939_v0 = vsel %vm4923_vm15, %v4938_v5, %v4937_v8  ;;  %9434 = vpow2.f32 %v7286_v61 }
 0x2cf   : > { %v8987_v30 = vadd.f32 %v8555_v32, %v13074_v23  ;;  %v4584_v21 = vpop.f32.mrb[33].mxu0  ;;  %v13687_v16 = vpop.eup %9420  ;;  %5892 = vmatprep.mubr.f32.mxu1 %v4939_v0  ;;  %v4924_v56 = vsel %vm4923_vm15, %v16086_v49, %v4921_v24  ;;  %v7295_v26 = vmul.f32 -1.442695, %v8984_v12  ;;  %v16921_v23 = vrot.slane %v13558_v62, 3 }
 0x2d0   : > { %v8988_v11 = vadd.f32 %v4584_v21, %v13085_v2  ;;  %v13694_v28 = vpop.eup %9422  ;;  %9436 = vrcp.f32 %v4808_v6  ;;  %5893 = vmatmul.mubr.f32.vlgmr.msra.gmra.mrb[40].mxu1 %v4924_v56  ;;  %v4942_v61 = vrot.slane %v13594_v37, 5  ;;  %v16922_v2 = vpack.c.bf16 %v13180_v3, %v13175_v33 }
 0x2d1   : > { %v4956_v45 = vsel %vm2119_vm4, %v16921_v23, 0.0  ;;  %9438 = vpow2.f32 %v7288_v59  ;;  %v4959_v5 = vrot.slane %v13609_v31, 1  ;;  %v9425_v9 = vpop.eup %9424  ;;  %v16923_v8 = vpack.c.bf16 %v13190_v36, %v13185_v10  ;;  %v13724_v10 = vld [vmem:[%s15625_s2 + $0x390] sm:$0xff]  ;;  %v13729_v36 = vld [vmem:[%s15625_s2 + $0x398] sm:$0xff] }
 0x2d2   : > { %v7299_v39 = vmul.f32 -1.442695, %v8988_v11  ;;  %v8558_v0 = vpop.f32.mrb[34].mxu0  ;;  %8654 = vmatpush3.bf16.msra.mxu1 %v16922_v2  ;;  %9440 = vpow2.f32 %v7297_v63  ;;  %v16924_v59 = vrot.slane %v13594_v37, 6  ;;  %v4961_v33 = vrot.slane %v13616_v27, 4  ;;  %v13713_v3 = vpop.eup %9426  ;;  %v17007_v37 = vld [vmem:[#allocation216_spill] sm:$0xff] }
 0x2d3   : > { %v8989_v12 = vadd.f32 %v8558_v0, %v13090_v29  ;;  %v4594_v32 = vpop.f32.mrb[35].mxu0  ;;  %8656 = vmatprep.subr.bf16.mxu1 %v16923_v8  ;;  %v4797_v6 = vadd.f32 1.0, %v9415_v44  ;;  %9442 = vpow2.f32 %v7290_v46  ;;  %v16925_v29 = vrot.slane %v13558_v62, 2  ;;  %v13731_v11 = vpop.eup %9428 }
 0x2d4   : > { %v4958_v24 = vsel %vm4906_vm10, %v16924_v59, %v4956_v45  ;;  %v13716_v21 = vadd.f32 %v4594_v32, %v13098_v22  ;;  %9444 = vpow2.f32 %v7295_v26  ;;  %v7300_v44 = vmul.f32 -1.442695, %v8987_v30  ;;  %v9431_v56 = vpop.eup %9430 }
 0x2d5   : > { %v4941_v63 = vsel %vm2119_vm4, %v16925_v29, 0.0  ;;  %v7302_v22 = vmul.f32 -1.442695, %v8989_v12  ;;  %v4810_v23 = vadd.f32 1.0, %v9425_v9  ;;  %9446 = vpow2.f32 %v7299_v39 }
 0x2d6   : > { %v4943_v46 = vsel %vm4906_vm10, %v4942_v61, %v4941_v63  ;;  %v8561_v45 = vpop.f32.mrb[36].mxu0  ;;  %v16926_v0 = vpack.c.bf16 %v13200_v58, %v13195_v54  ;;  %v4960_v2 = vsel %vm4909_vm11, %v4959_v5, %v4958_v24  ;;  %v4945_v32 = vrot.slane %v13616_v27, 3 }
 0x2d7   : > { %9448 = vpow2.f32 %v7302_v22  ;;  %v8991_v8 = vadd.f32 %v8561_v45, %v13106_v38  ;;  %v4604_v26 = vpop.f32.mrb[37].mxu0  ;;  %v16927_v30 = vpack.c.bf16 %v13210_v35, %v13205_v48  ;;  %v13744_v61 = vsel %vm4912_vm12, %v4961_v33, %v4960_v2  ;;  %v13748_v54 = vpop.eup %9432 }
 0x2d8   : > { %8658 = vmatpush3.bf16.msra.mxu1 %v16926_v0  ;;  %16928 = vst [vmem:[#allocation127_spill] sm:$0xff] %v13748_v54  ;;  %9450 = vrcp.f32 %v4797_v6  ;;  %v13751_v58 = vadd.f32 %v4604_v26, %v13108_v50  ;;  %v5221_v5 = vrot.slane %v13731_v11, 1  ;;  %v4944_v38 = vsel %vm4909_vm11, %v13609_v31, %v4943_v46  ;;  %v13758_v12 = vpop.eup %9434 }
 0x2d9   : > { %8660 = vmatprep.subr.bf16.mxu1 %v16927_v30  ;;  %9452 = vpow2.f32 %v7300_v44  ;;  %v7304_v48 = vmul.f32 -1.442695, %v8991_v8  ;;  %v5223_v35 = vrot.slane %v13748_v54, 4  ;;  %v4986_v9 = vsel %vm2119_vm4, %v4985_v4, 0.0 }
 0x2da   : > { %9454 = vrcp.f32 %v4810_v23  ;;  %v8564_v59 = vpop.f32.mrb[38].mxu0  ;;  %v16929_v24 = vpack.c.bf16 %v13223_v42, %v13215_v7  ;;  %v16085_v50 = vrot.slane %v13748_v54, 3  ;;  %v13765_v33 = vsel %vm4912_vm12, %v4945_v32, %v4944_v38  ;;  %v13768_v29 = vpop.eup %9436 }
 0x2db   : > { %v4988_v6 = vrot.slane %v13609_v31, 3  ;;  %v4801_v63 = vadd.f32 1.0, %v9431_v56  ;;  %v7293_v4 = vmul.f32 -1.442695, %v13628_v1  ;;  %9456 = vpow2.f32 %v7304_v48  ;;  %v4614_v22 = vpop.f32.mrb[39].mxu0  ;;  %v9439_v42 = vpop.eup %9438  ;;  %v16933_v48 = vld [vmem:[#allocation6_spill] sm:$0xff] }
 0x2dc   : > { %8662 = vmatpush3.bf16.msra.mxu1 %v16929_v24  ;;  %v13772_v44 = vadd.f32 %v8564_v59, %v13122_v51  ;;  %v16930_v7 = vpack.c.bf16 %v13233_v41, %v13228_v25  ;;  %v8994_v46 = vadd.f32 %v4614_v22, %v13124_v34  ;;  %v5222_v23 = vsel %vm2119_vm4, %v5221_v5, 0.0  ;;  %v9441_v0 = vpop.eup %9440  ;;  %v16931_v34 = vld [vmem:[#allocation5_spill] sm:$0xff] }
 0x2dd   : > { %v5225_v45 = vrot.slane %v13768_v29, 7  ;;  %v5251_v56 = vrot.slane %v13731_v11, 3  ;;  %v5224_v1 = vsel %vm4906_vm10, %v5223_v35, %v5222_v23  ;;  %v5206_v51 = vsel %vm2119_vm4, %v13731_v11, 0.0  ;;  %v9443_v41 = vpop.eup %9442  ;;  %v16934_v35 = vld [vmem:[#allocation113_spill] sm:$0xff] }
 0x2de   : > { %8664 = vmatprep.subr.bf16.mxu1 %v16930_v7  ;;  %v5209_v2 = vrot.slane %v13768_v29, 6  ;;  %v5253_v25 = vrot.slane %v13748_v54, 6  ;;  %v4813_v32 = vadd.f32 1.0, %v9441_v0  ;;  %v7305_v8 = vmul.f32 -1.442695, %v8994_v46  ;;  %v9445_v38 = vpop.eup %9444 }
 0x2df   : > { %v16932_v26 = vpack.c.bf16 %v13244_v19, %v16931_v34  ;;  %v13790_v30 = vsel %vm4909_vm11, %v5225_v45, %v5224_v1  ;;  %v5208_v5 = vsel %vm4906_vm10, %v16085_v50, %v5206_v51  ;;  %9458 = vrcp.f32 %v4801_v63  ;;  %v9447_v7 = vpop.eup %9446 }
 0x2e0   : > { %v16935_v59 = vpack.c.bf16 %v16933_v48, %v16934_v35  ;;  %v13799_v24 = vsel %vm4909_vm11, %v5209_v2, %v5208_v5  ;;  %v4963_v22 = vrot.slane %v13620_v55, 7  ;;  %v13804_v19 = vsel %vm4906_vm10, %v13625_v20, %v4986_v9  ;;  %v16936_v9 = vld [vmem:[#allocation200_spill] sm:$0xff] }
 0x2e1   : > { %8666 = vmatpush3.bf16.msra.mxu1 %v16932_v26  ;;  %9460 = vrcp.f32 %v4813_v32  ;;  %v4965_v46 = vrot.slane %v13636_v57, 2  ;;  %v5252_v23 = vsel %vm2119_vm4, %v5251_v56, 0.0  ;;  %v5255_v63 = vrot.slane %v13768_v29, 1  ;;  %v9449_v45 = vpop.eup %9448  ;;  %v16937_v26 = vld [vmem:[#allocation192_spill] sm:$0xff] }
 0x2e2   : > { %8668 = vmatprep.subr.bf16.mxu1 %v16935_v59  ;;  %v4806_v0 = vadd.f32 1.0, %v9443_v41  ;;  %v4815_v1 = vadd.f32 1.0, %v9447_v7  ;;  %9462 = vpow2.f32 %v7305_v8  ;;  %v5254_v51 = vsel %vm4906_vm10, %v5253_v25, %v5252_v23  ;;  %v13810_v2 = vpop.eup %9450  ;;  %v16939_v41 = vld [vmem:[#allocation9_spill] sm:$0xff] }
 0x2e3   : > { %9464 = vpow2.f32 %v7293_v4  ;;  %v4818_v34 = vadd.f32 1.0, %v9449_v45  ;;  %v16938_v5 = vpack.c.bf16 %v16936_v9, %v16937_v26  ;;  %v4967_v32 = vrot.slane %v13647_v40, 5  ;;  %v9453_v48 = vpop.eup %9452  ;;  %v16940_v59 = vld [vmem:[#allocation201_spill] sm:$0xff] }
 0x2e4   : > { %v5256_v56 = vsel %vm4909_vm11, %v5255_v63, %v5254_v51  ;;  %v4811_v35 = vadd.f32 1.0, %v9445_v38  ;;  %9466 = vrcp.f32 %v4815_v1  ;;  %v16941_v8 = vpack.c.bf16 %v16939_v41, %v16940_v59  ;;  %v13822_v7 = vpop.eup %9454  ;;  %v16943_v41 = vld [vmem:[#allocation10_spill] sm:$0xff] }
 0x2e5   : > { %8670 = vmatpush3.bf16.msra.mxu1 %v16938_v5  ;;  %v5236_v25 = vrot.slane %v13731_v11, 2  ;;  %v5238_v4 = vrot.slane %v13748_v54, 5  ;;  %16942 = vst [vmem:[#allocation103_spill] sm:$0xff] %v13822_v7  ;;  %v13825_v23 = vmul.f32 -1.442695, %v13612_v14  ;;  %9468 = vrcp.f32 %v4818_v34  ;;  %v9457_v45 = vpop.eup %9456  ;;  %v16946_v59 = vld [vmem:[#allocation18_spill] sm:$0xff] }
 0x2e6   : > { %8672 = vmatprep.subr.bf16.mxu1 %v16941_v8  ;;  %v4964_v63 = vsel %vm2120_vm5, %v4963_v22, %v13744_v61  ;;  %v4947_v38 = vrot.slane %v13620_v55, 6  ;;  %9470 = vrcp.f32 %v4806_v0  ;;  %v7298_v1 = vmul.f32 -1.442695, %v13664_v52  ;;  %v16945_v0 = vld [vmem:[#allocation115_spill] sm:$0xff] }
 0x2e7   : > { %v4966_v51 = vsel %vm4917_vm13, %v4965_v46, %v4964_v63  ;;  %v5237_v9 = vsel %vm2119_vm4, %v5236_v25, 0.0  ;;  %v4816_v26 = vadd.f32 1.0, %v9453_v48  ;;  %v4820_v5 = vadd.f32 1.0, %v9457_v45 }
 0x2e8   : > { %v16944_v14 = vpack.c.bf16 %v13295_v17, %v16943_v41  ;;  %v4968_v34 = vsel %vm4920_vm14, %v4967_v32, %v4966_v51  ;;  %v5239_v61 = vsel %vm4906_vm10, %v5238_v4, %v5237_v9  ;;  %v13838_v22 = vadd.f32 1.0, %v9439_v42  ;;  %v16948_v51 = vld [vmem:[#allocation193_spill] sm:$0xff] }
 0x2e9   : > { %9472 = vrcp.f32 %v4811_v35  ;;  %v16947_v52 = vpack.c.bf16 %v16945_v0, %v16946_v59  ;;  %v5227_v46 = vrot.slane %v13822_v7, 2  ;;  %v5240_v48 = vsel %vm4909_vm11, %v13768_v29, %v5239_v61  ;;  %v13850_v42 = vpop.eup %9458  ;;  %v16952_v61 = vld [vmem:[#allocation194_spill] sm:$0xff] }
 0x2ea   : > { %8674 = vmatpush3.bf16.msra.mxu1 %v16944_v14  ;;  %9474 = vrcp.f32 %v4820_v5  ;;  %v16084_v17 = vrot.slane %v13822_v7, 1  ;;  %v4948_v32 = vsel %vm2120_vm5, %v4947_v38, %v13765_v33  ;;  %v5257_v8 = vrot.slane %v13822_v7, 4  ;;  %v16949_v33 = vld [vmem:[#allocation19_spill] sm:$0xff] }
 0x2eb   : > { %8676 = vmatprep.subr.bf16.mxu1 %v16947_v52  ;;  %9476 = vpow2.f32 %v7298_v1  ;;  %v13854_v35 = vsel %vm4923_vm15, %v13669_v18, %v4968_v34  ;;  %v4949_v25 = vrot.slane %v13636_v57, 1  ;;  %v5241_v4 = vrot.slane %v13822_v7, 3  ;;  %v13858_v63 = vpop.eup %9460  ;;  %v16951_v34 = vld [vmem:[#allocation21_spill] sm:$0xff] }
 0x2ec   : > { %9478 = vrcp.f32 %v4816_v26  ;;  %v7303_v45 = vmul.f32 -1.442695, %v13751_v58  ;;  %v16950_v38 = vpack.c.bf16 %v16948_v51, %v16949_v33  ;;  %v4951_v9 = vrot.slane %v13647_v40, 4  ;;  %v9463_v5 = vpop.eup %9462 }
 0x2ed   : > { %v4953_v1 = vrot.slane %v13669_v18, 7  ;;  %v5228_v41 = vsel %vm4912_vm12, %v5227_v46, %v13790_v30  ;;  %v5229_v14 = vrot.slane %v13858_v63, 5  ;;  %v16953_v0 = vpack.c.bf16 %v16951_v34, %v16952_v61  ;;  %v13874_v59 = vpop.eup %9464  ;;  %v16962_v18 = vld [vmem:[#allocation31_spill] sm:$0xff] }
 0x2ee   : > { %8678 = vmatpush3.bf16.msra.mxu1 %v16950_v38  ;;  %v5213_v58 = vrot.slane %v13858_v63, 4  ;;  %v5259_v26 = vrot.slane %v13858_v63, 7  ;;  %v4821_v52 = vadd.f32 1.0, %v9463_v5  ;;  %v5212_v51 = vsel %vm4912_vm12, %v16084_v17, %v13799_v24  ;;  %v13882_v33 = vpop.eup %9466  ;;  %v16956_v17 = vld [vmem:[#allocation204_spill] sm:$0xff] }
 0x2ef   : > { %8680 = vmatprep.subr.bf16.mxu1 %v16953_v0  ;;  %v5258_v30 = vsel %vm4912_vm12, %v5257_v8, %v5256_v56  ;;  %v5243_v46 = vrot.slane %v13858_v63, 6  ;;  %16954 = vst [vmem:[#allocation98_spill] sm:$0xff] %v13882_v33  ;;  %v5230_v38 = vsel %vm2120_vm5, %v5229_v14, %v5228_v41  ;;  %v5242_v0 = vsel %vm4912_vm12, %v5241_v4, %v5240_v48  ;;  %v13888_v5 = vpop.eup %9468  ;;  %v16955_v8 = vld [vmem:[#allocation195_spill] sm:$0xff] }
 0x2f0   : > { %v5214_v34 = vsel %vm2120_vm5, %v5213_v58, %v5212_v51  ;;  %v5260_v61 = vsel %vm2120_vm5, %v5259_v26, %v5258_v30  ;;  %9480 = vrcp.f32 %v4821_v52  ;;  %v5231_v24 = vsel %vm4917_vm13, %v13882_v33, %v5230_v38  ;;  %v13897_v14 = vpop.eup %9470  ;;  %v16958_v4 = vld [vmem:[#allocation207_spill] sm:$0xff]  ;;  %v16959_v26 = vld [vmem:[#allocation26_spill] sm:$0xff] }
 0x2f1   : > { %v16088_v56 = vrot.slane %v13882_v33, 7  ;;  %v16957_v50 = vpack.c.bf16 %v16955_v8, %v16956_v17  ;;  %v5261_v41 = vrot.slane %v13882_v33, 2  ;;  %v5232_v58 = vrot.slane %v13888_v5, 3 }
 0x2f2   : > { %v5217_v48 = vrot.slane %v13888_v5, 2  ;;  %v16960_v52 = vpack.c.bf16 %v16958_v4, %v16959_v26  ;;  %v5263_v51 = vrot.slane %v13888_v5, 5  ;;  %v5244_v30 = vsel %vm2120_vm5, %v5243_v46, %v5242_v0 }
 0x2f3   : > { %8682 = vmatpush3.bf16.msra.mxu1 %v16957_v50  ;;  %v5216_v50 = vsel %vm4917_vm13, %v16088_v56, %v5214_v34  ;;  %v5262_v17 = vsel %vm4917_vm13, %v5261_v41, %v5260_v61  ;;  %v5245_v38 = vrot.slane %v13882_v33, 1  ;;  %v5247_v8 = vrot.slane %v13888_v5, 4  ;;  %v13912_v49 = vpop.eup %9472 }
 0x2f4   : > { %8684 = vmatprep.subr.bf16.mxu1 %v16960_v52  ;;  %v5233_v39 = vsel %vm4920_vm14, %v5232_v58, %v5231_v24  ;;  %v5218_v4 = vsel %vm4920_vm14, %v5217_v48, %v5216_v50  ;;  %v4950_v26 = vsel %vm4917_vm13, %v4949_v25, %v4948_v32  ;;  %v5264_v46 = vsel %vm4920_vm14, %v5263_v51, %v5262_v17  ;;  %v13918_v0 = vpop.eup %9474 }
 0x2f5   : > { %16961 = vst [vmem:[#allocation106_spill] sm:$0xff] %v13918_v0  ;;  %v4952_v34 = vsel %vm4920_vm14, %v4951_v9, %v4950_v26  ;;  %v5246_v61 = vsel %vm4917_vm13, %v5245_v38, %v5244_v30  ;;  %v4989_v41 = vsel %vm4909_vm11, %v4988_v6, %v13804_v19  ;;  %v4990_v52 = vrot.slane %v13683_v53, 6  ;;  %v13927_v24 = vpop.eup %9476 }
 0x2f6   : > { %v5234_v58 = vrot.slane %v13918_v0, 6  ;;  %v16087_v32 = vrot.slane %v13918_v0, 5  ;;  %v4954_v25 = vsel %vm4923_vm15, %v4953_v1, %v4952_v34  ;;  %v5248_v48 = vsel %vm4920_vm14, %v5247_v8, %v5246_v61  ;;  %v13933_v9 = vpop.eup %9478 }
 0x2f7   : > { %9482 = vpow2.f32 %v7303_v45  ;;  %v4992_v51 = vrot.slane %v13620_v55, 1  ;;  %v5281_v30 = vrot.slane %v13731_v11, 5  ;;  %v5284_v6 = vrot.slane %v13768_v29, 3 }
 0x2f8   : > { %v5235_v19 = vsel %vm4923_vm15, %v5234_v58, %v5233_v39  ;;  %v5220_v50 = vsel %vm4923_vm15, %v16087_v32, %v5218_v4  ;;  %v4994_v17 = vrot.slane %v13713_v3, 4  ;;  %v5286_v1 = vrot.slane %v13912_v49, 6 }
 0x2f9   : > { %5897 = vmatprep.mubr.f32.mxu1 %v5235_v19  ;;  %v4991_v38 = vsel %vm4912_vm12, %v4990_v52, %v4989_v41  ;;  %v4996_v45 = vrot.slane %v13647_v40, 7  ;;  %v5282_v8 = vsel %vm2119_vm4, %v5281_v30, 0.0  ;;  %v5288_v26 = vrot.slane %v13858_v63, 1 }
 0x2fa   : > { %5898 = vmatmul.mubr.f32.gmra.mrb[42].mxu1 %v5220_v50  ;;  %v5283_v39 = vsel %vm4906_vm10, %v13897_v14, %v5282_v8  ;;  %v5290_v34 = vrot.slane %v13933_v9, 4  ;;  %v5292_v4 = vrot.slane %v13888_v5, 7  ;;  %v5266_v61 = vrot.slane %v13731_v11, 4  ;;  %v13953_v58 = vpop.eup %9480 }
 0x2fb   : > { %5967 = vmatprep.mubr.f32.mxu1 %v13854_v35  ;;  %v5285_v41 = vsel %vm4909_vm11, %v5284_v6, %v5283_v39  ;;  %v5268_v52 = vrot.slane %v13897_v14, 7  ;;  %v5270_v30 = vrot.slane %v13768_v29, 2  ;;  %v5272_v19 = vrot.slane %v13912_v49, 5 }
 0x2fc   : > { %v4998_v50 = vrot.slane %v13850_v42, 2  ;;  %v5287_v8 = vsel %vm4912_vm12, %v5286_v1, %v5285_v41  ;;  %v5294_v32 = vrot.slane %v13953_v58, 2  ;;  %v5267_v56 = vsel %vm2119_vm4, %v5266_v61, 0.0  ;;  %v16963_v61 = vld [vmem:[#allocation208_spill] sm:$0xff] }
 0x2fd   : > { %v5249_v33 = vrot.slane %v13918_v0, 7  ;;  %v5289_v35 = vsel %vm2120_vm5, %v5288_v26, %v5287_v8  ;;  %v5269_v6 = vsel %vm4906_vm10, %v5268_v52, %v5267_v56  ;;  %v5275_v39 = vrot.slane %v13933_v9, 3 }
 0x2fe   : > { %5968 = vmatmul.mubr.f32.vlgmr.msra.gmra.mrb[44].mxu1 %v4954_v25  ;;  %v5265_v7 = vsel %vm4923_vm15, %v13918_v0, %v5264_v46  ;;  %v5291_v54 = vsel %vm4917_vm13, %v5290_v34, %v5289_v35  ;;  %v5271_v1 = vsel %vm4909_vm11, %v5270_v30, %v5269_v6  ;;  %v5277_v41 = vrot.slane %v13888_v5, 6  ;;  %v16965_v34 = vld [vmem:[#allocation202_spill] sm:$0xff]  ;;  %v14031_v35 = vld [vmem:[%s15625_s2 + $0x3b0] sm:$0xff]  ;;  %v14036_v6 = vld [vmem:[%s15625_s2 + $0x3b8] sm:$0xff] }
 0x2ff   : > { %v16964_v57 = vpack.c.bf16 %v16962_v18, %v16963_v61  ;;  %5972 = vmatprep.mubr.f32.mxu1 %v5265_v7  ;;  %v4993_v26 = vsel %vm2120_vm5, %v4992_v51, %v4991_v38  ;;  %v5293_v56 = vsel %vm4920_vm14, %v5292_v4, %v5291_v54  ;;  %v5273_v25 = vsel %vm4912_vm12, %v5272_v19, %v5271_v1  ;;  %v13993_v54 = vld [vmem:[%s15625_s2 + $0x310] sm:$0xff]  ;;  %v14012_v4 = vld [vmem:[%s15625_s2 + $0x3a8] sm:$0xff]  ;;  %v14017_v19 = vld [vmem:[%s15625_s2 + $0x320] sm:$0xff] }
 0x300   : > { %v5279_v52 = vrot.slane %v13953_v58, 1  ;;  %v7296_v46 = vmul.f32 -1.442695, %v13643_v15  ;;  %v16966_v30 = vpack.c.bf16 %v13388_v13, %v16965_v34  ;;  %v4995_v8 = vsel %vm4917_vm13, %v4994_v17, %v4993_v26  ;;  %v13998_v15 = vld [vmem:[%s15625_s2 + $0x318] sm:$0xff]  ;;  %v14003_v13 = vld [vmem:[%s15625_s2 + $0x3a0] sm:$0xff]  ;;  %v14051_v61 = vld [vmem:[%s15625_s2 + $0x330] sm:$0xff] }
 0x301   : > { %8686 = vmatpush3.bf16.msra.mxu1 %v16964_v57  ;;  %v13986_v18 = vsel %vm4923_vm15, %v5294_v32, %v5293_v56  ;;  %v5274_v57 = vsel %vm2120_vm5, %v13858_v63, %v5273_v25  ;;  %v9483_v7 = vpop.eup %9482  ;;  %v4809_v32 = vadd.f32 1.0, %v13874_v59  ;;  %v5250_v51 = vsel %vm4923_vm15, %v5249_v33, %v5248_v48  ;;  %v14022_v59 = vld [vmem:[%s15625_s2 + $0x328] sm:$0xff]  ;;  %v16971_v26 = vld [vmem:[#allocation211_spill] sm:$0xff]  ;;  %v16984_v34 = vld [vmem:[#allocation49_spill] sm:$0xff] }
 0x302   : > { %8688 = vmatprep.subr.bf16.mxu1 %v16966_v30  ;;  %v4997_v17 = vsel %vm4920_vm14, %v4996_v45, %v4995_v8  ;;  %v5276_v38 = vsel %vm4917_vm13, %v5275_v39, %v5274_v57  ;;  %9484 = vpow2.f32 %v13825_v23  ;;  %v7301_v33 = vmul.f32 -1.442695, %v13716_v21  ;;  %5973 = vmatmul.mubr.f32.gmra.mrb[46].mxu1 %v5250_v51  ;;  %v16967_v21 = vld [vmem:[#allocation210_spill] sm:$0xff]  ;;  %v16968_v39 = vld [vmem:[#allocation33_spill] sm:$0xff] }
 0x303   : > { %v4999_v48 = vsel %vm4923_vm15, %v4998_v50, %v4997_v17  ;;  %v5278_v45 = vsel %vm4920_vm14, %v5277_v41, %v5276_v38  ;;  %9486 = vrcp.f32 %v13838_v22  ;;  %v4814_v23 = vadd.f32 1.0, %v13927_v24  ;;  %v14056_v22 = vld [vmem:[%s15625_s2 + $0x338] sm:$0xff] }
 0x304   : > { %v16969_v1 = vpack.c.bf16 %v16967_v21, %v16968_v39  ;;  %6042 = vmatprep.mubr.f32.mxu1 %v4999_v48  ;;  %v14044_v50 = vsel %vm4923_vm15, %v5279_v52, %v5278_v45  ;;  %9488 = vpow2.f32 %v7296_v46  ;;  %v16970_v24 = vld [vmem:[#allocation36_spill] sm:$0xff]  ;;  %v4970_v25 = vrot.slane %v13558_v62, 4 }
 0x305   : > { %v16972_v56 = vpack.c.bf16 %v16970_v24, %v16971_v26  ;;  %9490 = vrcp.f32 %v4809_v32  ;;  %v7306_v30 = vmul.f32 -1.442695, %v13772_v44  ;;  %v4972_v8 = vrot.slane %v13625_v20, 7  ;;  %v16973_v48 = vld [vmem:[#allocation40_spill] sm:$0xff]  ;;  %v16976_v44 = vld [vmem:[#allocation58_spill] sm:$0xff] }
 0x306   : > { %8690 = vmatpush3.bf16.msra.mxu1 %v16969_v1  ;;  %9492 = vpow2.f32 %v7301_v33  ;;  %v4819_v57 = vadd.f32 1.0, %v9483_v7  ;;  %v4974_v51 = vrot.slane %v13609_v31, 2  ;;  %v4799_v38 = vadd.f32 1.0, %v13694_v28  ;;  %v16974_v45 = vld [vmem:[#allocation212_spill] sm:$0xff]  ;;  %v16977_v33 = vld [vmem:[#allocation215_spill] sm:$0xff]  ;;  %v16978_v7 = vld [vmem:[#allocation214_spill] sm:$0xff] }
 0x307   : > { %8692 = vmatprep.subr.bf16.mxu1 %v16972_v56  ;;  %9494 = vrcp.f32 %v4814_v23  ;;  %v16975_v32 = vpack.c.bf16 %v16973_v48, %v16974_v45  ;;  %v5045_v21 = vrot.slane %v16976_v44, 1  ;;  %v14080_v39 = vsel %vm2119_vm4, %v16976_v44, 0.0 }
 0x308   : > { %v16979_v1 = vpack.c.bf16 %v16977_v33, %v16978_v7  ;;  %v4971_v24 = vsel %vm2119_vm4, %v4970_v25, 0.0  ;;  %v5311_v26 = vrot.slane %v13731_v11, 7  ;;  %v5313_v28 = vrot.slane %v13897_v14, 2  ;;  %v16980_v7 = vld [vmem:[#allocation205_spill] sm:$0xff] }
 0x309   : > { %v5315_v23 = vrot.slane %v13768_v29, 5  ;;  %v14090_v56 = vadd.f32 1.0, %v13758_v12  ;;  %9496 = vpow2.f32 %v7306_v30  ;;  %v4973_v48 = vsel %vm4906_vm10, %v4972_v8, %v4971_v24 }
 0x30a   : > { %8694 = vmatpush3.bf16.msra.mxu1 %v16975_v32  ;;  %v4976_v45 = vrot.slane %v13683_v53, 5  ;;  %9498 = vrcp.f32 %v4819_v57  ;;  %v4975_v32 = vsel %vm4909_vm11, %v4974_v51, %v4973_v48  ;;  %v5312_v33 = vsel %vm2119_vm4, %v5311_v26, 0.0  ;;  %v16983_v57 = vld [vmem:[#allocation52_spill] sm:$0xff] }
 0x30b   : > { %8696 = vmatprep.subr.bf16.mxu1 %v16979_v1  ;;  %v5318_v25 = vrot.slane %v13858_v63, 3  ;;  %v16981_v1 = vld [vmem:[#allocation46_spill] sm:$0xff]  ;;  %v5314_v46 = vsel %vm4906_vm10, %v5313_v28, %v5312_v33  ;;  %v5320_v12 = vrot.slane %v13933_v9, 6  ;;  %v5296_v30 = vrot.slane %v13731_v11, 6 }
 0x30c   : > { %v16982_v17 = vpack.c.bf16 %v16980_v7, %v16981_v1  ;;  %v5298_v8 = vrot.slane %v13897_v14, 1  ;;  %v9485_v24 = vpop.eup %9484  ;;  %v16985_v51 = vpack.c.bf16 %v16983_v57, %v16984_v34  ;;  %v5316_v26 = vsel %vm4909_vm11, %v5315_v23, %v5314_v46 }
 0x30d   : > { %v5322_v48 = vrot.slane %v13888_v5, 1  ;;  %v5300_v7 = vrot.slane %v13768_v29, 4  ;;  %v14111_v28 = vpop.eup %9486  ;;  %v5317_v11 = vsel %vm4912_vm12, %v13912_v49, %v5316_v26  ;;  %v5324_v33 = vrot.slane %v13953_v58, 4 }
 0x30e   : > { %8698 = vmatpush3.bf16.msra.mxu1 %v16982_v17  ;;  %v5302_v17 = vrot.slane %v13912_v49, 7  ;;  %v5297_v1 = vsel %vm2119_vm4, %v5296_v30, 0.0  ;;  %v5304_v34 = vrot.slane %v13858_v63, 2  ;;  %v9489_v57 = vpop.eup %9488  ;;  %v4977_v46 = vsel %vm4912_vm12, %v4976_v45, %v4975_v32 }
 0x30f   : > { %8700 = vmatprep.subr.bf16.mxu1 %v16985_v51  ;;  %v5319_v23 = vsel %vm2120_vm5, %v5318_v25, %v5317_v11  ;;  %v5299_v29 = vsel %vm4906_vm10, %v5298_v8, %v5297_v1  ;;  %v5306_v51 = vrot.slane %v13933_v9, 5  ;;  %v14122_v52 = vpop.eup %9490  ;;  %v16986_v26 = vpack.c.bf16 %v13481_v60, %v13472_v47  ;;  %v16987_v25 = vld [vmem:[#allocation218_spill] sm:$0xff] }
 0x310   : > { %v4979_v41 = vrot.slane %v13713_v3, 3  ;;  %v5321_v30 = vsel %vm4917_vm13, %v5320_v12, %v5319_v23  ;;  %v5301_v63 = vsel %vm4909_vm11, %v5300_v7, %v5299_v29  ;;  %v5309_v45 = vrot.slane %v13953_v58, 3  ;;  %v9493_v32 = vpop.eup %9492  ;;  %v16988_v11 = vld [vmem:[#allocation198_spill] sm:$0xff] }
 0x311   : > { %v16989_v8 = vpack.c.bf16 %v16987_v25, %v16988_v11  ;;  %v5323_v1 = vsel %vm4920_vm14, %v5322_v48, %v5321_v30  ;;  %v5303_v0 = vsel %vm4912_vm12, %v5302_v17, %v5301_v63  ;;  %v5046_v60 = vsel %vm2119_vm4, %v5045_v21, 0.0  ;;  %v16991_v63 = vld [vmem:[#allocation64_spill] sm:$0xff]  ;;  %v16992_v11 = vld [vmem:[#allocation89_spill] sm:$0xff] }
 0x312   : > { %8702 = vmatpush3.bf16.msra.mxu1 %v16986_v26  ;;  %v5047_v47 = vrot.slane %v13625_v20, 4  ;;  %v14138_v26 = vpop.eup %9494  ;;  %v14141_v12 = vsel %vm4923_vm15, %v5324_v33, %v5323_v1  ;;  %v5305_v7 = vsel %vm2120_vm5, %v5304_v34, %v5303_v0  ;;  %v5049_v23 = vrot.slane %v13652_v43, 7 }
 0x313   : > { %8704 = vmatprep.subr.bf16.mxu1 %v16989_v8  ;;  %16990 = vst [vmem:[#allocation224_spill] sm:$0xff] %v14141_v12  ;;  %v5051_v29 = vrot.slane %v13683_v53, 2  ;;  %v4981_v25 = vrot.slane %v13647_v40, 6  ;;  %v5307_v48 = vsel %vm4917_vm13, %v5306_v51, %v5305_v7  ;;  %v5053_v21 = vrot.slane %v13687_v16, 5  ;;  %v9497_v30 = vpop.eup %9496  ;;  %v16994_v51 = vld [vmem:[#allocation199_spill] sm:$0xff]  ;;  %v16995_v7 = vld [vmem:[#allocation213_spill] sm:$0xff] }
 0x314   : > { %v5048_v17 = vsel %vm4906_vm10, %v5047_v47, %v5046_v60  ;;  %9500 = vrcp.f32 %v4799_v38  ;;  %v16993_v33 = vpack.c.bf16 %v16991_v63, %v16992_v11  ;;  %v4983_v0 = vrot.slane %v13850_v42, 1  ;;  %v14157_v1 = vpop.eup %9498 }
 0x315   : > { %v5308_v34 = vsel %vm4920_vm14, %v13888_v5, %v5307_v48  ;;  %v5050_v8 = vsel %vm4909_vm11, %v5049_v23, %v5048_v17  ;;  %v16996_v60 = vpack.c.bf16 %v16994_v51, %v16995_v7  ;;  %v4978_v38 = vsel %vm2120_vm5, %v13620_v55, %v4977_v46  ;;  %v17002_v7 = vld [vmem:[#allocation96_spill] sm:$0xff] }
 0x316   : > { %8706 = vmatpush3.bf16.msra.mxu1 %v16993_v33  ;;  %v5015_v47 = vrot.slane %v13558_v62, 7  ;;  %v14166_v63 = vsel %vm4923_vm15, %v5309_v45, %v5308_v34  ;;  %v5052_v11 = vsel %vm4912_vm12, %v5051_v29, %v5050_v8  ;;  %9502 = vrcp.f32 %v14090_v56  ;;  %v16998_v29 = vld [vmem:[#allocation69_spill] sm:$0xff] }
 0x317   : > { %8708 = vmatprep.subr.bf16.mxu1 %v16996_v60  ;;  %16997 = vst [vmem:[#allocation135_spill] sm:$0xff] %v14166_v63  ;;  %v4980_v5 = vsel %vm4917_vm13, %v4979_v41, %v4978_v38  ;;  %v5017_v23 = vrot.slane %v13625_v20, 2  ;;  %v14173_v48 = vsel %vm2120_vm5, %v5053_v21, %v5052_v11  ;;  %v14175_v17 = vadd.f32 1.0, %v9485_v24  ;;  %v16999_v8 = vld [vmem:[#allocation221_spill] sm:$0xff]  ;;  %v17001_v24 = vld [vmem:[#allocation74_spill] sm:$0xff] }
 0x318   : > { %v14177_v33 = vadd.f32 1.0, %v9489_v57  ;;  %v14179_v46 = vadd.f32 1.0, %v9493_v32  ;;  %v4982_v45 = vsel %vm4920_vm14, %v4981_v25, %v4980_v5  ;;  %v14182_v34 = vadd.f32 1.0, %v9497_v30  ;;  %v17008_v63 = vld [vmem:[#allocation82_spill] sm:$0xff] }
 0x319   : > { %v17000_v56 = vpack.c.bf16 %v16998_v29, %v16999_v8  ;;  %v4984_v41 = vsel %vm4923_vm15, %v4983_v0, %v4982_v45  ;;  %v5019_v51 = vrot.slane %v13609_v31, 5  ;;  %v5022_v21 = vrot.slane %v13620_v55, 3 }
 0x31a   : > { %v17003_v57 = vpack.c.bf16 %v17001_v24, %v17002_v7  ;;  %v5016_v32 = vsel %vm2119_vm4, %v5015_v47, 0.0  ;;  %v5031_v25 = vrot.slane %v13625_v20, 3  ;;  %v5033_v30 = vrot.slane %v13652_v43, 6  ;;  %v17005_v24 = vld [vmem:[#allocation225_spill] sm:$0xff] }
 0x31b   : > { %8710 = vmatpush3.bf16.msra.mxu1 %v17000_v56  ;;  %v5035_v60 = vrot.slane %v13683_v53, 1  ;;  %v5018_v38 = vsel %vm4906_vm10, %v5017_v23, %v5016_v32  ;;  %v5024_v0 = vrot.slane %v13713_v3, 6  ;;  %v5026_v11 = vrot.slane %v13647_v40, 1  ;;  %v17004_v56 = vld [vmem:[#allocation79_spill] sm:$0xff] }
 0x31c   : > { %8712 = vmatprep.subr.bf16.mxu1 %v17003_v57  ;;  %v5037_v5 = vrot.slane %v13687_v16, 4  ;;  %v5028_v45 = vrot.slane %v13850_v42, 4  ;;  %v5032_v29 = vsel %vm4906_vm10, %v5031_v25, %v14080_v39  ;;  %v5341_v47 = vrot.slane %v14111_v28, 1 }
 0x31d   : > { %v5343_v8 = vrot.slane %v13897_v14, 4  ;;  %v17006_v7 = vpack.c.bf16 %v17004_v56, %v17005_v24  ;;  %v5020_v23 = vsel %vm4909_vm11, %v5019_v51, %v5018_v38  ;;  %v5034_v57 = vsel %vm4909_vm11, %v5033_v30, %v5032_v29 }
 0x31e   : > { %v5345_v32 = vrot.slane %v14122_v52, 7  ;;  %v5347_v27 = vrot.slane %v13912_v49, 2  ;;  %v17009_v12 = vpack.c.bf16 %v17007_v37, %v17008_v63  ;;  %v5021_v39 = vsel %vm4912_vm12, %v13683_v53, %v5020_v23  ;;  %v14221_v51 = vpop.eup %9500 }
 0x31f   : > { %8714 = vmatpush3.bf16.msra.mxu1 %v17006_v7  ;;  %v5036_v25 = vsel %vm4912_vm12, %v5035_v60, %v5034_v57  ;;  %v5342_v56 = vsel %vm2119_vm4, %v5341_v47, 0.0  ;;  %v5349_v24 = vrot.slane %v14138_v26, 5  ;;  %v5023_v30 = vsel %vm2120_vm5, %v5022_v21, %v5021_v39  ;;  %v17010_v21 = vld [vmem:[#allocation230_spill] sm:$0xff] }
 0x320   : > { %8716 = vmatprep.subr.bf16.mxu1 %v17009_v12  ;;  %v14225_v38 = vsel %vm2120_vm5, %v5037_v5, %v5036_v25  ;;  %v5344_v29 = vsel %vm4906_vm10, %v5343_v8, %v5342_v56  ;;  %v5352_v37 = vrot.slane %v14157_v1, 3  ;;  %v5354_v63 = vrot.slane %v13953_v58, 6  ;;  %v14233_v7 = vpop.eup %9502  ;;  %v17011_v5 = vld [vmem:[#allocation229_spill] sm:$0xff] }
 0x321   : > { %v5346_v12 = vsel %vm4909_vm11, %v5345_v32, %v5344_v29  ;;  %v5327_v60 = vrot.slane %v13897_v14, 3  ;;  %v5329_v47 = vrot.slane %v14122_v52, 6  ;;  %v17012_v23 = vpack.c.bf16 %v17010_v21, %v17011_v5 }
 0x322   : > { %6043 = vmatmul.mubr.f32.vlgmr.msra.gmra.mrb[48].mxu1 %v4984_v41  ;;  %v5348_v8 = vsel %vm4912_vm12, %v5347_v27, %v5346_v12  ;;  %v5326_v41 = vsel %vm2119_vm4, %v14111_v28, 0.0  ;;  %v5331_v57 = vrot.slane %v13912_v49, 1  ;;  %v5333_v32 = vrot.slane %v14138_v26, 4 }
 0x323   : > { %6047 = vmatprep.mubr.f32.mxu1 %v13986_v18  ;;  %8718 = vmatpush3.bf16.msra.mxu1 %v17012_v23  ;;  %v17013_v39 = vpack.c.bf16 %v13729_v36, %v13724_v10  ;;  %v5025_v25 = vsel %vm4917_vm13, %v5024_v0, %v5023_v30  ;;  %v5350_v18 = vsel %vm2120_vm5, %v5349_v24, %v5348_v8  ;;  %v5335_v29 = vrot.slane %v13933_v9, 7  ;;  %v5622_v30 = vld [vmem:[%s15625_s2 + $0x3c0] sm:$0xff]  ;;  %v5607_v23 = vld [vmem:[%s15625_s2 + $0x348] sm:$0xff]  ;;  %v14296_v8 = vld [vmem:[%s15625_s2 + $0x3d8] sm:$0xff] }
 0x324   : > { %v5328_v56 = vsel %vm4906_vm10, %v5327_v60, %v5326_v41  ;;  %v5027_v27 = vsel %vm4920_vm14, %v5026_v11, %v5025_v25  ;;  %v5351_v12 = vsel %vm4917_vm13, %v13933_v9, %v5350_v18  ;;  %v5337_v5 = vrot.slane %v14157_v1, 2 }
 0x325   : > { %8720 = vmatprep.subr.bf16.mxu1 %v17013_v39  ;;  %v5330_v21 = vsel %vm4909_vm11, %v5329_v47, %v5328_v56  ;;  %v5029_v10 = vsel %vm4923_vm15, %v5028_v45, %v5027_v27  ;;  %v5353_v36 = vsel %vm4920_vm14, %v5352_v37, %v5351_v12  ;;  %v5339_v24 = vrot.slane %v13953_v58, 5  ;;  %v14273_v45 = vld [vmem:[%s15625_s2 + $0x340] sm:$0xff]  ;;  %v14324_v56 = vld [vmem:[%s15625_s2 + $0x3e8] sm:$0xff] }
 0x326   : > { %6048 = vmatmul.mubr.f32.gmra.mrb[50].mxu1 %v14044_v50  ;;  %v5332_v0 = vsel %vm4912_vm12, %v5331_v57, %v5330_v21  ;;  %v17014_v11 = vpack.c.bf16 %v13998_v15, %v13993_v54  ;;  %v5623_v50 = vld [vmem:[%s15625_s2 + $0x3c8] sm:$0xff]  ;;  %v14276_v37 = vsel %vm4923_vm15, %v5354_v63, %v5353_v36  ;;  %v5075_v15 = vrot.slane %v16976_v44, 3  ;;  %v14291_v63 = vld [vmem:[%s15625_s2 + $0x3d0] sm:$0xff]  ;;  %v14310_v57 = vld [vmem:[%s15625_s2 + $0x358] sm:$0xff] }
 0x327   : > { %6117 = vmatprep.mubr.f32.mxu1 %v5029_v10  ;;  %v5334_v54 = vsel %vm2120_vm5, %v5333_v32, %v5332_v0  ;;  %v5077_v60 = vrot.slane %v13625_v20, 6  ;;  %9504 = vrcp.f32 %v14175_v17  ;;  %v17015_v47 = vpack.c.bf16 %v14012_v4, %v14003_v13  ;;  %v14305_v4 = vld [vmem:[%s15625_s2 + $0x350] sm:$0xff]  ;;  %v14315_v32 = vld [vmem:[%s15625_s2 + $0x3e0] sm:$0xff]  ;;  %v14334_v27 = vld [vmem:[%s15625_s2 + $0x368] sm:$0xff] }
 0x328   : > { %8722 = vmatpush3.bf16.msra.mxu1 %v17014_v11  ;;  %v5336_v17 = vsel %vm4917_vm13, %v5335_v29, %v5334_v54  ;;  %v5079_v41 = vrot.slane %v13652_v43, 1  ;;  %v5081_v13 = vrot.slane %v13683_v53, 4  ;;  %9506 = vrcp.f32 %v14177_v33  ;;  %v14329_v29 = vld [vmem:[%s15625_s2 + $0x360] sm:$0xff]  ;;  %v14348_v10 = vld [vmem:[%s15625_s2 + $0x3f0] sm:$0xff]  ;;  %v14353_v36 = vld [vmem:[%s15625_s2 + $0x3f8] sm:$0xff] }
 0x329   : > { %8724 = vmatprep.subr.bf16.mxu1 %v17015_v47  ;;  %v5338_v39 = vsel %vm4920_vm14, %v5337_v5, %v5336_v17  ;;  %v5076_v25 = vsel %vm2119_vm4, %v5075_v15, 0.0  ;;  %v5083_v33 = vrot.slane %v13687_v16, 7  ;;  %9508 = vrcp.f32 %v14179_v46  ;;  %v14367_v11 = vld [vmem:[%s15625_s2 + $0x370] sm:$0xff] }
 0x32a   : > { %v8731_v18 = vpack.c.bf16 %v5623_v50, %v5622_v30  ;;  %v14337_v12 = vsel %vm4923_vm15, %v5339_v24, %v5338_v39  ;;  %v5078_v46 = vsel %vm4906_vm10, %v5077_v60, %v5076_v25  ;;  %9510 = vrcp.f32 %v14182_v34 }
 0x32b   : > { %v17016_v21 = vpack.c.bf16 %v14022_v59, %v14017_v19  ;;  %v8733_v5 = vpack.c.bf16 %v5607_v23, %v14273_v45  ;;  %v5000_v0 = vrot.slane %v13558_v62, 6  ;;  %v5080_v34 = vsel %vm4909_vm11, %v5079_v41, %v5078_v46  ;;  %v14372_v62 = vld [vmem:[%s15625_s2 + $0x378] sm:$0xff] }
 0x32c   : > { %v17017_v19 = vpack.c.bf16 %v14036_v6, %v14031_v35  ;;  %v8735_v59 = vpack.c.bf16 %v14296_v8, %v14291_v63  ;;  %v8737_v24 = vpack.c.bf16 %v14310_v57, %v14305_v4  ;;  %v5002_v30 = vrot.slane %v13625_v20, 1 }
 0x32d   : > { %8726 = vmatpush3.bf16.msra.mxu1 %v17016_v21  ;;  %v5082_v35 = vsel %vm4912_vm12, %v5081_v13, %v5080_v34  ;;  %v8739_v6 = vpack.c.bf16 %v14324_v56, %v14315_v32  ;;  %v8741_v50 = vpack.c.bf16 %v14334_v27, %v14329_v29  ;;  %v5004_v45 = vrot.slane %v13609_v31, 4  ;;  %v14522_v29 = vld [vmem:[%s15625_s2 + $0x428] sm:$0xff] }
 0x32e   : > { %8728 = vmatprep.subr.bf16.mxu1 %v17017_v19  ;;  %v14382_v54 = vsel %vm2120_vm5, %v5083_v33, %v5082_v35  ;;  %v8743_v15 = vpack.c.bf16 %v14353_v36, %v14348_v10  ;;  %v5006_v60 = vrot.slane %v13683_v53, 7  ;;  %v5060_v47 = vrot.slane %v16976_v44, 2 }
 0x32f   : > { %v5062_v23 = vrot.slane %v13625_v20, 5  ;;  %v17018_v63 = vpack.c.bf16 %v14056_v22, %v14051_v61  ;;  %v8745_v8 = vpack.c.bf16 %v14372_v62, %v14367_v11  ;;  %v5001_v31 = vsel %vm2119_vm4, %v5000_v0, 0.0 }
 0x330   : > { %v5008_v17 = vrot.slane %v13620_v55, 2  ;;  %v5065_v41 = vrot.slane %v13683_v53, 3  ;;  %v5003_v13 = vsel %vm4906_vm10, %v5002_v30, %v5001_v31  ;;  %v5010_v4 = vrot.slane %v13713_v3, 5 }
 0x331   : > { %8730 = vmatpush3.bf16.msra.mxu1 %v17018_v63  ;;  %v5061_v20 = vsel %vm2119_vm4, %v5060_v47, 0.0  ;;  %v5067_v57 = vrot.slane %v13687_v16, 6  ;;  %v5005_v61 = vsel %vm4909_vm11, %v5004_v45, %v5003_v13  ;;  %v5371_v32 = vrot.slane %v14111_v28, 3  ;;  %v14405_v55 = vpop.eup %9504  ;;  %v14431_v47 = vld [vmem:[%s15625_s2 + $0x480] sm:$0xff] }
 0x332   : > { %8732 = vmatprep.subr.bf16.mxu1 %v8731_v18  ;;  %v5063_v22 = vsel %vm4906_vm10, %v5062_v23, %v5061_v20  ;;  %v5373_v39 = vrot.slane %v13897_v14, 6  ;;  %v5007_v53 = vsel %vm4912_vm12, %v5006_v60, %v5005_v61  ;;  %v5375_v33 = vrot.slane %v14122_v52, 1  ;;  %v14412_v56 = vpop.eup %9506 }
 0x333   : > { %v5064_v25 = vsel %vm4909_vm11, %v13652_v43, %v5063_v22  ;;  %v5377_v18 = vrot.slane %v13912_v49, 4  ;;  %v5009_v46 = vsel %vm2120_vm5, %v5008_v17, %v5007_v53  ;;  %v5372_v0 = vsel %vm2119_vm4, %v5371_v32, 0.0  ;;  %v14418_v19 = vpop.eup %9508 }
 0x334   : > { %v5066_v21 = vsel %vm4912_vm12, %v5065_v41, %v5064_v25  ;;  %v5379_v34 = vrot.slane %v14138_v26, 7  ;;  %v5374_v35 = vsel %vm4906_vm10, %v5373_v39, %v5372_v0  ;;  %v5381_v45 = vrot.slane %v13933_v9, 2  ;;  %v14426_v60 = vpop.eup %9510  ;;  %v14471_v25 = vld [vmem:[%s15625_s2 + $0x490] sm:$0xff]  ;;  %v14489_v0 = vld [vmem:[%s15625_s2 + $0x418] sm:$0xff] }
 0x335   : > { %8734 = vmatpush3.bf16.msra.mxu1 %v8733_v5  ;;  %v14421_v30 = vsel %vm2120_vm5, %v5067_v57, %v5066_v21  ;;  %v5356_v5 = vrot.slane %v14111_v28, 2  ;;  %v5376_v23 = vsel %vm4909_vm11, %v5375_v33, %v5374_v35  ;;  %v5383_v63 = vrot.slane %v14157_v1, 5  ;;  %v14476_v33 = vld [vmem:[%s15625_s2 + $0x498] sm:$0xff] }
 0x336   : > { %8736 = vmatprep.subr.bf16.mxu1 %v8735_v59  ;;  %v14436_v59 = vld [vmem:[%s15625_s2 + $0x488] sm:$0xff]  ;;  %v5358_v31 = vrot.slane %v13897_v14, 5  ;;  %v5361_v17 = vrot.slane %v13912_v49, 3  ;;  %v5011_v41 = vsel %vm4917_vm13, %v5010_v4, %v5009_v46  ;;  %v5378_v13 = vsel %vm4912_vm12, %v5377_v18, %v5376_v23  ;;  %v14455_v14 = vld [vmem:[%s15625_s2 + $0x400] sm:$0xff] }
 0x337   : > { %v5357_v20 = vsel %vm2119_vm4, %v5356_v5, 0.0  ;;  %v5363_v57 = vrot.slane %v14138_v26, 6  ;;  %v5013_v61 = vrot.slane %v13850_v42, 3  ;;  %v5380_v22 = vsel %vm2120_vm5, %v5379_v34, %v5378_v13  ;;  %v14494_v34 = vld [vmem:[%s15625_s2 + $0x4a0] sm:$0xff]  ;;  %v14539_v13 = vld [vmem:[%s15625_s2 + $0x4b8] sm:$0xff] }
 0x338   : > { %v5359_v32 = vsel %vm4906_vm10, %v5358_v31, %v5357_v20  ;;  %v5365_v39 = vrot.slane %v13933_v9, 1  ;;  %v8747_v49 = vpack.c.bf16 %v14436_v59, %v14431_v47  ;;  %v5382_v4 = vsel %vm4917_vm13, %v5381_v45, %v5380_v22  ;;  %v14544_v20 = vld [vmem:[%s15625_s2 + $0x430] sm:$0xff]  ;;  %v14559_v22 = vld [vmem:[%s15625_s2 + $0x4c0] sm:$0xff] }
 0x339   : > { %8738 = vmatpush3.bf16.msra.mxu1 %v8737_v24  ;;  %v14460_v24 = vld [vmem:[%s15625_s2 + $0x408] sm:$0xff]  ;;  %v5360_v53 = vsel %vm4909_vm11, %v14122_v52, %v5359_v32  ;;  %v5367_v9 = vrot.slane %v14157_v1, 4  ;;  %v5384_v18 = vsel %vm4920_vm14, %v5383_v63, %v5382_v4  ;;  %v5369_v21 = vrot.slane %v13953_v58, 7  ;;  %v14517_v63 = vld [vmem:[%s15625_s2 + $0x420] sm:$0xff] }
 0x33a   : > { %8740 = vmatprep.subr.bf16.mxu1 %v8739_v6  ;;  %v5012_v6 = vsel %vm4920_vm14, %v13647_v40, %v5011_v41  ;;  %v5362_v46 = vsel %vm4912_vm12, %v5361_v17, %v5360_v53  ;;  %v14484_v40 = vld [vmem:[%s15625_s2 + $0x410] sm:$0xff]  ;;  %v14498_v35 = vsel %vm4923_vm15, %v13953_v58, %v5384_v18  ;;  %v5105_v5 = vrot.slane %v16976_v44, 5  ;;  %v14512_v58 = vld [vmem:[%s15625_s2 + $0x4a8] sm:$0xff] }
 0x33b   : > { %v5364_v45 = vsel %vm2120_vm5, %v5363_v57, %v5362_v46  ;;  %v5108_v47 = vrot.slane %v13652_v43, 3  ;;  %v5014_v59 = vsel %vm4923_vm15, %v5013_v61, %v5012_v6  ;;  %v8749_v23 = vpack.c.bf16 %v14460_v24, %v14455_v14  ;;  %v14534_v41 = vld [vmem:[%s15625_s2 + $0x4b0] sm:$0xff]  ;;  %v14554_v61 = vld [vmem:[%s15625_s2 + $0x438] sm:$0xff]  ;;  %v14564_v32 = vld [vmem:[%s15625_s2 + $0x4c8] sm:$0xff] }
 0x33c   : > { %v5366_v27 = vsel %vm4917_vm13, %v5365_v39, %v5364_v45  ;;  %v8751_v17 = vpack.c.bf16 %v14476_v33, %v14471_v25  ;;  %v5106_v36 = vsel %vm2119_vm4, %v5105_v5, 0.0  ;;  %v8753_v57 = vpack.c.bf16 %v14489_v0, %v14484_v40  ;;  %v17020_v14 = vld [vmem:[#allocation233_spill] sm:$0xff] }
 0x33d   : > { %8742 = vmatpush3.bf16.msra.mxu1 %v8741_v50  ;;  %v17019_v50 = vld [vmem:[#allocation222_spill] sm:$0xff]  ;;  %v5368_v10 = vsel %vm4920_vm14, %v5367_v9, %v5366_v27  ;;  %v5107_v24 = vsel %vm4906_vm10, %v17020_v14, %v5106_v36  ;;  %v5114_v4 = vrot.slane %v13810_v2, 4  ;;  %v5056_v53 = vrot.slane %v14221_v51, 3 }
 0x33e   : > { %v5110_v31 = vrot.slane %v17019_v50, 6  ;;  %8744 = vmatprep.subr.bf16.mxu1 %v8743_v15  ;;  %v5112_v15 = vrot.slane %v13687_v16, 1  ;;  %v14567_v39 = vsel %vm4923_vm15, %v5369_v21, %v5368_v10  ;;  %v5058_v9 = vrot.slane %v13850_v42, 6 }
 0x33f   : > { %v5109_v6 = vsel %vm4909_vm11, %v5108_v47, %v5107_v24  ;;  %v5116_v25 = vrot.slane %v14221_v51, 7  ;;  %v8755_v33 = vpack.c.bf16 %v14512_v58, %v14494_v34  ;;  %v8757_v18 = vpack.c.bf16 %v14522_v29, %v14517_v63  ;;  %v17021_v29 = vld [vmem:[#allocation224_spill] sm:$0xff] }
 0x340   : > { %v5111_v46 = vsel %vm4912_vm12, %v5110_v31, %v5109_v6  ;;  %v5118_v21 = vrot.slane %v14233_v7, 2  ;;  %v8759_v40 = vpack.c.bf16 %v14539_v13, %v14534_v41  ;;  %v8761_v0 = vpack.c.bf16 %v14554_v61, %v14544_v20  ;;  %v17022_v6 = vld [vmem:[#allocation135_spill] sm:$0xff] }
 0x341   : > { %8746 = vmatpush3.bf16.msra.mxu1 %v8745_v8  ;;  %v8763_v11 = vpack.c.bf16 %v14564_v32, %v14559_v22  ;;  %v5113_v62 = vsel %vm2120_vm5, %v5112_v15, %v5111_v46  ;;  %v5055_v8 = vsel %vm4917_vm13, %v13713_v3, %v14173_v48  ;;  %v5090_v45 = vrot.slane %v16976_v44, 4 }
 0x342   : > { %8748 = vmatprep.subr.bf16.mxu1 %v8747_v49  ;;  %v5115_v34 = vsel %vm4917_vm13, %v5114_v4, %v5113_v62  ;;  %v5092_v49 = vrot.slane %v17020_v14, 7  ;;  %v5057_v5 = vsel %vm4920_vm14, %v5056_v53, %v5055_v8  ;;  %v5094_v58 = vrot.slane %v13652_v43, 2 }
 0x343   : > { %v5117_v47 = vsel %vm4920_vm14, %v5116_v25, %v5115_v34  ;;  %v5096_v63 = vrot.slane %v17019_v50, 5  ;;  %v5059_v48 = vsel %vm4923_vm15, %v5058_v9, %v5057_v5  ;;  %v5091_v31 = vsel %vm2119_vm4, %v5090_v45, 0.0 }
 0x344   : > { %6118 = vmatmul.mubr.f32.vlgmr.msra.gmra.mrb[52].mxu1 %v5014_v59  ;;  %v14605_v27 = vsel %vm4923_vm15, %v5118_v21, %v5117_v47  ;;  %v5099_v59 = vrot.slane %v13810_v2, 3  ;;  %v5093_v10 = vsel %vm4906_vm10, %v5092_v49, %v5091_v31  ;;  %v5101_v36 = vrot.slane %v14221_v51, 6  ;;  %v14631_v49 = vld [vmem:[%s15625_s2 + $0x440] sm:$0xff] }
 0x345   : > { %6122 = vmatprep.mubr.f32.mxu1 %v17021_v29  ;;  %8750 = vmatpush3.bf16.msra.mxu1 %v8749_v23  ;;  %v5401_v15 = vrot.slane %v14111_v28, 5  ;;  %v5404_v24 = vrot.slane %v14122_v52, 3  ;;  %v5095_v23 = vsel %vm4909_vm11, %v5094_v58, %v5093_v10  ;;  %v5103_v4 = vrot.slane %v14233_v7, 1  ;;  %v14650_v29 = vld [vmem:[%s15625_s2 + $0x4d8] sm:$0xff] }
 0x346   : > { %8752 = vmatprep.subr.bf16.mxu1 %v8751_v17  ;;  %v5406_v53 = vrot.slane %v14412_v56, 6  ;;  %v5408_v9 = vrot.slane %v14138_v26, 1  ;;  %v5097_v17 = vsel %vm4912_vm12, %v5096_v63, %v5095_v23  ;;  %v5410_v46 = vrot.slane %v14418_v19, 4 }
 0x347   : > { %v5402_v25 = vsel %vm2119_vm4, %v5401_v15, 0.0  ;;  %v5412_v21 = vrot.slane %v14157_v1, 7  ;;  %v5098_v62 = vsel %vm2120_vm5, %v13687_v16, %v5097_v17  ;;  %v5414_v34 = vrot.slane %v14426_v60, 2  ;;  %v14659_v15 = vld [vmem:[%s15625_s2 + $0x450] sm:$0xff]  ;;  %v14672_v17 = vld [vmem:[%s15625_s2 + $0x458] sm:$0xff] }
 0x348   : > { %6123 = vmatmul.mubr.f32.gmra.mrb[54].mxu1 %v17022_v6  ;;  %v5403_v8 = vsel %vm4906_vm10, %v14405_v55, %v5402_v25  ;;  %v5386_v45 = vrot.slane %v14111_v28, 4  ;;  %v5100_v5 = vsel %vm4917_vm13, %v5099_v59, %v5098_v62  ;;  %v5388_v58 = vrot.slane %v14405_v55, 7 }
 0x349   : > { %8754 = vmatpush3.bf16.msra.mxu1 %v8753_v57  ;;  %6192 = vmatprep.mubr.f32.mxu1 %v5059_v48  ;;  %v14636_v57 = vld [vmem:[%s15625_s2 + $0x448] sm:$0xff]  ;;  %v5405_v47 = vsel %vm4909_vm11, %v5404_v24, %v5403_v8  ;;  %v5390_v63 = vrot.slane %v14122_v52, 2  ;;  %v5102_v48 = vsel %vm4920_vm14, %v5101_v36, %v5100_v5  ;;  %v5392_v10 = vrot.slane %v14412_v56, 5 }
 0x34a   : > { %8756 = vmatprep.subr.bf16.mxu1 %v8755_v33  ;;  %v14645_v33 = vld [vmem:[%s15625_s2 + $0x4d0] sm:$0xff]  ;;  %v5407_v31 = vsel %vm4912_vm12, %v5406_v53, %v5405_v47  ;;  %v5387_v59 = vsel %vm2119_vm4, %v5386_v45, 0.0  ;;  %v14662_v24 = vsel %vm4923_vm15, %v5103_v4, %v5102_v48  ;;  %v5395_v36 = vrot.slane %v14418_v19, 3  ;;  %v14677_v4 = vld [vmem:[%s15625_s2 + $0x4e0] sm:$0xff] }
 0x34b   : > { %v5409_v23 = vsel %vm2120_vm5, %v5408_v9, %v5407_v31  ;;  %v5389_v6 = vsel %vm4906_vm10, %v5388_v58, %v5387_v59  ;;  %v8765_v53 = vpack.c.bf16 %v14636_v57, %v14631_v49  ;;  %v14682_v9 = vld [vmem:[%s15625_s2 + $0x4e8] sm:$0xff]  ;;  %v5397_v62 = vrot.slane %v14157_v1, 6  ;;  %v14734_v48 = vld [vmem:[%s15625_s2 + $0x470] sm:$0xff]  ;;  %v14739_v31 = vld [vmem:[%s15625_s2 + $0x478] sm:$0xff] }
 0x34c   : > { %v5391_v25 = vsel %vm4909_vm11, %v5390_v63, %v5389_v6  ;;  %v8767_v8 = vpack.c.bf16 %v14650_v29, %v14645_v33  ;;  %v5399_v57 = vrot.slane %v14426_v60, 1  ;;  %v5135_v13 = vrot.slane %v16976_v44, 7  ;;  %v14714_v58 = vld [vmem:[%s15625_s2 + $0x468] sm:$0xff]  ;;  %v14724_v63 = vld [vmem:[%s15625_s2 + $0x4f8] sm:$0xff]  ;;  %v14762_v6 = vld [vmem:[%s15625_s2 + $0x500] sm:$0xff] }
 0x34d   : > { %8758 = vmatpush3.bf16.msra.mxu1 %v8757_v18  ;;  %v5411_v18 = vsel %vm4917_vm13, %v5410_v46, %v5409_v23  ;;  %v5393_v49 = vsel %vm4912_vm12, %v5392_v10, %v5391_v25  ;;  %v14698_v46 = vld [vmem:[%s15625_s2 + $0x460] sm:$0xff]  ;;  %v8771_v47 = vpack.c.bf16 %v14682_v9, %v14677_v4  ;;  %v5139_v29 = vrot.slane %v13652_v43, 5  ;;  %v14757_v23 = vld [vmem:[%s15625_s2 + $0x588] sm:$0xff] }
 0x34e   : > { %8760 = vmatprep.subr.bf16.mxu1 %v8759_v40  ;;  %v5413_v45 = vsel %vm4920_vm14, %v5412_v21, %v5411_v18  ;;  %v5394_v41 = vsel %vm2120_vm5, %v14138_v26, %v5393_v49  ;;  %v5137_v40 = vrot.slane %v17020_v14, 2  ;;  %v8769_v21 = vpack.c.bf16 %v14672_v17, %v14659_v15  ;;  %v14745_v10 = vld [vmem:[%s15625_s2 + $0x580] sm:$0xff] }
 0x34f   : > { %v14701_v5 = vsel %vm4923_vm15, %v5414_v34, %v5413_v45  ;;  %v14719_v34 = vld [vmem:[%s15625_s2 + $0x4f0] sm:$0xff]  ;;  %v5396_v33 = vsel %vm4917_vm13, %v5395_v36, %v5394_v41  ;;  %v5039_v59 = vrot.slane %v13713_v3, 7  ;;  %v5136_v61 = vsel %vm2119_vm4, %v5135_v13, 0.0  ;;  %v14767_v36 = vld [vmem:[%s15625_s2 + $0x508] sm:$0xff] }
 0x350   : > { %v5398_v20 = vsel %vm4920_vm14, %v5397_v62, %v5396_v33  ;;  %v5041_v15 = vrot.slane %v14221_v51, 2  ;;  %v5138_v32 = vsel %vm4906_vm10, %v5137_v40, %v5136_v61  ;;  %v8773_v17 = vpack.c.bf16 %v14714_v58, %v14698_v46  ;;  %v14795_v13 = vld [vmem:[%s15625_s2 + $0x590] sm:$0xff]  ;;  %v14800_v40 = vld [vmem:[%s15625_s2 + $0x598] sm:$0xff] }
 0x351   : > { %8762 = vmatpush3.bf16.msra.mxu1 %v8761_v0  ;;  %v5142_v0 = vrot.slane %v13687_v16, 3  ;;  %v14770_v22 = vsel %vm4923_vm15, %v5399_v57, %v5398_v20  ;;  %v5043_v4 = vrot.slane %v13850_v42, 5  ;;  %v5140_v9 = vsel %vm4909_vm11, %v5139_v29, %v5138_v32 }
 0x352   : > { %8764 = vmatprep.subr.bf16.mxu1 %v8763_v11  ;;  %v5144_v11 = vrot.slane %v13810_v2, 6  ;;  %v5146_v18 = vrot.slane %v14221_v51, 1  ;;  %v8775_v25 = vpack.c.bf16 %v14724_v63, %v14719_v34  ;;  %v8777_v62 = vpack.c.bf16 %v14739_v31, %v14734_v48 }
 0x353   : > { %v5141_v45 = vsel %vm4912_vm12, %v17019_v50, %v5140_v9  ;;  %v5148_v49 = vrot.slane %v14233_v7, 4  ;;  %v5040_v57 = vsel %vm4917_vm13, %v5039_v59, %v14225_v38  ;;  %v8779_v46 = vpack.c.bf16 %v14757_v23, %v14745_v10 }
 0x354   : > { %v8781_v41 = vpack.c.bf16 %v14767_v36, %v14762_v6  ;;  %v5042_v38 = vsel %vm4920_vm14, %v5041_v15, %v5040_v57  ;;  %v5120_v34 = vrot.slane %v16976_v44, 6  ;;  %v5122_v63 = vrot.slane %v17020_v14, 1 }
 0x355   : > { %8766 = vmatpush3.bf16.msra.mxu1 %v8765_v53  ;;  %v5143_v53 = vsel %vm2120_vm5, %v5142_v0, %v5141_v45  ;;  %v5044_v33 = vsel %vm4923_vm15, %v5043_v4, %v5042_v38  ;;  %v5124_v48 = vrot.slane %v13652_v43, 4  ;;  %v5126_v31 = vrot.slane %v17019_v50, 7 }
 0x356   : > { %8768 = vmatprep.subr.bf16.mxu1 %v8767_v8  ;;  %v5145_v58 = vsel %vm4917_vm13, %v5144_v11, %v5143_v53  ;;  %v8783_v59 = vpack.c.bf16 %v14800_v40, %v14795_v13  ;;  %v5121_v10 = vsel %vm2119_vm4, %v5120_v34, 0.0  ;;  %v5128_v44 = vrot.slane %v13687_v16, 2 }
 0x357   : > { %v5147_v29 = vsel %vm4920_vm14, %v5146_v18, %v5145_v58  ;;  %v5123_v20 = vsel %vm4906_vm10, %v5122_v63, %v5121_v10  ;;  %v5130_v61 = vrot.slane %v13810_v2, 5  ;;  %v5431_v0 = vrot.slane %v14111_v28, 7  ;;  %v5665_v10 = vld [vmem:[%s15625_s2 + $0x518] sm:$0xff] }
 0x358   : > { %v14814_v8 = vsel %vm4923_vm15, %v5148_v49, %v5147_v29  ;;  %v5433_v43 = vrot.slane %v14405_v55, 2  ;;  %v5125_v15 = vsel %vm4909_vm11, %v5124_v48, %v5123_v20  ;;  %v5133_v23 = vrot.slane %v14233_v7, 3 }
 0x359   : > { %8770 = vmatpush3.bf16.msra.mxu1 %v8769_v21  ;;  %v5435_v32 = vrot.slane %v14122_v52, 5  ;;  %v5438_v11 = vrot.slane %v14138_v26, 3  ;;  %v5127_v16 = vsel %vm4912_vm12, %v5126_v31, %v5125_v15  ;;  %v5432_v21 = vsel %vm2119_vm4, %v5431_v0, 0.0 }
 0x35a   : > { %8772 = vmatprep.subr.bf16.mxu1 %v8771_v47  ;;  %v5440_v4 = vrot.slane %v14418_v19, 6  ;;  %v5442_v9 = vrot.slane %v14157_v1, 1  ;;  %v5129_v18 = vsel %vm2120_vm5, %v5128_v44, %v5127_v16  ;;  %v5434_v47 = vsel %vm4906_vm10, %v5433_v43, %v5432_v21  ;;  %v17023_v16 = vld [vmem:[#allocation88_spill] sm:$0xff] }
 0x35b   : > { %v5444_v45 = vrot.slane %v14426_v60, 4  ;;  %v5416_v49 = vrot.slane %v14111_v28, 6  ;;  %v5131_v57 = vsel %vm4917_vm13, %v5130_v61, %v5129_v18  ;;  %v5436_v53 = vsel %vm4909_vm11, %v5435_v32, %v5434_v47  ;;  %v17024_v47 = vld [vmem:[#allocation232_spill] sm:$0xff] }
 0x35c   : > { %v5418_v38 = vrot.slane %v14405_v55, 1  ;;  %v5420_v58 = vrot.slane %v14122_v52, 4  ;;  %v5132_v34 = vsel %vm4920_vm14, %v14221_v51, %v5131_v57  ;;  %v5437_v63 = vsel %vm4912_vm12, %v14412_v56, %v5436_v53  ;;  %v5666_v53 = vld [vmem:[%s15625_s2 + $0x520] sm:$0xff] }
 0x35d   : > { %8774 = vmatpush3.bf16.msra.mxu1 %v8773_v17  ;;  %v5417_v29 = vsel %vm2119_vm4, %v5416_v49, 0.0  ;;  %v5422_v28 = vrot.slane %v14412_v56, 7  ;;  %v14845_v17 = vsel %vm4923_vm15, %v5133_v23, %v5132_v34  ;;  %v5439_v48 = vsel %vm2120_vm5, %v5438_v11, %v5437_v63  ;;  %v17025_v63 = vld [vmem:[#allocation219_spill] sm:$0xff] }
 0x35e   : > { %8776 = vmatprep.subr.bf16.mxu1 %v8775_v25  ;;  %v5419_v31 = vsel %vm4906_vm10, %v5418_v38, %v5417_v29  ;;  %v5424_v52 = vrot.slane %v14138_v26, 2  ;;  %v5664_v25 = vld [vmem:[%s15625_s2 + $0x510] sm:$0xff]  ;;  %v5085_v44 = vrot.slane %v13713_v3, 2  ;;  %v5441_v20 = vsel %vm4917_vm13, %v5440_v4, %v5439_v48  ;;  %v5667_v38 = vld [vmem:[%s15625_s2 + $0x528] sm:$0xff]  ;;  %v5669_v48 = vld [vmem:[%s15625_s2 + $0x538] sm:$0xff] }
 0x35f   : > { %v5421_v61 = vsel %vm4909_vm11, %v5420_v58, %v5419_v31  ;;  %v5426_v0 = vrot.slane %v14418_v19, 5  ;;  %v5087_v43 = vrot.slane %v14221_v51, 5  ;;  %v5443_v26 = vsel %vm4920_vm14, %v5442_v9, %v5441_v20  ;;  %v5683_v9 = vld [vmem:[%s15625_s2 + $0x5a8] sm:$0xff]  ;;  %v5684_v58 = vld [vmem:[%s15625_s2 + $0x5b0] sm:$0xff] }
 0x360   : > { %v5423_v15 = vsel %vm4912_vm12, %v5422_v28, %v5421_v61  ;;  %v5429_v23 = vrot.slane %v14426_v60, 3  ;;  %v14865_v32 = vsel %vm4923_vm15, %v5444_v45, %v5443_v26  ;;  %v5165_v21 = vrot.slane %v17023_v16, 1  ;;  %v5685_v28 = vld [vmem:[%s15625_s2 + $0x5b8] sm:$0xff]  ;;  %v5687_v31 = vld [vmem:[%s15625_s2 + $0x5c8] sm:$0xff] }
 0x361   : > { %8778 = vmatpush3.bf16.msra.mxu1 %v8777_v62  ;;  %v5425_v11 = vsel %vm2120_vm5, %v5424_v52, %v5423_v15  ;;  %v5167_v4 = vrot.slane %v17020_v14, 4  ;;  %v8785_v18 = vpack.c.bf16 %v5665_v10, %v5664_v25  ;;  %v5682_v62 = vld [vmem:[%s15625_s2 + $0x5a0] sm:$0xff]  ;;  %v5169_v45 = vrot.slane %v17024_v47, 7  ;;  %v17026_v25 = vld [vmem:[#allocation94_spill] sm:$0xff] }
 0x362   : > { %8780 = vmatprep.subr.bf16.mxu1 %v8779_v46  ;;  %v5427_v46 = vsel %vm4917_vm13, %v5426_v0, %v5425_v11  ;;  %v5171_v49 = vrot.slane %v17019_v50, 2  ;;  %v5086_v57 = vsel %vm4917_vm13, %v5085_v44, %v14382_v54  ;;  %v5173_v29 = vrot.slane %v17025_v63, 5  ;;  %v14931_v0 = vld [vmem:[%s15625_s2 + $0x540] sm:$0xff] }
 0x363   : > { %v5428_v34 = vsel %vm4920_vm14, %v14157_v1, %v5427_v46  ;;  %v5088_v54 = vsel %vm4920_vm14, %v5087_v43, %v5086_v57  ;;  %v5668_v1 = vld [vmem:[%s15625_s2 + $0x530] sm:$0xff]  ;;  %v8787_v36 = vpack.c.bf16 %v5683_v9, %v5682_v62  ;;  %v5176_v10 = vrot.slane %v17026_v25, 3  ;;  %v14936_v43 = vld [vmem:[%s15625_s2 + $0x548] sm:$0xff] }
 0x364   : > { %6193 = vmatmul.mubr.f32.vlgmr.msra.gmra.mrb[56].mxu1 %v5044_v33  ;;  %v5166_v33 = vsel %vm2119_vm4, %v5165_v21, 0.0  ;;  %v8789_v44 = vpack.c.bf16 %v5667_v38, %v5666_v53  ;;  %v5178_v61 = vrot.slane %v14233_v7, 6  ;;  %v5089_v13 = vsel %vm4923_vm15, %v13850_v42, %v5088_v54  ;;  %v5688_v46 = vld [vmem:[%s15625_s2 + $0x5d0] sm:$0xff] }
 0x365   : > { %6197 = vmatprep.mubr.f32.mxu1 %v14276_v37  ;;  %8782 = vmatpush3.bf16.msra.mxu1 %v8781_v41  ;;  %v14909_v37 = vsel %vm4923_vm15, %v5429_v23, %v5428_v34  ;;  %v5168_v6 = vsel %vm4906_vm10, %v5167_v4, %v5166_v33  ;;  %v5686_v41 = vld [vmem:[%s15625_s2 + $0x5c0] sm:$0xff]  ;;  %v8791_v40 = vpack.c.bf16 %v5685_v28, %v5684_v58  ;;  %v5150_v23 = vsel %vm2119_vm4, %v17023_v16, 0.0  ;;  %v17027_v33 = vld [vmem:[#allocation127_spill] sm:$0xff] }
 0x366   : > { %8784 = vmatprep.subr.bf16.mxu1 %v8783_v59  ;;  %v5170_v52 = vsel %vm4909_vm11, %v5169_v45, %v5168_v6  ;;  %v8793_v59 = vpack.c.bf16 %v5669_v48, %v5668_v1  ;;  %v5151_v11 = vrot.slane %v17020_v14, 3  ;;  %v5153_v4 = vrot.slane %v17024_v47, 6  ;;  %v5689_v45 = vld [vmem:[%s15625_s2 + $0x5d8] sm:$0xff]  ;;  %v17028_v1 = vld [vmem:[#allocation103_spill] sm:$0xff] }
 0x367   : > { %v5172_v20 = vsel %vm4912_vm12, %v5171_v49, %v5170_v52  ;;  %v5155_v62 = vrot.slane %v17019_v50, 1  ;;  %v5157_v9 = vrot.slane %v17025_v63, 4  ;;  %v5159_v53 = vrot.slane %v13810_v2, 7  ;;  %v17029_v52 = vld [vmem:[#allocation98_spill] sm:$0xff] }
 0x368   : > { %6198 = vmatmul.mubr.f32.gmra.mrb[58].mxu1 %v14337_v12  ;;  %v5174_v26 = vsel %vm2120_vm5, %v5173_v29, %v5172_v20  ;;  %v8795_v12 = vpack.c.bf16 %v5687_v31, %v5686_v41  ;;  %v5152_v57 = vsel %vm4906_vm10, %v5151_v11, %v5150_v23  ;;  %v5161_v58 = vrot.slane %v17026_v25, 2 }
 0x369   : > { %8786 = vmatpush3.bf16.msra.mxu1 %v8785_v18  ;;  %6267 = vmatprep.mubr.f32.mxu1 %v5089_v13  ;;  %v5175_v15 = vsel %vm4917_vm13, %v13810_v2, %v5174_v26  ;;  %v8797_v18 = vpack.c.bf16 %v14936_v43, %v14931_v0  ;;  %v5154_v38 = vsel %vm4909_vm11, %v5153_v4, %v5152_v57  ;;  %v5163_v34 = vrot.slane %v14233_v7, 5  ;;  %v5672_v43 = vld [vmem:[%s15625_s2 + $0x550] sm:$0xff]  ;;  %v5691_v4 = vld [vmem:[%s15625_s2 + $0x5e8] sm:$0xff] }
 0x36a   : > { %8788 = vmatprep.subr.bf16.mxu1 %v8787_v36  ;;  %v5177_v21 = vsel %vm4920_vm14, %v5176_v10, %v5175_v15  ;;  %v5461_v29 = vrot.slane %v17027_v33, 1  ;;  %v5156_v54 = vsel %vm4912_vm12, %v5155_v62, %v5154_v38  ;;  %v5463_v28 = vrot.slane %v14405_v55, 4  ;;  %v5675_v57 = vld [vmem:[%s15625_s2 + $0x568] sm:$0xff] }
 0x36b   : > { %v14957_v49 = vsel %vm4923_vm15, %v5178_v61, %v5177_v21  ;;  %v5465_v48 = vrot.slane %v17028_v1, 7  ;;  %v5467_v6 = vrot.slane %v14412_v56, 2  ;;  %v8799_v36 = vpack.c.bf16 %v5689_v45, %v5688_v46  ;;  %v17030_v61 = vld [vmem:[#allocation106_spill] sm:$0xff]  ;;  %v5690_v21 = vld [vmem:[%s15625_s2 + $0x5e0] sm:$0xff] }
 0x36c   : > { %v5158_v41 = vsel %vm2120_vm5, %v5157_v9, %v5156_v54  ;;  %v5462_v31 = vsel %vm2119_vm4, %v5461_v29, 0.0  ;;  %v5469_v10 = vrot.slane %v17029_v52, 5  ;;  %v5472_v13 = vrot.slane %v17030_v61, 3  ;;  %v5693_v54 = vld [vmem:[%s15625_s2 + $0x5f8] sm:$0xff] }
 0x36d   : > { %8790 = vmatpush3.bf16.msra.mxu1 %v8789_v44  ;;  %v5160_v20 = vsel %vm4917_vm13, %v5159_v53, %v5158_v41  ;;  %v5464_v44 = vsel %vm4906_vm10, %v5463_v28, %v5462_v31  ;;  %v5474_v0 = vrot.slane %v14426_v60, 6  ;;  %v5446_v23 = vsel %vm2119_vm4, %v17027_v33, 0.0 }
 0x36e   : > { %8792 = vmatprep.subr.bf16.mxu1 %v8791_v40  ;;  %v5673_v40 = vld [vmem:[%s15625_s2 + $0x558] sm:$0xff]  ;;  %v5162_v26 = vsel %vm4920_vm14, %v5161_v58, %v5160_v20  ;;  %v5466_v15 = vsel %vm4909_vm11, %v5465_v48, %v5464_v44  ;;  %v5447_v11 = vrot.slane %v14405_v55, 3  ;;  %v5449_v46 = vrot.slane %v17028_v1, 6 }
 0x36f   : > { %v14994_v62 = vsel %vm4923_vm15, %v5163_v34, %v5162_v26  ;;  %v5468_v9 = vsel %vm4912_vm12, %v5467_v6, %v5466_v15  ;;  %v5451_v45 = vrot.slane %v14412_v56, 1  ;;  %v5453_v58 = vrot.slane %v17029_v52, 4 }
 0x370   : > { %v5470_v53 = vsel %vm2120_vm5, %v5469_v10, %v5468_v9  ;;  %v5448_v38 = vsel %vm4906_vm10, %v5447_v11, %v5446_v23  ;;  %v5455_v34 = vrot.slane %v14418_v19, 7  ;;  %v8801_v29 = vpack.c.bf16 %v5673_v40, %v5672_v43  ;;  %v5676_v43 = vld [vmem:[%s15625_s2 + $0x570] sm:$0xff]  ;;  %v5677_v40 = vld [vmem:[%s15625_s2 + $0x578] sm:$0xff] }
 0x371   : > { %8794 = vmatpush3.bf16.msra.mxu1 %v8793_v59  ;;  %v5674_v59 = vld [vmem:[%s15625_s2 + $0x560] sm:$0xff]  ;;  %v5471_v28 = vsel %vm4917_vm13, %v14418_v19, %v5470_v53  ;;  %v5450_v48 = vsel %vm4909_vm11, %v5449_v46, %v5448_v38  ;;  %v5457_v6 = vrot.slane %v17030_v61, 2  ;;  %v8803_v41 = vpack.c.bf16 %v5691_v4, %v5690_v21  ;;  %v5711_v46 = vld [vmem:[%s15625_s2 + $0x688] sm:$0xff] }
 0x372   : > { %8796 = vmatprep.subr.bf16.mxu1 %v8795_v12  ;;  %v5692_v12 = vld [vmem:[%s15625_s2 + $0x5f0] sm:$0xff]  ;;  %v5473_v31 = vsel %vm4920_vm14, %v5472_v13, %v5471_v28  ;;  %v5452_v10 = vsel %vm4912_vm12, %v5451_v45, %v5450_v48  ;;  %v5459_v20 = vrot.slane %v14426_v60, 5  ;;  %v8805_v44 = vpack.c.bf16 %v5675_v57, %v5674_v59  ;;  %v15053_v45 = vld [vmem:[%s15625_s2 + $0x608] sm:$0xff] }
 0x373   : > { %v15029_v26 = vsel %vm4923_vm15, %v5474_v0, %v5473_v31  ;;  %v5454_v15 = vsel %vm2120_vm5, %v5453_v58, %v5452_v10  ;;  %v5196_v13 = vrot.slane %v17020_v14, 6  ;;  %v8807_v23 = vpack.c.bf16 %v5693_v54, %v5692_v12 }
 0x374   : > { %v5456_v11 = vsel %vm4917_vm13, %v5455_v34, %v5454_v15  ;;  %v17031_v21 = vrot.slane %v17023_v16, 3  ;;  %v5199_v9 = vrot.slane %v17019_v50, 4  ;;  %v5069_v0 = vrot.slane %v13713_v3, 1 }
 0x375   : > { %8798 = vmatpush3.bf16.msra.mxu1 %v8797_v18  ;;  %v5710_v18 = vld [vmem:[%s15625_s2 + $0x680] sm:$0xff]  ;;  %v5458_v59 = vsel %vm4920_vm14, %v5457_v6, %v5456_v11  ;;  %v5202_v3 = vrot.slane %v13810_v2, 2  ;;  %v8809_v53 = vpack.c.bf16 %v5677_v40, %v5676_v43  ;;  %v5071_v38 = vrot.slane %v14221_v51, 4 }
 0x376   : > { %8800 = vmatprep.subr.bf16.mxu1 %v8799_v36  ;;  %v5195_v4 = vsel %vm2119_vm4, %v17031_v21, 0.0  ;;  %v15048_v36 = vld [vmem:[%s15625_s2 + $0x600] sm:$0xff]  ;;  %v15060_v58 = vsel %vm4923_vm15, %v5459_v20, %v5458_v59  ;;  %v17032_v34 = vrot.slane %v17024_v47, 1  ;;  %v5073_v54 = vrot.slane %v13850_v42, 7 }
 0x377   : > { %v5197_v57 = vsel %vm4906_vm10, %v5196_v13, %v5195_v4  ;;  %v5180_v48 = vrot.slane %v17023_v16, 2  ;;  %v5182_v6 = vrot.slane %v17020_v14, 5  ;;  %v8811_v31 = vpack.c.bf16 %v5711_v46, %v5710_v18 }
 0x378   : > { %v5198_v12 = vsel %vm4909_vm11, %v17032_v34, %v5197_v57  ;;  %v8813_v51 = vpack.c.bf16 %v15053_v45, %v15048_v36  ;;  %v17033_v10 = vrot.slane %v17025_v63, 7  ;;  %v5185_v43 = vrot.slane %v17019_v50, 3 }
 0x379   : > { %8802 = vmatpush3.bf16.msra.mxu1 %v8801_v29  ;;  %v5200_v28 = vsel %vm4912_vm12, %v5199_v9, %v5198_v12  ;;  %v5070_v42 = vsel %vm4917_vm13, %v5069_v0, %v14421_v30  ;;  %v5181_v16 = vsel %vm2119_vm4, %v5180_v48, 0.0  ;;  %v5187_v14 = vrot.slane %v17025_v63, 6  ;;  %v5712_v9 = vld [vmem:[%s15625_s2 + $0x690] sm:$0xff]  ;;  %v5697_v48 = vld [vmem:[%s15625_s2 + $0x618] sm:$0xff] }
 0x37a   : > { %8804 = vmatprep.subr.bf16.mxu1 %v8803_v41  ;;  %v5201_v20 = vsel %vm2120_vm5, %v17033_v10, %v5200_v28  ;;  %v17034_v41 = vrot.slane %v17026_v25, 5  ;;  %v5183_v15 = vsel %vm4906_vm10, %v5182_v6, %v5181_v16  ;;  %v5189_v13 = vrot.slane %v13810_v2, 1  ;;  %v5715_v10 = vld [vmem:[%s15625_s2 + $0x6a8] sm:$0xff] }
 0x37b   : > { %v5203_v29 = vsel %vm4917_vm13, %v5202_v3, %v5201_v20  ;;  %v5191_v18 = vrot.slane %v17026_v25, 4  ;;  %v5184_v50 = vsel %vm4909_vm11, %v17024_v47, %v5183_v15  ;;  %v5193_v63 = vrot.slane %v14233_v7, 7 }
 0x37c   : > { %v5204_v40 = vsel %vm4920_vm14, %v17034_v41, %v5203_v29  ;;  %v5492_v11 = vrot.slane %v14405_v55, 6  ;;  %v5186_v21 = vsel %vm4912_vm12, %v5185_v43, %v5184_v50  ;;  %v17035_v4 = vrot.slane %v17027_v33, 3 }
 0x37d   : > { %8806 = vmatpush3.bf16.msra.mxu1 %v8805_v44  ;;  %v15088_v30 = vsel %vm4923_vm15, %v14233_v7, %v5204_v40  ;;  %v5495_v25 = vrot.slane %v14412_v56, 4  ;;  %v5476_v44 = vrot.slane %v17027_v33, 2  ;;  %v5713_v7 = vld [vmem:[%s15625_s2 + $0x698] sm:$0xff]  ;;  %v5188_v47 = vsel %vm2120_vm5, %v5187_v14, %v5186_v21 }
 0x37e   : > { %8808 = vmatprep.subr.bf16.mxu1 %v8807_v23  ;;  %v5491_v2 = vsel %vm2119_vm4, %v17035_v4, 0.0  ;;  %v5498_v0 = vrot.slane %v14418_v19, 2  ;;  %v5478_v46 = vrot.slane %v14405_v55, 5  ;;  %v5072_v36 = vsel %vm4920_vm14, %v5071_v38, %v5070_v42  ;;  %v5696_v38 = vld [vmem:[%s15625_s2 + $0x610] sm:$0xff] }
 0x37f   : > { %v5493_v23 = vsel %vm4906_vm10, %v5492_v11, %v5491_v2  ;;  %v5190_v33 = vsel %vm4917_vm13, %v5189_v13, %v5188_v47  ;;  %v17036_v45 = vrot.slane %v17028_v1, 1  ;;  %v5481_v57 = vrot.slane %v14412_v56, 3  ;;  %v5700_v4 = vld [vmem:[%s15625_s2 + $0x630] sm:$0xff]  ;;  %v5701_v2 = vld [vmem:[%s15625_s2 + $0x638] sm:$0xff] }
 0x380   : > { %v5074_v3 = vsel %vm4923_vm15, %v5073_v54, %v5072_v36  ;;  %v5192_v34 = vsel %vm4920_vm14, %v5191_v18, %v5190_v33  ;;  %v5477_v28 = vsel %vm2119_vm4, %v5476_v44, 0.0  ;;  %v8815_v55 = vpack.c.bf16 %v5713_v7, %v5712_v9  ;;  %v5698_v18 = vld [vmem:[%s15625_s2 + $0x620] sm:$0xff]  ;;  %v5703_v7 = vld [vmem:[%s15625_s2 + $0x648] sm:$0xff]  ;;  %v5720_v47 = vld [vmem:[%s15625_s2 + $0x6d0] sm:$0xff] }
 0x381   : > { %v5494_v59 = vsel %vm4909_vm11, %v17036_v45, %v5493_v23  ;;  %8810 = vmatpush3.bf16.msra.mxu1 %v8809_v53  ;;  %v15127_v56 = vsel %vm4923_vm15, %v5193_v63, %v5192_v34  ;;  %v17037_v53 = vrot.slane %v17029_v52, 7  ;;  %v5479_v6 = vsel %vm4906_vm10, %v5478_v46, %v5477_v28  ;;  %v5702_v9 = vld [vmem:[%s15625_s2 + $0x640] sm:$0xff]  ;;  %v5721_v23 = vld [vmem:[%s15625_s2 + $0x6d8] sm:$0xff]  ;;  %v5704_v36 = vld [vmem:[%s15625_s2 + $0x650] sm:$0xff] }
 0x382   : > { %v5496_v12 = vsel %vm4912_vm12, %v5495_v25, %v5494_v59  ;;  %8812 = vmatprep.subr.bf16.mxu1 %v8811_v31  ;;  %v5714_v31 = vld [vmem:[%s15625_s2 + $0x6a0] sm:$0xff]  ;;  %v5480_v43 = vsel %vm4909_vm11, %v17028_v1, %v5479_v6  ;;  %v5483_v42 = vrot.slane %v17029_v52, 6  ;;  %v5485_v29 = vrot.slane %v14418_v19, 1  ;;  %v5719_v25 = vld [vmem:[%s15625_s2 + $0x6c8] sm:$0xff]  ;;  %v5705_v33 = vld [vmem:[%s15625_s2 + $0x658] sm:$0xff] }
 0x383   : > { %v5497_v54 = vsel %vm2120_vm5, %v17037_v53, %v5496_v12  ;;  %v17038_v16 = vrot.slane %v17030_v61, 5  ;;  %v5482_v41 = vsel %vm4912_vm12, %v5481_v57, %v5480_v43  ;;  %v5487_v40 = vrot.slane %v17030_v61, 4  ;;  %v5699_v61 = vld [vmem:[%s15625_s2 + $0x628] sm:$0xff]  ;;  %v5722_v45 = vld [vmem:[%s15625_s2 + $0x6e0] sm:$0xff]  ;;  %v5724_v28 = vld [vmem:[%s15625_s2 + $0x6f0] sm:$0xff] }
 0x384   : > { %v5499_v20 = vsel %vm4917_vm13, %v5498_v0, %v5497_v54  ;;  %6268 = vmatmul.mubr.f32.vlgmr.msra.gmra.mrb[60].mxu1 %v5074_v3  ;;  %v5489_v15 = vrot.slane %v14426_v60, 7  ;;  %v8817_v13 = vpack.c.bf16 %v5697_v48, %v5696_v38  ;;  %v5484_v19 = vsel %vm2120_vm5, %v5483_v42, %v5482_v41  ;;  %v5723_v59 = vld [vmem:[%s15625_s2 + $0x6e8] sm:$0xff]  ;;  %v5706_v34 = vld [vmem:[%s15625_s2 + $0x660] sm:$0xff]  ;;  %v5708_v53 = vld [vmem:[%s15625_s2 + $0x670] sm:$0xff] }
 0x385   : > { %v5500_v14 = vsel %vm4920_vm14, %v17038_v16, %v5499_v20  ;;  %6272 = vmatprep.mubr.f32.mxu1 %v14498_v35  ;;  %8814 = vmatpush3.bf16.msra.mxu1 %v8813_v51  ;;  %v8819_v52 = vpack.c.bf16 %v5715_v10, %v5714_v31  ;;  %v5486_v35 = vsel %vm4917_vm13, %v5485_v29, %v5484_v19  ;;  %v5716_v51 = vld [vmem:[%s15625_s2 + $0x6b0] sm:$0xff]  ;;  %v5707_v12 = vld [vmem:[%s15625_s2 + $0x668] sm:$0xff]  ;;  %v5709_v54 = vld [vmem:[%s15625_s2 + $0x678] sm:$0xff] }
 0x386   : > { %v15153_v1 = vsel %vm4923_vm15, %v14426_v60, %v5500_v14  ;;  %8816 = vmatprep.subr.bf16.mxu1 %v8815_v55  ;;  %v5717_v60 = vld [vmem:[%s15625_s2 + $0x6b8] sm:$0xff]  ;;  %v5488_v50 = vsel %vm4920_vm14, %v5487_v40, %v5486_v35  ;;  %v8821_v11 = vpack.c.bf16 %v5699_v61, %v5698_v18  ;;  %v8829_v0 = vpack.c.bf16 %v5703_v7, %v5702_v9  ;;  %v5742_v6 = vld [vmem:[%s15625_s2 + $0x780] sm:$0xff]  ;;  %v5743_v31 = vld [vmem:[%s15625_s2 + $0x788] sm:$0xff] }
 0x387   : > { %v15172_v63 = vsel %vm4923_vm15, %v5489_v15, %v5488_v50  ;;  %v8823_v21 = vpack.c.bf16 %v5717_v60, %v5716_v51  ;;  %v8831_v46 = vpack.c.bf16 %v5721_v23, %v5720_v47  ;;  %v8833_v57 = vpack.c.bf16 %v5705_v33, %v5704_v36  ;;  %v5725_v55 = vld [vmem:[%s15625_s2 + $0x6f8] sm:$0xff]  ;;  %v5726_v43 = vld [vmem:[%s15625_s2 + $0x700] sm:$0xff]  ;;  %v5727_v42 = vld [vmem:[%s15625_s2 + $0x708] sm:$0xff] }
 0x388   : > { %6273 = vmatmul.mubr.f32.gmra.mrb[62].mxu1 %v14567_v39  ;;  %v5718_v39 = vld [vmem:[%s15625_s2 + $0x6c0] sm:$0xff]  ;;  %v8835_v3 = vpack.c.bf16 %v5723_v59, %v5722_v45  ;;  %v8837_v38 = vpack.c.bf16 %v5707_v12, %v5706_v34  ;;  %v8839_v48 = vpack.c.bf16 %v5725_v55, %v5724_v28  ;;  %v8841_v10 = vpack.c.bf16 %v5709_v54, %v5708_v53  ;;  %v5744_v29 = vld [vmem:[%s15625_s2 + $0x790] sm:$0xff]  ;;  %v5745_v16 = vld [vmem:[%s15625_s2 + $0x798] sm:$0xff] }
 0x389   : > { %8818 = vmatpush3.bf16.msra.mxu1 %v8817_v13  ;;  %6342 = vmatprep.mubr.f32.mxu1 %v14605_v27  ;;  %v8825_v27 = vpack.c.bf16 %v5701_v2, %v5700_v4  ;;  %v8827_v44 = vpack.c.bf16 %v5719_v25, %v5718_v39  ;;  %v8843_v20 = vpack.c.bf16 %v5743_v31, %v5742_v6  ;;  %v5728_v40 = vld [vmem:[%s15625_s2 + $0x710] sm:$0xff]  ;;  %v5729_v15 = vld [vmem:[%s15625_s2 + $0x718] sm:$0xff]  ;;  %v5746_v13 = vld [vmem:[%s15625_s2 + $0x7a0] sm:$0xff] }
 0x38a   : > { %8820 = vmatprep.subr.bf16.mxu1 %v8819_v52  ;;  %v8845_v14 = vpack.c.bf16 %v5727_v42, %v5726_v43  ;;  %v8847_v41 = vpack.c.bf16 %v5745_v16, %v5744_v29  ;;  %v5747_v19 = vld [vmem:[%s15625_s2 + $0x7a8] sm:$0xff]  ;;  %v8849_v52 = vpack.c.bf16 %v5729_v15, %v5728_v40  ;;  %v5730_v61 = vld [vmem:[%s15625_s2 + $0x720] sm:$0xff]  ;;  %v5748_v51 = vld [vmem:[%s15625_s2 + $0x7b0] sm:$0xff] }
 0x38b   : > { %v8851_v18 = vpack.c.bf16 %v5747_v19, %v5746_v13  ;;  %v5731_v35 = vld [vmem:[%s15625_s2 + $0x728] sm:$0xff]  ;;  %v5732_v50 = vld [vmem:[%s15625_s2 + $0x730] sm:$0xff]  ;;  %v5734_v25 = vld [vmem:[%s15625_s2 + $0x740] sm:$0xff] }
 0x38c   : > { %v5752_v9 = vld [vmem:[%s15625_s2 + $0x7d0] sm:$0xff]  ;;  %v5753_v7 = vld [vmem:[%s15625_s2 + $0x7d8] sm:$0xff]  ;;  %v5754_v36 = vld [vmem:[%s15625_s2 + $0x7e0] sm:$0xff] }
 0x38d   : > { %8822 = vmatpush3.bf16.msra.mxu1 %v8821_v11  ;;  %v5733_v11 = vld [vmem:[%s15625_s2 + $0x738] sm:$0xff]  ;;  %v8863_v23 = vpack.c.bf16 %v5753_v7, %v5752_v9  ;;  %v5755_v33 = vld [vmem:[%s15625_s2 + $0x7e8] sm:$0xff]  ;;  %v5756_v34 = vld [vmem:[%s15625_s2 + $0x7f0] sm:$0xff] }
 0x38e   : > { %8824 = vmatprep.subr.bf16.mxu1 %v8823_v21  ;;  %v5750_v21 = vld [vmem:[%s15625_s2 + $0x7c0] sm:$0xff]  ;;  %v8857_v4 = vpack.c.bf16 %v5733_v11, %v5732_v50  ;;  %v8867_v59 = vpack.c.bf16 %v5755_v33, %v5754_v36  ;;  %v5757_v12 = vld [vmem:[%s15625_s2 + $0x7f8] sm:$0xff]  ;;  %v5775_v54 = vld [vmem:[%s15625_s2 + $0x888] sm:$0xff] }
 0x38f   : > { %v8871_v55 = vpack.c.bf16 %v5757_v12, %v5756_v34  ;;  %v5774_v53 = vld [vmem:[%s15625_s2 + $0x880] sm:$0xff]  ;;  %v5776_v43 = vld [vmem:[%s15625_s2 + $0x890] sm:$0xff]  ;;  %v5777_v42 = vld [vmem:[%s15625_s2 + $0x898] sm:$0xff] }
 0x390   : > { %v8875_v31 = vpack.c.bf16 %v5775_v54, %v5774_v53  ;;  %v8879_v16 = vpack.c.bf16 %v5777_v42, %v5776_v43  ;;  %v5778_v40 = vld [vmem:[%s15625_s2 + $0x8a0] sm:$0xff]  ;;  %v5779_v15 = vld [vmem:[%s15625_s2 + $0x8a8] sm:$0xff] }
 0x391   : > { %8826 = vmatpush3.bf16.msra.mxu1 %v8825_v27  ;;  %v5735_v27 = vld [vmem:[%s15625_s2 + $0x748] sm:$0xff]  ;;  %v8883_v19 = vpack.c.bf16 %v5779_v15, %v5778_v40  ;;  %v5766_v50 = vld [vmem:[%s15625_s2 + $0x840] sm:$0xff]  ;;  %v5809_v40 = vld [vmem:[%s15625_s2 + $0x998] sm:$0xff] }
 0x392   : > { %8828 = vmatprep.subr.bf16.mxu1 %v8827_v44  ;;  %v8861_v47 = vpack.c.bf16 %v5735_v27, %v5734_v25  ;;  %v5767_v11 = vld [vmem:[%s15625_s2 + $0x848] sm:$0xff]  ;;  %v5786_v27 = vld [vmem:[%s15625_s2 + $0x8e0] sm:$0xff] }
 0x393   : > { %v5787_v9 = vld [vmem:[%s15625_s2 + $0x8e8] sm:$0xff]  ;;  %v5770_v36 = vld [vmem:[%s15625_s2 + $0x860] sm:$0xff] }
 0x394   : > { %v5771_v33 = vld [vmem:[%s15625_s2 + $0x868] sm:$0xff] }
 0x395   : > { %8830 = vmatpush3.bf16.msra.mxu1 %v8829_v0  ;;  %v5736_v0 = vld [vmem:[%s15625_s2 + $0x750] sm:$0xff] }
 0x396   : > { %8832 = vmatprep.subr.bf16.mxu1 %v8831_v46  ;;  %v5737_v46 = vld [vmem:[%s15625_s2 + $0x758] sm:$0xff] }
 0x397   : > { %v8865_v45 = vpack.c.bf16 %v5737_v46, %v5736_v0  ;;  %v15416_v0 = vld [vmem:[%s15627_s4] ss:$0 sm:$0xff]  ;;  %v8899_v46 = vpack.c.bf16 %v5787_v9, %v5786_v27  ;;  %v5819_v9 = vld [vmem:[%s15625_s2 + $0x9e8] sm:$0xff] }
 0x398   : > { %v5818_v27 = vld [vmem:[%s15625_s2 + $0x9e0] sm:$0xff]  ;;  %6594 = vrot.lane.b32.xlu1 %v15416_v0, %s9669_s26 }
 0x399   : > { %8834 = vmatpush3.bf16.msra.mxu1 %v8833_v57  ;;  %v5738_v57 = vld [vmem:[%s15625_s2 + $0x760] sm:$0xff] }
 0x39a   : > { %8836 = vmatprep.subr.bf16.mxu1 %v8835_v3  ;;  %v5739_v3 = vld [vmem:[%s15625_s2 + $0x768] sm:$0xff] }
 0x39b   : > { %v8869_v28 = vpack.c.bf16 %v5739_v3, %v5738_v57  ;;  %v5789_v57 = vld [vmem:[%s15625_s2 + $0x8f8] sm:$0xff] }
 0x39c   : > { %6699 = vrot.lane.b32.xlu1 %v15416_v0, %s9670_s6 }
 0x39d   : > { %8838 = vmatpush3.bf16.msra.mxu1 %v8837_v38  ;;  %v5740_v38 = vld [vmem:[%s15625_s2 + $0x770] sm:$0xff] }
 0x39e   : > { %8840 = vmatprep.subr.bf16.mxu1 %v8839_v48  ;;  %v5741_v48 = vld [vmem:[%s15625_s2 + $0x778] sm:$0xff] }
 0x39f   : > { %v8873_v6 = vpack.c.bf16 %v5741_v48, %v5740_v38  ;;  %v5772_v38 = vld [vmem:[%s15625_s2 + $0x870] sm:$0xff]  ;;  %v5773_v48 = vld [vmem:[%s15625_s2 + $0x878] sm:$0xff] }
 0x3a0   : > { %v8905_v43 = vpack.c.bf16 %v5773_v48, %v5772_v38 }
 0x3a1   : > { %8842 = vmatpush3.bf16.msra.mxu1 %v8841_v10  ;;  %v5758_v10 = vld [vmem:[%s15625_s2 + $0x800] sm:$0xff] }
 0x3a2   : > { %8844 = vmatprep.subr.bf16.mxu1 %v8843_v20  ;;  %v5759_v20 = vld [vmem:[%s15625_s2 + $0x808] sm:$0xff] }
 0x3a3   : > { %v8877_v29 = vpack.c.bf16 %v5759_v20, %v5758_v10 }
 0x3a4   : > { %6343 = vmatmul.mubr.f32.vlgmr.msra.gmra.mrb[64].mxu1 %v14662_v24  ;;  %v5749_v24 = vld [vmem:[%s15625_s2 + $0x7b8] sm:$0xff] }
 0x3a5   : > { %6347 = vmatprep.mubr.f32.mxu1 %v14701_v5  ;;  %8846 = vmatpush3.bf16.msra.mxu1 %v8845_v14  ;;  %v8853_v5 = vpack.c.bf16 %v5731_v35, %v5730_v61  ;;  %v8855_v60 = vpack.c.bf16 %v5749_v24, %v5748_v51  ;;  %v5760_v14 = vld [vmem:[%s15625_s2 + $0x810] sm:$0xff]  ;;  %v5765_v24 = vld [vmem:[%s15625_s2 + $0x838] sm:$0xff] }
 0x3a6   : > { %8848 = vmatprep.subr.bf16.mxu1 %v8847_v41  ;;  %v5761_v41 = vld [vmem:[%s15625_s2 + $0x818] sm:$0xff]  ;;  %v5780_v61 = vld [vmem:[%s15625_s2 + $0x8b0] sm:$0xff] }
 0x3a7   : > { %v8881_v13 = vpack.c.bf16 %v5761_v41, %v5760_v14  ;;  %v5764_v51 = vld [vmem:[%s15625_s2 + $0x830] sm:$0xff] }
 0x3a8   : > { %6348 = vmatmul.mubr.f32.gmra.mrb[66].mxu1 %v14770_v22  ;;  %v5751_v22 = vld [vmem:[%s15625_s2 + $0x7c8] sm:$0xff]  ;;  %v5808_v41 = vld [vmem:[%s15625_s2 + $0x990] sm:$0xff] }
 0x3a9   : > { %8850 = vmatpush3.bf16.msra.mxu1 %v8849_v52  ;;  %6417 = vmatprep.mubr.f32.mxu1 %v14814_v8  ;;  %v7693_v8 = vpop.f32.mrb[40].mxu1  ;;  %v8859_v39 = vpack.c.bf16 %v5751_v22, %v5750_v21  ;;  %v5762_v52 = vld [vmem:[%s15625_s2 + $0x820] sm:$0xff]  ;;  %v5784_v21 = vld [vmem:[%s15625_s2 + $0x8d0] sm:$0xff]  ;;  %v5785_v22 = vld [vmem:[%s15625_s2 + $0x8d8] sm:$0xff] }
 0x3aa   : > { %8852 = vmatprep.subr.bf16.mxu1 %v8851_v18  ;;  %v7694_v2 = vpop.f32.mrb[41].mxu1  ;;  %v5763_v18 = vld [vmem:[%s15625_s2 + $0x828] sm:$0xff] }
 0x3ab   : > { %v15293_v44 = vadd.f32 %v7694_v2, %v7693_v8  ;;  %v8893_v8 = vpack.c.bf16 %v5767_v11, %v5766_v50  ;;  %v5768_v2 = vld [vmem:[%s15625_s2 + $0x850] sm:$0xff]  ;;  %v5798_v11 = vld [vmem:[%s15625_s2 + $0x940] sm:$0xff] }
 0x3ad   : > { %8854 = vmatpush3.bf16.msra.mxu1 %v8853_v5  ;;  %v5782_v5 = vld [vmem:[%s15625_s2 + $0x8c0] sm:$0xff]  ;;  %v5895_v34 = vadd.f32 %v15293_v44, %v15416_v0 }
 0x3ae   : > { %8856 = vmatprep.subr.bf16.mxu1 %v8855_v60  ;;  %v5806_v44 = vld [vmem:[%s15625_s2 + $0x980] sm:$0xff] }
 0x3b1   : > { %8858 = vmatpush3.bf16.msra.mxu1 %v8857_v4  ;;  %v8895_v4 = vpack.c.bf16 %v5785_v22, %v5784_v21  ;;  %v5799_v21 = vld [vmem:[%s15625_s2 + $0x948] sm:$0xff]  ;;  %v5816_v22 = vld [vmem:[%s15625_s2 + $0x9d0] sm:$0xff] }
 0x3b2   : > { %8860 = vmatprep.subr.bf16.mxu1 %v8859_v39  ;;  %v5769_v39 = vld [vmem:[%s15625_s2 + $0x858] sm:$0xff] }
 0x3b5   : > { %8862 = vmatpush3.bf16.msra.mxu1 %v8861_v47 }
 0x3b6   : > { %8864 = vmatprep.subr.bf16.mxu1 %v8863_v23  ;;  %v8897_v23 = vpack.c.bf16 %v5769_v39, %v5768_v2  ;;  %v5800_v39 = vld [vmem:[%s15625_s2 + $0x950] sm:$0xff] }
 0x3b9   : > { %8866 = vmatpush3.bf16.msra.mxu1 %v8865_v45 }
 0x3ba   : > { %8868 = vmatprep.subr.bf16.mxu1 %v8867_v59  ;;  %v5788_v59 = vld [vmem:[%s15625_s2 + $0x8f0] sm:$0xff] }
 0x3bd   : > { %8870 = vmatpush3.bf16.msra.mxu1 %v8869_v28  ;;  %v8901_v28 = vpack.c.bf16 %v5771_v33, %v5770_v36  ;;  %v5820_v33 = vld [vmem:[%s15625_s2 + $0x9f0] sm:$0xff] }
 0x3be   : > { %8872 = vmatprep.subr.bf16.mxu1 %v8871_v55  ;;  %v8903_v55 = vpack.c.bf16 %v5789_v57, %v5788_v59 }
 0x3c1   : > { %8874 = vmatpush3.bf16.msra.mxu1 %v8873_v6  ;;  %v5807_v6 = vld [vmem:[%s15625_s2 + $0x988] sm:$0xff] }
 0x3c2   : > { %8876 = vmatprep.subr.bf16.mxu1 %v8875_v31  ;;  %v8907_v42 = vpack.c.bf16 %v5807_v6, %v5806_v44 }
 0x3c4   : > { %6418 = vmatmul.mubr.f32.vlgmr.msra.gmra.mrb[68].mxu1 %v14845_v17  ;;  %v5781_v17 = vld [vmem:[%s15625_s2 + $0x8b8] sm:$0xff] }
 0x3c5   : > { %6422 = vmatprep.mubr.f32.mxu1 %v14865_v32  ;;  %8878 = vmatpush3.bf16.msra.mxu1 %v8877_v29  ;;  %v8885_v32 = vpack.c.bf16 %v5763_v18, %v5762_v52  ;;  %v8887_v35 = vpack.c.bf16 %v5781_v17, %v5780_v61  ;;  %v5790_v29 = vld [vmem:[%s15625_s2 + $0x900] sm:$0xff]  ;;  %v5793_v52 = vld [vmem:[%s15625_s2 + $0x918] sm:$0xff]  ;;  %v5811_v61 = vld [vmem:[%s15625_s2 + $0x9a8] sm:$0xff] }
 0x3c6   : > { %8880 = vmatprep.subr.bf16.mxu1 %v8879_v16  ;;  %v5791_v16 = vld [vmem:[%s15625_s2 + $0x908] sm:$0xff]  ;;  %v5810_v18 = vld [vmem:[%s15625_s2 + $0x9a0] sm:$0xff] }
 0x3c7   : > { %v8909_v15 = vpack.c.bf16 %v5791_v16, %v5790_v29 }
 0x3c8   : > { %6423 = vmatmul.mubr.f32.gmra.mrb[70].mxu1 %v14909_v37  ;;  %v5783_v37 = vld [vmem:[%s15625_s2 + $0x8c8] sm:$0xff] }
 0x3c9   : > { %8882 = vmatpush3.bf16.msra.mxu1 %v8881_v13  ;;  %6492 = vmatprep.mubr.f32.mxu1 %v14957_v49  ;;  %v8889_v49 = vpack.c.bf16 %v5765_v24, %v5764_v51  ;;  %v8891_v60 = vpack.c.bf16 %v5783_v37, %v5782_v5  ;;  %v8911_v13 = vpack.c.bf16 %v5809_v40, %v5808_v41  ;;  %v5795_v51 = vld [vmem:[%s15625_s2 + $0x928] sm:$0xff]  ;;  %v5812_v24 = vld [vmem:[%s15625_s2 + $0x9b0] sm:$0xff] }
 0x3ca   : > { %8884 = vmatprep.subr.bf16.mxu1 %v8883_v19  ;;  %v5792_v19 = vld [vmem:[%s15625_s2 + $0x910] sm:$0xff] }
 0x3cb   : > { %v8913_v17 = vpack.c.bf16 %v5793_v52, %v5792_v19  ;;  %v5796_v37 = vld [vmem:[%s15625_s2 + $0x930] sm:$0xff] }
 0x3cd   : > { %8886 = vmatpush3.bf16.msra.mxu1 %v8885_v32  ;;  %v7696_v25 = vpop.f32.mrb[42].mxu1  ;;  %v8915_v32 = vpack.c.bf16 %v5811_v61, %v5810_v18 }
 0x3ce   : > { %8888 = vmatprep.subr.bf16.mxu1 %v8887_v35  ;;  %v7697_v7 = vpop.f32.mrb[43].mxu1  ;;  %v5794_v35 = vld [vmem:[%s15625_s2 + $0x920] sm:$0xff] }
 0x3cf   : > { %v7698_v47 = vadd.f32 %v7697_v7, %v7696_v25  ;;  %v5801_v25 = vld [vmem:[%s15625_s2 + $0x958] sm:$0xff] }
 0x3d0   : > { %v8929_v7 = vpack.c.bf16 %v5801_v25, %v5800_v39 }
 0x3d1   : > { %8890 = vmatpush3.bf16.msra.mxu1 %v8889_v49  ;;  %v7731_v45 = vpop.f32.mrb[44].mxu1  ;;  %v5900_v10 = vadd.f32 %v7698_v47, %v15416_v0  ;;  %v5797_v49 = vld [vmem:[%s15625_s2 + $0x938] sm:$0xff]  ;;  %v8931_v47 = vpack.c.bf16 %v5819_v9, %v5818_v27 }
 0x3d2   : > { %8892 = vmatprep.subr.bf16.mxu1 %v8891_v60  ;;  %v7732_v3 = vpop.f32.mrb[45].mxu1  ;;  %v5814_v60 = vld [vmem:[%s15625_s2 + $0x9c0] sm:$0xff] }
 0x3d3   : > { %v7733_v12 = vadd.f32 %v7732_v3, %v7731_v45  ;;  %v5821_v45 = vld [vmem:[%s15625_s2 + $0x9f8] sm:$0xff] }
 0x3d5   : > { %8894 = vmatpush3.bf16.msra.mxu1 %v8893_v8  ;;  %v15438_v53 = vadd.f32 %v7733_v12, %v5895_v34  ;;  %v7734_v54 = vpop.f32.mrb[46].mxu1  ;;  %v5817_v8 = vld [vmem:[%s15625_s2 + $0x9d8] sm:$0xff]  ;;  %v8935_v34 = vpack.c.bf16 %v5821_v45, %v5820_v33  ;;  %v5804_v12 = vld [vmem:[%s15625_s2 + $0x970] sm:$0xff] }
 0x3d6   : > { %8896 = vmatprep.subr.bf16.mxu1 %v8895_v4  ;;  %v7735_v31 = vpop.f32.mrb[47].mxu1  ;;  %v8925_v4 = vpack.c.bf16 %v5799_v21, %v5798_v11  ;;  %v8927_v2 = vpack.c.bf16 %v5817_v8, %v5816_v22 }
 0x3d7   : > { %v7736_v20 = vadd.f32 %v7735_v31, %v7734_v54 }
 0x3d9   : > { %8898 = vmatpush3.bf16.msra.mxu1 %v8897_v23  ;;  %v15453_v14 = vadd.f32 %v7736_v20, %v5900_v10  ;;  %v5802_v23 = vld [vmem:[%s15625_s2 + $0x960] sm:$0xff] }
 0x3da   : > { %8900 = vmatprep.subr.bf16.mxu1 %v8899_v46  ;;  %v5803_v46 = vld [vmem:[%s15625_s2 + $0x968] sm:$0xff] }
 0x3db   : > { %v8933_v3 = vpack.c.bf16 %v5803_v46, %v5802_v23 }
 0x3dd   : > { %8902 = vmatpush3.bf16.msra.mxu1 %v8901_v28  ;;  %v5805_v28 = vld [vmem:[%s15625_s2 + $0x978] sm:$0xff] }
 0x3de   : > { %8904 = vmatprep.subr.bf16.mxu1 %v8903_v55  ;;  %v8937_v44 = vpack.c.bf16 %v5805_v28, %v5804_v12 }
 0x3e1   : > { %8906 = vmatpush3.bf16.msra.mxu1 %v8905_v43 }
 0x3e2   : > { %8908 = vmatprep.subr.bf16.mxu1 %v8907_v42 }
 0x3e4   : > { %6493 = vmatmul.mubr.f32.vlgmr.msra.gmra.mrb[72].mxu1 %v14994_v62  ;;  %v5813_v62 = vld [vmem:[%s15625_s2 + $0x9b8] sm:$0xff] }
 0x3e5   : > { %6497 = vmatprep.mubr.f32.mxu1 %v15029_v26  ;;  %8910 = vmatpush3.bf16.msra.mxu1 %v8909_v15  ;;  %v8917_v26 = vpack.c.bf16 %v5795_v51, %v5794_v35  ;;  %v8919_v5 = vpack.c.bf16 %v5813_v62, %v5812_v24  ;;  %v6590_v24 = vld [vmem:[%s15626_s3] sm:$0xff]  ;;  %v6591_v62 = vld [vmem:[%s15626_s3 + $0x8] sm:$0xff] }
 0x3e6   : > { %8912 = vmatprep.subr.bf16.mxu1 %v8911_v13  ;;  %v9278_v21 = vpack.i.bf16 %v6591_v62, %v6590_v24 }
 0x3e8   : > { %6498 = vmatmul.mubr.f32.gmra.mrb[74].mxu1 %v15060_v58  ;;  %v5815_v58 = vld [vmem:[%s15625_s2 + $0x9c8] sm:$0xff]  ;;  %9279 = vrot.lane.b32.xlu0 %v9278_v21, %s9669_s26 }
 0x3e9   : > { %8914 = vmatpush3.bf16.msra.mxu1 %v8913_v17  ;;  %6567 = vmatprep.mubr.f32.mxu1 %v15088_v30  ;;  %v8921_v30 = vpack.c.bf16 %v5797_v49, %v5796_v37  ;;  %v8923_v50 = vpack.c.bf16 %v5815_v58, %v5814_v60  ;;  %v6593_v37 = vld [vmem:[%s15626_s3 + $0x18] sm:$0xff] }
 0x3ea   : > { %8916 = vmatprep.subr.bf16.mxu1 %v8915_v32 }
 0x3ed   : > { %8918 = vmatpush3.bf16.msra.mxu1 %v8917_v26  ;;  %v6592_v26 = vld [vmem:[%s15626_s3 + $0x10] sm:$0xff] }
 0x3ee   : > { %8920 = vmatprep.subr.bf16.mxu1 %v8919_v5  ;;  %v8939_v5 = vpack.c.bf16 %v6591_v62, %v6590_v24  ;;  %v8943_v49 = vpack.c.bf16 %v6593_v37, %v6592_v26 }
 0x3f1   : > { %8922 = vmatpush3.bf16.msra.mxu1 %v8921_v30 }
 0x3f2   : > { %8924 = vmatprep.subr.bf16.mxu1 %v8923_v50 }
 0x3f5   : > { %8926 = vmatpush3.bf16.msra.mxu1 %v8925_v4  ;;  %v7769_v36 = vpop.f32.mrb[48].mxu1  ;;  %v9283_v4 = vpack.i.bf16 %v6593_v37, %v6592_v26 }
 0x3f6   : > { %8928 = vmatprep.subr.bf16.mxu1 %v8927_v2  ;;  %v7770_v59 = vpop.f32.mrb[49].mxu1 }
 0x3f7   : > { %v7771_v57 = vadd.f32 %v7770_v59, %v7769_v36  ;;  %9284 = vrot.lane.b32.xlu0 %v9283_v4, %s9669_s26 }
 0x3f9   : > { %8930 = vmatpush3.bf16.msra.mxu1 %v8929_v7  ;;  %v6045_v55 = vadd.f32 %v7771_v57, %v15438_v53  ;;  %v7772_v38 = vpop.f32.mrb[50].mxu1 }
 0x3fa   : > { %8932 = vmatprep.subr.bf16.mxu1 %v8931_v47  ;;  %v7773_v48 = vpop.f32.mrb[51].mxu1 }
 0x3fb   : > { %v7774_v54 = vadd.f32 %v7773_v48, %v7772_v38 }
 0x3fd   : > { %8934 = vmatpush3.bf16.msra.mxu1 %v8933_v3  ;;  %v6050_v6 = vadd.f32 %v7774_v54, %v15453_v14 }
 0x3fe   : > { %8936 = vmatprep.subr.bf16.mxu1 %v8935_v34 }
 0x401   : > { %8938 = vmatpush3.bf16.msra.mxu1 %v8937_v44 }
 0x402   : > { %8940 = vmatprep.subr.bf16.mxu1 %v8939_v5 }
 0x404   : > { %6568 = vmatmul.mubr.f32.vlgmr.msra.gmra.mrb[76].mxu1 %v15127_v56 }
 0x405   : > { %6572 = vmatprep.mubr.f32.mxu1 %v15153_v1  ;;  %8942 = vmatpush3.bf16.msra.mxu1 %v8939_v5 }
 0x406   : > { %8944 = vmatprep.subr.bf16.mxu1 %v8943_v49 }
 0x408   : > { %6573 = vmatmul.mubr.f32.gmra.mrb[78].mxu1 %v15172_v63 }
 0x409   : > { %8946 = vmatpush3.bf16.msra.mxu1 %v8943_v49 }
 0x417   : > { %v7807_v31 = vpop.f32.mrb[52].mxu1 }
 0x418   : > { %v7808_v10 = vpop.f32.mrb[53].mxu1 }
 0x419   : > { %v7809_v20 = vadd.f32 %v7808_v10, %v7807_v31 }
 0x41b   : > { %v6120_v43 = vadd.f32 %v7809_v20, %v6045_v55  ;;  %v7810_v53 = vpop.f32.mrb[54].mxu1 }
 0x41c   : > { %v7811_v42 = vpop.f32.mrb[55].mxu1 }
 0x41d   : > { %v7812_v29 = vadd.f32 %v7811_v42, %v7810_v53 }
 0x41f   : > { %v6125_v16 = vadd.f32 %v7812_v29, %v6050_v6 }
 0x437   : > { %v7845_v41 = vpop.f32.mrb[56].mxu1 }
 0x438   : > { %v7846_v40 = vpop.f32.mrb[57].mxu1 }
 0x439   : > { %v7847_v15 = vadd.f32 %v7846_v40, %v7845_v41 }
 0x43b   : > { %v6195_v13 = vadd.f32 %v7847_v15, %v6120_v43  ;;  %v7848_v14 = vpop.f32.mrb[58].mxu1 }
 0x43c   : > { %v7849_v19 = vpop.f32.mrb[59].mxu1 }
 0x43d   : > { %v7850_v52 = vadd.f32 %v7849_v19, %v7848_v14 }
 0x43f   : > { %v6200_v56 = vadd.f32 %v7850_v52, %v6125_v16 }
 0x457   : > { %v7883_v18 = vpop.f32.mrb[60].mxu1 }
 0x458   : > { %v7884_v1 = vpop.f32.mrb[61].mxu1 }
 0x459   : > { %v7885_v61 = vadd.f32 %v7884_v1, %v7883_v18  ;;  %v6595_v1 = vpop.permute.xlu1 %6594 }
 0x45a   : > { %v9280_v16 = vpop.permute.xlu0 %9279 }
 0x45b   : > { %v6270_v63 = vadd.f32 %v7885_v61, %v6195_v13  ;;  %v7886_v17 = vpop.f32.mrb[62].mxu1  ;;  %v9282_v41 = vunpack.i.h.bf16 %v9280_v16  ;;  %v9281_v40 = vunpack.i.l.bf16 %v9280_v16 }
 0x45c   : > { %v7887_v32 = vpop.f32.mrb[63].mxu1 }
 0x45d   : > { %v7888_v35 = vadd.f32 %v7887_v32, %v7886_v17  ;;  %v8947_v15 = vpack.c.bf16 %v9282_v41, %v9281_v40  ;;  %v6700_v24 = vpop.permute.xlu1 %6699 }
 0x45f   : > { %v6275_v51 = vadd.f32 %v7888_v35, %v6200_v56  ;;  %8948 = vmatprep.subr.bf16.mxu1 %v8947_v15 }
 0x469   : > { %v9285_v13 = vpop.permute.xlu0 %9284 }
 0x46a   : > { %v9287_v14 = vunpack.i.h.bf16 %v9285_v13  ;;  %v9286_v19 = vunpack.i.l.bf16 %v9285_v13 }
 0x46c   : > { %v8951_v56 = vpack.c.bf16 %v9287_v14, %v9286_v19 }
 0x477   : > { %v7921_v60 = vpop.f32.mrb[64].mxu1 }
 0x478   : > { %v7922_v58 = vpop.f32.mrb[65].mxu1 }
 0x479   : > { %v7923_v30 = vadd.f32 %v7922_v58, %v7921_v60 }
 0x47b   : > { %v6345_v50 = vadd.f32 %v7923_v30, %v6270_v63  ;;  %v7924_v11 = vpop.f32.mrb[66].mxu1 }
 0x47c   : > { %v7925_v22 = vpop.f32.mrb[67].mxu1 }
 0x47d   : > { %v7926_v8 = vadd.f32 %v7925_v22, %v7924_v11 }
 0x47f   : > { %v6350_v2 = vadd.f32 %v7926_v8, %v6275_v51 }
 0x497   : > { %v7959_v39 = vpop.f32.mrb[68].mxu1 }
 0x498   : > { %v7960_v25 = vpop.f32.mrb[69].mxu1 }
 0x499   : > { %v7961_v27 = vadd.f32 %v7960_v25, %v7959_v39 }
 0x49b   : > { %v6420_v9 = vadd.f32 %v7961_v27, %v6345_v50  ;;  %v7962_v7 = vpop.f32.mrb[70].mxu1 }
 0x49c   : > { %v7963_v47 = vpop.f32.mrb[71].mxu1 }
 0x49d   : > { %v7964_v23 = vadd.f32 %v7963_v47, %v7962_v7 }
 0x49f   : > { %v6425_v46 = vadd.f32 %v7964_v23, %v6350_v2 }
 0x4b7   : > { %v7997_v36 = vpop.f32.mrb[72].mxu1 }
 0x4b8   : > { %v7998_v33 = vpop.f32.mrb[73].mxu1 }
 0x4b9   : > { %v7999_v45 = vadd.f32 %v7998_v33, %v7997_v36 }
 0x4bb   : > { %v6495_v59 = vadd.f32 %v7999_v45, %v6420_v9  ;;  %v8000_v57 = vpop.f32.mrb[74].mxu1 }
 0x4bc   : > { %v8001_v3 = vpop.f32.mrb[75].mxu1 }
 0x4bd   : > { %v8002_v34 = vadd.f32 %v8001_v3, %v8000_v57 }
 0x4bf   : > { %v6500_v12 = vadd.f32 %v8002_v34, %v6425_v46 }
 0x4d7   : > { %v8035_v28 = vpop.f32.mrb[76].mxu1 }
 0x4d8   : > { %v8036_v55 = vpop.f32.mrb[77].mxu1 }
 0x4d9   : > { %v8037_v38 = vadd.f32 %v8036_v55, %v8035_v28 }
 0x4db   : > { %v6570_v48 = vadd.f32 %v8037_v38, %v6495_v59  ;;  %v8038_v54 = vpop.f32.mrb[78].mxu1 }
 0x4dc   : > { %v8039_v44 = vpop.f32.mrb[79].mxu1 }
 0x4dd   : > { %v7308_v6 = vmul.f32 -1.442695, %v6570_v48  ;;  %v8040_v31 = vadd.f32 %v8039_v44, %v8038_v54 }
 0x4df   : > { %9512 = vpow2.f32 %v7308_v6  ;;  %v6575_v10 = vadd.f32 %v8040_v31, %v6500_v12 }
 0x4e1   : > { %v7309_v20 = vmul.f32 -1.442695, %v6575_v10 }
 0x4e3   : > { %9514 = vpow2.f32 %v7309_v20 }
 0x4e9   : > { %v9513_v43 = vpop.eup %9512 }
 0x4ea   : > { %v6584_v53 = vadd.f32 1.0, %v9513_v43 }
 0x4ec   : > { %9516 = vrcp.f32 %v6584_v53 }
 0x4ed   : > { %v9515_v42 = vpop.eup %9514 }
 0x4ee   : > { %v6585_v29 = vadd.f32 1.0, %v9515_v42 }
 0x4f0   : > { %9518 = vrcp.f32 %v6585_v29 }
 0x4f6   : > { %v9517_v52 = vpop.eup %9516 }
 0x4f7   : > { %8573 = vmatprep.mubr.msk.f32.mxu1 %vm6597_vm0, %v9517_v52 }
 0x4fa   : > { %v9519_v18 = vpop.eup %9518 }
 0x4fb   : > { %8574 = vmatmul.mubr.msk.f32.vlgmr.msra.gmra.mrb[80].mxu1 %vm6597_vm0, %v9519_v18 }
 0x4fc   : > { %8950 = vmatpush3.bf16.msra.mxu1 %v8947_v15 }
 0x4fd   : > { %8952 = vmatprep.subr.bf16.mxu1 %v8951_v56 }
 0x500   : > { %8954 = vmatpush3.bf16.msra.mxu1 %v8951_v56 }
 0x5ce   : > { %v8575_v61 = vpop.f32.mrb[80].mxu1 }
 0x5cf   : > { %v6676_v63 = vadd.f32 %v8575_v61, %v6595_v1  ;;  %v6670_v17 = vpop.f32.mrb[81].mxu1 }
 0x5d0   : > { %v6671_v32 = vadd.f32 %v6670_v17, %v6595_v1 }
 0x5d1   : > { %v7313_v51 = vclamps-f32 %v6676_v63, 3.0 }
 0x5d2   : > { %v7312_v35 = vclamps-f32 %v6671_v32, 3.0 }
 0x5d4   : > { %8584 = vmatprep.mubr.msk.f32.mxu1 %vm6597_vm0, %v7312_v35 }
 0x5d5   : > { %8585 = vmatmul.mubr.msk.f32.vlgmr.msra.gmra.mrb[82].mxu1 %vm6597_vm0, %v7313_v51 }
 0x6a8   : > { %v8586_v62 = vpop.f32.mrb[82].mxu1 }
 0x6a9   : > { %v6780_v26 = vadd.f32 %v8586_v62, %v6700_v24  ;;  %v6774_v5 = vpop.f32.mrb[83].mxu1 }
 0x6aa   : > { %v6775_v37 = vadd.f32 %v6774_v5, %v6700_v24 }
 0x6ab   : > { %v7317_v49 = vclamps-f32 %v6780_v26, 3.0  ;;  %v6784_v60 = vmax.f32 %v6780_v26, 0.0 }
 0x6ac   : > { %v7316_v0 = vclamps-f32 %v6775_v37, 3.0  ;;  %v6783_v58 = vmax.f32 %v6775_v37, 0.0 }
 0x6ad   : > { %6793 = vrot.lane.b32.xlu1 %v7317_v49, %s9669_s26  ;;  %v6800_v30 = vsub.f32 1.0, %v6784_v60 }
 0x6ae   : > { %6791 = vrot.lane.b32.xlu0 %v7316_v0, %s9669_s26  ;;  %v6799_v50 = vsub.f32 1.0, %v6783_v58 }
 0x6af   : > { %v6802_v22 = vmul.f32 %v7313_v51, %v6800_v30 }
 0x6b0   : > { %v6801_v2 = vmul.f32 %v7312_v35, %v6799_v50 }
 0x71f   : > { %v6794_v11 = vpop.permute.xlu1 %6793 }
 0x720   : > { %v6798_v21 = vmul.f32 %v6794_v11, %v6784_v60  ;;  %v6792_v8 = vpop.permute.xlu0 %6791 }
 0x721   : > { %v6797_v4 = vmul.f32 %v6792_v8, %v6783_v58 }
 0x722   : > { %v6804_v39 = vadd.f32 %v6802_v22, %v6798_v21 }
 0x723   : > { %v6803_v25 = vadd.f32 %v6801_v2, %v6797_v4 }
 0x724   : > { %6806 = vst.msk [vmem:[%s220_s9 + $0x8] sm:$0xff] %vm6597_vm0, %v6804_v39 }
 0x725   : > { %6805 = vst.msk [vmem:[%s220_s9] sm:$0xff] %vm6597_vm0, %v6803_v25 }
 0x726   : > { %9618 = shalt.err (!%p9615_p3)
}
 0x727   : > { %s9619_s30 = scalar_lea.hbm %s15576_s14, 256  ;;  %s9623_s6 = scalar_lea.hbm %s15628_s5, 512 }
 0x728   : > { %p9620_p4 = scmp.ne.s32.totalorder %s15576_s14, %s9619_s30  ;;  %p9624_p9 = scmp.lt.u32.totalorder %s15576_s14, %s15628_s5 }
 0x729   : > { %p9625_p10 = scmp.lt.u32.totalorder %s9623_s6, %s9619_s30  ;;  %p9627_p12 = scmp.lt.u32.totalorder %s9619_s30, %s15576_s14 }
 0x72a   : > { %p9621_p7 = pnand %p9620_p4, %p9742_p5 }
 0x72b   : > { %p9626_p11 = por %p9625_p10, %p9624_p9 }
 0x72c   : > { %p9622_p8 = pneg %p9621_p7 }
 0x72d   : > { %p9628_p13 = por %p9627_p12, %p9626_p11 }
 0x72f   : > { %p9629_p0 = pnand %p9628_p13, %p9622_p8 }
 0x731   : > { %9632 = shalt.err (!%p9629_p0)
}
 0x732   : > { %s9672_s9 = smov 128   ;;  %s9673_s11 = smov 8  }
 0x733   : > { %9235 = dma.vmem_to_hbm [thread:$0]  (%p9742_p5), %s15578_s10, 256, %s15576_s14, %s15582_s22, %s9672_s9, %s9672_s9, %s9673_s11  }
 0x734 PF: > { %p9241_p1 = scmp.ge.s32.totalorder %s9667_s21, 2  ;;  %s6836_s12 = sand.u32 1, %s9655_s18  }
 0x735   : > { %s6837_s13 = scalar_lea.sflag [#allocation3], %s6836_s12 }
 0x736   : > { %p9238_p2 = pnand %p9241_p1, %p9746_p6 }
 0x738   : > { %9650 = dma.done.wait (!%p9238_p2), %s6837_s13, 256  }
 0x739   : > { %9652 = vsyncadd (!%p9238_p2), %s6837_s13, 4294967040  ;;  %p15_p3 = scmp.ge.s32.totalorder %s9729_s24, 4   ;;  %s17039_s18 = smov %s9659_s19 }
 0x73a   : > { %s17040_s19 = smov %s9663_s20  ;;  %s17041_s20 = smov %s9740_s27 }
 0x73b   : > { %s17042_s21 = smov %s9729_s24  ;;  %17 = sbr.rel (!%p15_p3) target bundleno = 3 (0x3), region = 75 }
 0x742   :  { %6842 = vsyncpa [#allocation3], 1 }
 0x743   :  { %6844 = vsyncpa [#allocation3 + $0x1], 1 }

</bundles_post_ra>
